<compile_context>
chip_gen: v7x
topology: tpu7x:2x2x1
jax: 0.10.0
libtpu: 0.0.40
codegen_flags: <defaults>
</compile_context>

<pallas_src>
import jax
import jax.numpy as jnp
from jax.experimental import pallas as pl
from jax.experimental.pallas import tpu as pltpu

N_LAYERS = 10  # enc1..enc5, dec5..dec1
LAYER_NAMES = (
    "enc1", "enc2", "enc3", "enc4", "enc5",
    "dec5", "dec4", "dec3", "dec2", "dec1",
)


def _autoencoder_fused_kernel(x_ref, *refs):
    """refs = (w1, b1, ..., w10, b10, recon_ref, latent_ref).

    Weights are (K, N) bf16 (pre-transposed), biases (1, N) f32.
    """
    wb = refs[: 2 * N_LAYERS]
    recon_ref = refs[2 * N_LAYERS]
    latent_ref = refs[2 * N_LAYERS + 1]

    def layer(h, idx, apply_tanh):
        w = wb[2 * idx][...]
        b = wb[2 * idx + 1][...]
        y = jnp.dot(h.astype(w.dtype), w, preferred_element_type=jnp.float32) + b
        return jnp.tanh(y) if apply_tanh else y

    # dropout -> identity (eval mode)
    h = x_ref[...].astype(jnp.float32)

    # encoder1..encoder5 (all tanh); encoder5 output is the latent.
    for i in range(5):
        h = layer(h, i, apply_tanh=True)
    latent_ref[...] = h.astype(latent_ref.dtype)

    # decoder5..decoder2 (tanh), decoder1 (no activation).
    for i in range(5, 9):
        h = layer(h, i, apply_tanh=True)
    recon_ref[...] = layer(h, 9, apply_tanh=False).astype(recon_ref.dtype)


def autoencoder_forward(params, x):
    """Fused Pallas forward of AutoEncoder (layer='origin', eval mode).

    Returns (reconstruction, latent), matching the PyTorch forward's (x, latent).
    """
    flat = []
    for name in LAYER_NAMES:
        w, b = params[name]
        flat += [w, b]

    B = x.shape[0]
    F0 = params["dec1"][0].shape[1]   # output width of decoder1 (== fea_orig)
    F5 = params["enc5"][0].shape[1]   # latent width (== fea5)

    vmem_spec = pl.BlockSpec(memory_space=pltpu.MemorySpace.VMEM)

    recon, latent = pl.pallas_call(
        _autoencoder_fused_kernel,
        out_shape=(
            jax.ShapeDtypeStruct((B, F0), jnp.float32),
            jax.ShapeDtypeStruct((B, F5), jnp.float32),
        ),
        in_specs=[vmem_spec] * (1 + 2 * N_LAYERS),
        out_specs=(vmem_spec, vmem_spec),
        compiler_params=pltpu.CompilerParams(
            # ~6 MiB of bf16 weights + small activations; 16 MiB headroom is
            # safe on every generation (v5e scoped default is 16 MiB).
            vmem_limit_bytes=16 * 1024 * 1024,
        ),
    )(x, *flat)
    return recon, latent


def init_linear_params(key, fan_in, fan_out):
    """PyTorch-style uniform(-1/sqrt(fan_in), 1/sqrt(fan_in)) init.

    Weight is returned transposed to (fan_in, fan_out) and cast to bf16;
    bias stays f32 (shape (1, fan_out) for clean broadcasting in-kernel).
    """
    kw, kb = jax.random.split(key)
    bound = 1.0 / (float(fan_in) ** 0.5)
    w = jax.random.uniform(kw, (fan_in, fan_out), jnp.float32, -bound, bound)
    b = jax.random.uniform(kb, (1, fan_out), jnp.float32, -bound, bound)
    return w.astype(jnp.bfloat16), b


def make_autoencoder_params(key, feats):
    """feats = [F0, F1, F2, F3, F4, F5] for layer='origin'."""
    params = {}
    keys = jax.random.split(key, 10)
    # encoders 1..5: F(i) -> F(i+1)
    for i in range(5):
        params[f"enc{i + 1}"] = init_linear_params(keys[i], feats[i], feats[i + 1])
    # decoders 5..1: F(i) -> F(i-1)
    for i in range(5):
        params[f"dec{5 - i}"] = init_linear_params(
            keys[5 + i], feats[5 - i], feats[4 - i]
        )
    return params


def autoencoder_forward_ref(params, x):
    """Pure-JAX reference (same bf16-weight math) for correctness checking."""

    def layer(h, name, tanh):
        w, b = params[name]
        y = jnp.dot(h.astype(w.dtype), w, preferred_element_type=jnp.float32) + b
        return jnp.tanh(y) if tanh else y

    h = x.astype(jnp.float32)
    for name in ("enc1", "enc2", "enc3", "enc4", "enc5"):
        h = layer(h, name, True)
    latent = h
    for name in ("dec5", "dec4", "dec3", "dec2"):
        h = layer(h, name, True)
    return layer(h, "dec1", False), latent


if __name__ == "__main__":
    # Scaled-down feature sizes (original: 9900, 7700, 5500, 2930, 900, 200).
    feats = [1024, 768, 512, 384, 256, 128]
    batch = 8

    key = jax.random.PRNGKey(0)
    kp, kx = jax.random.split(key)
    params = make_autoencoder_params(kp, feats)
    x = jax.random.normal(kx, (batch, feats[0]), jnp.float32)

    recon, latent = autoencoder_forward(params, x)
    recon = jax.block_until_ready(recon)
    latent = jax.block_until_ready(latent)

    recon_ref, latent_ref = autoencoder_forward_ref(params, x)

    assert recon.shape == (batch, feats[0])
    assert latent.shape == (batch, feats[-1])
    assert jnp.allclose(latent, latent_ref, atol=1e-3, rtol=1e-3), (
        float(jnp.max(jnp.abs(latent - latent_ref)))
    )
    assert jnp.allclose(recon, recon_ref, atol=1e-3, rtol=1e-3), (
        float(jnp.max(jnp.abs(recon - recon_ref)))
    )

    print("KERNEL_OK")
</pallas_src>

<mosaic_0001>
module attributes {stable_mosaic.version = 11 : i64} {
  func.func @_autoencoder_fused_kernel(%arg0: memref<8x1024xf32, #tpu.memory_space<vmem>>, %arg1: memref<1024x768xbf16, #tpu.memory_space<vmem>>, %arg2: memref<1x768xf32, #tpu.memory_space<vmem>>, %arg3: memref<768x512xbf16, #tpu.memory_space<vmem>>, %arg4: memref<1x512xf32, #tpu.memory_space<vmem>>, %arg5: memref<512x384xbf16, #tpu.memory_space<vmem>>, %arg6: memref<1x384xf32, #tpu.memory_space<vmem>>, %arg7: memref<384x256xbf16, #tpu.memory_space<vmem>>, %arg8: memref<1x256xf32, #tpu.memory_space<vmem>>, %arg9: memref<256x128xbf16, #tpu.memory_space<vmem>>, %arg10: memref<1x128xf32, #tpu.memory_space<vmem>>, %arg11: memref<128x256xbf16, #tpu.memory_space<vmem>>, %arg12: memref<1x256xf32, #tpu.memory_space<vmem>>, %arg13: memref<256x384xbf16, #tpu.memory_space<vmem>>, %arg14: memref<1x384xf32, #tpu.memory_space<vmem>>, %arg15: memref<384x512xbf16, #tpu.memory_space<vmem>>, %arg16: memref<1x512xf32, #tpu.memory_space<vmem>>, %arg17: memref<512x768xbf16, #tpu.memory_space<vmem>>, %arg18: memref<1x768xf32, #tpu.memory_space<vmem>>, %arg19: memref<768x1024xbf16, #tpu.memory_space<vmem>>, %arg20: memref<1x1024xf32, #tpu.memory_space<vmem>>, %arg21: memref<8x1024xf32, #tpu.memory_space<vmem>>, %arg22: memref<8x128xf32, #tpu.memory_space<vmem>>) attributes {dimension_semantics = [], scalar_prefetch = 0 : i64, scratch_operands = 0 : i64, tpu.core_type = #tpu.core_type<tc>} {
    %c0 = arith.constant 0 : index
    %c0_0 = arith.constant 0 : index
    %0 = vector.load %arg0[%c0, %c0_0] : memref<8x1024xf32, #tpu.memory_space<vmem>>, vector<8x1024xf32>
    %c0_1 = arith.constant 0 : index
    %c0_2 = arith.constant 0 : index
    %1 = vector.load %arg1[%c0_1, %c0_2] : memref<1024x768xbf16, #tpu.memory_space<vmem>>, vector<1024x768xbf16>
    %c0_3 = arith.constant 0 : index
    %c0_4 = arith.constant 0 : index
    %2 = vector.load %arg2[%c0_3, %c0_4] : memref<1x768xf32, #tpu.memory_space<vmem>>, vector<1x768xf32>
    %3 = arith.truncf %0 : vector<8x1024xf32> to vector<8x1024xbf16>
    %cst = arith.constant dense<0.000000e+00> : vector<8x768xf32>
    %4 = tpu.matmul %3, %1, %cst {dimension_numbers = #tpu.dot_dimension_numbers<[1], [0], [0], [1], [0, 0, 1, 1], [], []>} : vector<8x1024xbf16>, vector<1024x768xbf16>, vector<8x768xf32> -> vector<8x768xf32>
    %5 = vector.broadcast %2 : vector<1x768xf32> to vector<8x768xf32>
    %6 = arith.addf %4, %5 : vector<8x768xf32>
    %7 = math.tanh %6 : vector<8x768xf32>
    %c0_5 = arith.constant 0 : index
    %c0_6 = arith.constant 0 : index
    %8 = vector.load %arg3[%c0_5, %c0_6] : memref<768x512xbf16, #tpu.memory_space<vmem>>, vector<768x512xbf16>
    %c0_7 = arith.constant 0 : index
    %c0_8 = arith.constant 0 : index
    %9 = vector.load %arg4[%c0_7, %c0_8] : memref<1x512xf32, #tpu.memory_space<vmem>>, vector<1x512xf32>
    %10 = arith.truncf %7 : vector<8x768xf32> to vector<8x768xbf16>
    %cst_9 = arith.constant dense<0.000000e+00> : vector<8x512xf32>
    %11 = tpu.matmul %10, %8, %cst_9 {dimension_numbers = #tpu.dot_dimension_numbers<[1], [0], [0], [1], [0, 0, 1, 1], [], []>} : vector<8x768xbf16>, vector<768x512xbf16>, vector<8x512xf32> -> vector<8x512xf32>
    %12 = vector.broadcast %9 : vector<1x512xf32> to vector<8x512xf32>
    %13 = arith.addf %11, %12 : vector<8x512xf32>
    %14 = math.tanh %13 : vector<8x512xf32>
    %c0_10 = arith.constant 0 : index
    %c0_11 = arith.constant 0 : index
    %15 = vector.load %arg5[%c0_10, %c0_11] : memref<512x384xbf16, #tpu.memory_space<vmem>>, vector<512x384xbf16>
    %c0_12 = arith.constant 0 : index
    %c0_13 = arith.constant 0 : index
    %16 = vector.load %arg6[%c0_12, %c0_13] : memref<1x384xf32, #tpu.memory_space<vmem>>, vector<1x384xf32>
    %17 = arith.truncf %14 : vector<8x512xf32> to vector<8x512xbf16>
    %cst_14 = arith.constant dense<0.000000e+00> : vector<8x384xf32>
    %18 = tpu.matmul %17, %15, %cst_14 {dimension_numbers = #tpu.dot_dimension_numbers<[1], [0], [0], [1], [0, 0, 1, 1], [], []>} : vector<8x512xbf16>, vector<512x384xbf16>, vector<8x384xf32> -> vector<8x384xf32>
    %19 = vector.broadcast %16 : vector<1x384xf32> to vector<8x384xf32>
    %20 = arith.addf %18, %19 : vector<8x384xf32>
    %21 = math.tanh %20 : vector<8x384xf32>
    %c0_15 = arith.constant 0 : index
    %c0_16 = arith.constant 0 : index
    %22 = vector.load %arg7[%c0_15, %c0_16] : memref<384x256xbf16, #tpu.memory_space<vmem>>, vector<384x256xbf16>
    %c0_17 = arith.constant 0 : index
    %c0_18 = arith.constant 0 : index
    %23 = vector.load %arg8[%c0_17, %c0_18] : memref<1x256xf32, #tpu.memory_space<vmem>>, vector<1x256xf32>
    %24 = arith.truncf %21 : vector<8x384xf32> to vector<8x384xbf16>
    %cst_19 = arith.constant dense<0.000000e+00> : vector<8x256xf32>
    %25 = tpu.matmul %24, %22, %cst_19 {dimension_numbers = #tpu.dot_dimension_numbers<[1], [0], [0], [1], [0, 0, 1, 1], [], []>} : vector<8x384xbf16>, vector<384x256xbf16>, vector<8x256xf32> -> vector<8x256xf32>
    %26 = vector.broadcast %23 : vector<1x256xf32> to vector<8x256xf32>
    %27 = arith.addf %25, %26 : vector<8x256xf32>
    %28 = math.tanh %27 : vector<8x256xf32>
    %c0_20 = arith.constant 0 : index
    %c0_21 = arith.constant 0 : index
    %29 = vector.load %arg9[%c0_20, %c0_21] : memref<256x128xbf16, #tpu.memory_space<vmem>>, vector<256x128xbf16>
    %c0_22 = arith.constant 0 : index
    %c0_23 = arith.constant 0 : index
    %30 = vector.load %arg10[%c0_22, %c0_23] : memref<1x128xf32, #tpu.memory_space<vmem>>, vector<1x128xf32>
    %31 = arith.truncf %28 : vector<8x256xf32> to vector<8x256xbf16>
    %cst_24 = arith.constant dense<0.000000e+00> : vector<8x128xf32>
    %32 = tpu.matmul %31, %29, %cst_24 {dimension_numbers = #tpu.dot_dimension_numbers<[1], [0], [0], [1], [0, 0, 1, 1], [], []>} : vector<8x256xbf16>, vector<256x128xbf16>, vector<8x128xf32> -> vector<8x128xf32>
    %33 = vector.broadcast %30 : vector<1x128xf32> to vector<8x128xf32>
    %34 = arith.addf %32, %33 : vector<8x128xf32>
    %35 = math.tanh %34 : vector<8x128xf32>
    %c0_25 = arith.constant 0 : index
    %c0_26 = arith.constant 0 : index
    %36 = vector.load %arg22[%c0_25, %c0_26] : memref<8x128xf32, #tpu.memory_space<vmem>>, vector<8x128xf32>
    tpu.vector_store %arg22[%c0_25, %c0_26], %35 {strides = array<i32>} : memref<8x128xf32, #tpu.memory_space<vmem>>, vector<8x128xf32>,
    %c0_27 = arith.constant 0 : index
    %c0_28 = arith.constant 0 : index
    %37 = vector.load %arg11[%c0_27, %c0_28] : memref<128x256xbf16, #tpu.memory_space<vmem>>, vector<128x256xbf16>
    %c0_29 = arith.constant 0 : index
    %c0_30 = arith.constant 0 : index
    %38 = vector.load %arg12[%c0_29, %c0_30] : memref<1x256xf32, #tpu.memory_space<vmem>>, vector<1x256xf32>
    %39 = arith.truncf %35 : vector<8x128xf32> to vector<8x128xbf16>
    %cst_31 = arith.constant dense<0.000000e+00> : vector<8x256xf32>
    %40 = tpu.matmul %39, %37, %cst_31 {dimension_numbers = #tpu.dot_dimension_numbers<[1], [0], [0], [1], [0, 0, 1, 1], [], []>} : vector<8x128xbf16>, vector<128x256xbf16>, vector<8x256xf32> -> vector<8x256xf32>
    %41 = vector.broadcast %38 : vector<1x256xf32> to vector<8x256xf32>
    %42 = arith.addf %40, %41 : vector<8x256xf32>
    %43 = math.tanh %42 : vector<8x256xf32>
    %c0_32 = arith.constant 0 : index
    %c0_33 = arith.constant 0 : index
    %44 = vector.load %arg13[%c0_32, %c0_33] : memref<256x384xbf16, #tpu.memory_space<vmem>>, vector<256x384xbf16>
    %c0_34 = arith.constant 0 : index
    %c0_35 = arith.constant 0 : index
    %45 = vector.load %arg14[%c0_34, %c0_35] : memref<1x384xf32, #tpu.memory_space<vmem>>, vector<1x384xf32>
    %46 = arith.truncf %43 : vector<8x256xf32> to vector<8x256xbf16>
    %cst_36 = arith.constant dense<0.000000e+00> : vector<8x384xf32>
    %47 = tpu.matmul %46, %44, %cst_36 {dimension_numbers = #tpu.dot_dimension_numbers<[1], [0], [0], [1], [0, 0, 1, 1], [], []>} : vector<8x256xbf16>, vector<256x384xbf16>, vector<8x384xf32> -> vector<8x384xf32>
    %48 = vector.broadcast %45 : vector<1x384xf32> to vector<8x384xf32>
    %49 = arith.addf %47, %48 : vector<8x384xf32>
    %50 = math.tanh %49 : vector<8x384xf32>
    %c0_37 = arith.constant 0 : index
    %c0_38 = arith.constant 0 : index
    %51 = vector.load %arg15[%c0_37, %c0_38] : memref<384x512xbf16, #tpu.memory_space<vmem>>, vector<384x512xbf16>
    %c0_39 = arith.constant 0 : index
    %c0_40 = arith.constant 0 : index
    %52 = vector.load %arg16[%c0_39, %c0_40] : memref<1x512xf32, #tpu.memory_space<vmem>>, vector<1x512xf32>
    %53 = arith.truncf %50 : vector<8x384xf32> to vector<8x384xbf16>
    %cst_41 = arith.constant dense<0.000000e+00> : vector<8x512xf32>
    %54 = tpu.matmul %53, %51, %cst_41 {dimension_numbers = #tpu.dot_dimension_numbers<[1], [0], [0], [1], [0, 0, 1, 1], [], []>} : vector<8x384xbf16>, vector<384x512xbf16>, vector<8x512xf32> -> vector<8x512xf32>
    %55 = vector.broadcast %52 : vector<1x512xf32> to vector<8x512xf32>
    %56 = arith.addf %54, %55 : vector<8x512xf32>
    %57 = math.tanh %56 : vector<8x512xf32>
    %c0_42 = arith.constant 0 : index
    %c0_43 = arith.constant 0 : index
    %58 = vector.load %arg17[%c0_42, %c0_43] : memref<512x768xbf16, #tpu.memory_space<vmem>>, vector<512x768xbf16>
    %c0_44 = arith.constant 0 : index
    %c0_45 = arith.constant 0 : index
    %59 = vector.load %arg18[%c0_44, %c0_45] : memref<1x768xf32, #tpu.memory_space<vmem>>, vector<1x768xf32>
    %60 = arith.truncf %57 : vector<8x512xf32> to vector<8x512xbf16>
    %cst_46 = arith.constant dense<0.000000e+00> : vector<8x768xf32>
    %61 = tpu.matmul %60, %58, %cst_46 {dimension_numbers = #tpu.dot_dimension_numbers<[1], [0], [0], [1], [0, 0, 1, 1], [], []>} : vector<8x512xbf16>, vector<512x768xbf16>, vector<8x768xf32> -> vector<8x768xf32>
    %62 = vector.broadcast %59 : vector<1x768xf32> to vector<8x768xf32>
    %63 = arith.addf %61, %62 : vector<8x768xf32>
    %64 = math.tanh %63 : vector<8x768xf32>
    %c0_47 = arith.constant 0 : index
    %c0_48 = arith.constant 0 : index
    %65 = vector.load %arg19[%c0_47, %c0_48] : memref<768x1024xbf16, #tpu.memory_space<vmem>>, vector<768x1024xbf16>
    %c0_49 = arith.constant 0 : index
    %c0_50 = arith.constant 0 : index
    %66 = vector.load %arg20[%c0_49, %c0_50] : memref<1x1024xf32, #tpu.memory_space<vmem>>, vector<1x1024xf32>
    %67 = arith.truncf %64 : vector<8x768xf32> to vector<8x768xbf16>
    %cst_51 = arith.constant dense<0.000000e+00> : vector<8x1024xf32>
    %68 = tpu.matmul %67, %65, %cst_51 {dimension_numbers = #tpu.dot_dimension_numbers<[1], [0], [0], [1], [0, 0, 1, 1], [], []>} : vector<8x768xbf16>, vector<768x1024xbf16>, vector<8x1024xf32> -> vector<8x1024xf32>
    %69 = vector.broadcast %66 : vector<1x1024xf32> to vector<8x1024xf32>
    %70 = arith.addf %68, %69 : vector<8x1024xf32>
    %c0_52 = arith.constant 0 : index
    %c0_53 = arith.constant 0 : index
    %71 = vector.load %arg21[%c0_52, %c0_53] : memref<8x1024xf32, #tpu.memory_space<vmem>>, vector<8x1024xf32>
    tpu.vector_store %arg21[%c0_52, %c0_53], %70 {strides = array<i32>} : memref<8x1024xf32, #tpu.memory_space<vmem>>, vector<8x1024xf32>,
    return
  }
}

</mosaic_0001>

<bundles_post_ra>
// kernel: tpu_custom_call.1
= control target key start
LH: loop header
LB: loop body
LE: loop exit
PB: predicated region body
PF: predicated region fallthrough
CT: control target
= control target key end

     0   :  { %s16310_s0 = inlined_call_operand.hbm [shape: f32[8,1024], index: 0, kind: input, shape index: {}]   ;;  %s16311_s1 = inlined_call_operand.hbm [shape: bf16[1024,768], index: 1, kind: input, shape index: {}]   ;;  %s16312_s2 = inlined_call_operand.hbm [shape: f32[1,768], index: 2, kind: input, shape index: {}]   ;;  %s16313_s3 = inlined_call_operand.hbm [shape: bf16[768,512], index: 3, kind: input, shape index: {}]   ;;  %s16314_s4 = inlined_call_operand.hbm [shape: f32[1,512], index: 4, kind: input, shape index: {}]   ;;  %s16315_s5 = inlined_call_operand.hbm [shape: bf16[512,384], index: 5, kind: input, shape index: {}]   ;;  %s16316_s6 = inlined_call_operand.hbm [shape: f32[1,384], index: 6, kind: input, shape index: {}]   ;;  %s16317_s7 = inlined_call_operand.hbm [shape: bf16[384,256], index: 7, kind: input, shape index: {}]   ;;  %s16318_s8 = inlined_call_operand.hbm [shape: f32[1,256], index: 8, kind: input, shape index: {}]   ;;  %s16319_s9 = inlined_call_operand.hbm [shape: bf16[256,128], index: 9, kind: input, shape index: {}]   ;;  %s16320_s10 = inlined_call_operand.hbm [shape: f32[1,128], index: 10, kind: input, shape index: {}]   ;;  %s16321_s11 = inlined_call_operand.hbm [shape: bf16[128,256], index: 11, kind: input, shape index: {}]   ;;  %s16322_s12 = inlined_call_operand.hbm [shape: f32[1,256], index: 12, kind: input, shape index: {}]   ;;  %s16323_s13 = inlined_call_operand.hbm [shape: bf16[256,384], index: 13, kind: input, shape index: {}]   ;;  %s16324_s14 = inlined_call_operand.hbm [shape: f32[1,384], index: 14, kind: input, shape index: {}]   ;;  %s16325_s15 = inlined_call_operand.hbm [shape: bf16[384,512], index: 15, kind: input, shape index: {}]   ;;  %s16326_s16 = inlined_call_operand.hbm [shape: f32[1,512], index: 16, kind: input, shape index: {}]   ;;  %s16327_s17 = inlined_call_operand.hbm [shape: bf16[512,768], index: 17, kind: input, shape index: {}]   ;;  %s16328_s18 = inlined_call_operand.hbm [shape: f32[1,768], index: 18, kind: input, shape index: {}]   ;;  %s16329_s19 = inlined_call_operand.hbm [shape: bf16[768,1024], index: 19, kind: input, shape index: {}]   ;;  %s16330_s20 = inlined_call_operand.hbm [shape: f32[1,1024], index: 20, kind: input, shape index: {}]   ;;  %s16331_s21 = inlined_call_operand.hbm [shape: f32[8,1024], index: 21, kind: output, shape index: {0}]   ;;  %s16332_s22 = inlined_call_operand.hbm [shape: f32[8,128], index: 22, kind: output, shape index: {1}]  }
   0x1   :  { %16348 = sst [smem:[#allocation51_spill]] %s16310_s0 }
   0x2   :  { %16349 = sst [smem:[#allocation52_spill]] %s16311_s1 }
   0x3   :  { %16350 = sst [smem:[#allocation53_spill]] %s16312_s2 }
   0x4   :  { %16351 = sst [smem:[#allocation54_spill]] %s16313_s3 }
   0x5   :  { %16352 = sst [smem:[#allocation55_spill]] %s16314_s4 }
   0x6   :  { %16353 = sst [smem:[#allocation56_spill]] %s16315_s5 }
   0x7   :  { %16354 = sst [smem:[#allocation57_spill]] %s16316_s6 }
   0x8   :  { %16355 = sst [smem:[#allocation58_spill]] %s16331_s21 }
   0x9   :  { %16356 = sst [smem:[#allocation59_spill]] %s16332_s22 }
   0xa   :  { %28 = vsyncpa [#allocation3], 0 }
   0xb   :  { %29 = vsyncpa [#allocation6], 0 }
   0xc   :  { %30 = vsyncpa [#allocation9], 0 }
   0xd   :  { %31 = vsyncpa [#allocation12], 0 }
   0xe   :  { %32 = vsyncpa [#allocation15], 0 }
   0xf   :  { %33 = vsyncpa [#allocation18], 0 }
  0x10   :  { %34 = vsyncpa [#allocation21], 0 }
  0x11   :  { %35 = vsyncpa [#allocation24], 0 }
  0x12   :  { %36 = vsyncpa [#allocation27], 0 }
  0x13   :  { %37 = vsyncpa [#allocation30], 0 }
  0x14   :  { %38 = vsyncpa [#allocation33], 0 }
  0x15   :  { %39 = vsyncpa [#allocation4], 0 }
  0x16   :  { %40 = vsyncpa [#allocation37], 0  ;;  %s15616_s3 = smov [#allocation5]   ;;  %s16357_s4 = sld [smem:[#allocation52_spill]] }
  0x17   :  { %s56_s28 = sshll.u32 %s15616_s3, 4  ;;  %s57_s28 = int_to_ptr.vmem [resolvable:$true] %s56_s28 }
  0x1c   :  { %s15084_s0 = scalar_lea.hbm %s16357_s4, 49152 }
  0x1d   :  { %p15085_p0 = scmp.ne.s32.totalorder %s16357_s4, %s15084_s0  ;;  %p15088_p1 = scmp.lt.u32.totalorder %s15084_s0, %s16357_s4 }
  0x1f   :  { %p15090_p2 = pnand %p15088_p1, %p15085_p0 }
  0x21   :  { %15093 = shalt.err (!%p15090_p2)
}
  0x22   :  { %s15094_s6 = scalar_lea.vmem %s57_s28, 49152  ;;  %p15099_p4 = scmp.lt.s32.totalorder %s57_s28, %s57_s28 }
  0x23   :  { %p15095_p3 = scmp.ne.s32.totalorder %s57_s28, %s15094_s6  ;;  %p15100_p5 = scmp.lt.s32.totalorder %s15094_s6, %s15094_s6 }
  0x25   :  { %p15101_p6 = por %p15100_p5, %p15099_p4 }
  0x27   :  { %p15102_p7 = pnand %p15101_p6, %p15095_p3 }
  0x29   :  { %15105 = shalt.err (!%p15102_p7)
}
  0x2a   :  { %s16342_s25 = smov 384   ;;  %s16343_s26 = smov 24  }
  0x2b   :  { %62 = dma.hbm_to_vmem [thread:$0]  %s16357_s4, 49152, %s57_s28, [#allocation6], %s16342_s25, %s16342_s25, %s16343_s26  }
  0x2c   :  { %s15619_s3 = smov [#allocation8]   ;;  %s16358_s23 = sld [smem:[#allocation54_spill]] }
  0x2d   :  { %s78_s29 = sshll.u32 %s15619_s3, 4  ;;  %s79_s29 = int_to_ptr.vmem [resolvable:$true] %s78_s29 }
  0x32   :  { %s15106_s1 = scalar_lea.hbm %s16358_s23, 24576 }
  0x33   :  { %p15107_p8 = scmp.ne.s32.totalorder %s16358_s23, %s15106_s1  ;;  %p15110_p9 = scmp.lt.u32.totalorder %s15106_s1, %s16358_s23 }
  0x35   :  { %p15112_p10 = pnand %p15110_p9, %p15107_p8 }
  0x37   :  { %15115 = shalt.err (!%p15112_p10)
}
  0x38   :  { %s15116_s22 = scalar_lea.vmem %s79_s29, 24576  ;;  %p15121_p12 = scmp.lt.s32.totalorder %s79_s29, %s79_s29 }
  0x39   :  { %p15117_p11 = scmp.ne.s32.totalorder %s79_s29, %s15116_s22  ;;  %p15122_p13 = scmp.lt.s32.totalorder %s15116_s22, %s15116_s22 }
  0x3b   :  { %p15123_p0 = por %p15122_p13, %p15121_p12 }
  0x3d   :  { %p15124_p1 = pnand %p15123_p0, %p15117_p11 }
  0x3f   :  { %15127 = shalt.err (!%p15124_p1)
}
  0x40   :  { %s16344_s28 = smov 256   ;;  %s16345_s4 = smov 16  }
  0x41   :  { %84 = dma.hbm_to_vmem [thread:$0]  %s16358_s23, 24576, %s79_s29, [#allocation9], %s16344_s28, %s16344_s28, %s16345_s4  }
  0x42   :  { %s15622_s21 = smov [#allocation11]   ;;  %s16359_s1 = sld [smem:[#allocation56_spill]] }
  0x43   :  { %s100_s3 = sshll.u32 %s15622_s21, 4  ;;  %s101_s3 = int_to_ptr.vmem [resolvable:$true] %s100_s3 }
  0x48   :  { %s15128_s5 = scalar_lea.hbm %s16359_s1, 12288 }
  0x49   :  { %p15129_p2 = scmp.ne.s32.totalorder %s16359_s1, %s15128_s5  ;;  %p15132_p3 = scmp.lt.u32.totalorder %s15128_s5, %s16359_s1 }
  0x4b   :  { %p15134_p4 = pnand %p15132_p3, %p15129_p2 }
  0x4d   :  { %15137 = shalt.err (!%p15134_p4)
}
  0x4e   :  { %s15138_s26 = scalar_lea.vmem %s101_s3, 12288  ;;  %p15143_p6 = scmp.lt.s32.totalorder %s101_s3, %s101_s3 }
  0x4f   :  { %p15139_p5 = scmp.ne.s32.totalorder %s101_s3, %s15138_s26  ;;  %p15144_p7 = scmp.lt.s32.totalorder %s15138_s26, %s15138_s26 }
  0x51   :  { %p15145_p8 = por %p15144_p7, %p15143_p6 }
  0x53   :  { %p15146_p9 = pnand %p15145_p8, %p15139_p5 }
  0x55   :  { %15149 = shalt.err (!%p15146_p9)
}
  0x56   :  { %s16346_s29 = smov 192   ;;  %s16347_s23 = smov 12  }
  0x57   :  { %106 = dma.hbm_to_vmem [thread:$0]  %s16359_s1, 12288, %s101_s3, [#allocation12], %s16346_s29, %s16346_s29, %s16347_s23  }
  0x58   :  { %s15625_s25 = smov [#allocation14]   ;;  %s15150_s5 = scalar_lea.hbm %s16317_s7, 6144 }
  0x59   :  { %s122_s21 = sshll.u32 %s15625_s25, 4  ;;  %p15151_p10 = scmp.ne.s32.totalorder %s16317_s7, %s15150_s5  ;;  %s123_s21 = int_to_ptr.vmem [resolvable:$true] %s122_s21 }
  0x5a   :  { %p15154_p11 = scmp.lt.u32.totalorder %s15150_s5, %s16317_s7 }
  0x5c   :  { %p15156_p12 = pnand %p15154_p11, %p15151_p10 }
  0x5e   :  { %15159 = shalt.err (!%p15156_p12)
}
  0x5f   :  { %s15160_s28 = scalar_lea.vmem %s123_s21, 6144  ;;  %p15165_p0 = scmp.lt.s32.totalorder %s123_s21, %s123_s21 }
  0x60   :  { %p15161_p13 = scmp.ne.s32.totalorder %s123_s21, %s15160_s28  ;;  %p15166_p1 = scmp.lt.s32.totalorder %s15160_s28, %s15160_s28 }
  0x62   :  { %p15167_p2 = por %p15166_p1, %p15165_p0 }
  0x64   :  { %p15168_p3 = pnand %p15167_p2, %p15161_p13 }
  0x66   :  { %15171 = shalt.err (!%p15168_p3)
}
  0x67   :  { %s15626_s3 = smov 128   ;;  %s15627_s1 = smov 8  }
  0x68   :  { %128 = dma.hbm_to_vmem [thread:$0]  %s16317_s7, 6144, %s123_s21, [#allocation15], %s15626_s3, %s15626_s3, %s15627_s1  }
  0x69   :  { %s15628_s25 = smov [#allocation17]   ;;  %s15172_s26 = scalar_lea.hbm %s16319_s9, 2048 }
  0x6a   :  { %s144_s30 = sshll.u32 %s15628_s25, 4  ;;  %p15173_p4 = scmp.ne.s32.totalorder %s16319_s9, %s15172_s26  ;;  %s145_s30 = int_to_ptr.vmem [resolvable:$true] %s144_s30 }
  0x6b   :  { %p15176_p5 = scmp.lt.u32.totalorder %s15172_s26, %s16319_s9 }
  0x6d   :  { %p15178_p6 = pnand %p15176_p5, %p15173_p4 }
  0x6f   :  { %15181 = shalt.err (!%p15178_p6)
}
  0x70   :  { %s15182_s4 = scalar_lea.vmem %s145_s30, 2048  ;;  %p15187_p8 = scmp.lt.s32.totalorder %s145_s30, %s145_s30 }
  0x71   :  { %p15183_p7 = scmp.ne.s32.totalorder %s145_s30, %s15182_s4  ;;  %p15188_p9 = scmp.lt.s32.totalorder %s15182_s4, %s15182_s4 }
  0x73   :  { %p15189_p10 = por %p15188_p9, %p15187_p8 }
  0x75   :  { %p15190_p11 = pnand %p15189_p10, %p15183_p7 }
  0x77   :  { %15193 = shalt.err (!%p15190_p11)
}
  0x78   :  { %s15629_s7 = smov 64   ;;  %s15630_s21 = smov 4  }
  0x79   :  { %150 = dma.hbm_to_vmem [thread:$0]  %s16319_s9, 2048, %s145_s30, [#allocation18], %s15629_s7, %s15629_s7, %s15630_s21  }
  0x7a   :  { %s15631_s25 = smov [#allocation20]   ;;  %s15632_s5 = smov [#allocation23]  }
  0x7b   :  { %s166_s0 = sshll.u32 %s15631_s25, 4  ;;  %s188_s26 = sshll.u32 %s15632_s5, 4  ;;  %s167_s0 = int_to_ptr.vmem [resolvable:$true] %s166_s0  ;;  %s189_s26 = int_to_ptr.vmem [resolvable:$true] %s188_s26 }
  0x7c   :  { %s15194_s24 = scalar_lea.hbm %s16321_s11, 2048 }
  0x7d   :  { %p15195_p12 = scmp.ne.s32.totalorder %s16321_s11, %s15194_s24  ;;  %p15198_p13 = scmp.lt.u32.totalorder %s15194_s24, %s16321_s11 }
  0x7f   :  { %p15200_p0 = pnand %p15198_p13, %p15195_p12 }
  0x81   :  { %15203 = shalt.err (!%p15200_p0)
}
  0x82   :  { %s15204_s9 = scalar_lea.vmem %s167_s0, 2048  ;;  %p15209_p2 = scmp.lt.s32.totalorder %s167_s0, %s167_s0 }
  0x83   :  { %p15205_p1 = scmp.ne.s32.totalorder %s167_s0, %s15204_s9  ;;  %p15210_p3 = scmp.lt.s32.totalorder %s15204_s9, %s15204_s9 }
  0x85   :  { %p15211_p4 = por %p15210_p3, %p15209_p2 }
  0x87   :  { %p15212_p5 = pnand %p15211_p4, %p15205_p1 }
  0x89   :  { %15215 = shalt.err (!%p15212_p5)
}
  0x8a   :  { %172 = dma.hbm_to_vmem [thread:$0]  %s16321_s11, 2048, %s167_s0, [#allocation21], %s15626_s3, %s15626_s3, %s15627_s1  }
  0x8b   :  { %s15216_s23 = scalar_lea.hbm %s16323_s13, 6144 }
  0x8c   :  { %p15217_p6 = scmp.ne.s32.totalorder %s16323_s13, %s15216_s23  ;;  %p15220_p7 = scmp.lt.u32.totalorder %s15216_s23, %s16323_s13 }
  0x8e   :  { %p15222_p8 = pnand %p15220_p7, %p15217_p6 }
  0x90   :  { %15225 = shalt.err (!%p15222_p8)
}
  0x91   :  { %s15226_s28 = scalar_lea.vmem %s189_s26, 6144  ;;  %p15231_p10 = scmp.lt.s32.totalorder %s189_s26, %s189_s26 }
  0x92   :  { %p15227_p9 = scmp.ne.s32.totalorder %s189_s26, %s15226_s28  ;;  %p15232_p11 = scmp.lt.s32.totalorder %s15226_s28, %s15226_s28 }
  0x94   :  { %p15233_p12 = por %p15232_p11, %p15231_p10 }
  0x96   :  { %p15234_p13 = pnand %p15233_p12, %p15227_p9 }
  0x98   :  { %15237 = shalt.err (!%p15234_p13)
}
  0x99   :  { %s16360_s11 = smov 12   ;;  %s16361_s3 = smov 192  }
  0x9a   :  { %194 = dma.hbm_to_vmem [thread:$0]  %s16323_s13, 6144, %s189_s26, [#allocation24], %s16361_s3, %s16361_s3, %s16360_s11  }
  0x9b   :  { %s15633_s22 = smov [#allocation26]   ;;  %s15634_s6 = smov [#allocation29]  }
  0x9c   :  { %s210_s24 = sshll.u32 %s15633_s22, 4  ;;  %s232_s4 = sshll.u32 %s15634_s6, 4  ;;  %s211_s24 = int_to_ptr.vmem [resolvable:$true] %s210_s24  ;;  %s233_s4 = int_to_ptr.vmem [resolvable:$true] %s232_s4 }
  0x9d   :  { %s15238_s7 = scalar_lea.hbm %s16325_s15, 12288 }
  0x9e   :  { %p15239_p0 = scmp.ne.s32.totalorder %s16325_s15, %s15238_s7  ;;  %p15242_p1 = scmp.lt.u32.totalorder %s15238_s7, %s16325_s15 }
  0xa0   :  { %p15244_p2 = pnand %p15242_p1, %p15239_p0 }
  0xa2   :  { %15247 = shalt.err (!%p15244_p2)
}
  0xa3   :  { %s15248_s13 = scalar_lea.vmem %s211_s24, 12288  ;;  %p15253_p4 = scmp.lt.s32.totalorder %s211_s24, %s211_s24 }
  0xa4   :  { %p15249_p3 = scmp.ne.s32.totalorder %s211_s24, %s15248_s13  ;;  %p15254_p5 = scmp.lt.s32.totalorder %s15248_s13, %s15248_s13 }
  0xa6   :  { %p15255_p6 = por %p15254_p5, %p15253_p4 }
  0xa8   :  { %p15256_p7 = pnand %p15255_p6, %p15249_p3 }
  0xaa   :  { %15259 = shalt.err (!%p15256_p7)
}
  0xab   :  { %s16362_s26 = smov 16   ;;  %s16363_s27 = smov 256  }
  0xac   :  { %216 = dma.hbm_to_vmem [thread:$0]  %s16325_s15, 12288, %s211_s24, [#allocation27], %s16363_s27, %s16363_s27, %s16362_s26  }
  0xad   :  { %s15260_s3 = scalar_lea.hbm %s16327_s17, 24576 }
  0xae   :  { %p15261_p8 = scmp.ne.s32.totalorder %s16327_s17, %s15260_s3  ;;  %p15264_p9 = scmp.lt.u32.totalorder %s15260_s3, %s16327_s17 }
  0xb0   :  { %p15266_p10 = pnand %p15264_p9, %p15261_p8 }
  0xb2   :  { %15269 = shalt.err (!%p15266_p10)
}
  0xb3   :  { %s15270_s9 = scalar_lea.vmem %s233_s4, 24576  ;;  %p15275_p12 = scmp.lt.s32.totalorder %s233_s4, %s233_s4 }
  0xb4   :  { %p15271_p11 = scmp.ne.s32.totalorder %s233_s4, %s15270_s9  ;;  %p15276_p13 = scmp.lt.s32.totalorder %s15270_s9, %s15270_s9 }
  0xb6   :  { %p15277_p0 = por %p15276_p13, %p15275_p12 }
  0xb8   :  { %p15278_p1 = pnand %p15277_p0, %p15271_p11 }
  0xba   :  { %15281 = shalt.err (!%p15278_p1)
}
  0xbb   :  { %s16364_s15 = smov 24   ;;  %s16365_s24 = smov 384  }
  0xbc   :  { %238 = dma.hbm_to_vmem [thread:$0]  %s16327_s17, 24576, %s233_s4, [#allocation30], %s16365_s24, %s16365_s24, %s16364_s15  }
  0xbd   :  { %s15635_s21 = smov [#allocation32]   ;;  %s15282_s13 = scalar_lea.hbm %s16329_s19, 49152 }
  0xbe   :  { %s254_s29 = sshll.u32 %s15635_s21, 4  ;;  %p15283_p2 = scmp.ne.s32.totalorder %s16329_s19, %s15282_s13  ;;  %s255_s29 = int_to_ptr.vmem [resolvable:$true] %s254_s29 }
  0xbf   :  { %p15286_p3 = scmp.lt.u32.totalorder %s15282_s13, %s16329_s19 }
  0xc1   :  { %p15288_p4 = pnand %p15286_p3, %p15283_p2 }
  0xc3   :  { %15291 = shalt.err (!%p15288_p4)
}
  0xc4   :  { %s15292_s28 = scalar_lea.vmem %s255_s29, 49152  ;;  %p15297_p6 = scmp.lt.s32.totalorder %s255_s29, %s255_s29 }
  0xc5   :  { %p15293_p5 = scmp.ne.s32.totalorder %s255_s29, %s15292_s28  ;;  %p15298_p7 = scmp.lt.s32.totalorder %s15292_s28, %s15292_s28 }
  0xc7   :  { %p15299_p8 = por %p15298_p7, %p15297_p6 }
  0xc9   :  { %p15300_p9 = pnand %p15299_p8, %p15293_p5 }
  0xcb   :  { %15303 = shalt.err (!%p15300_p9)
}
  0xcc   :  { %s15636_s17 = smov 512   ;;  %s15637_s4 = smov 32  }
  0xcd   :  { %260 = dma.hbm_to_vmem [thread:$0]  %s16329_s19, 49152, %s255_s29, [#allocation33], %s15636_s17, %s15636_s17, %s15637_s4  }
  0xce   :  { %s15638_s1 = smov [#allocation2]   ;;  %s15639_s22 = smov [#allocation7]  }
  0xcf   :  { %s47_s0 = sshll.u32 %s15638_s1, 4  ;;  %s69_s6 = sshll.u32 %s15639_s22, 4  ;;  %s48_s0 = int_to_ptr.vmem [resolvable:$true] %s47_s0  ;;  %s70_s6 = int_to_ptr.vmem [resolvable:$true] %s69_s6 }
  0xd0   :  { %s16366_s24 = sld [smem:[#allocation51_spill]] }
  0xd6   :  { %s15304_s30 = scalar_lea.hbm %s16366_s24, 1024 }
  0xd7   :  { %p15305_p10 = scmp.ne.s32.totalorder %s16366_s24, %s15304_s30  ;;  %p15308_p11 = scmp.lt.u32.totalorder %s15304_s30, %s16366_s24 }
  0xd9   :  { %p15310_p12 = pnand %p15308_p11, %p15305_p10 }
  0xdb   :  { %15313 = shalt.err (!%p15310_p12)
}
  0xdc   :  { %s15314_s19 = scalar_lea.vmem %s48_s0, 1024  ;;  %p15319_p0 = scmp.lt.s32.totalorder %s48_s0, %s48_s0 }
  0xdd   :  { %p15315_p13 = scmp.ne.s32.totalorder %s48_s0, %s15314_s19  ;;  %p15320_p1 = scmp.lt.s32.totalorder %s15314_s19, %s15314_s19 }
  0xdf   :  { %p15321_p2 = por %p15320_p1, %p15319_p0 }
  0xe1   :  { %p15322_p3 = pnand %p15321_p2, %p15315_p13 }
  0xe3   :  { %15325 = shalt.err (!%p15322_p3)
}
  0xe4   :  { %50 = dma.hbm_to_vmem [thread:$0]  %s16366_s24, 1024, %s48_s0, [#allocation3]  }
  0xe5   :  { %s16367_s25 = sld [smem:[#allocation53_spill]] }
  0xeb   :  { %s15326_s5 = scalar_lea.hbm %s16367_s25, 96 }
  0xec   :  { %p15327_p4 = scmp.ne.s32.totalorder %s16367_s25, %s15326_s5  ;;  %p15330_p5 = scmp.lt.u32.totalorder %s15326_s5, %s16367_s25 }
  0xee   :  { %p15332_p6 = pnand %p15330_p5, %p15327_p4 }
  0xf0   :  { %15335 = shalt.err (!%p15332_p6)
}
  0xf1   :  { %s15336_s3 = scalar_lea.vmem %s70_s6, 96  ;;  %p15341_p8 = scmp.lt.s32.totalorder %s70_s6, %s70_s6 }
  0xf2   :  { %p15337_p7 = scmp.ne.s32.totalorder %s70_s6, %s15336_s3  ;;  %p15342_p9 = scmp.lt.s32.totalorder %s15336_s3, %s15336_s3 }
  0xf4   :  { %p15343_p10 = por %p15342_p9, %p15341_p8 }
  0xf6   :  { %p15344_p11 = pnand %p15343_p10, %p15337_p7 }
  0xf8   :  { %15347 = shalt.err (!%p15344_p11)
}
  0xf9   :  { %72 = dma.hbm_to_vmem [thread:$0]  %s16367_s25, 96, %s70_s6, [#allocation6]  }
  0xfa   :  { %s15640_s22 = smov [#allocation10]   ;;  %s15641_s15 = smov [#allocation13]  }
  0xfb   :  { %s91_s9 = sshll.u32 %s15640_s22, 4  ;;  %s113_s24 = sshll.u32 %s15641_s15, 4  ;;  %s92_s9 = int_to_ptr.vmem [resolvable:$true] %s91_s9  ;;  %s114_s24 = int_to_ptr.vmem [resolvable:$true] %s113_s24 }
  0xfc   :  { %s16368_s21 = sld [smem:[#allocation55_spill]] }
 0x102   :  { %s15348_s23 = scalar_lea.hbm %s16368_s21, 64 }
 0x103   :  { %p15349_p12 = scmp.ne.s32.totalorder %s16368_s21, %s15348_s23  ;;  %p15352_p13 = scmp.lt.u32.totalorder %s15348_s23, %s16368_s21 }
 0x105   :  { %p15354_p0 = pnand %p15352_p13, %p15349_p12 }
 0x107   :  { %15357 = shalt.err (!%p15354_p0)
}
 0x108   :  { %s15358_s6 = scalar_lea.vmem %s92_s9, 64  ;;  %p15363_p2 = scmp.lt.s32.totalorder %s92_s9, %s92_s9 }
 0x109   :  { %p15359_p1 = scmp.ne.s32.totalorder %s92_s9, %s15358_s6  ;;  %p15364_p3 = scmp.lt.s32.totalorder %s15358_s6, %s15358_s6 }
 0x10b   :  { %p15365_p4 = por %p15364_p3, %p15363_p2 }
 0x10d   :  { %p15366_p5 = pnand %p15365_p4, %p15359_p1 }
 0x10f   :  { %15369 = shalt.err (!%p15366_p5)
}
 0x110   :  { %94 = dma.hbm_to_vmem [thread:$0]  %s16368_s21, 64, %s92_s9, [#allocation9]  }
 0x111   :  { %s16369_s28 = sld [smem:[#allocation57_spill]] }
 0x117   :  { %s15370_s17 = scalar_lea.hbm %s16369_s28, 48 }
 0x118   :  { %p15371_p6 = scmp.ne.s32.totalorder %s16369_s28, %s15370_s17  ;;  %p15374_p7 = scmp.lt.u32.totalorder %s15370_s17, %s16369_s28 }
 0x11a   :  { %p15376_p8 = pnand %p15374_p7, %p15371_p6 }
 0x11c   :  { %15379 = shalt.err (!%p15376_p8)
}
 0x11d   :  { %s15380_s0 = scalar_lea.vmem %s114_s24, 48  ;;  %s15384_s22 = scalar_lea.vmem %s114_s24, 64 }
 0x11e   :  { %p15381_p9 = scmp.ne.s32.totalorder %s114_s24, %s15380_s0  ;;  %p15385_p10 = scmp.lt.s32.totalorder %s114_s24, %s114_s24 }
 0x11f   :  { %p15386_p11 = scmp.lt.s32.totalorder %s15384_s22, %s15380_s0 }
 0x121   :  { %p15387_p12 = por %p15386_p11, %p15385_p10 }
 0x123   :  { %p15388_p13 = pnand %p15387_p12, %p15381_p9 }
 0x125   :  { %15391 = shalt.err (!%p15388_p13)
}
 0x126   :  { %116 = dma.hbm_to_vmem [thread:$0]  %s16369_s28, 48, %s114_s24, [#allocation12]  }
 0x127   :  { %s15642_s30 = smov [#allocation16]   ;;  %s15643_s21 = smov [#allocation19]  }
 0x128   :  { %s135_s7 = sshll.u32 %s15642_s30, 4  ;;  %s157_s23 = sshll.u32 %s15643_s21, 4  ;;  %s136_s7 = int_to_ptr.vmem [resolvable:$true] %s135_s7  ;;  %s158_s23 = int_to_ptr.vmem [resolvable:$true] %s157_s23 }
 0x129   :  { %s15392_s29 = scalar_lea.hbm %s16318_s8, 32 }
 0x12a   :  { %p15393_p0 = scmp.ne.s32.totalorder %s16318_s8, %s15392_s29  ;;  %p15396_p1 = scmp.lt.u32.totalorder %s15392_s29, %s16318_s8 }
 0x12c   :  { %p15398_p2 = pnand %p15396_p1, %p15393_p0 }
 0x12e   :  { %15401 = shalt.err (!%p15398_p2)
}
 0x12f   :  { %s15402_s24 = scalar_lea.vmem %s136_s7, 32  ;;  %p15407_p4 = scmp.lt.s32.totalorder %s136_s7, %s136_s7 }
 0x130   :  { %p15403_p3 = scmp.ne.s32.totalorder %s136_s7, %s15402_s24  ;;  %p15408_p5 = scmp.lt.s32.totalorder %s15402_s24, %s15402_s24 }
 0x132   :  { %p15409_p6 = por %p15408_p5, %p15407_p4 }
 0x134   :  { %p15410_p7 = pnand %p15409_p6, %p15403_p3 }
 0x136   :  { %15413 = shalt.err (!%p15410_p7)
}
 0x137   :  { %138 = dma.hbm_to_vmem [thread:$0]  %s16318_s8, 32, %s136_s7, [#allocation15]  }
 0x138   :  { %s15414_s4 = scalar_lea.hbm %s16320_s10, 16 }
 0x139   :  { %p15415_p8 = scmp.ne.s32.totalorder %s16320_s10, %s15414_s4  ;;  %p15418_p9 = scmp.lt.u32.totalorder %s15414_s4, %s16320_s10 }
 0x13b   :  { %p15420_p10 = pnand %p15418_p9, %p15415_p8 }
 0x13d   :  { %15423 = shalt.err (!%p15420_p10)
}
 0x13e   :  { %s15424_s22 = scalar_lea.vmem %s158_s23, 16  ;;  %s15428_s9 = scalar_lea.vmem %s158_s23, 32 }
 0x13f   :  { %p15425_p11 = scmp.ne.s32.totalorder %s158_s23, %s15424_s22  ;;  %p15429_p12 = scmp.lt.s32.totalorder %s158_s23, %s158_s23 }
 0x140   :  { %p15430_p13 = scmp.lt.s32.totalorder %s15428_s9, %s15424_s22 }
 0x142   :  { %p15431_p0 = por %p15430_p13, %p15429_p12 }
 0x144   :  { %p15432_p1 = pnand %p15431_p0, %p15425_p11 }
 0x146   :  { %15435 = shalt.err (!%p15432_p1)
}
 0x147   :  { %160 = dma.hbm_to_vmem [thread:$0]  %s16320_s10, 16, %s158_s23, [#allocation18]  }
 0x148   :  { %s15644_s30 = smov [#allocation22]   ;;  %s15645_s21 = smov [#allocation25]  }
 0x149   :  { %s179_s7 = sshll.u32 %s15644_s30, 4  ;;  %s201_s2 = sshll.u32 %s15645_s21, 4  ;;  %s180_s7 = int_to_ptr.vmem [resolvable:$true] %s179_s7  ;;  %s202_s2 = int_to_ptr.vmem [resolvable:$true] %s201_s2 }
 0x14a   :  { %s15436_s13 = scalar_lea.hbm %s16322_s12, 32 }
 0x14b   :  { %p15437_p2 = scmp.ne.s32.totalorder %s16322_s12, %s15436_s13  ;;  %p15440_p3 = scmp.lt.u32.totalorder %s15436_s13, %s16322_s12 }
 0x14d   :  { %p15442_p4 = pnand %p15440_p3, %p15437_p2 }
 0x14f   :  { %15445 = shalt.err (!%p15442_p4)
}
 0x150   :  { %s15446_s10 = scalar_lea.vmem %s180_s7, 32  ;;  %p15451_p6 = scmp.lt.s32.totalorder %s180_s7, %s180_s7 }
 0x151   :  { %p15447_p5 = scmp.ne.s32.totalorder %s180_s7, %s15446_s10  ;;  %p15452_p7 = scmp.lt.s32.totalorder %s15446_s10, %s15446_s10 }
 0x153   :  { %p15453_p8 = por %p15452_p7, %p15451_p6 }
 0x155   :  { %p15454_p9 = pnand %p15453_p8, %p15447_p5 }
 0x157   :  { %15457 = shalt.err (!%p15454_p9)
}
 0x158   :  { %182 = dma.hbm_to_vmem [thread:$0]  %s16322_s12, 32, %s180_s7, [#allocation21]  }
 0x159   :  { %s15458_s17 = scalar_lea.hbm %s16324_s14, 48 }
 0x15a   :  { %p15459_p10 = scmp.ne.s32.totalorder %s16324_s14, %s15458_s17  ;;  %p15462_p11 = scmp.lt.u32.totalorder %s15458_s17, %s16324_s14 }
 0x15c   :  { %p15464_p12 = pnand %p15462_p11, %p15459_p10 }
 0x15e   :  { %15467 = shalt.err (!%p15464_p12)
}
 0x15f   :  { %s15468_s0 = scalar_lea.vmem %s202_s2, 48  ;;  %s15472_s22 = scalar_lea.vmem %s202_s2, 64 }
 0x160   :  { %p15469_p13 = scmp.ne.s32.totalorder %s202_s2, %s15468_s0  ;;  %p15473_p0 = scmp.lt.s32.totalorder %s202_s2, %s202_s2 }
 0x161   :  { %p15474_p1 = scmp.lt.s32.totalorder %s15472_s22, %s15468_s0 }
 0x163   :  { %p15475_p2 = por %p15474_p1, %p15473_p0 }
 0x165   :  { %p15476_p3 = pnand %p15475_p2, %p15469_p13 }
 0x167   :  { %15479 = shalt.err (!%p15476_p3)
}
 0x168   :  { %204 = dma.hbm_to_vmem [thread:$0]  %s16324_s14, 48, %s202_s2, [#allocation24]  }
 0x169   :  { %s15646_s8 = smov [#allocation28]   ;;  %s15647_s30 = smov [#allocation31]  }
 0x16a   :  { %s223_s15 = sshll.u32 %s15646_s8, 4  ;;  %s245_s7 = sshll.u32 %s15647_s30, 4  ;;  %s224_s15 = int_to_ptr.vmem [resolvable:$true] %s223_s15  ;;  %s246_s7 = int_to_ptr.vmem [resolvable:$true] %s245_s7 }
 0x16b   :  { %s15480_s29 = scalar_lea.hbm %s16326_s16, 64 }
 0x16c   :  { %p15481_p4 = scmp.ne.s32.totalorder %s16326_s16, %s15480_s29  ;;  %p15484_p5 = scmp.lt.u32.totalorder %s15480_s29, %s16326_s16 }
 0x16e   :  { %p15486_p6 = pnand %p15484_p5, %p15481_p4 }
 0x170   :  { %15489 = shalt.err (!%p15486_p6)
}
 0x171   :  { %s15490_s14 = scalar_lea.vmem %s224_s15, 64  ;;  %p15495_p8 = scmp.lt.s32.totalorder %s224_s15, %s224_s15 }
 0x172   :  { %p15491_p7 = scmp.ne.s32.totalorder %s224_s15, %s15490_s14  ;;  %p15496_p9 = scmp.lt.s32.totalorder %s15490_s14, %s15490_s14 }
 0x174   :  { %p15497_p10 = por %p15496_p9, %p15495_p8 }
 0x176   :  { %p15498_p11 = pnand %p15497_p10, %p15491_p7 }
 0x178   :  { %15501 = shalt.err (!%p15498_p11)
}
 0x179   :  { %226 = dma.hbm_to_vmem [thread:$0]  %s16326_s16, 64, %s224_s15, [#allocation27]  }
 0x17a   :  { %s15502_s25 = scalar_lea.hbm %s16328_s18, 96 }
 0x17b   :  { %p15503_p12 = scmp.ne.s32.totalorder %s16328_s18, %s15502_s25  ;;  %p15506_p13 = scmp.lt.u32.totalorder %s15502_s25, %s16328_s18 }
 0x17d   :  { %p15508_p0 = pnand %p15506_p13, %p15503_p12 }
 0x17f   :  { %15511 = shalt.err (!%p15508_p0)
}
 0x180   :  { %s15512_s11 = scalar_lea.vmem %s246_s7, 96  ;;  %p15517_p2 = scmp.lt.s32.totalorder %s246_s7, %s246_s7 }
 0x181   :  { %p15513_p1 = scmp.ne.s32.totalorder %s246_s7, %s15512_s11  ;;  %p15518_p3 = scmp.lt.s32.totalorder %s15512_s11, %s15512_s11 }
 0x183   :  { %p15519_p4 = por %p15518_p3, %p15517_p2 }
 0x185   :  { %p15520_p5 = pnand %p15519_p4, %p15513_p1 }
 0x187   :  { %15523 = shalt.err (!%p15520_p5)
}
 0x188   :  { %248 = dma.hbm_to_vmem [thread:$0]  %s16328_s18, 96, %s246_s7, [#allocation30]  }
 0x189   :  { %s15648_s1 = smov [#allocation34]   ;;  %s15524_s9 = scalar_lea.hbm %s16330_s20, 128 }
 0x18a   :  { %s267_s0 = sshll.u32 %s15648_s1, 4  ;;  %p15525_p6 = scmp.ne.s32.totalorder %s16330_s20, %s15524_s9  ;;  %s268_s0 = int_to_ptr.vmem [resolvable:$true] %s267_s0 }
 0x18b   :  { %p15528_p7 = scmp.lt.u32.totalorder %s15524_s9, %s16330_s20 }
 0x18d   :  { %p15530_p8 = pnand %p15528_p7, %p15525_p6 }
 0x18f   :  { %15533 = shalt.err (!%p15530_p8)
}
 0x190   :  { %s15534_s19 = scalar_lea.vmem %s268_s0, 128  ;;  %p15539_p10 = scmp.lt.s32.totalorder %s268_s0, %s268_s0 }
 0x191   :  { %p15535_p9 = scmp.ne.s32.totalorder %s268_s0, %s15534_s19  ;;  %p15540_p11 = scmp.lt.s32.totalorder %s15534_s19, %s15534_s19 }
 0x193   :  { %p15541_p12 = por %p15540_p11, %p15539_p10 }
 0x195   :  { %p15542_p13 = pnand %p15541_p12, %p15535_p9 }
 0x197   :  { %15545 = shalt.err (!%p15542_p13)
}
 0x198   :  { %270 = dma.hbm_to_vmem [thread:$0]  %s16330_s20, 128, %s268_s0, [#allocation33]  }
 0x199   :  { %15590 = dma.done.wait [#allocation3], 1024  }
 0x19a   :  { %15591 = vsyncadd [#allocation3], 4294966272 }
 0x19b   :  { %15592 = dma.done.wait [#allocation6], 49248  }
 0x19c   :  { %15593 = vsyncadd [#allocation6], 4294918048 }
 0x19d   :  { %15594 = dma.done.wait [#allocation9], 24640  }
 0x19e   :  { %15595 = vsyncadd [#allocation9], 4294942656 }
 0x19f   :  { %15596 = dma.done.wait [#allocation12], 12336  }
 0x1a0   :  { %15597 = vsyncadd [#allocation12], 4294954960 }
 0x1a1   :  { %15598 = dma.done.wait [#allocation15], 6176  }
 0x1a2   :  { %15599 = vsyncadd [#allocation15], 4294961120 }
 0x1a3   :  { %15600 = dma.done.wait [#allocation18], 2064  }
 0x1a4   :  { %15601 = vsyncadd [#allocation18], 4294965232 }
 0x1a5   :  { %15602 = dma.done.wait [#allocation21], 2080  }
 0x1a6   :  { %15603 = vsyncadd [#allocation21], 4294965216 }
 0x1a7   :  { %15604 = dma.done.wait [#allocation24], 6192  }
 0x1a8   :  { %15605 = vsyncadd [#allocation24], 4294961104 }
 0x1a9   :  { %15606 = dma.done.wait [#allocation27], 12352  }
 0x1aa   :  { %15607 = vsyncadd [#allocation27], 4294954944 }
 0x1ab   :  { %15608 = dma.done.wait [#allocation30], 24672  }
 0x1ac   :  { %15609 = vsyncadd [#allocation30], 4294942624 }
 0x1ad   :  { %15610 = dma.done.wait [#allocation33], 49280  }
 0x1ae   :  { %15611 = vsyncadd [#allocation33], 4294918016  ;;  %v13421_v0 = vld [vmem:[#allocation5 + $0x4] ss:$24 sps:$4 sm:$0xff]   ;;  %v13425_v2 = vld [vmem:[#allocation5] ss:$24 sps:$4 sm:$0xff]  }
 0x1af   :  { %v13423_v1 = vld [vmem:[#allocation5 + $0x304] ss:$24 sps:$4 sm:$0xff]   ;;  %2687 = vmatprep.subr.bf16.mxu1 %v13421_v0  ;;  %v13426_v3 = vld [vmem:[#allocation5 + $0x300] ss:$24 sps:$4 sm:$0xff]   ;;  %v13427_v4 = vld [vmem:[#allocation5 + $0x34] ss:$24 sps:$4 sm:$0xff]  }
 0x1b0   :  { %2728 = vmatprep.subr.bf16.mxu0 %v13423_v1  ;;  %2688 = vmatpush1.bf16.msra.mxu1 %v13425_v2  ;;  %v13429_v5 = vld [vmem:[#allocation5 + $0x334] ss:$24 sps:$4 sm:$0xff]   ;;  %v13431_v6 = vld [vmem:[#allocation5 + $0x30] ss:$24 sps:$4 sm:$0xff]   ;;  %v13433_v8 = vld [vmem:[#allocation5 + $0x64] ss:$24 sps:$4 sm:$0xff]  }
 0x1b1   :  { %2729 = vmatpush1.bf16.msra.mxu0 %v13426_v3  ;;  %2689 = vmatprep.subr.bf16.mxu1 %v13427_v4  ;;  %v13432_v7 = vld [vmem:[#allocation5 + $0x330] ss:$24 sps:$4 sm:$0xff]   ;;  %v13435_v9 = vld [vmem:[#allocation5 + $0x364] ss:$24 sps:$4 sm:$0xff]   ;;  %v13437_v10 = vld [vmem:[#allocation5 + $0x60] ss:$24 sps:$4 sm:$0xff]  }
 0x1b2   :  { %2730 = vmatprep.subr.bf16.mxu0 %v13429_v5  ;;  %v13438_v11 = vld [vmem:[#allocation5 + $0x360] ss:$24 sps:$4 sm:$0xff]   ;;  %v13439_v12 = vld [vmem:[#allocation5 + $0x94] ss:$24 sps:$4 sm:$0xff]   ;;  %v13443_v14 = vld [vmem:[#allocation5 + $0x90] ss:$24 sps:$4 sm:$0xff]  }
 0x1b3   :  { %v13441_v13 = vld [vmem:[#allocation5 + $0x394] ss:$24 sps:$4 sm:$0xff]   ;;  %v13444_v15 = vld [vmem:[#allocation5 + $0x390] ss:$24 sps:$4 sm:$0xff]   ;;  %v13445_v16 = vld [vmem:[#allocation5 + $0xc4] ss:$24 sps:$4 sm:$0xff]  }
 0x1b4   :  { %2690 = vmatpush1.bf16.msra.mxu1 %v13431_v6  ;;  %v13447_v17 = vld [vmem:[#allocation5 + $0x3c4] ss:$24 sps:$4 sm:$0xff]   ;;  %v13449_v18 = vld [vmem:[#allocation5 + $0xc0] ss:$24 sps:$4 sm:$0xff]   ;;  %v13451_v20 = vld [vmem:[#allocation5 + $0xf4] ss:$24 sps:$4 sm:$0xff]  }
 0x1b5   :  { %2731 = vmatpush1.bf16.msra.mxu0 %v13432_v7  ;;  %2691 = vmatprep.subr.bf16.mxu1 %v13433_v8  ;;  %v13450_v19 = vld [vmem:[#allocation5 + $0x3c0] ss:$24 sps:$4 sm:$0xff]   ;;  %v13453_v21 = vld [vmem:[#allocation5 + $0x3f4] ss:$24 sps:$4 sm:$0xff]   ;;  %v13455_v22 = vld [vmem:[#allocation5 + $0xf0] ss:$24 sps:$4 sm:$0xff]  }
 0x1b6   :  { %2732 = vmatprep.subr.bf16.mxu0 %v13435_v9  ;;  %v13456_v23 = vld [vmem:[#allocation5 + $0x3f0] ss:$24 sps:$4 sm:$0xff]   ;;  %v13457_v24 = vld [vmem:[#allocation5 + $0x124] ss:$24 sps:$4 sm:$0xff]   ;;  %v13461_v26 = vld [vmem:[#allocation5 + $0x120] ss:$24 sps:$4 sm:$0xff]  }
 0x1b7   :  { %v13459_v25 = vld [vmem:[#allocation5 + $0x424] ss:$24 sps:$4 sm:$0xff]   ;;  %v13462_v27 = vld [vmem:[#allocation5 + $0x420] ss:$24 sps:$4 sm:$0xff]   ;;  %v13463_v28 = vld [vmem:[#allocation5 + $0x154] ss:$24 sps:$4 sm:$0xff]  }
 0x1b8   :  { %2692 = vmatpush1.bf16.msra.mxu1 %v13437_v10  ;;  %v13465_v29 = vld [vmem:[#allocation5 + $0x454] ss:$24 sps:$4 sm:$0xff]   ;;  %v13467_v30 = vld [vmem:[#allocation5 + $0x150] ss:$24 sps:$4 sm:$0xff]   ;;  %v13469_v32 = vld [vmem:[#allocation5 + $0x184] ss:$24 sps:$4 sm:$0xff]  }
 0x1b9   :  { %2733 = vmatpush1.bf16.msra.mxu0 %v13438_v11  ;;  %2693 = vmatprep.subr.bf16.mxu1 %v13439_v12  ;;  %v13468_v31 = vld [vmem:[#allocation5 + $0x450] ss:$24 sps:$4 sm:$0xff]   ;;  %v13471_v33 = vld [vmem:[#allocation5 + $0x484] ss:$24 sps:$4 sm:$0xff]   ;;  %v13473_v34 = vld [vmem:[#allocation5 + $0x180] ss:$24 sps:$4 sm:$0xff]  }
 0x1ba   :  { %2734 = vmatprep.subr.bf16.mxu0 %v13441_v13  ;;  %v13474_v35 = vld [vmem:[#allocation5 + $0x480] ss:$24 sps:$4 sm:$0xff]   ;;  %v13475_v36 = vld [vmem:[#allocation5 + $0x1b4] ss:$24 sps:$4 sm:$0xff]   ;;  %v13479_v38 = vld [vmem:[#allocation5 + $0x1b0] ss:$24 sps:$4 sm:$0xff]  }
 0x1bb   :  { %v13477_v37 = vld [vmem:[#allocation5 + $0x4b4] ss:$24 sps:$4 sm:$0xff]   ;;  %v13480_v39 = vld [vmem:[#allocation5 + $0x4b0] ss:$24 sps:$4 sm:$0xff]   ;;  %v13481_v40 = vld [vmem:[#allocation5 + $0x1e4] ss:$24 sps:$4 sm:$0xff]  }
 0x1bc   :  { %2694 = vmatpush1.bf16.msra.mxu1 %v13443_v14  ;;  %v13483_v41 = vld [vmem:[#allocation5 + $0x4e4] ss:$24 sps:$4 sm:$0xff]   ;;  %v13485_v42 = vld [vmem:[#allocation5 + $0x1e0] ss:$24 sps:$4 sm:$0xff]   ;;  %v13487_v44 = vld [vmem:[#allocation5 + $0x214] ss:$24 sps:$4 sm:$0xff]  }
 0x1bd   :  { %2735 = vmatpush1.bf16.msra.mxu0 %v13444_v15  ;;  %2695 = vmatprep.subr.bf16.mxu1 %v13445_v16  ;;  %v13486_v43 = vld [vmem:[#allocation5 + $0x4e0] ss:$24 sps:$4 sm:$0xff]   ;;  %v13489_v45 = vld [vmem:[#allocation5 + $0x514] ss:$24 sps:$4 sm:$0xff]   ;;  %v13491_v49 = vld [vmem:[#allocation5 + $0x210] ss:$24 sps:$4 sm:$0xff]  }
 0x1be   :  { %2736 = vmatprep.subr.bf16.mxu0 %v13447_v17  ;;  %v336_v46 = vld [vmem:[#allocation2 + $0x8] sm:$0xff]  ;;  %v338_v48 = vld [vmem:[#allocation2 + $0x18] sm:$0xff]  ;;  %v335_v5 = vld [vmem:[#allocation2] sm:$0xff]  ;;  %s15650_s20 = smov [#allocation36]  }
 0x1bf   :  { %v16043_v47 = vpack.c.bf16 %v336_v46, %v336_v46  ;;  %v13492_v50 = vld [vmem:[#allocation5 + $0x510] ss:$24 sps:$4 sm:$0xff]   ;;  %v16045_v51 = vpack.c.bf16 %v338_v48, %v338_v48  ;;  %v13493_v52 = vld [vmem:[#allocation5 + $0x244] ss:$24 sps:$4 sm:$0xff]   ;;  %v13497_v54 = vld [vmem:[#allocation5 + $0x240] ss:$24 sps:$4 sm:$0xff]   ;;  %v16049_v10 = vpack.c.bf16 %v335_v5, %v335_v5 }
 0x1c0   :  { %2696 = vmatpush1.bf16.msra.mxu1 %v13449_v18  ;;  %v13495_v53 = vld [vmem:[#allocation5 + $0x544] ss:$24 sps:$4 sm:$0xff]   ;;  %v13498_v55 = vld [vmem:[#allocation5 + $0x540] ss:$24 sps:$4 sm:$0xff]   ;;  %v13499_v56 = vld [vmem:[#allocation5 + $0x274] ss:$24 sps:$4 sm:$0xff]  }
 0x1c1   :  { %2737 = vmatpush1.bf16.msra.mxu0 %v13450_v19  ;;  %2697 = vmatprep.subr.bf16.mxu1 %v13451_v20  ;;  %v13501_v57 = vld [vmem:[#allocation5 + $0x574] ss:$24 sps:$4 sm:$0xff]   ;;  %v13503_v58 = vld [vmem:[#allocation5 + $0x270] ss:$24 sps:$4 sm:$0xff]   ;;  %v13505_v60 = vld [vmem:[#allocation5 + $0x2a4] ss:$24 sps:$4 sm:$0xff]  }
 0x1c2   :  { %2738 = vmatprep.subr.bf16.mxu0 %v13453_v21  ;;  %2719 = vmatprep.mubr.bf16.mxu1 %v16043_v47  ;;  %v13504_v59 = vld [vmem:[#allocation5 + $0x570] ss:$24 sps:$4 sm:$0xff]   ;;  %v13507_v61 = vld [vmem:[#allocation5 + $0x5a4] ss:$24 sps:$4 sm:$0xff]   ;;  %v13509_v62 = vld [vmem:[#allocation5 + $0x2a0] ss:$24 sps:$4 sm:$0xff]  }
 0x1c3   :  { %2760 = vmatprep.mubr.bf16.mxu0 %v16045_v51  ;;  %v13510_v63 = vld [vmem:[#allocation5 + $0x5a0] ss:$24 sps:$4 sm:$0xff]   ;;  %v13511_v0 = vld [vmem:[#allocation5 + $0x2d4] ss:$24 sps:$4 sm:$0xff]   ;;  %v13515_v2 = vld [vmem:[#allocation5 + $0x2d0] ss:$24 sps:$4 sm:$0xff]  }
 0x1c4   :  { %2698 = vmatpush1.bf16.msra.mxu1 %v13455_v22  ;;  %v13513_v1 = vld [vmem:[#allocation5 + $0x5d4] ss:$24 sps:$4 sm:$0xff]   ;;  %v13516_v3 = vld [vmem:[#allocation5 + $0x5d0] ss:$24 sps:$4 sm:$0xff]   ;;  %v13519_v4 = vld [vmem:[#allocation5 + $0x604] ss:$24 sps:$4 sm:$0xff]  }
 0x1c5   :  { %2739 = vmatpush1.bf16.msra.mxu0 %v13456_v23  ;;  %2699 = vmatprep.subr.bf16.mxu1 %v13457_v24  ;;  %v337_v6 = vld [vmem:[#allocation2 + $0x10] sm:$0xff]  ;;  %v13522_v7 = vld [vmem:[#allocation5 + $0xc] ss:$24 sps:$4 sm:$0xff]   ;;  %v13517_v8 = vld [vmem:[#allocation5 + $0x600] ss:$24 sps:$4 sm:$0xff]   ;;  %s11659_s29 = sshll.u32 %s15650_s20, 4  ;;  %s11660_s29 = int_to_ptr.vmem [resolvable:$true] %s11659_s29 }
 0x1c6   :  { %2740 = vmatprep.subr.bf16.mxu0 %v13459_v25  ;;  %v13520_v9 = vld [vmem:[#allocation5 + $0x8] ss:$24 sps:$4 sm:$0xff]   ;;  %v16051_v11 = vpack.c.bf16 %v337_v6, %v337_v6  ;;  %v13525_v12 = vld [vmem:[#allocation5 + $0x634] ss:$24 sps:$4 sm:$0xff]   ;;  %v13526_v15 = vld [vmem:[#allocation5 + $0x38] ss:$24 sps:$4 sm:$0xff]   ;;  %p15551_p1 = scmp.lt.s32.totalorder %s11660_s29, %s11660_s29 }
 0x1c7   :  { %v13528_v13 = vld [vmem:[#allocation5 + $0x3c] ss:$24 sps:$4 sm:$0xff]   ;;  %v13523_v14 = vld [vmem:[#allocation5 + $0x630] ss:$24 sps:$4 sm:$0xff]   ;;  %v13534_v17 = vld [vmem:[#allocation5 + $0x6c] ss:$24 sps:$4 sm:$0xff]  }
 0x1c8   :  { %2700 = vmatpush1.bf16.msra.mxu1 %v13461_v26  ;;  %v13531_v16 = vld [vmem:[#allocation5 + $0x664] ss:$24 sps:$4 sm:$0xff]   ;;  %v13529_v18 = vld [vmem:[#allocation5 + $0x660] ss:$24 sps:$4 sm:$0xff]   ;;  %v13537_v20 = vld [vmem:[#allocation5 + $0x694] ss:$24 sps:$4 sm:$0xff]  }
 0x1c9   :  { %2741 = vmatpush1.bf16.msra.mxu0 %v13462_v27  ;;  %2701 = vmatprep.subr.bf16.mxu1 %v13463_v28  ;;  %v13532_v19 = vld [vmem:[#allocation5 + $0x68] ss:$24 sps:$4 sm:$0xff]   ;;  %v13540_v21 = vld [vmem:[#allocation5 + $0x9c] ss:$24 sps:$4 sm:$0xff]   ;;  %v13538_v23 = vld [vmem:[#allocation5 + $0x98] ss:$24 sps:$4 sm:$0xff]  }
 0x1ca   :  { %2742 = vmatprep.subr.bf16.mxu0 %v13465_v29  ;;  %v13535_v22 = vld [vmem:[#allocation5 + $0x690] ss:$24 sps:$4 sm:$0xff]   ;;  %v13543_v24 = vld [vmem:[#allocation5 + $0x6c4] ss:$24 sps:$4 sm:$0xff]   ;;  %v13541_v26 = vld [vmem:[#allocation5 + $0x6c0] ss:$24 sps:$4 sm:$0xff]  }
 0x1cb   :  { %v13546_v25 = vld [vmem:[#allocation5 + $0xcc] ss:$24 sps:$4 sm:$0xff]   ;;  %v13544_v27 = vld [vmem:[#allocation5 + $0xc8] ss:$24 sps:$4 sm:$0xff]   ;;  %v13552_v29 = vld [vmem:[#allocation5 + $0xfc] ss:$24 sps:$4 sm:$0xff]  }
 0x1cc   :  { %2702 = vmatpush1.bf16.msra.mxu1 %v13467_v30  ;;  %v13549_v28 = vld [vmem:[#allocation5 + $0x6f4] ss:$24 sps:$4 sm:$0xff]   ;;  %v13547_v30 = vld [vmem:[#allocation5 + $0x6f0] ss:$24 sps:$4 sm:$0xff]   ;;  %v13601_v6 = vld [vmem:[#allocation5 + $0x8a0] ss:$24 sps:$4 sm:$0xff]  }
 0x1cd   :  { %2743 = vmatpush1.bf16.msra.mxu0 %v13468_v31  ;;  %2703 = vmatprep.subr.bf16.mxu1 %v13469_v32  ;;  %v13550_v31 = vld [vmem:[#allocation5 + $0xf8] ss:$24 sps:$4 sm:$0xff]   ;;  %v13555_v32 = vld [vmem:[#allocation5 + $0x724] ss:$24 sps:$4 sm:$0xff]   ;;  %v13573_v46 = vld [vmem:[#allocation5 + $0x7b4] ss:$24 sps:$4 sm:$0xff]  }
 0x1ce   :  { %2744 = vmatprep.subr.bf16.mxu0 %v13471_v33  ;;  %v13558_v33 = vld [vmem:[#allocation5 + $0x12c] ss:$24 sps:$4 sm:$0xff]   ;;  %v13576_v48 = vld [vmem:[#allocation5 + $0x1bc] ss:$24 sps:$4 sm:$0xff]   ;;  %s15546_s13 = scalar_lea.vmem %s11660_s29, 128 }
 0x1cf   :  { %v13606_v5 = vld [vmem:[#allocation5 + $0x2ac] ss:$24 sps:$4 sm:$0xff]   ;;  %p15547_p0 = scmp.ne.s32.totalorder %s11660_s29, %s15546_s13  ;;  %p15552_p2 = scmp.lt.s32.totalorder %s15546_s13, %s15546_s13 }
 0x1d0   :  { %2704 = vmatpush1.bf16.msra.mxu1 %v13473_v34  ;;  %v340_v34 = vld [vmem:[#allocation2 + $0x28] sm:$0xff] }
 0x1d1   :  { %2745 = vmatpush1.bf16.msra.mxu0 %v13474_v35  ;;  %2705 = vmatprep.subr.bf16.mxu1 %v13475_v36  ;;  %v13553_v35 = vld [vmem:[#allocation5 + $0x720] ss:$24 sps:$4 sm:$0xff]   ;;  %v16056_v36 = vpack.c.bf16 %v340_v34, %v340_v34  ;;  %v13639_v34 = vld [vmem:[#allocation5 + $0x9c4] ss:$24 sps:$4 sm:$0xff]   ;;  %p15553_p3 = por %p15552_p2, %p15551_p1 }
 0x1d2   :  { %2746 = vmatprep.subr.bf16.mxu0 %v13477_v37  ;;  %v13556_v37 = vld [vmem:[#allocation5 + $0x128] ss:$24 sps:$4 sm:$0xff]  }
 0x1d3   :  { %p15554_p4 = pnand %p15553_p3, %p15547_p0 }
 0x1d4   :  { %2706 = vmatpush1.bf16.msra.mxu1 %v13479_v38  ;;  %v13561_v38 = vld [vmem:[#allocation5 + $0x754] ss:$24 sps:$4 sm:$0xff]  }
 0x1d5   :  { %2747 = vmatpush1.bf16.msra.mxu0 %v13480_v39  ;;  %2707 = vmatprep.subr.bf16.mxu1 %v13481_v40  ;;  %v13564_v39 = vld [vmem:[#allocation5 + $0x15c] ss:$24 sps:$4 sm:$0xff]   ;;  %v13559_v40 = vld [vmem:[#allocation5 + $0x750] ss:$24 sps:$4 sm:$0xff]  }
 0x1d6   :  { %2748 = vmatprep.subr.bf16.mxu0 %v13483_v41  ;;  %v13562_v41 = vld [vmem:[#allocation5 + $0x158] ss:$24 sps:$4 sm:$0xff]  }
 0x1d8   :  { %2708 = vmatpush1.bf16.msra.mxu1 %v13485_v42  ;;  %v13567_v42 = vld [vmem:[#allocation5 + $0x784] ss:$24 sps:$4 sm:$0xff]  }
 0x1d9   :  { %2749 = vmatpush1.bf16.msra.mxu0 %v13486_v43  ;;  %2709 = vmatprep.subr.bf16.mxu1 %v13487_v44  ;;  %v13570_v43 = vld [vmem:[#allocation5 + $0x18c] ss:$24 sps:$4 sm:$0xff]   ;;  %v13565_v44 = vld [vmem:[#allocation5 + $0x780] ss:$24 sps:$4 sm:$0xff]  }
 0x1da   :  { %2750 = vmatprep.subr.bf16.mxu0 %v13489_v45  ;;  %v13568_v45 = vld [vmem:[#allocation5 + $0x188] ss:$24 sps:$4 sm:$0xff]  }
 0x1dc   :  { %2710 = vmatpush1.bf16.msra.mxu1 %v13491_v49  ;;  %v13571_v49 = vld [vmem:[#allocation5 + $0x7b0] ss:$24 sps:$4 sm:$0xff]  }
 0x1dd   :  { %2751 = vmatpush1.bf16.msra.mxu0 %v13492_v50  ;;  %2711 = vmatprep.subr.bf16.mxu1 %v13493_v52  ;;  %v13574_v50 = vld [vmem:[#allocation5 + $0x1b8] ss:$24 sps:$4 sm:$0xff]   ;;  %v13579_v52 = vld [vmem:[#allocation5 + $0x7e4] ss:$24 sps:$4 sm:$0xff]  }
 0x1de   :  { %2752 = vmatprep.subr.bf16.mxu0 %v13495_v53  ;;  %v13582_v53 = vld [vmem:[#allocation5 + $0x1ec] ss:$24 sps:$4 sm:$0xff]  }
 0x1e0   :  { %2712 = vmatpush1.bf16.msra.mxu1 %v13497_v54  ;;  %v13577_v54 = vld [vmem:[#allocation5 + $0x7e0] ss:$24 sps:$4 sm:$0xff]  }
 0x1e1   :  { %2753 = vmatpush1.bf16.msra.mxu0 %v13498_v55  ;;  %2713 = vmatprep.subr.bf16.mxu1 %v13499_v56  ;;  %v13580_v55 = vld [vmem:[#allocation5 + $0x1e8] ss:$24 sps:$4 sm:$0xff]   ;;  %v13585_v56 = vld [vmem:[#allocation5 + $0x814] ss:$24 sps:$4 sm:$0xff]  }
 0x1e2   :  { %2754 = vmatprep.subr.bf16.mxu0 %v13501_v57  ;;  %v13588_v57 = vld [vmem:[#allocation5 + $0x21c] ss:$24 sps:$4 sm:$0xff]  }
 0x1e4   :  { %2714 = vmatpush1.bf16.msra.mxu1 %v13503_v58  ;;  %v13583_v58 = vld [vmem:[#allocation5 + $0x810] ss:$24 sps:$4 sm:$0xff]  }
 0x1e5   :  { %2755 = vmatpush1.bf16.msra.mxu0 %v13504_v59  ;;  %2715 = vmatprep.subr.bf16.mxu1 %v13505_v60  ;;  %v13586_v59 = vld [vmem:[#allocation5 + $0x218] ss:$24 sps:$4 sm:$0xff]   ;;  %v13591_v60 = vld [vmem:[#allocation5 + $0x844] ss:$24 sps:$4 sm:$0xff]  }
 0x1e6   :  { %2756 = vmatprep.subr.bf16.mxu0 %v13507_v61  ;;  %v13594_v61 = vld [vmem:[#allocation5 + $0x24c] ss:$24 sps:$4 sm:$0xff]  }
 0x1e8   :  { %2716 = vmatpush1.bf16.msra.mxu1 %v13509_v62  ;;  %v13589_v62 = vld [vmem:[#allocation5 + $0x840] ss:$24 sps:$4 sm:$0xff]  }
 0x1e9   :  { %2757 = vmatpush1.bf16.msra.mxu0 %v13510_v63  ;;  %2717 = vmatprep.subr.bf16.mxu1 %v13511_v0  ;;  %v13592_v63 = vld [vmem:[#allocation5 + $0x248] ss:$24 sps:$4 sm:$0xff]   ;;  %v13597_v0 = vld [vmem:[#allocation5 + $0x874] ss:$24 sps:$4 sm:$0xff]  }
 0x1ea   :  { %2758 = vmatprep.subr.bf16.mxu0 %v13513_v1  ;;  %v13600_v1 = vld [vmem:[#allocation5 + $0x27c] ss:$24 sps:$4 sm:$0xff]  }
 0x1ec   :  { %2718 = vmatpush1.bf16.msra.mxu1 %v13515_v2  ;;  %v13595_v2 = vld [vmem:[#allocation5 + $0x870] ss:$24 sps:$4 sm:$0xff]  }
 0x1ed   :  { %2759 = vmatpush1.bf16.msra.mxu0 %v13516_v3  ;;  %2851 = vmatprep.subr.bf16.mxu1 %v13522_v7  ;;  %v13598_v3 = vld [vmem:[#allocation5 + $0x278] ss:$24 sps:$4 sm:$0xff]   ;;  %v13604_v7 = vld [vmem:[#allocation5 + $0x2a8] ss:$24 sps:$4 sm:$0xff]  }
 0x1ee   :  { %2769 = vmatprep.subr.bf16.mxu0 %v13519_v4  ;;  %v13603_v4 = vld [vmem:[#allocation5 + $0x8a4] ss:$24 sps:$4 sm:$0xff]  }
 0x1ef   :  { %2720 = vmatmul.mubr.bf16.vlgmr.msra.gmra.mrb[0].mxu1 %v16049_v10 }
 0x1f0   :  { %2761 = vmatmul.mubr.bf16.vlgmr.msra.gmra.mrb[0].mxu0 %v16051_v11  ;;  %2852 = vmatpush1.bf16.msra.mxu1 %v13520_v9  ;;  %v13612_v9 = vld [vmem:[#allocation5 + $0x2dc] ss:$24 sps:$4 sm:$0xff]  }
 0x1f1   :  { %2770 = vmatpush1.bf16.msra.mxu0 %v13517_v8  ;;  %2853 = vmatprep.subr.bf16.mxu1 %v13528_v13  ;;  %v13609_v8 = vld [vmem:[#allocation5 + $0x8d4] ss:$24 sps:$4 sm:$0xff]   ;;  %v13610_v13 = vld [vmem:[#allocation5 + $0x2d8] ss:$24 sps:$4 sm:$0xff]  }
 0x1f2   :  { %2771 = vmatprep.subr.bf16.mxu0 %v13525_v12  ;;  %2883 = vmatprep.mubr.bf16.mxu1 %v16043_v47  ;;  %v13607_v12 = vld [vmem:[#allocation5 + $0x8d0] ss:$24 sps:$4 sm:$0xff]  }
 0x1f3   :  { %2801 = vmatprep.mubr.bf16.mxu0 %v16056_v36 }
 0x1f4   :  { %2854 = vmatpush1.bf16.msra.mxu1 %v13526_v15  ;;  %v13615_v15 = vld [vmem:[#allocation5 + $0x904] ss:$24 sps:$4 sm:$0xff]  }
 0x1f5   :  { %2772 = vmatpush1.bf16.msra.mxu0 %v13523_v14  ;;  %2855 = vmatprep.subr.bf16.mxu1 %v13534_v17  ;;  %v339_v14 = vld [vmem:[#allocation2 + $0x20] sm:$0xff] }
 0x1f6   :  { %2773 = vmatprep.subr.bf16.mxu0 %v13531_v16  ;;  %v13618_v16 = vld [vmem:[#allocation5 + $0x30c] ss:$24 sps:$4 sm:$0xff]   ;;  %v16059_v17 = vpack.c.bf16 %v339_v14, %v339_v14  ;;  %v13694_v14 = vld [vmem:[#allocation5 + $0x578] ss:$24 sps:$4 sm:$0xff]  }
 0x1f8   :  { %2856 = vmatpush1.bf16.msra.mxu1 %v13532_v19  ;;  %v13616_v19 = vld [vmem:[#allocation5 + $0x308] ss:$24 sps:$4 sm:$0xff]  }
 0x1f9   :  { %2774 = vmatpush1.bf16.msra.mxu0 %v13529_v18  ;;  %2857 = vmatprep.subr.bf16.mxu1 %v13540_v21  ;;  %v13613_v18 = vld [vmem:[#allocation5 + $0x900] ss:$24 sps:$4 sm:$0xff]   ;;  %v13624_v21 = vld [vmem:[#allocation5 + $0x33c] ss:$24 sps:$4 sm:$0xff]  }
 0x1fa   :  { %2775 = vmatprep.subr.bf16.mxu0 %v13537_v20  ;;  %v13621_v20 = vld [vmem:[#allocation5 + $0x934] ss:$24 sps:$4 sm:$0xff]  }
 0x1fc   :  { %2858 = vmatpush1.bf16.msra.mxu1 %v13538_v23  ;;  %v13619_v23 = vld [vmem:[#allocation5 + $0x930] ss:$24 sps:$4 sm:$0xff]  }
 0x1fd   :  { %2776 = vmatpush1.bf16.msra.mxu0 %v13535_v22  ;;  %2859 = vmatprep.subr.bf16.mxu1 %v13546_v25  ;;  %v342_v22 = vld [vmem:[#allocation2 + $0x38] sm:$0xff] }
 0x1fe   :  { %2777 = vmatprep.subr.bf16.mxu0 %v13543_v24  ;;  %v13622_v24 = vld [vmem:[#allocation5 + $0x338] ss:$24 sps:$4 sm:$0xff]   ;;  %v16063_v25 = vpack.c.bf16 %v342_v22, %v342_v22 }
 0x1ff   :  { %v13703_v22 = vld [vmem:[#allocation5 + $0xbd0] ss:$24 sps:$4 sm:$0xff]  }
 0x200   :  { %2860 = vmatpush1.bf16.msra.mxu1 %v13544_v27  ;;  %v13630_v27 = vld [vmem:[#allocation5 + $0x36c] ss:$24 sps:$4 sm:$0xff]  }
 0x201   :  { %2778 = vmatpush1.bf16.msra.mxu0 %v13541_v26  ;;  %2861 = vmatprep.subr.bf16.mxu1 %v13552_v29  ;;  %v13627_v26 = vld [vmem:[#allocation5 + $0x964] ss:$24 sps:$4 sm:$0xff]   ;;  %v13628_v29 = vld [vmem:[#allocation5 + $0x368] ss:$24 sps:$4 sm:$0xff]  }
 0x202   :  { %2779 = vmatprep.subr.bf16.mxu0 %v13549_v28  ;;  %v13625_v28 = vld [vmem:[#allocation5 + $0x960] ss:$24 sps:$4 sm:$0xff]  }
 0x204   :  { %2862 = vmatpush1.bf16.msra.mxu1 %v13550_v31  ;;  %v13636_v31 = vld [vmem:[#allocation5 + $0x39c] ss:$24 sps:$4 sm:$0xff]  }
 0x205   :  { %2780 = vmatpush1.bf16.msra.mxu0 %v13547_v30  ;;  %2863 = vmatprep.subr.bf16.mxu1 %v13558_v33  ;;  %v13633_v30 = vld [vmem:[#allocation5 + $0x994] ss:$24 sps:$4 sm:$0xff]   ;;  %v13634_v33 = vld [vmem:[#allocation5 + $0x398] ss:$24 sps:$4 sm:$0xff]  }
 0x206   :  { %2781 = vmatprep.subr.bf16.mxu0 %v13555_v32  ;;  %v13631_v32 = vld [vmem:[#allocation5 + $0x990] ss:$24 sps:$4 sm:$0xff]  }
 0x208   :  { %2864 = vmatpush1.bf16.msra.mxu1 %v13556_v37  ;;  %v13637_v37 = vld [vmem:[#allocation5 + $0x9c0] ss:$24 sps:$4 sm:$0xff]  }
 0x209   :  { %2782 = vmatpush1.bf16.msra.mxu0 %v13553_v35  ;;  %2865 = vmatprep.subr.bf16.mxu1 %v13564_v39  ;;  %v13642_v35 = vld [vmem:[#allocation5 + $0x3cc] ss:$24 sps:$4 sm:$0xff]  }
 0x20a   :  { %2783 = vmatprep.subr.bf16.mxu0 %v13561_v38  ;;  %v13640_v38 = vld [vmem:[#allocation5 + $0x3c8] ss:$24 sps:$4 sm:$0xff]   ;;  %v13645_v39 = vld [vmem:[#allocation5 + $0x9f4] ss:$24 sps:$4 sm:$0xff]  }
 0x20c   :  { %2866 = vmatpush1.bf16.msra.mxu1 %v13562_v41  ;;  %v13643_v41 = vld [vmem:[#allocation5 + $0x9f0] ss:$24 sps:$4 sm:$0xff]  }
 0x20d   :  { %2784 = vmatpush1.bf16.msra.mxu0 %v13559_v40  ;;  %2867 = vmatprep.subr.bf16.mxu1 %v13570_v43  ;;  %v13648_v40 = vld [vmem:[#allocation5 + $0x3fc] ss:$24 sps:$4 sm:$0xff]  }
 0x20e   :  { %2785 = vmatprep.subr.bf16.mxu0 %v13567_v42  ;;  %v13646_v42 = vld [vmem:[#allocation5 + $0x3f8] ss:$24 sps:$4 sm:$0xff]   ;;  %v13651_v43 = vld [vmem:[#allocation5 + $0xa24] ss:$24 sps:$4 sm:$0xff]  }
 0x210   :  { %2868 = vmatpush1.bf16.msra.mxu1 %v13568_v45  ;;  %v13649_v45 = vld [vmem:[#allocation5 + $0xa20] ss:$24 sps:$4 sm:$0xff]  }
 0x211   :  { %2786 = vmatpush1.bf16.msra.mxu0 %v13565_v44  ;;  %2869 = vmatprep.subr.bf16.mxu1 %v13576_v48  ;;  %v13654_v44 = vld [vmem:[#allocation5 + $0x42c] ss:$24 sps:$4 sm:$0xff]  }
 0x212   :  { %2787 = vmatprep.subr.bf16.mxu0 %v13573_v46  ;;  %v13652_v46 = vld [vmem:[#allocation5 + $0x428] ss:$24 sps:$4 sm:$0xff]   ;;  %v13657_v48 = vld [vmem:[#allocation5 + $0xa54] ss:$24 sps:$4 sm:$0xff]  }
 0x214   :  { %2870 = vmatpush1.bf16.msra.mxu1 %v13574_v50  ;;  %v13655_v50 = vld [vmem:[#allocation5 + $0xa50] ss:$24 sps:$4 sm:$0xff]  }
 0x215   :  { %2788 = vmatpush1.bf16.msra.mxu0 %v13571_v49  ;;  %2871 = vmatprep.subr.bf16.mxu1 %v13582_v53  ;;  %v13660_v49 = vld [vmem:[#allocation5 + $0x45c] ss:$24 sps:$4 sm:$0xff]  }
 0x216   :  { %2789 = vmatprep.subr.bf16.mxu0 %v13579_v52  ;;  %v13658_v52 = vld [vmem:[#allocation5 + $0x458] ss:$24 sps:$4 sm:$0xff]   ;;  %v13663_v53 = vld [vmem:[#allocation5 + $0xa84] ss:$24 sps:$4 sm:$0xff]  }
 0x218   :  { %2872 = vmatpush1.bf16.msra.mxu1 %v13580_v55  ;;  %v13661_v55 = vld [vmem:[#allocation5 + $0xa80] ss:$24 sps:$4 sm:$0xff]  }
 0x219   :  { %2790 = vmatpush1.bf16.msra.mxu0 %v13577_v54  ;;  %2873 = vmatprep.subr.bf16.mxu1 %v13588_v57  ;;  %v13666_v54 = vld [vmem:[#allocation5 + $0x48c] ss:$24 sps:$4 sm:$0xff]  }
 0x21a   :  { %2791 = vmatprep.subr.bf16.mxu0 %v13585_v56  ;;  %v13664_v56 = vld [vmem:[#allocation5 + $0x488] ss:$24 sps:$4 sm:$0xff]   ;;  %v13669_v57 = vld [vmem:[#allocation5 + $0xab4] ss:$24 sps:$4 sm:$0xff]  }
 0x21c   :  { %2874 = vmatpush1.bf16.msra.mxu1 %v13586_v59  ;;  %v13667_v59 = vld [vmem:[#allocation5 + $0xab0] ss:$24 sps:$4 sm:$0xff]  }
 0x21d   :  { %2792 = vmatpush1.bf16.msra.mxu0 %v13583_v58  ;;  %2875 = vmatprep.subr.bf16.mxu1 %v13594_v61  ;;  %v13672_v58 = vld [vmem:[#allocation5 + $0x4bc] ss:$24 sps:$4 sm:$0xff]  }
 0x21e   :  { %2793 = vmatprep.subr.bf16.mxu0 %v13591_v60  ;;  %v13670_v60 = vld [vmem:[#allocation5 + $0x4b8] ss:$24 sps:$4 sm:$0xff]   ;;  %v13675_v61 = vld [vmem:[#allocation5 + $0xae4] ss:$24 sps:$4 sm:$0xff]  }
 0x220   :  { %2876 = vmatpush1.bf16.msra.mxu1 %v13592_v63  ;;  %v13673_v63 = vld [vmem:[#allocation5 + $0xae0] ss:$24 sps:$4 sm:$0xff]  }
 0x221   :  { %2794 = vmatpush1.bf16.msra.mxu0 %v13589_v62  ;;  %2877 = vmatprep.subr.bf16.mxu1 %v13600_v1  ;;  %v13678_v62 = vld [vmem:[#allocation5 + $0x4ec] ss:$24 sps:$4 sm:$0xff]  }
 0x222   :  { %2795 = vmatprep.subr.bf16.mxu0 %v13597_v0  ;;  %v13676_v0 = vld [vmem:[#allocation5 + $0x4e8] ss:$24 sps:$4 sm:$0xff]   ;;  %v13681_v1 = vld [vmem:[#allocation5 + $0xb14] ss:$24 sps:$4 sm:$0xff]  }
 0x224   :  { %2878 = vmatpush1.bf16.msra.mxu1 %v13598_v3  ;;  %v13679_v3 = vld [vmem:[#allocation5 + $0xb10] ss:$24 sps:$4 sm:$0xff]  }
 0x225   :  { %2796 = vmatpush1.bf16.msra.mxu0 %v13595_v2  ;;  %2879 = vmatprep.subr.bf16.mxu1 %v13606_v5  ;;  %v13684_v2 = vld [vmem:[#allocation5 + $0x51c] ss:$24 sps:$4 sm:$0xff]  }
 0x226   :  { %2797 = vmatprep.subr.bf16.mxu0 %v13603_v4  ;;  %v13682_v4 = vld [vmem:[#allocation5 + $0x518] ss:$24 sps:$4 sm:$0xff]   ;;  %v13687_v5 = vld [vmem:[#allocation5 + $0xb44] ss:$24 sps:$4 sm:$0xff]  }
 0x228   :  { %2880 = vmatpush1.bf16.msra.mxu1 %v13604_v7  ;;  %v13685_v7 = vld [vmem:[#allocation5 + $0xb40] ss:$24 sps:$4 sm:$0xff]  }
 0x229   :  { %2798 = vmatpush1.bf16.msra.mxu0 %v13601_v6  ;;  %2881 = vmatprep.subr.bf16.mxu1 %v13612_v9  ;;  %v13690_v6 = vld [vmem:[#allocation5 + $0x54c] ss:$24 sps:$4 sm:$0xff]  }
 0x22a   :  { %2799 = vmatprep.subr.bf16.mxu0 %v13609_v8  ;;  %v13688_v8 = vld [vmem:[#allocation5 + $0x548] ss:$24 sps:$4 sm:$0xff]   ;;  %v13693_v9 = vld [vmem:[#allocation5 + $0xb74] ss:$24 sps:$4 sm:$0xff]  }
 0x22c   :  { %2882 = vmatpush1.bf16.msra.mxu1 %v13610_v13  ;;  %v13691_v13 = vld [vmem:[#allocation5 + $0xb70] ss:$24 sps:$4 sm:$0xff]  }
 0x22d   :  { %2800 = vmatpush1.bf16.msra.mxu0 %v13607_v12  ;;  %2892 = vmatprep.subr.bf16.mxu1 %v13618_v16  ;;  %v13696_v12 = vld [vmem:[#allocation5 + $0x57c] ss:$24 sps:$4 sm:$0xff]   ;;  %v13702_v16 = vld [vmem:[#allocation5 + $0x5ac] ss:$24 sps:$4 sm:$0xff]  }
 0x22e   :  { %2810 = vmatprep.subr.bf16.mxu0 %v13615_v15  ;;  %v13699_v15 = vld [vmem:[#allocation5 + $0xba4] ss:$24 sps:$4 sm:$0xff]  }
 0x22f   :  { %2884 = vmatmul.mubr.bf16.vlgmr.msra.gmra.mrb[4].mxu1 %v16049_v10 }
 0x230   :  { %2802 = vmatmul.mubr.bf16.vlgmr.msra.gmra.mrb[0].mxu0 %v16059_v17  ;;  %2893 = vmatpush1.bf16.msra.mxu1 %v13616_v19  ;;  %v13700_v19 = vld [vmem:[#allocation5 + $0x5a8] ss:$24 sps:$4 sm:$0xff]  }
 0x231   :  { %2811 = vmatpush1.bf16.msra.mxu0 %v13613_v18  ;;  %2894 = vmatprep.subr.bf16.mxu1 %v13624_v21  ;;  %v13697_v18 = vld [vmem:[#allocation5 + $0xba0] ss:$24 sps:$4 sm:$0xff]   ;;  %v13708_v21 = vld [vmem:[#allocation5 + $0x5dc] ss:$24 sps:$4 sm:$0xff]  }
 0x232   :  { %2812 = vmatprep.subr.bf16.mxu0 %v13621_v20  ;;  %2842 = vmatprep.mubr.bf16.mxu0 %v16063_v25  ;;  %v13705_v20 = vld [vmem:[#allocation5 + $0xbd4] ss:$24 sps:$4 sm:$0xff]  }
 0x233   :  { %2924 = vmatprep.mubr.bf16.mxu1 %v16045_v51 }
 0x234   :  { %2895 = vmatpush1.bf16.msra.mxu1 %v13622_v24  ;;  %v341_v24 = vld [vmem:[#allocation2 + $0x30] sm:$0xff] }
 0x235   :  { %2813 = vmatpush1.bf16.msra.mxu0 %v13619_v23  ;;  %2896 = vmatprep.subr.bf16.mxu1 %v13630_v27  ;;  %v13706_v23 = vld [vmem:[#allocation5 + $0x5d8] ss:$24 sps:$4 sm:$0xff]   ;;  %v13714_v27 = vld [vmem:[#allocation5 + $0x14] ss:$24 sps:$4 sm:$0xff]  }
 0x236   :  { %2814 = vmatprep.subr.bf16.mxu0 %v13627_v26  ;;  %v13711_v26 = vld [vmem:[#allocation5 + $0x60c] ss:$24 sps:$4 sm:$0xff]  }
 0x238   :  { %2897 = vmatpush1.bf16.msra.mxu1 %v13628_v29  ;;  %v13709_v29 = vld [vmem:[#allocation5 + $0x608] ss:$24 sps:$4 sm:$0xff]  }
 0x239   :  { %2815 = vmatpush1.bf16.msra.mxu0 %v13625_v28  ;;  %2898 = vmatprep.subr.bf16.mxu1 %v13636_v31  ;;  %v16067_v28 = vpack.c.bf16 %v341_v24, %v341_v24  ;;  %v13717_v31 = vld [vmem:[#allocation5 + $0x63c] ss:$24 sps:$4 sm:$0xff]   ;;  %v13795_v24 = vld [vmem:[#allocation5 + $0x8ac] ss:$24 sps:$4 sm:$0xff]  }
 0x23a   :  { %2816 = vmatprep.subr.bf16.mxu0 %v13633_v30  ;;  %v13712_v30 = vld [vmem:[#allocation5 + $0x10] ss:$24 sps:$4 sm:$0xff]  }
 0x23c   :  { %2899 = vmatpush1.bf16.msra.mxu1 %v13634_v33  ;;  %v13715_v33 = vld [vmem:[#allocation5 + $0x638] ss:$24 sps:$4 sm:$0xff]  }
 0x23d   :  { %2817 = vmatpush1.bf16.msra.mxu0 %v13631_v32  ;;  %2900 = vmatprep.subr.bf16.mxu1 %v13642_v35  ;;  %v13720_v32 = vld [vmem:[#allocation5 + $0x44] ss:$24 sps:$4 sm:$0xff]  }
 0x23e   :  { %2818 = vmatprep.subr.bf16.mxu0 %v13639_v34  ;;  %v13718_v34 = vld [vmem:[#allocation5 + $0x40] ss:$24 sps:$4 sm:$0xff]   ;;  %v13723_v35 = vld [vmem:[#allocation5 + $0x66c] ss:$24 sps:$4 sm:$0xff]  }
 0x240   :  { %2901 = vmatpush1.bf16.msra.mxu1 %v13640_v38  ;;  %v13721_v38 = vld [vmem:[#allocation5 + $0x668] ss:$24 sps:$4 sm:$0xff]  }
 0x241   :  { %2819 = vmatpush1.bf16.msra.mxu0 %v13637_v37  ;;  %2902 = vmatprep.subr.bf16.mxu1 %v13648_v40  ;;  %v13726_v37 = vld [vmem:[#allocation5 + $0x74] ss:$24 sps:$4 sm:$0xff]  }
 0x242   :  { %2820 = vmatprep.subr.bf16.mxu0 %v13645_v39  ;;  %v13724_v39 = vld [vmem:[#allocation5 + $0x70] ss:$24 sps:$4 sm:$0xff]   ;;  %v13729_v40 = vld [vmem:[#allocation5 + $0x69c] ss:$24 sps:$4 sm:$0xff]  }
 0x244   :  { %2903 = vmatpush1.bf16.msra.mxu1 %v13646_v42  ;;  %v13727_v42 = vld [vmem:[#allocation5 + $0x698] ss:$24 sps:$4 sm:$0xff]  }
 0x245   :  { %2821 = vmatpush1.bf16.msra.mxu0 %v13643_v41  ;;  %2904 = vmatprep.subr.bf16.mxu1 %v13654_v44  ;;  %v13732_v41 = vld [vmem:[#allocation5 + $0xa4] ss:$24 sps:$4 sm:$0xff]  }
 0x246   :  { %2822 = vmatprep.subr.bf16.mxu0 %v13651_v43  ;;  %v13730_v43 = vld [vmem:[#allocation5 + $0xa0] ss:$24 sps:$4 sm:$0xff]   ;;  %v13735_v44 = vld [vmem:[#allocation5 + $0x6cc] ss:$24 sps:$4 sm:$0xff]  }
 0x248   :  { %2905 = vmatpush1.bf16.msra.mxu1 %v13652_v46  ;;  %v13733_v46 = vld [vmem:[#allocation5 + $0x6c8] ss:$24 sps:$4 sm:$0xff]  }
 0x249   :  { %2823 = vmatpush1.bf16.msra.mxu0 %v13649_v45  ;;  %2906 = vmatprep.subr.bf16.mxu1 %v13660_v49  ;;  %v13738_v45 = vld [vmem:[#allocation5 + $0xd4] ss:$24 sps:$4 sm:$0xff]   ;;  %v13744_v49 = vld [vmem:[#allocation5 + $0x104] ss:$24 sps:$4 sm:$0xff]  }
 0x24a   :  { %2824 = vmatprep.subr.bf16.mxu0 %v13657_v48  ;;  %v13736_v48 = vld [vmem:[#allocation5 + $0xd0] ss:$24 sps:$4 sm:$0xff]  }
 0x24c   :  { %2907 = vmatpush1.bf16.msra.mxu1 %v13658_v52  ;;  %v13742_v52 = vld [vmem:[#allocation5 + $0x100] ss:$24 sps:$4 sm:$0xff]  }
 0x24d   :  { %2825 = vmatpush1.bf16.msra.mxu0 %v13655_v50  ;;  %2908 = vmatprep.subr.bf16.mxu1 %v13666_v54  ;;  %v13739_v50 = vld [vmem:[#allocation5 + $0x6f8] ss:$24 sps:$4 sm:$0xff]   ;;  %v13750_v54 = vld [vmem:[#allocation5 + $0x134] ss:$24 sps:$4 sm:$0xff]  }
 0x24e   :  { %2826 = vmatprep.subr.bf16.mxu0 %v13663_v53  ;;  %v13747_v53 = vld [vmem:[#allocation5 + $0x72c] ss:$24 sps:$4 sm:$0xff]  }
 0x250   :  { %2909 = vmatpush1.bf16.msra.mxu1 %v13664_v56  ;;  %v13748_v56 = vld [vmem:[#allocation5 + $0x130] ss:$24 sps:$4 sm:$0xff]  }
 0x251   :  { %2827 = vmatpush1.bf16.msra.mxu0 %v13661_v55  ;;  %2910 = vmatprep.subr.bf16.mxu1 %v13672_v58  ;;  %v13745_v55 = vld [vmem:[#allocation5 + $0x728] ss:$24 sps:$4 sm:$0xff]   ;;  %v13756_v58 = vld [vmem:[#allocation5 + $0x164] ss:$24 sps:$4 sm:$0xff]  }
 0x252   :  { %2828 = vmatprep.subr.bf16.mxu0 %v13669_v57  ;;  %v13753_v57 = vld [vmem:[#allocation5 + $0x75c] ss:$24 sps:$4 sm:$0xff]  }
 0x254   :  { %2911 = vmatpush1.bf16.msra.mxu1 %v13670_v60  ;;  %v13754_v60 = vld [vmem:[#allocation5 + $0x160] ss:$24 sps:$4 sm:$0xff]  }
 0x255   :  { %2829 = vmatpush1.bf16.msra.mxu0 %v13667_v59  ;;  %2912 = vmatprep.subr.bf16.mxu1 %v13678_v62  ;;  %v13751_v59 = vld [vmem:[#allocation5 + $0x758] ss:$24 sps:$4 sm:$0xff]   ;;  %v13762_v62 = vld [vmem:[#allocation5 + $0x194] ss:$24 sps:$4 sm:$0xff]  }
 0x256   :  { %2830 = vmatprep.subr.bf16.mxu0 %v13675_v61  ;;  %v13759_v61 = vld [vmem:[#allocation5 + $0x78c] ss:$24 sps:$4 sm:$0xff]  }
 0x258   :  { %2913 = vmatpush1.bf16.msra.mxu1 %v13676_v0  ;;  %v13760_v0 = vld [vmem:[#allocation5 + $0x190] ss:$24 sps:$4 sm:$0xff]  }
 0x259   :  { %2831 = vmatpush1.bf16.msra.mxu0 %v13673_v63  ;;  %2914 = vmatprep.subr.bf16.mxu1 %v13684_v2  ;;  %v13757_v63 = vld [vmem:[#allocation5 + $0x788] ss:$24 sps:$4 sm:$0xff]   ;;  %v13768_v2 = vld [vmem:[#allocation5 + $0x1c4] ss:$24 sps:$4 sm:$0xff]  }
 0x25a   :  { %2832 = vmatprep.subr.bf16.mxu0 %v13681_v1  ;;  %v13765_v1 = vld [vmem:[#allocation5 + $0x7bc] ss:$24 sps:$4 sm:$0xff]  }
 0x25c   :  { %2915 = vmatpush1.bf16.msra.mxu1 %v13682_v4  ;;  %v13766_v4 = vld [vmem:[#allocation5 + $0x1c0] ss:$24 sps:$4 sm:$0xff]  }
 0x25d   :  { %2833 = vmatpush1.bf16.msra.mxu0 %v13679_v3  ;;  %2916 = vmatprep.subr.bf16.mxu1 %v13690_v6  ;;  %v13763_v3 = vld [vmem:[#allocation5 + $0x7b8] ss:$24 sps:$4 sm:$0xff]   ;;  %v13774_v6 = vld [vmem:[#allocation5 + $0x1f4] ss:$24 sps:$4 sm:$0xff]  }
 0x25e   :  { %2834 = vmatprep.subr.bf16.mxu0 %v13687_v5  ;;  %v13771_v5 = vld [vmem:[#allocation5 + $0x7ec] ss:$24 sps:$4 sm:$0xff]  }
 0x260   :  { %2917 = vmatpush1.bf16.msra.mxu1 %v13688_v8  ;;  %v13772_v8 = vld [vmem:[#allocation5 + $0x1f0] ss:$24 sps:$4 sm:$0xff]  }
 0x261   :  { %2835 = vmatpush1.bf16.msra.mxu0 %v13685_v7  ;;  %2918 = vmatprep.subr.bf16.mxu1 %v13696_v12  ;;  %v13769_v7 = vld [vmem:[#allocation5 + $0x7e8] ss:$24 sps:$4 sm:$0xff]   ;;  %v13780_v12 = vld [vmem:[#allocation5 + $0x224] ss:$24 sps:$4 sm:$0xff]  }
 0x262   :  { %2836 = vmatprep.subr.bf16.mxu0 %v13693_v9  ;;  %v13777_v9 = vld [vmem:[#allocation5 + $0x81c] ss:$24 sps:$4 sm:$0xff]  }
 0x264   :  { %2919 = vmatpush1.bf16.msra.mxu1 %v13694_v14  ;;  %v13778_v14 = vld [vmem:[#allocation5 + $0x220] ss:$24 sps:$4 sm:$0xff]  }
 0x265   :  { %2837 = vmatpush1.bf16.msra.mxu0 %v13691_v13  ;;  %2920 = vmatprep.subr.bf16.mxu1 %v13702_v16  ;;  %v13775_v13 = vld [vmem:[#allocation5 + $0x818] ss:$24 sps:$4 sm:$0xff]   ;;  %v13786_v16 = vld [vmem:[#allocation5 + $0x254] ss:$24 sps:$4 sm:$0xff]  }
 0x266   :  { %2838 = vmatprep.subr.bf16.mxu0 %v13699_v15  ;;  %v13783_v15 = vld [vmem:[#allocation5 + $0x84c] ss:$24 sps:$4 sm:$0xff]  }
 0x268   :  { %2921 = vmatpush1.bf16.msra.mxu1 %v13700_v19  ;;  %v13784_v19 = vld [vmem:[#allocation5 + $0x250] ss:$24 sps:$4 sm:$0xff]  }
 0x269   :  { %2839 = vmatpush1.bf16.msra.mxu0 %v13697_v18  ;;  %2922 = vmatprep.subr.bf16.mxu1 %v13708_v21  ;;  %v13781_v18 = vld [vmem:[#allocation5 + $0x848] ss:$24 sps:$4 sm:$0xff]   ;;  %v13792_v21 = vld [vmem:[#allocation5 + $0x284] ss:$24 sps:$4 sm:$0xff]  }
 0x26a   :  { %2840 = vmatprep.subr.bf16.mxu0 %v13705_v20  ;;  %v13789_v20 = vld [vmem:[#allocation5 + $0x87c] ss:$24 sps:$4 sm:$0xff]  }
 0x26c   :  { %2923 = vmatpush1.bf16.msra.mxu1 %v13706_v23  ;;  %v13790_v23 = vld [vmem:[#allocation5 + $0x280] ss:$24 sps:$4 sm:$0xff]  }
 0x26d   :  { %2841 = vmatpush1.bf16.msra.mxu0 %v13703_v22  ;;  %2933 = vmatprep.subr.bf16.mxu1 %v13711_v26  ;;  %v13787_v22 = vld [vmem:[#allocation5 + $0x878] ss:$24 sps:$4 sm:$0xff]   ;;  %v13798_v26 = vld [vmem:[#allocation5 + $0x2b4] ss:$24 sps:$4 sm:$0xff]  }
 0x26e   :  { %3015 = vmatprep.subr.bf16.mxu0 %v13714_v27  ;;  %v13793_v27 = vld [vmem:[#allocation5 + $0x8a8] ss:$24 sps:$4 sm:$0xff]  }
 0x26f   :  { %2925 = vmatmul.mubr.bf16.vlgmr.msra.gmra.mrb[4].mxu1 %v16051_v11 }
 0x270   :  { %2843 = vmatmul.mubr.bf16.vlgmr.msra.gmra.mrb[0].mxu0 %v16067_v28  ;;  %2934 = vmatpush1.bf16.msra.mxu1 %v13709_v29  ;;  %v13796_v29 = vld [vmem:[#allocation5 + $0x2b0] ss:$24 sps:$4 sm:$0xff]  }
 0x271   :  { %3016 = vmatpush1.bf16.msra.mxu0 %v13712_v30  ;;  %2935 = vmatprep.subr.bf16.mxu1 %v13717_v31  ;;  %v13801_v30 = vld [vmem:[#allocation5 + $0x8dc] ss:$24 sps:$4 sm:$0xff]  }
 0x272   :  { %3017 = vmatprep.subr.bf16.mxu0 %v13720_v32  ;;  %2965 = vmatprep.mubr.bf16.mxu1 %v16056_v36  ;;  %v13804_v31 = vld [vmem:[#allocation5 + $0x2e4] ss:$24 sps:$4 sm:$0xff]   ;;  %v13799_v32 = vld [vmem:[#allocation5 + $0x8d8] ss:$24 sps:$4 sm:$0xff]  }
 0x273   :  { %3047 = vmatprep.mubr.bf16.mxu0 %v16043_v47  ;;  %v13741_v47 = vld [vmem:[#allocation5 + $0x6fc] ss:$24 sps:$4 sm:$0xff]  }
 0x274   :  { %2936 = vmatpush1.bf16.msra.mxu1 %v13715_v33  ;;  %v13802_v33 = vld [vmem:[#allocation5 + $0x2e0] ss:$24 sps:$4 sm:$0xff]  }
 0x275   :  { %3018 = vmatpush1.bf16.msra.mxu0 %v13718_v34  ;;  %2937 = vmatprep.subr.bf16.mxu1 %v13723_v35  ;;  %v13807_v34 = vld [vmem:[#allocation5 + $0x90c] ss:$24 sps:$4 sm:$0xff]  }
 0x276   :  { %3019 = vmatprep.subr.bf16.mxu0 %v13726_v37  ;;  %v13810_v35 = vld [vmem:[#allocation5 + $0x314] ss:$24 sps:$4 sm:$0xff]   ;;  %v13805_v37 = vld [vmem:[#allocation5 + $0x908] ss:$24 sps:$4 sm:$0xff]  }
 0x278   :  { %2938 = vmatpush1.bf16.msra.mxu1 %v13721_v38  ;;  %v13808_v38 = vld [vmem:[#allocation5 + $0x310] ss:$24 sps:$4 sm:$0xff]  }
 0x279   :  { %3020 = vmatpush1.bf16.msra.mxu0 %v13724_v39  ;;  %2939 = vmatprep.subr.bf16.mxu1 %v13729_v40  ;;  %v13813_v39 = vld [vmem:[#allocation5 + $0x93c] ss:$24 sps:$4 sm:$0xff]  }
 0x27a   :  { %3021 = vmatprep.subr.bf16.mxu0 %v13732_v41  ;;  %v13816_v40 = vld [vmem:[#allocation5 + $0x344] ss:$24 sps:$4 sm:$0xff]   ;;  %v13811_v41 = vld [vmem:[#allocation5 + $0x938] ss:$24 sps:$4 sm:$0xff]  }
 0x27c   :  { %2940 = vmatpush1.bf16.msra.mxu1 %v13727_v42  ;;  %v13814_v42 = vld [vmem:[#allocation5 + $0x340] ss:$24 sps:$4 sm:$0xff]  }
 0x27d   :  { %3022 = vmatpush1.bf16.msra.mxu0 %v13730_v43  ;;  %2941 = vmatprep.subr.bf16.mxu1 %v13735_v44  ;;  %v13819_v43 = vld [vmem:[#allocation5 + $0x96c] ss:$24 sps:$4 sm:$0xff]  }
 0x27e   :  { %3023 = vmatprep.subr.bf16.mxu0 %v13738_v45  ;;  %v13822_v44 = vld [vmem:[#allocation5 + $0x374] ss:$24 sps:$4 sm:$0xff]   ;;  %v13817_v45 = vld [vmem:[#allocation5 + $0x968] ss:$24 sps:$4 sm:$0xff]  }
 0x280   :  { %2942 = vmatpush1.bf16.msra.mxu1 %v13733_v46  ;;  %v13820_v46 = vld [vmem:[#allocation5 + $0x370] ss:$24 sps:$4 sm:$0xff]  }
 0x281   :  { %3024 = vmatpush1.bf16.msra.mxu0 %v13736_v48  ;;  %2943 = vmatprep.subr.bf16.mxu1 %v13741_v47  ;;  %v13825_v48 = vld [vmem:[#allocation5 + $0x99c] ss:$24 sps:$4 sm:$0xff]  }
 0x282   :  { %3025 = vmatprep.subr.bf16.mxu0 %v13744_v49  ;;  %v13828_v47 = vld [vmem:[#allocation5 + $0x3a4] ss:$24 sps:$4 sm:$0xff]   ;;  %v13826_v49 = vld [vmem:[#allocation5 + $0x3a0] ss:$24 sps:$4 sm:$0xff]  }
 0x284   :  { %2944 = vmatpush1.bf16.msra.mxu1 %v13739_v50  ;;  %v13831_v50 = vld [vmem:[#allocation5 + $0x9cc] ss:$24 sps:$4 sm:$0xff]  }
 0x285   :  { %3026 = vmatpush1.bf16.msra.mxu0 %v13742_v52  ;;  %2945 = vmatprep.subr.bf16.mxu1 %v13747_v53  ;;  %v13834_v52 = vld [vmem:[#allocation5 + $0x3d4] ss:$24 sps:$4 sm:$0xff]   ;;  %v13829_v53 = vld [vmem:[#allocation5 + $0x9c8] ss:$24 sps:$4 sm:$0xff]  }
 0x286   :  { %3027 = vmatprep.subr.bf16.mxu0 %v13750_v54  ;;  %v13832_v54 = vld [vmem:[#allocation5 + $0x3d0] ss:$24 sps:$4 sm:$0xff]  }
 0x288   :  { %2946 = vmatpush1.bf16.msra.mxu1 %v13745_v55  ;;  %v13840_v55 = vld [vmem:[#allocation5 + $0x404] ss:$24 sps:$4 sm:$0xff]  }
 0x289   :  { %3028 = vmatpush1.bf16.msra.mxu0 %v13748_v56  ;;  %2947 = vmatprep.subr.bf16.mxu1 %v13753_v57  ;;  %v13835_v56 = vld [vmem:[#allocation5 + $0x9f8] ss:$24 sps:$4 sm:$0xff]  }
 0x28a   :  { %3029 = vmatprep.subr.bf16.mxu0 %v13756_v58  ;;  %v13838_v57 = vld [vmem:[#allocation5 + $0x400] ss:$24 sps:$4 sm:$0xff]   ;;  %v13843_v58 = vld [vmem:[#allocation5 + $0xa2c] ss:$24 sps:$4 sm:$0xff]  }
 0x28c   :  { %2948 = vmatpush1.bf16.msra.mxu1 %v13751_v59  ;;  %v13846_v59 = vld [vmem:[#allocation5 + $0x434] ss:$24 sps:$4 sm:$0xff]  }
 0x28d   :  { %3030 = vmatpush1.bf16.msra.mxu0 %v13754_v60  ;;  %2949 = vmatprep.subr.bf16.mxu1 %v13759_v61  ;;  %v13841_v60 = vld [vmem:[#allocation5 + $0xa28] ss:$24 sps:$4 sm:$0xff]  }
 0x28e   :  { %3031 = vmatprep.subr.bf16.mxu0 %v13762_v62  ;;  %v13844_v61 = vld [vmem:[#allocation5 + $0x430] ss:$24 sps:$4 sm:$0xff]  }
 0x290   :  { %2950 = vmatpush1.bf16.msra.mxu1 %v13757_v63  ;;  %v13849_v63 = vld [vmem:[#allocation5 + $0xa5c] ss:$24 sps:$4 sm:$0xff]  }
 0x291   :  { %3032 = vmatpush1.bf16.msra.mxu0 %v13760_v0  ;;  %2951 = vmatprep.subr.bf16.mxu1 %v13765_v1 }
 0x292   :  { %3033 = vmatprep.subr.bf16.mxu0 %v13768_v2  ;;  %v13852_v2 = vld [vmem:[#allocation5 + $0x464] ss:$24 sps:$4 sm:$0xff]  }
 0x294   :  { %2952 = vmatpush1.bf16.msra.mxu1 %v13763_v3 }
 0x295   :  { %3034 = vmatpush1.bf16.msra.mxu0 %v13766_v4  ;;  %2953 = vmatprep.subr.bf16.mxu1 %v13771_v5  ;;  %v13847_v4 = vld [vmem:[#allocation5 + $0xa58] ss:$24 sps:$4 sm:$0xff]  }
 0x296   :  { %3035 = vmatprep.subr.bf16.mxu0 %v13774_v6  ;;  %v13850_v5 = vld [vmem:[#allocation5 + $0x460] ss:$24 sps:$4 sm:$0xff]   ;;  %v13855_v6 = vld [vmem:[#allocation5 + $0xa8c] ss:$24 sps:$4 sm:$0xff]  }
 0x298   :  { %2954 = vmatpush1.bf16.msra.mxu1 %v13769_v7  ;;  %v13858_v7 = vld [vmem:[#allocation5 + $0x494] ss:$24 sps:$4 sm:$0xff]  }
 0x299   :  { %3036 = vmatpush1.bf16.msra.mxu0 %v13772_v8  ;;  %2955 = vmatprep.subr.bf16.mxu1 %v13777_v9  ;;  %v13853_v8 = vld [vmem:[#allocation5 + $0xa88] ss:$24 sps:$4 sm:$0xff]  }
 0x29a   :  { %3037 = vmatprep.subr.bf16.mxu0 %v13780_v12  ;;  %v13856_v9 = vld [vmem:[#allocation5 + $0x490] ss:$24 sps:$4 sm:$0xff]   ;;  %v13861_v12 = vld [vmem:[#allocation5 + $0xabc] ss:$24 sps:$4 sm:$0xff]  }
 0x29c   :  { %2956 = vmatpush1.bf16.msra.mxu1 %v13775_v13  ;;  %v13864_v13 = vld [vmem:[#allocation5 + $0x4c4] ss:$24 sps:$4 sm:$0xff]  }
 0x29d   :  { %3038 = vmatpush1.bf16.msra.mxu0 %v13778_v14  ;;  %2957 = vmatprep.subr.bf16.mxu1 %v13783_v15  ;;  %v13859_v14 = vld [vmem:[#allocation5 + $0xab8] ss:$24 sps:$4 sm:$0xff]  }
 0x29e   :  { %3039 = vmatprep.subr.bf16.mxu0 %v13786_v16  ;;  %v13862_v15 = vld [vmem:[#allocation5 + $0x4c0] ss:$24 sps:$4 sm:$0xff]   ;;  %v13867_v16 = vld [vmem:[#allocation5 + $0xaec] ss:$24 sps:$4 sm:$0xff]  }
 0x2a0   :  { %2958 = vmatpush1.bf16.msra.mxu1 %v13781_v18  ;;  %v13870_v18 = vld [vmem:[#allocation5 + $0x4f4] ss:$24 sps:$4 sm:$0xff]  }
 0x2a1   :  { %3040 = vmatpush1.bf16.msra.mxu0 %v13784_v19  ;;  %2959 = vmatprep.subr.bf16.mxu1 %v13789_v20  ;;  %v13865_v19 = vld [vmem:[#allocation5 + $0xae8] ss:$24 sps:$4 sm:$0xff]  }
 0x2a2   :  { %3041 = vmatprep.subr.bf16.mxu0 %v13792_v21  ;;  %v13868_v20 = vld [vmem:[#allocation5 + $0x4f0] ss:$24 sps:$4 sm:$0xff]   ;;  %v13873_v21 = vld [vmem:[#allocation5 + $0xb1c] ss:$24 sps:$4 sm:$0xff]  }
 0x2a4   :  { %2960 = vmatpush1.bf16.msra.mxu1 %v13787_v22  ;;  %v13876_v22 = vld [vmem:[#allocation5 + $0x524] ss:$24 sps:$4 sm:$0xff]  }
 0x2a5   :  { %3042 = vmatpush1.bf16.msra.mxu0 %v13790_v23  ;;  %2961 = vmatprep.subr.bf16.mxu1 %v13795_v24  ;;  %v13871_v23 = vld [vmem:[#allocation5 + $0xb18] ss:$24 sps:$4 sm:$0xff]  }
 0x2a6   :  { %3043 = vmatprep.subr.bf16.mxu0 %v13798_v26  ;;  %v13874_v24 = vld [vmem:[#allocation5 + $0x520] ss:$24 sps:$4 sm:$0xff]   ;;  %v13879_v26 = vld [vmem:[#allocation5 + $0xb4c] ss:$24 sps:$4 sm:$0xff]  }
 0x2a8   :  { %2962 = vmatpush1.bf16.msra.mxu1 %v13793_v27  ;;  %v13882_v27 = vld [vmem:[#allocation5 + $0x554] ss:$24 sps:$4 sm:$0xff]  }
 0x2a9   :  { %3044 = vmatpush1.bf16.msra.mxu0 %v13796_v29  ;;  %2963 = vmatprep.subr.bf16.mxu1 %v13801_v30  ;;  %v13877_v29 = vld [vmem:[#allocation5 + $0xb48] ss:$24 sps:$4 sm:$0xff]  }
 0x2aa   :  { %3045 = vmatprep.subr.bf16.mxu0 %v13804_v31  ;;  %v13880_v30 = vld [vmem:[#allocation5 + $0x550] ss:$24 sps:$4 sm:$0xff]   ;;  %v13885_v31 = vld [vmem:[#allocation5 + $0xb7c] ss:$24 sps:$4 sm:$0xff]  }
 0x2ac   :  { %2964 = vmatpush1.bf16.msra.mxu1 %v13799_v32  ;;  %v13888_v32 = vld [vmem:[#allocation5 + $0x584] ss:$24 sps:$4 sm:$0xff]  }
 0x2ad   :  { %3046 = vmatpush1.bf16.msra.mxu0 %v13802_v33  ;;  %2974 = vmatprep.subr.bf16.mxu1 %v13807_v34  ;;  %v13883_v33 = vld [vmem:[#allocation5 + $0xb78] ss:$24 sps:$4 sm:$0xff]  }
 0x2ae   :  { %3056 = vmatprep.subr.bf16.mxu0 %v13810_v35  ;;  %v13886_v34 = vld [vmem:[#allocation5 + $0x580] ss:$24 sps:$4 sm:$0xff]   ;;  %v13891_v35 = vld [vmem:[#allocation5 + $0xbac] ss:$24 sps:$4 sm:$0xff]  }
 0x2af   :  { %2966 = vmatmul.mubr.bf16.vlgmr.msra.gmra.mrb[4].mxu1 %v16059_v17 }
 0x2b0   :  { %3048 = vmatmul.mubr.bf16.vlgmr.msra.gmra.mrb[4].mxu0 %v16049_v10  ;;  %2975 = vmatpush1.bf16.msra.mxu1 %v13805_v37  ;;  %v13823_v10 = vld [vmem:[#allocation5 + $0x998] ss:$24 sps:$4 sm:$0xff]   ;;  %v13894_v37 = vld [vmem:[#allocation5 + $0x5b4] ss:$24 sps:$4 sm:$0xff]  }
 0x2b1   :  { %3057 = vmatpush1.bf16.msra.mxu0 %v13808_v38  ;;  %2976 = vmatprep.subr.bf16.mxu1 %v13813_v39  ;;  %v13889_v38 = vld [vmem:[#allocation5 + $0xba8] ss:$24 sps:$4 sm:$0xff]  }
 0x2b2   :  { %3058 = vmatprep.subr.bf16.mxu0 %v13816_v40  ;;  %3006 = vmatprep.mubr.bf16.mxu1 %v16063_v25  ;;  %v13892_v39 = vld [vmem:[#allocation5 + $0x5b0] ss:$24 sps:$4 sm:$0xff]   ;;  %v13897_v40 = vld [vmem:[#allocation5 + $0xbdc] ss:$24 sps:$4 sm:$0xff]  }
 0x2b3   :  { %3088 = vmatprep.mubr.bf16.mxu0 %v16045_v51  ;;  %v13837_v51 = vld [vmem:[#allocation5 + $0x9fc] ss:$24 sps:$4 sm:$0xff]  }
 0x2b4   :  { %2977 = vmatpush1.bf16.msra.mxu1 %v13811_v41  ;;  %v13900_v41 = vld [vmem:[#allocation5 + $0x5e4] ss:$24 sps:$4 sm:$0xff]  }
 0x2b5   :  { %3059 = vmatpush1.bf16.msra.mxu0 %v13814_v42  ;;  %2978 = vmatprep.subr.bf16.mxu1 %v13819_v43  ;;  %v13895_v42 = vld [vmem:[#allocation5 + $0xbd8] ss:$24 sps:$4 sm:$0xff]  }
 0x2b6   :  { %3060 = vmatprep.subr.bf16.mxu0 %v13822_v44  ;;  %v13898_v43 = vld [vmem:[#allocation5 + $0x5e0] ss:$24 sps:$4 sm:$0xff]   ;;  %v13903_v44 = vld [vmem:[#allocation5 + $0x614] ss:$24 sps:$4 sm:$0xff]  }
 0x2b8   :  { %2979 = vmatpush1.bf16.msra.mxu1 %v13817_v45  ;;  %v13933_v45 = vld [vmem:[#allocation8 + $0x4] ss:$16 sps:$4 sm:$0xff]  }
 0x2b9   :  { %3061 = vmatpush1.bf16.msra.mxu0 %v13820_v46  ;;  %2980 = vmatprep.subr.bf16.mxu1 %v13825_v48  ;;  %v13901_v46 = vld [vmem:[#allocation5 + $0x610] ss:$24 sps:$4 sm:$0xff]  }
 0x2ba   :  { %3062 = vmatprep.subr.bf16.mxu0 %v13828_v47  ;;  %v13931_v48 = vld [vmem:[#allocation8] ss:$16 sps:$4 sm:$0xff]  }
 0x2bb   :  { %v13906_v47 = vld [vmem:[#allocation5 + $0x644] ss:$24 sps:$4 sm:$0xff]  }
 0x2bc   :  { %2981 = vmatpush1.bf16.msra.mxu1 %v13823_v10  ;;  %v13939_v10 = vld [vmem:[#allocation8 + $0x24] ss:$16 sps:$4 sm:$0xff]  }
 0x2bd   :  { %3063 = vmatpush1.bf16.msra.mxu0 %v13826_v49  ;;  %2982 = vmatprep.subr.bf16.mxu1 %v13831_v50  ;;  %v13904_v49 = vld [vmem:[#allocation5 + $0x640] ss:$24 sps:$4 sm:$0xff]  }
 0x2be   :  { %3064 = vmatprep.subr.bf16.mxu0 %v13834_v52  ;;  %v13937_v50 = vld [vmem:[#allocation8 + $0x20] ss:$16 sps:$4 sm:$0xff]  }
 0x2bf   :  { %v13909_v52 = vld [vmem:[#allocation5 + $0x674] ss:$24 sps:$4 sm:$0xff]  }
 0x2c0   :  { %2983 = vmatpush1.bf16.msra.mxu1 %v13829_v53  ;;  %v13945_v53 = vld [vmem:[#allocation8 + $0x44] ss:$16 sps:$4 sm:$0xff]  }
 0x2c1   :  { %3065 = vmatpush1.bf16.msra.mxu0 %v13832_v54  ;;  %2984 = vmatprep.subr.bf16.mxu1 %v13837_v51  ;;  %v13907_v54 = vld [vmem:[#allocation5 + $0x670] ss:$24 sps:$4 sm:$0xff]  }
 0x2c2   :  { %3066 = vmatprep.subr.bf16.mxu0 %v13840_v55  ;;  %v16077_v62 = vpop.f32.mrb[0].mxu1  ;;  %v13943_v51 = vld [vmem:[#allocation8 + $0x40] ss:$16 sps:$4 sm:$0xff]  }
 0x2c3   :  { %v16079_v0 = vpop.f32.mrb[1].mxu1  ;;  %v13912_v55 = vld [vmem:[#allocation5 + $0x6a4] ss:$24 sps:$4 sm:$0xff]  }
 0x2c4   :  { %2985 = vmatpush1.bf16.msra.mxu1 %v13835_v56  ;;  %v2725_v1 = vpop.f32.mrb[2].mxu1  ;;  %v13951_v56 = vld [vmem:[#allocation8 + $0x64] ss:$16 sps:$4 sm:$0xff]  }
 0x2c5   :  { %3067 = vmatpush1.bf16.msra.mxu0 %v13838_v57  ;;  %2986 = vmatprep.subr.bf16.mxu1 %v13843_v58  ;;  %v2726_v3 = vpop.f32.mrb[3].mxu1  ;;  %v13910_v57 = vld [vmem:[#allocation5 + $0x6a0] ss:$24 sps:$4 sm:$0xff]   ;;  %v13915_v58 = vld [vmem:[#allocation5 + $0x6d4] ss:$24 sps:$4 sm:$0xff]  }
 0x2c6   :  { %3068 = vmatprep.subr.bf16.mxu0 %v13846_v59  ;;  %v13957_v59 = vld [vmem:[#allocation8 + $0x84] ss:$16 sps:$4 sm:$0xff]  }
 0x2c7   :  { %v13916_v1 = vld [vmem:[#allocation5 + $0x700] ss:$24 sps:$4 sm:$0xff]   ;;  %v13921_v3 = vld [vmem:[#allocation5 + $0x734] ss:$24 sps:$4 sm:$0xff]  }
 0x2c8   :  { %2987 = vmatpush1.bf16.msra.mxu1 %v13841_v60  ;;  %v13913_v60 = vld [vmem:[#allocation5 + $0x6d0] ss:$24 sps:$4 sm:$0xff]  }
 0x2c9   :  { %3069 = vmatpush1.bf16.msra.mxu0 %v13844_v61  ;;  %2988 = vmatprep.subr.bf16.mxu1 %v13849_v63  ;;  %v13955_v61 = vld [vmem:[#allocation8 + $0x80] ss:$16 sps:$4 sm:$0xff]   ;;  %v13963_v63 = vld [vmem:[#allocation8 + $0xa4] ss:$16 sps:$4 sm:$0xff]  }
 0x2ca   :  { %3070 = vmatprep.subr.bf16.mxu0 %v13852_v2  ;;  %v13961_v2 = vld [vmem:[#allocation8 + $0xa0] ss:$16 sps:$4 sm:$0xff]  }
 0x2cc   :  { %2989 = vmatpush1.bf16.msra.mxu1 %v13847_v4  ;;  %v13969_v4 = vld [vmem:[#allocation8 + $0xc4] ss:$16 sps:$4 sm:$0xff]  }
 0x2cd   :  { %3071 = vmatpush1.bf16.msra.mxu0 %v13850_v5  ;;  %2990 = vmatprep.subr.bf16.mxu1 %v13855_v6  ;;  %v13919_v5 = vld [vmem:[#allocation5 + $0x730] ss:$24 sps:$4 sm:$0xff]  }
 0x2ce   :  { %3072 = vmatprep.subr.bf16.mxu0 %v13858_v7  ;;  %v13967_v6 = vld [vmem:[#allocation8 + $0xc0] ss:$16 sps:$4 sm:$0xff]  }
 0x2cf   :  { %v13924_v7 = vld [vmem:[#allocation5 + $0x764] ss:$24 sps:$4 sm:$0xff]  }
 0x2d0   :  { %2991 = vmatpush1.bf16.msra.mxu1 %v13853_v8  ;;  %v13975_v8 = vld [vmem:[#allocation8 + $0xe4] ss:$16 sps:$4 sm:$0xff]  }
 0x2d1   :  { %3073 = vmatpush1.bf16.msra.mxu0 %v13856_v9  ;;  %2992 = vmatprep.subr.bf16.mxu1 %v13861_v12  ;;  %v13922_v9 = vld [vmem:[#allocation5 + $0x760] ss:$24 sps:$4 sm:$0xff]  }
 0x2d2   :  { %3074 = vmatprep.subr.bf16.mxu0 %v13864_v13  ;;  %v13973_v12 = vld [vmem:[#allocation8 + $0xe0] ss:$16 sps:$4 sm:$0xff]  }
 0x2d3   :  { %v13927_v13 = vld [vmem:[#allocation5 + $0x794] ss:$24 sps:$4 sm:$0xff]  }
 0x2d4   :  { %2993 = vmatpush1.bf16.msra.mxu1 %v13859_v14  ;;  %v13981_v14 = vld [vmem:[#allocation8 + $0x104] ss:$16 sps:$4 sm:$0xff]  }
 0x2d5   :  { %3075 = vmatpush1.bf16.msra.mxu0 %v13862_v15  ;;  %2994 = vmatprep.subr.bf16.mxu1 %v13867_v16  ;;  %v13925_v15 = vld [vmem:[#allocation5 + $0x790] ss:$24 sps:$4 sm:$0xff]  }
 0x2d6   :  { %3076 = vmatprep.subr.bf16.mxu0 %v13870_v18  ;;  %v13979_v16 = vld [vmem:[#allocation8 + $0x100] ss:$16 sps:$4 sm:$0xff]  }
 0x2d7   :  { %v13930_v18 = vld [vmem:[#allocation5 + $0x7c4] ss:$24 sps:$4 sm:$0xff]  }
 0x2d8   :  { %2995 = vmatpush1.bf16.msra.mxu1 %v13865_v19  ;;  %v13987_v19 = vld [vmem:[#allocation8 + $0x124] ss:$16 sps:$4 sm:$0xff]  }
 0x2d9   :  { %3077 = vmatpush1.bf16.msra.mxu0 %v13868_v20  ;;  %2996 = vmatprep.subr.bf16.mxu1 %v13873_v21  ;;  %v13928_v20 = vld [vmem:[#allocation5 + $0x7c0] ss:$24 sps:$4 sm:$0xff]  }
 0x2da   :  { %3078 = vmatprep.subr.bf16.mxu0 %v13876_v22  ;;  %v13985_v21 = vld [vmem:[#allocation8 + $0x120] ss:$16 sps:$4 sm:$0xff]  }
 0x2db   :  { %v13936_v22 = vld [vmem:[#allocation5 + $0x7f4] ss:$24 sps:$4 sm:$0xff]  }
 0x2dc   :  { %2997 = vmatpush1.bf16.msra.mxu1 %v13871_v23  ;;  %v13993_v23 = vld [vmem:[#allocation8 + $0x144] ss:$16 sps:$4 sm:$0xff]  }
 0x2dd   :  { %3079 = vmatpush1.bf16.msra.mxu0 %v13874_v24  ;;  %2998 = vmatprep.subr.bf16.mxu1 %v13879_v26  ;;  %v13934_v24 = vld [vmem:[#allocation5 + $0x7f0] ss:$24 sps:$4 sm:$0xff]  }
 0x2de   :  { %3080 = vmatprep.subr.bf16.mxu0 %v13882_v27  ;;  %v13991_v26 = vld [vmem:[#allocation8 + $0x140] ss:$16 sps:$4 sm:$0xff]  }
 0x2df   :  { %v13942_v27 = vld [vmem:[#allocation5 + $0x824] ss:$24 sps:$4 sm:$0xff]  }
 0x2e0   :  { %2999 = vmatpush1.bf16.msra.mxu1 %v13877_v29  ;;  %v13999_v29 = vld [vmem:[#allocation8 + $0x164] ss:$16 sps:$4 sm:$0xff]  }
 0x2e1   :  { %3081 = vmatpush1.bf16.msra.mxu0 %v13880_v30  ;;  %3000 = vmatprep.subr.bf16.mxu1 %v13885_v31  ;;  %v13940_v30 = vld [vmem:[#allocation5 + $0x820] ss:$24 sps:$4 sm:$0xff]  }
 0x2e2   :  { %3082 = vmatprep.subr.bf16.mxu0 %v13888_v32  ;;  %v13997_v31 = vld [vmem:[#allocation8 + $0x160] ss:$16 sps:$4 sm:$0xff]  }
 0x2e3   :  { %v13948_v32 = vld [vmem:[#allocation5 + $0x854] ss:$24 sps:$4 sm:$0xff]  }
 0x2e4   :  { %3001 = vmatpush1.bf16.msra.mxu1 %v13883_v33  ;;  %v14005_v33 = vld [vmem:[#allocation8 + $0x184] ss:$16 sps:$4 sm:$0xff]  }
 0x2e5   :  { %3083 = vmatpush1.bf16.msra.mxu0 %v13886_v34  ;;  %3002 = vmatprep.subr.bf16.mxu1 %v13891_v35  ;;  %v13946_v34 = vld [vmem:[#allocation5 + $0x850] ss:$24 sps:$4 sm:$0xff]  }
 0x2e6   :  { %3084 = vmatprep.subr.bf16.mxu0 %v13894_v37  ;;  %v14003_v35 = vld [vmem:[#allocation8 + $0x180] ss:$16 sps:$4 sm:$0xff]  }
 0x2e7   :  { %v13954_v37 = vld [vmem:[#allocation5 + $0x884] ss:$24 sps:$4 sm:$0xff]  }
 0x2e8   :  { %3003 = vmatpush1.bf16.msra.mxu1 %v13889_v38  ;;  %v14011_v38 = vld [vmem:[#allocation8 + $0x1a4] ss:$16 sps:$4 sm:$0xff]  }
 0x2e9   :  { %3085 = vmatpush1.bf16.msra.mxu0 %v13892_v39  ;;  %3004 = vmatprep.subr.bf16.mxu1 %v13897_v40  ;;  %v13952_v39 = vld [vmem:[#allocation5 + $0x880] ss:$24 sps:$4 sm:$0xff]  }
 0x2ea   :  { %3086 = vmatprep.subr.bf16.mxu0 %v13900_v41  ;;  %v14009_v40 = vld [vmem:[#allocation8 + $0x1a0] ss:$16 sps:$4 sm:$0xff]  }
 0x2eb   :  { %v13960_v41 = vld [vmem:[#allocation5 + $0x8b4] ss:$24 sps:$4 sm:$0xff]  }
 0x2ec   :  { %3005 = vmatpush1.bf16.msra.mxu1 %v13895_v42  ;;  %v14017_v42 = vld [vmem:[#allocation8 + $0x1c4] ss:$16 sps:$4 sm:$0xff]  }
 0x2ed   :  { %3087 = vmatpush1.bf16.msra.mxu0 %v13898_v43  ;;  %4365 = vmatprep.subr.bf16.mxu1 %v13933_v45  ;;  %v13958_v43 = vld [vmem:[#allocation5 + $0x8b0] ss:$24 sps:$4 sm:$0xff]   ;;  %v13966_v45 = vld [vmem:[#allocation5 + $0x8e4] ss:$24 sps:$4 sm:$0xff]  }
 0x2ee   :  { %3097 = vmatprep.subr.bf16.mxu0 %v13903_v44  ;;  %v14015_v44 = vld [vmem:[#allocation8 + $0x1c0] ss:$16 sps:$4 sm:$0xff]  }
 0x2ef   :  { %3007 = vmatmul.mubr.bf16.vlgmr.msra.gmra.mrb[4].mxu1 %v16067_v28 }
 0x2f0   :  { %3089 = vmatmul.mubr.bf16.vlgmr.msra.gmra.mrb[4].mxu0 %v16051_v11  ;;  %4366 = vmatpush1.bf16.msra.mxu1 %v13931_v48  ;;  %v13949_v11 = vld [vmem:[#allocation8 + $0x60] ss:$16 sps:$4 sm:$0xff]  }
 0x2f1   :  { %3098 = vmatpush1.bf16.msra.mxu0 %v13901_v46  ;;  %4367 = vmatprep.subr.bf16.mxu1 %v13939_v10  ;;  %v14023_v46 = vld [vmem:[#allocation8 + $0x1e4] ss:$16 sps:$4 sm:$0xff]  }
 0x2f2   :  { %3099 = vmatprep.subr.bf16.mxu0 %v13906_v47  ;;  %3129 = vmatprep.mubr.bf16.mxu0 %v16056_v36  ;;  %v13918_v36 = vld [vmem:[#allocation5 + $0x704] ss:$24 sps:$4 sm:$0xff]   ;;  %v13964_v48 = vld [vmem:[#allocation5 + $0x8e0] ss:$24 sps:$4 sm:$0xff]   ;;  %v13972_v10 = vld [vmem:[#allocation5 + $0x914] ss:$24 sps:$4 sm:$0xff]  }
 0x2f3   :  { %v14021_v47 = vld [vmem:[#allocation8 + $0x1e0] ss:$16 sps:$4 sm:$0xff]  }
 0x2f4   :  { %4368 = vmatpush1.bf16.msra.mxu1 %v13937_v50  ;;  %v13970_v50 = vld [vmem:[#allocation5 + $0x910] ss:$24 sps:$4 sm:$0xff]  }
 0x2f5   :  { %3100 = vmatpush1.bf16.msra.mxu0 %v13904_v49  ;;  %4369 = vmatprep.subr.bf16.mxu1 %v13945_v53  ;;  %v14047_v49 = vld [vmem:[#allocation8 + $0x204] ss:$16 sps:$4 sm:$0xff]  }
 0x2f6   :  { %3101 = vmatprep.subr.bf16.mxu0 %v13909_v52  ;;  %v13978_v52 = vld [vmem:[#allocation5 + $0x944] ss:$24 sps:$4 sm:$0xff]   ;;  %v13976_v53 = vld [vmem:[#allocation5 + $0x940] ss:$24 sps:$4 sm:$0xff]  }
 0x2f8   :  { %4370 = vmatpush1.bf16.msra.mxu1 %v13943_v51  ;;  %v737_v51 = vlaneseq }
 0x2f9   :  { %3102 = vmatpush1.bf16.msra.mxu0 %v13907_v54  ;;  %4371 = vmatprep.subr.bf16.mxu1 %v13951_v56  ;;  %v13984_v54 = vld [vmem:[#allocation5 + $0x974] ss:$24 sps:$4 sm:$0xff]   ;;  %v13990_v56 = vld [vmem:[#allocation5 + $0x9a4] ss:$24 sps:$4 sm:$0xff]  }
 0x2fa   :  { %3103 = vmatprep.subr.bf16.mxu0 %v13912_v55  ;;  %v13982_v55 = vld [vmem:[#allocation5 + $0x970] ss:$24 sps:$4 sm:$0xff]  }
 0x2fc   :  { %4372 = vmatpush1.bf16.msra.mxu1 %v13949_v11  ;;  %v13988_v11 = vld [vmem:[#allocation5 + $0x9a0] ss:$24 sps:$4 sm:$0xff]  }
 0x2fd   :  { %3104 = vmatpush1.bf16.msra.mxu0 %v13910_v57  ;;  %4373 = vmatprep.subr.bf16.mxu1 %v13957_v59  ;;  %v16086_v57 = vshrl.u32 %v737_v51, 7  ;;  %v16088_v59 = vld [vmem:[#allocation7] sm:$0x3f]  ;;  %v14074_v51 = vld [vmem:[#allocation8 + $0x324] ss:$16 sps:$4 sm:$0xff]  }
 0x2fe   :  { %3105 = vmatprep.subr.bf16.mxu0 %v13915_v58  ;;  %v13996_v58 = vld [vmem:[#allocation5 + $0x9d4] ss:$24 sps:$4 sm:$0xff]  }
 0x300   :  { %4374 = vmatpush1.bf16.msra.mxu1 %v13955_v61  ;;  %v14002_v61 = vld [vmem:[#allocation5 + $0xa04] ss:$24 sps:$4 sm:$0xff]  }
 0x301   :  { %3106 = vmatpush1.bf16.msra.mxu0 %v13913_v60  ;;  %4375 = vmatprep.subr.bf16.mxu1 %v13963_v63  ;;  %v16091_v60 = vsub.s32 0, %v16086_v57 }
 0x302   :  { %3107 = vmatprep.subr.bf16.mxu0 %v13918_v36 }
 0x303   :  { %v740_v36 = vrot.slane %v16088_v59, %v16091_v60 }
 0x304   :  { %4376 = vmatpush1.bf16.msra.mxu1 %v13961_v2  ;;  %v14008_v2 = vld [vmem:[#allocation5 + $0xa34] ss:$24 sps:$4 sm:$0xff]  }
 0x305   :  { %3108 = vmatpush1.bf16.msra.mxu0 %v13916_v1  ;;  %4377 = vmatprep.subr.bf16.mxu1 %v13969_v4  ;;  %v14000_v1 = vld [vmem:[#allocation5 + $0xa00] ss:$24 sps:$4 sm:$0xff]  }
 0x306   :  { %3109 = vmatprep.subr.bf16.mxu0 %v13921_v3  ;;  %v2722_v3 = vadd.f32 %v16077_v62, %v740_v36  ;;  %v14018_v62 = vld [vmem:[#allocation5 + $0xa90] ss:$24 sps:$4 sm:$0xff]  }
 0x307   :  { %v14081_v36 = vld [vmem:[#allocation8 + $0x380] ss:$16 sps:$4 sm:$0xff]  }
 0x308   :  { %4378 = vmatpush1.bf16.msra.mxu1 %v13967_v6  ;;  %v14006_v6 = vld [vmem:[#allocation5 + $0xa30] ss:$24 sps:$4 sm:$0xff]  }
 0x309   :  { %3110 = vmatpush1.bf16.msra.mxu0 %v13919_v5  ;;  %4379 = vmatprep.subr.bf16.mxu1 %v13975_v8 }
 0x30a   :  { %3111 = vmatprep.subr.bf16.mxu0 %v13924_v7 }
 0x30c   :  { %4380 = vmatpush1.bf16.msra.mxu1 %v13973_v12 }
 0x30d   :  { %3112 = vmatpush1.bf16.msra.mxu0 %v13922_v9  ;;  %4381 = vmatprep.subr.bf16.mxu1 %v13981_v14  ;;  %v14014_v9 = vld [vmem:[#allocation5 + $0xa64] ss:$24 sps:$4 sm:$0xff]  }
 0x30e   :  { %3113 = vmatprep.subr.bf16.mxu0 %v13927_v13 }
 0x310   :  { %4382 = vmatpush1.bf16.msra.mxu1 %v13979_v16  ;;  %v14020_v16 = vld [vmem:[#allocation5 + $0xa94] ss:$24 sps:$4 sm:$0xff]  }
 0x311   :  { %3114 = vmatpush1.bf16.msra.mxu0 %v13925_v15  ;;  %4383 = vmatprep.subr.bf16.mxu1 %v13987_v19  ;;  %v14012_v15 = vld [vmem:[#allocation5 + $0xa60] ss:$24 sps:$4 sm:$0xff]  }
 0x312   :  { %3115 = vmatprep.subr.bf16.mxu0 %v13930_v18  ;;  %v14026_v18 = vld [vmem:[#allocation5 + $0xac4] ss:$24 sps:$4 sm:$0xff]  }
 0x314   :  { %4384 = vmatpush1.bf16.msra.mxu1 %v13985_v21  ;;  %v14045_v21 = vld [vmem:[#allocation8 + $0x200] ss:$16 sps:$4 sm:$0xff]  }
 0x315   :  { %3116 = vmatpush1.bf16.msra.mxu0 %v13928_v20  ;;  %4385 = vmatprep.subr.bf16.mxu1 %v13993_v23  ;;  %v14029_v20 = vld [vmem:[#allocation5 + $0xaf4] ss:$24 sps:$4 sm:$0xff]  }
 0x316   :  { %3117 = vmatprep.subr.bf16.mxu0 %v13936_v22  ;;  %v14050_v23 = vld [vmem:[#allocation8 + $0x224] ss:$16 sps:$4 sm:$0xff]  }
 0x318   :  { %4386 = vmatpush1.bf16.msra.mxu1 %v13991_v26 }
 0x319   :  { %3118 = vmatpush1.bf16.msra.mxu0 %v13934_v24  ;;  %4387 = vmatprep.subr.bf16.mxu1 %v13999_v29  ;;  %v14032_v29 = vld [vmem:[#allocation5 + $0xb24] ss:$24 sps:$4 sm:$0xff]  }
 0x31a   :  { %3119 = vmatprep.subr.bf16.mxu0 %v13942_v27  ;;  %v14027_v27 = vld [vmem:[#allocation5 + $0xaf0] ss:$24 sps:$4 sm:$0xff]  }
 0x31c   :  { %4388 = vmatpush1.bf16.msra.mxu1 %v13997_v31  ;;  %v14053_v31 = vld [vmem:[#allocation8 + $0x244] ss:$16 sps:$4 sm:$0xff]  }
 0x31d   :  { %3120 = vmatpush1.bf16.msra.mxu0 %v13940_v30  ;;  %4389 = vmatprep.subr.bf16.mxu1 %v14005_v33  ;;  %v14048_v30 = vld [vmem:[#allocation8 + $0x220] ss:$16 sps:$4 sm:$0xff]  }
 0x31e   :  { %3121 = vmatprep.subr.bf16.mxu0 %v13948_v32  ;;  %v14030_v32 = vld [vmem:[#allocation5 + $0xb20] ss:$24 sps:$4 sm:$0xff]   ;;  %v14035_v33 = vld [vmem:[#allocation5 + $0xb54] ss:$24 sps:$4 sm:$0xff]  }
 0x320   :  { %4390 = vmatpush1.bf16.msra.mxu1 %v14003_v35  ;;  %v14056_v35 = vld [vmem:[#allocation8 + $0x264] ss:$16 sps:$4 sm:$0xff]  }
 0x321   :  { %3122 = vmatpush1.bf16.msra.mxu0 %v13946_v34  ;;  %4391 = vmatprep.subr.bf16.mxu1 %v14011_v38  ;;  %v14051_v34 = vld [vmem:[#allocation8 + $0x240] ss:$16 sps:$4 sm:$0xff]  }
 0x322   :  { %3123 = vmatprep.subr.bf16.mxu0 %v13954_v37  ;;  %v14033_v37 = vld [vmem:[#allocation5 + $0xb50] ss:$24 sps:$4 sm:$0xff]   ;;  %v14038_v38 = vld [vmem:[#allocation5 + $0xb84] ss:$24 sps:$4 sm:$0xff]  }
 0x324   :  { %4392 = vmatpush1.bf16.msra.mxu1 %v14009_v40  ;;  %v14059_v40 = vld [vmem:[#allocation8 + $0x284] ss:$16 sps:$4 sm:$0xff]  }
 0x325   :  { %3124 = vmatpush1.bf16.msra.mxu0 %v13952_v39  ;;  %4393 = vmatprep.subr.bf16.mxu1 %v14017_v42  ;;  %v14054_v39 = vld [vmem:[#allocation8 + $0x260] ss:$16 sps:$4 sm:$0xff]  }
 0x326   :  { %3125 = vmatprep.subr.bf16.mxu0 %v13960_v41  ;;  %v14036_v41 = vld [vmem:[#allocation5 + $0xb80] ss:$24 sps:$4 sm:$0xff]   ;;  %v14041_v42 = vld [vmem:[#allocation5 + $0xbb4] ss:$24 sps:$4 sm:$0xff]  }
 0x328   :  { %4394 = vmatpush1.bf16.msra.mxu1 %v14015_v44  ;;  %v14062_v44 = vld [vmem:[#allocation8 + $0x2a4] ss:$16 sps:$4 sm:$0xff]  }
 0x329   :  { %3126 = vmatpush1.bf16.msra.mxu0 %v13958_v43  ;;  %4395 = vmatprep.subr.bf16.mxu1 %v14023_v46  ;;  %v14057_v43 = vld [vmem:[#allocation8 + $0x280] ss:$16 sps:$4 sm:$0xff]  }
 0x32a   :  { %3127 = vmatprep.subr.bf16.mxu0 %v13966_v45  ;;  %v14039_v45 = vld [vmem:[#allocation5 + $0xbb0] ss:$24 sps:$4 sm:$0xff]   ;;  %v14044_v46 = vld [vmem:[#allocation5 + $0xbe4] ss:$24 sps:$4 sm:$0xff]  }
 0x32c   :  { %4396 = vmatpush1.bf16.msra.mxu1 %v14021_v47  ;;  %v14065_v47 = vld [vmem:[#allocation8 + $0x2c4] ss:$16 sps:$4 sm:$0xff]  }
 0x32d   :  { %3128 = vmatpush1.bf16.msra.mxu0 %v13964_v48  ;;  %4406 = vmatprep.subr.bf16.mxu1 %v14047_v49  ;;  %v14060_v48 = vld [vmem:[#allocation8 + $0x2a0] ss:$16 sps:$4 sm:$0xff]  }
 0x32e   :  { %3138 = vmatprep.subr.bf16.mxu0 %v13972_v10  ;;  %v14042_v10 = vld [vmem:[#allocation5 + $0xbe0] ss:$24 sps:$4 sm:$0xff]  }
 0x32f   :  { %v14063_v49 = vld [vmem:[#allocation8 + $0x2c0] ss:$16 sps:$4 sm:$0xff]  }
 0x330   :  { %3130 = vmatmul.mubr.bf16.vlgmr.msra.gmra.mrb[4].mxu0 %v16059_v17  ;;  %v16094_v17 = vsub.s32 1, %v16086_v57 }
 0x331   :  { %3139 = vmatpush1.bf16.msra.mxu0 %v13970_v50  ;;  %3170 = vmatprep.mubr.bf16.mxu0 %v16063_v25  ;;  %v13994_v25 = vld [vmem:[#allocation5 + $0x9d0] ss:$24 sps:$4 sm:$0xff]  }
 0x332   :  { %3140 = vmatprep.subr.bf16.mxu0 %v13978_v52  ;;  %v744_v63 = vrot.slane %v16088_v59, %v16094_v17  ;;  %v14068_v50 = vld [vmem:[#allocation8 + $0x2e4] ss:$16 sps:$4 sm:$0xff]   ;;  %v14066_v52 = vld [vmem:[#allocation8 + $0x2e0] ss:$16 sps:$4 sm:$0xff]  }
 0x334   :  { %v2724_v4 = vadd.f32 %v16079_v0, %v744_v63  ;;  %v14024_v0 = vld [vmem:[#allocation5 + $0xac0] ss:$24 sps:$4 sm:$0xff]  }
 0x335   :  { %3141 = vmatpush1.bf16.msra.mxu0 %v13976_v53  ;;  %v14071_v53 = vld [vmem:[#allocation8 + $0x304] ss:$16 sps:$4 sm:$0xff]  }
 0x336   :  { %3142 = vmatprep.subr.bf16.mxu0 %v13984_v54  ;;  %v14069_v54 = vld [vmem:[#allocation8 + $0x300] ss:$16 sps:$4 sm:$0xff]   ;;  %v14086_v63 = vld [vmem:[#allocation8 + $0x3a4] ss:$16 sps:$4 sm:$0xff]  }
 0x339   :  { %3143 = vmatpush1.bf16.msra.mxu0 %v13982_v55  ;;  %v14072_v55 = vld [vmem:[#allocation8 + $0x320] ss:$16 sps:$4 sm:$0xff]  }
 0x33a   :  { %3144 = vmatprep.subr.bf16.mxu0 %v13990_v56  ;;  %v14077_v56 = vld [vmem:[#allocation8 + $0x344] ss:$16 sps:$4 sm:$0xff]  }
 0x33d   :  { %3145 = vmatpush1.bf16.msra.mxu0 %v13988_v11  ;;  %v14075_v11 = vld [vmem:[#allocation8 + $0x340] ss:$16 sps:$4 sm:$0xff]  }
 0x33e   :  { %3146 = vmatprep.subr.bf16.mxu0 %v13996_v58  ;;  %v14080_v58 = vld [vmem:[#allocation8 + $0x364] ss:$16 sps:$4 sm:$0xff]  }
 0x341   :  { %3147 = vmatpush1.bf16.msra.mxu0 %v13994_v25  ;;  %v14078_v25 = vld [vmem:[#allocation8 + $0x360] ss:$16 sps:$4 sm:$0xff]  }
 0x342   :  { %3148 = vmatprep.subr.bf16.mxu0 %v14002_v61  ;;  %v14083_v61 = vld [vmem:[#allocation8 + $0x384] ss:$16 sps:$4 sm:$0xff]  }
 0x343   :  { %v2844_v5 = vpop.f32.mrb[0].mxu0 }
 0x344   :  { %v13244_v7 = vadd.f32 %v2844_v5, %v2722_v3  ;;  %v2846_v8 = vpop.f32.mrb[1].mxu0  ;;  %v14092_v3 = vld [vmem:[#allocation8 + $0x3e4] ss:$16 sps:$4 sm:$0xff]  }
 0x345   :  { %v13246_v12 = vadd.f32 %v2846_v8, %v2724_v4  ;;  %v2848_v13 = vpop.f32.mrb[2].mxu0  ;;  %3149 = vmatpush1.bf16.msra.mxu0 %v14000_v1  ;;  %v14089_v1 = vld [vmem:[#allocation8 + $0x3c4] ss:$16 sps:$4 sm:$0xff]   ;;  %v14090_v4 = vld [vmem:[#allocation8 + $0x3e0] ss:$16 sps:$4 sm:$0xff]  }
 0x346   :  { %15021 = vtanh.f32 %v13244_v7  ;;  %v2849_v14 = vpop.f32.mrb[3].mxu0  ;;  %3150 = vmatprep.subr.bf16.mxu0 %v14008_v2  ;;  %v14087_v2 = vld [vmem:[#allocation8 + $0x3c0] ss:$16 sps:$4 sm:$0xff]   ;;  %v14095_v5 = vld [vmem:[#allocation8 + $0x404] ss:$16 sps:$4 sm:$0xff]   ;;  %v16113_v7 = vsub.s32 3, %v16086_v57 }
 0x347   :  { %15023 = vtanh.f32 %v13246_v12 }
 0x349   :  { %3151 = vmatpush1.bf16.msra.mxu0 %v14006_v6  ;;  %v16110_v6 = vsub.s32 2, %v16086_v57 }
 0x34a   :  { %3152 = vmatprep.subr.bf16.mxu0 %v14014_v9  ;;  %v16117_v9 = vld [vmem:[#allocation7] sm:$0x3f] }
 0x34b   :  { %v748_v8 = vrot.slane %v16088_v59, %v16110_v6  ;;  %v752_v12 = vrot.slane %v16117_v9, %v16113_v7  ;;  %v14098_v59 = vld [vmem:[#allocation8 + $0x424] ss:$16 sps:$4 sm:$0xff]  }
 0x34d   :  { %3153 = vmatpush1.bf16.msra.mxu0 %v14012_v15 }
 0x34e   :  { %3154 = vmatprep.subr.bf16.mxu0 %v14020_v16 }
 0x350   :  { %v15022_v19 = vpop.eup %15021 }
 0x351   :  { %v15024_v22 = vpop.eup %15023  ;;  %3155 = vmatpush1.bf16.msra.mxu0 %v14018_v62  ;;  %v16104_v26 = vpack.c.bf16 %v15022_v19, %v15022_v19 }
 0x352   :  { %v16102_v24 = vpack.c.bf16 %v15024_v22, %v15024_v22  ;;  %3156 = vmatprep.subr.bf16.mxu0 %v14026_v18 }
 0x354   :  { %4397 = vmatprep.mubr.bf16.mxu1 %v16102_v24 }
 0x355   :  { %3157 = vmatpush1.bf16.msra.mxu0 %v14024_v0  ;;  %4398 = vmatmul.mubr.bf16.vlgmr.msra.gmra.mrb[8].mxu1 %v16104_v26 }
 0x356   :  { %3158 = vmatprep.subr.bf16.mxu0 %v14029_v20  ;;  %4407 = vmatpush1.bf16.msra.mxu1 %v14045_v21  ;;  %v14093_v21 = vld [vmem:[#allocation8 + $0x400] ss:$16 sps:$4 sm:$0xff]  }
 0x357   :  { %4408 = vmatprep.subr.bf16.mxu1 %v14050_v23  ;;  %v14096_v23 = vld [vmem:[#allocation8 + $0x420] ss:$16 sps:$4 sm:$0xff]  }
 0x359   :  { %3159 = vmatpush1.bf16.msra.mxu0 %v14027_v27  ;;  %v14101_v27 = vld [vmem:[#allocation8 + $0x444] ss:$16 sps:$4 sm:$0xff]  }
 0x35a   :  { %3160 = vmatprep.subr.bf16.mxu0 %v14032_v29  ;;  %4409 = vmatpush1.bf16.msra.mxu1 %v14048_v30  ;;  %v14099_v29 = vld [vmem:[#allocation8 + $0x440] ss:$16 sps:$4 sm:$0xff]   ;;  %v14104_v30 = vld [vmem:[#allocation8 + $0x464] ss:$16 sps:$4 sm:$0xff]  }
 0x35b   :  { %4410 = vmatprep.subr.bf16.mxu1 %v14053_v31  ;;  %v14102_v31 = vld [vmem:[#allocation8 + $0x460] ss:$16 sps:$4 sm:$0xff]  }
 0x35d   :  { %3161 = vmatpush1.bf16.msra.mxu0 %v14030_v32  ;;  %v14107_v32 = vld [vmem:[#allocation8 + $0x484] ss:$16 sps:$4 sm:$0xff]  }
 0x35e   :  { %3162 = vmatprep.subr.bf16.mxu0 %v14035_v33  ;;  %4411 = vmatpush1.bf16.msra.mxu1 %v14051_v34  ;;  %v14105_v33 = vld [vmem:[#allocation8 + $0x480] ss:$16 sps:$4 sm:$0xff]   ;;  %v14110_v34 = vld [vmem:[#allocation8 + $0x4a4] ss:$16 sps:$4 sm:$0xff]  }
 0x35f   :  { %4412 = vmatprep.subr.bf16.mxu1 %v14056_v35  ;;  %v14108_v35 = vld [vmem:[#allocation8 + $0x4a0] ss:$16 sps:$4 sm:$0xff]  }
 0x361   :  { %3163 = vmatpush1.bf16.msra.mxu0 %v14033_v37  ;;  %v14113_v37 = vld [vmem:[#allocation8 + $0x4c4] ss:$16 sps:$4 sm:$0xff]  }
 0x362   :  { %3164 = vmatprep.subr.bf16.mxu0 %v14038_v38  ;;  %4413 = vmatpush1.bf16.msra.mxu1 %v14054_v39  ;;  %v14111_v38 = vld [vmem:[#allocation8 + $0x4c0] ss:$16 sps:$4 sm:$0xff]   ;;  %v14116_v39 = vld [vmem:[#allocation8 + $0x4e4] ss:$16 sps:$4 sm:$0xff]  }
 0x363   :  { %4414 = vmatprep.subr.bf16.mxu1 %v14059_v40  ;;  %v14114_v40 = vld [vmem:[#allocation8 + $0x4e0] ss:$16 sps:$4 sm:$0xff]  }
 0x365   :  { %3165 = vmatpush1.bf16.msra.mxu0 %v14036_v41  ;;  %v14119_v41 = vld [vmem:[#allocation8 + $0x504] ss:$16 sps:$4 sm:$0xff]  }
 0x366   :  { %3166 = vmatprep.subr.bf16.mxu0 %v14041_v42  ;;  %4415 = vmatpush1.bf16.msra.mxu1 %v14057_v43  ;;  %v14117_v42 = vld [vmem:[#allocation8 + $0x500] ss:$16 sps:$4 sm:$0xff]   ;;  %v14122_v43 = vld [vmem:[#allocation8 + $0x524] ss:$16 sps:$4 sm:$0xff]  }
 0x367   :  { %4416 = vmatprep.subr.bf16.mxu1 %v14062_v44  ;;  %v14120_v44 = vld [vmem:[#allocation8 + $0x520] ss:$16 sps:$4 sm:$0xff]  }
 0x369   :  { %3167 = vmatpush1.bf16.msra.mxu0 %v14039_v45  ;;  %v14125_v45 = vld [vmem:[#allocation8 + $0x544] ss:$16 sps:$4 sm:$0xff]  }
 0x36a   :  { %3168 = vmatprep.subr.bf16.mxu0 %v14044_v46  ;;  %4417 = vmatpush1.bf16.msra.mxu1 %v14060_v48  ;;  %v14123_v46 = vld [vmem:[#allocation8 + $0x540] ss:$16 sps:$4 sm:$0xff]   ;;  %v14128_v48 = vld [vmem:[#allocation8 + $0x564] ss:$16 sps:$4 sm:$0xff]  }
 0x36b   :  { %4418 = vmatprep.subr.bf16.mxu1 %v14065_v47  ;;  %v14126_v47 = vld [vmem:[#allocation8 + $0x560] ss:$16 sps:$4 sm:$0xff]  }
 0x36d   :  { %3169 = vmatpush1.bf16.msra.mxu0 %v14042_v10  ;;  %v14131_v10 = vld [vmem:[#allocation8 + $0x584] ss:$16 sps:$4 sm:$0xff]  }
 0x36e   :  { %4419 = vmatpush1.bf16.msra.mxu1 %v14063_v49  ;;  %v14129_v49 = vld [vmem:[#allocation8 + $0x580] ss:$16 sps:$4 sm:$0xff]  }
 0x36f   :  { %4420 = vmatprep.subr.bf16.mxu1 %v14068_v50  ;;  %v14134_v50 = vld [vmem:[#allocation8 + $0x5a4] ss:$16 sps:$4 sm:$0xff]  }
 0x370   :  { %3171 = vmatmul.mubr.bf16.vlgmr.msra.gmra.mrb[4].mxu0 %v16067_v28  ;;  %v14084_v28 = vld [vmem:[#allocation8 + $0x3a0] ss:$16 sps:$4 sm:$0xff]  }
 0x372   :  { %4421 = vmatpush1.bf16.msra.mxu1 %v14066_v52  ;;  %v14132_v52 = vld [vmem:[#allocation8 + $0x5a0] ss:$16 sps:$4 sm:$0xff]  }
 0x373   :  { %4422 = vmatprep.subr.bf16.mxu1 %v14071_v53  ;;  %v14137_v53 = vld [vmem:[#allocation8 + $0x5c4] ss:$16 sps:$4 sm:$0xff]  }
 0x376   :  { %4423 = vmatpush1.bf16.msra.mxu1 %v14069_v54  ;;  %v14135_v54 = vld [vmem:[#allocation8 + $0x5c0] ss:$16 sps:$4 sm:$0xff]  }
 0x377   :  { %4424 = vmatprep.subr.bf16.mxu1 %v14074_v51  ;;  %v14140_v51 = vld [vmem:[#allocation8 + $0x5e4] ss:$16 sps:$4 sm:$0xff]  }
 0x37a   :  { %4425 = vmatpush1.bf16.msra.mxu1 %v14072_v55  ;;  %v14138_v55 = vld [vmem:[#allocation8 + $0x5e0] ss:$16 sps:$4 sm:$0xff]  }
 0x37b   :  { %4426 = vmatprep.subr.bf16.mxu1 %v14077_v56  ;;  %v14143_v56 = vld [vmem:[#allocation8 + $0xc] ss:$16 sps:$4 sm:$0xff]  }
 0x37e   :  { %4427 = vmatpush1.bf16.msra.mxu1 %v14075_v11  ;;  %v16128_v11 = vsub.s32 4, %v16086_v57 }
 0x37f   :  { %4428 = vmatprep.subr.bf16.mxu1 %v14080_v58  ;;  %v16131_v58 = vsub.s32 5, %v16086_v57 }
 0x382   :  { %4429 = vmatpush1.bf16.msra.mxu1 %v14078_v25  ;;  %v756_v25 = vrot.slane %v16117_v9, %v16128_v11 }
 0x383   :  { %4430 = vmatprep.subr.bf16.mxu1 %v14083_v61  ;;  %v760_v61 = vrot.slane %v16117_v9, %v16131_v58  ;;  %v14144_v9 = vld [vmem:[#allocation8 + $0x28] ss:$16 sps:$4 sm:$0xff]  }
 0x386   :  { %4431 = vmatpush1.bf16.msra.mxu1 %v14081_v36 }
 0x387   :  { %4432 = vmatprep.subr.bf16.mxu1 %v14086_v63 }
 0x38a   :  { %4433 = vmatpush1.bf16.msra.mxu1 %v14084_v28 }
 0x38b   :  { %4434 = vmatprep.subr.bf16.mxu1 %v14089_v1 }
 0x38e   :  { %4435 = vmatpush1.bf16.msra.mxu1 %v14087_v2 }
 0x38f   :  { %4436 = vmatprep.subr.bf16.mxu1 %v14092_v3 }
 0x392   :  { %4437 = vmatpush1.bf16.msra.mxu1 %v14090_v4 }
 0x393   :  { %4447 = vmatprep.subr.bf16.mxu1 %v14095_v5 }
 0x3c2   :  { %v3008_v13 = vpop.f32.mrb[4].mxu1 }
 0x3c3   :  { %v13247_v14 = vadd.f32 %v3008_v13, %v748_v8  ;;  %v3010_v15 = vpop.f32.mrb[5].mxu1 }
 0x3c4   :  { %v13248_v16 = vadd.f32 %v3010_v15, %v752_v12  ;;  %v3012_v62 = vpop.f32.mrb[6].mxu1  ;;  %v14141_v12 = vld [vmem:[#allocation8 + $0x8] ss:$16 sps:$4 sm:$0xff]   ;;  %v14149_v15 = vld [vmem:[#allocation8 + $0x4c] ss:$16 sps:$4 sm:$0xff]  }
 0x3c5   :  { %15025 = vtanh.f32 %v13247_v14  ;;  %v3013_v18 = vpop.f32.mrb[7].mxu1  ;;  %v14146_v14 = vld [vmem:[#allocation8 + $0x2c] ss:$16 sps:$4 sm:$0xff]  }
 0x3c6   :  { %15027 = vtanh.f32 %v13248_v16  ;;  %v14147_v16 = vld [vmem:[#allocation8 + $0x48] ss:$16 sps:$4 sm:$0xff]   ;;  %v14152_v62 = vld [vmem:[#allocation8 + $0x6c] ss:$16 sps:$4 sm:$0xff]  }
 0x3c7   :  { %v14150_v18 = vld [vmem:[#allocation8 + $0x68] ss:$16 sps:$4 sm:$0xff]  }
 0x3cf   :  { %v15026_v0 = vpop.eup %15025 }
 0x3d0   :  { %v15028_v19 = vpop.eup %15027  ;;  %v16123_v22 = vpack.c.bf16 %v15026_v0, %v15026_v0  ;;  %v14155_v0 = vld [vmem:[#allocation8 + $0x8c] ss:$16 sps:$4 sm:$0xff]  }
 0x3d1   :  { %v16121_v20 = vpack.c.bf16 %v15028_v19, %v15028_v19  ;;  %v14153_v19 = vld [vmem:[#allocation8 + $0x88] ss:$16 sps:$4 sm:$0xff]  }
 0x3d3   :  { %4438 = vmatprep.mubr.bf16.mxu1 %v16121_v20 }
 0x3d4   :  { %4439 = vmatmul.mubr.bf16.vlgmr.msra.gmra.mrb[8].mxu1 %v16123_v22 }
 0x3d5   :  { %4448 = vmatpush1.bf16.msra.mxu1 %v14093_v21  ;;  %v14158_v21 = vld [vmem:[#allocation8 + $0xac] ss:$16 sps:$4 sm:$0xff]  }
 0x3d6   :  { %4449 = vmatprep.subr.bf16.mxu1 %v14098_v59  ;;  %v14156_v59 = vld [vmem:[#allocation8 + $0xa8] ss:$16 sps:$4 sm:$0xff]  }
 0x3d9   :  { %4450 = vmatpush1.bf16.msra.mxu1 %v14096_v23  ;;  %v14161_v23 = vld [vmem:[#allocation8 + $0xcc] ss:$16 sps:$4 sm:$0xff]  }
 0x3da   :  { %4451 = vmatprep.subr.bf16.mxu1 %v14101_v27  ;;  %v14164_v27 = vld [vmem:[#allocation8 + $0xec] ss:$16 sps:$4 sm:$0xff]  }
 0x3dd   :  { %4452 = vmatpush1.bf16.msra.mxu1 %v14099_v29  ;;  %v14162_v29 = vld [vmem:[#allocation8 + $0xe8] ss:$16 sps:$4 sm:$0xff]  }
 0x3de   :  { %4453 = vmatprep.subr.bf16.mxu1 %v14104_v30  ;;  %v14167_v30 = vld [vmem:[#allocation8 + $0x10c] ss:$16 sps:$4 sm:$0xff]  }
 0x3e1   :  { %4454 = vmatpush1.bf16.msra.mxu1 %v14102_v31  ;;  %v14165_v31 = vld [vmem:[#allocation8 + $0x108] ss:$16 sps:$4 sm:$0xff]  }
 0x3e2   :  { %4455 = vmatprep.subr.bf16.mxu1 %v14107_v32  ;;  %v14170_v32 = vld [vmem:[#allocation8 + $0x12c] ss:$16 sps:$4 sm:$0xff]  }
 0x3e5   :  { %4456 = vmatpush1.bf16.msra.mxu1 %v14105_v33  ;;  %v14168_v33 = vld [vmem:[#allocation8 + $0x128] ss:$16 sps:$4 sm:$0xff]  }
 0x3e6   :  { %4457 = vmatprep.subr.bf16.mxu1 %v14110_v34  ;;  %v14173_v34 = vld [vmem:[#allocation8 + $0x14c] ss:$16 sps:$4 sm:$0xff]  }
 0x3e9   :  { %4458 = vmatpush1.bf16.msra.mxu1 %v14108_v35  ;;  %v14269_v35 = vld [vmem:[#allocation11 + $0x4] ss:$12 sps:$4 sm:$0xff]  }
 0x3ea   :  { %4459 = vmatprep.subr.bf16.mxu1 %v14113_v37  ;;  %v14171_v37 = vld [vmem:[#allocation8 + $0x148] ss:$16 sps:$4 sm:$0xff]   ;;  %5276 = vmatprep.subr.bf16.mxu0 %v14269_v35 }
 0x3eb   :  { %v14324_v35 = vld [vmem:[#allocation11 + $0x138] ss:$12 sps:$4 sm:$0xff]  }
 0x3ed   :  { %4460 = vmatpush1.bf16.msra.mxu1 %v14111_v38  ;;  %v14267_v38 = vld [vmem:[#allocation11] ss:$12 sps:$4 sm:$0xff]  }
 0x3ee   :  { %4461 = vmatprep.subr.bf16.mxu1 %v14116_v39  ;;  %v14176_v39 = vld [vmem:[#allocation8 + $0x16c] ss:$16 sps:$4 sm:$0xff]   ;;  %5277 = vmatpush1.bf16.msra.mxu0 %v14267_v38  ;;  %v14329_v38 = vld [vmem:[#allocation11 + $0x154] ss:$12 sps:$4 sm:$0xff]  }
 0x3f1   :  { %4462 = vmatpush1.bf16.msra.mxu1 %v14114_v40  ;;  %v14275_v40 = vld [vmem:[#allocation11 + $0x1c] ss:$12 sps:$4 sm:$0xff]  }
 0x3f2   :  { %4463 = vmatprep.subr.bf16.mxu1 %v14119_v41  ;;  %v14174_v41 = vld [vmem:[#allocation8 + $0x168] ss:$16 sps:$4 sm:$0xff]   ;;  %5278 = vmatprep.subr.bf16.mxu0 %v14275_v40  ;;  %v14327_v40 = vld [vmem:[#allocation11 + $0x150] ss:$12 sps:$4 sm:$0xff]  }
 0x3f5   :  { %4464 = vmatpush1.bf16.msra.mxu1 %v14117_v42  ;;  %v14273_v42 = vld [vmem:[#allocation11 + $0x18] ss:$12 sps:$4 sm:$0xff]  }
 0x3f6   :  { %4465 = vmatprep.subr.bf16.mxu1 %v14122_v43  ;;  %v14179_v43 = vld [vmem:[#allocation8 + $0x18c] ss:$16 sps:$4 sm:$0xff]   ;;  %5279 = vmatpush1.bf16.msra.mxu0 %v14273_v42 }
 0x3f7   :  { %v14332_v42 = vld [vmem:[#allocation11 + $0x16c] ss:$12 sps:$4 sm:$0xff]  }
 0x3f9   :  { %4466 = vmatpush1.bf16.msra.mxu1 %v14120_v44  ;;  %v14281_v44 = vld [vmem:[#allocation11 + $0x34] ss:$12 sps:$4 sm:$0xff]  }
 0x3fa   :  { %4467 = vmatprep.subr.bf16.mxu1 %v14125_v45  ;;  %v14177_v45 = vld [vmem:[#allocation8 + $0x188] ss:$16 sps:$4 sm:$0xff]   ;;  %5280 = vmatprep.subr.bf16.mxu0 %v14281_v44 }
 0x3fb   :  { %v14330_v44 = vld [vmem:[#allocation11 + $0x168] ss:$12 sps:$4 sm:$0xff]  }
 0x3fd   :  { %4468 = vmatpush1.bf16.msra.mxu1 %v14123_v46  ;;  %v14279_v46 = vld [vmem:[#allocation11 + $0x30] ss:$12 sps:$4 sm:$0xff]  }
 0x3fe   :  { %4469 = vmatprep.subr.bf16.mxu1 %v14128_v48  ;;  %v14182_v48 = vld [vmem:[#allocation8 + $0x1ac] ss:$16 sps:$4 sm:$0xff]   ;;  %5281 = vmatpush1.bf16.msra.mxu0 %v14279_v46  ;;  %v14219_v46 = vld [vmem:[#allocation8 + $0x348] ss:$16 sps:$4 sm:$0xff]  }
 0x401   :  { %4470 = vmatpush1.bf16.msra.mxu1 %v14126_v47  ;;  %v14287_v47 = vld [vmem:[#allocation11 + $0x4c] ss:$12 sps:$4 sm:$0xff]  }
 0x402   :  { %4471 = vmatprep.subr.bf16.mxu1 %v14131_v10  ;;  %v14180_v10 = vld [vmem:[#allocation8 + $0x1a8] ss:$16 sps:$4 sm:$0xff]   ;;  %5282 = vmatprep.subr.bf16.mxu0 %v14287_v47  ;;  %v14224_v47 = vld [vmem:[#allocation8 + $0x36c] ss:$16 sps:$4 sm:$0xff]  }
 0x405   :  { %4472 = vmatpush1.bf16.msra.mxu1 %v14129_v49  ;;  %v14285_v49 = vld [vmem:[#allocation11 + $0x48] ss:$12 sps:$4 sm:$0xff]  }
 0x406   :  { %4473 = vmatprep.subr.bf16.mxu1 %v14134_v50  ;;  %v14185_v50 = vld [vmem:[#allocation8 + $0x1cc] ss:$16 sps:$4 sm:$0xff]   ;;  %5283 = vmatpush1.bf16.msra.mxu0 %v14285_v49 }
 0x407   :  { %v14227_v49 = vld [vmem:[#allocation8 + $0x38c] ss:$16 sps:$4 sm:$0xff]  }
 0x409   :  { %4474 = vmatpush1.bf16.msra.mxu1 %v14132_v52  ;;  %v14293_v52 = vld [vmem:[#allocation11 + $0x64] ss:$12 sps:$4 sm:$0xff]  }
 0x40a   :  { %4475 = vmatprep.subr.bf16.mxu1 %v14137_v53  ;;  %v14183_v53 = vld [vmem:[#allocation8 + $0x1c8] ss:$16 sps:$4 sm:$0xff]   ;;  %5284 = vmatprep.subr.bf16.mxu0 %v14293_v52  ;;  %v14230_v52 = vld [vmem:[#allocation8 + $0x3ac] ss:$16 sps:$4 sm:$0xff]  }
 0x40d   :  { %4476 = vmatpush1.bf16.msra.mxu1 %v14135_v54  ;;  %v14291_v54 = vld [vmem:[#allocation11 + $0x60] ss:$12 sps:$4 sm:$0xff]  }
 0x40e   :  { %4477 = vmatprep.subr.bf16.mxu1 %v14140_v51  ;;  %v14188_v51 = vld [vmem:[#allocation8 + $0x1ec] ss:$16 sps:$4 sm:$0xff]   ;;  %5285 = vmatpush1.bf16.msra.mxu0 %v14291_v54 }
 0x40f   :  { %v14233_v54 = vld [vmem:[#allocation8 + $0x3cc] ss:$16 sps:$4 sm:$0xff]  }
 0x411   :  { %4478 = vmatpush1.bf16.msra.mxu1 %v14138_v55  ;;  %v14299_v55 = vld [vmem:[#allocation11 + $0x7c] ss:$12 sps:$4 sm:$0xff]  }
 0x412   :  { %4488 = vmatprep.subr.bf16.mxu1 %v14143_v56  ;;  %v14186_v56 = vld [vmem:[#allocation8 + $0x1e8] ss:$16 sps:$4 sm:$0xff]   ;;  %5286 = vmatprep.subr.bf16.mxu0 %v14299_v55  ;;  %v14236_v55 = vld [vmem:[#allocation8 + $0x3ec] ss:$16 sps:$4 sm:$0xff]  }
 0x443   :  { %v3172_v36 = vpop.f32.mrb[4].mxu0 }
 0x444   :  { %v13249_v63 = vadd.f32 %v3172_v36, %v756_v25  ;;  %v3174_v28 = vpop.f32.mrb[5].mxu0  ;;  %v14297_v25 = vld [vmem:[#allocation11 + $0x78] ss:$12 sps:$4 sm:$0xff]   ;;  %v14305_v36 = vld [vmem:[#allocation11 + $0x94] ss:$12 sps:$4 sm:$0xff]  }
 0x445   :  { %v13250_v1 = vadd.f32 %v3174_v28, %v760_v61  ;;  %v3176_v2 = vpop.f32.mrb[6].mxu0  ;;  %v14191_v61 = vld [vmem:[#allocation8 + $0x20c] ss:$16 sps:$4 sm:$0xff]   ;;  %5287 = vmatpush1.bf16.msra.mxu0 %v14297_v25  ;;  %v14303_v28 = vld [vmem:[#allocation11 + $0x90] ss:$12 sps:$4 sm:$0xff]  }
 0x446   :  { %15029 = vtanh.f32 %v13249_v63  ;;  %v3177_v3 = vpop.f32.mrb[7].mxu0  ;;  %v14189_v63 = vld [vmem:[#allocation8 + $0x208] ss:$16 sps:$4 sm:$0xff]   ;;  %5288 = vmatprep.subr.bf16.mxu0 %v14305_v36  ;;  %v14239_v25 = vld [vmem:[#allocation8 + $0x40c] ss:$16 sps:$4 sm:$0xff]  }
 0x447   :  { %15031 = vtanh.f32 %v13250_v1  ;;  %v14194_v1 = vld [vmem:[#allocation8 + $0x22c] ss:$16 sps:$4 sm:$0xff]  }
 0x448   :  { %v14306_v2 = vld [vmem:[#allocation11 + $0xa8] ss:$12 sps:$4 sm:$0xff]   ;;  %v14308_v3 = vld [vmem:[#allocation11 + $0xac] ss:$12 sps:$4 sm:$0xff]  }
 0x449   :  { %5289 = vmatpush1.bf16.msra.mxu0 %v14303_v28  ;;  %v14242_v36 = vld [vmem:[#allocation8 + $0x42c] ss:$16 sps:$4 sm:$0xff]  }
 0x44a   :  { %5290 = vmatprep.subr.bf16.mxu0 %v14308_v3  ;;  %v14245_v28 = vld [vmem:[#allocation8 + $0x44c] ss:$16 sps:$4 sm:$0xff]   ;;  %v14246_v3 = vld [vmem:[#allocation8 + $0x468] ss:$16 sps:$4 sm:$0xff]  }
 0x44d   :  { %5291 = vmatpush1.bf16.msra.mxu0 %v14306_v2  ;;  %v14248_v2 = vld [vmem:[#allocation8 + $0x46c] ss:$16 sps:$4 sm:$0xff]  }
 0x450   :  { %v15030_v4 = vpop.eup %15029 }
 0x451   :  { %v15032_v5 = vpop.eup %15031  ;;  %v16139_v13 = vpack.c.bf16 %v15030_v4, %v15030_v4  ;;  %v14192_v4 = vld [vmem:[#allocation8 + $0x228] ss:$16 sps:$4 sm:$0xff]  }
 0x452   :  { %v16137_v8 = vpack.c.bf16 %v15032_v5, %v15032_v5  ;;  %v14311_v5 = vld [vmem:[#allocation11 + $0xc4] ss:$12 sps:$4 sm:$0xff]  }
 0x453   :  { %5292 = vmatprep.subr.bf16.mxu0 %v14311_v5  ;;  %v14249_v5 = vld [vmem:[#allocation8 + $0x488] ss:$16 sps:$4 sm:$0xff]  }
 0x454   :  { %4479 = vmatprep.mubr.bf16.mxu1 %v16137_v8 }
 0x455   :  { %4480 = vmatmul.mubr.bf16.vlgmr.msra.gmra.mrb[8].mxu1 %v16139_v13 }
 0x456   :  { %4489 = vmatpush1.bf16.msra.mxu1 %v14141_v12  ;;  %4520 = vmatprep.mubr.bf16.mxu1 %v16102_v24  ;;  %v14159_v24 = vld [vmem:[#allocation8 + $0xc8] ss:$16 sps:$4 sm:$0xff]   ;;  %v14197_v12 = vld [vmem:[#allocation8 + $0x24c] ss:$16 sps:$4 sm:$0xff]  }
 0x457   :  { %4490 = vmatprep.subr.bf16.mxu1 %v14146_v14  ;;  %v14309_v14 = vld [vmem:[#allocation11 + $0xc0] ss:$12 sps:$4 sm:$0xff]  }
 0x458   :  { %5293 = vmatpush1.bf16.msra.mxu0 %v14309_v14  ;;  %v14257_v14 = vld [vmem:[#allocation8 + $0x4cc] ss:$16 sps:$4 sm:$0xff]  }
 0x45a   :  { %4491 = vmatpush1.bf16.msra.mxu1 %v14144_v9  ;;  %v14314_v9 = vld [vmem:[#allocation11 + $0xdc] ss:$12 sps:$4 sm:$0xff]  }
 0x45b   :  { %4492 = vmatprep.subr.bf16.mxu1 %v14149_v15  ;;  %v14195_v15 = vld [vmem:[#allocation8 + $0x248] ss:$16 sps:$4 sm:$0xff]   ;;  %5294 = vmatprep.subr.bf16.mxu0 %v14314_v9  ;;  %v14260_v9 = vld [vmem:[#allocation8 + $0x4ec] ss:$16 sps:$4 sm:$0xff]  }
 0x45e   :  { %4493 = vmatpush1.bf16.msra.mxu1 %v14147_v16  ;;  %v14200_v16 = vld [vmem:[#allocation8 + $0x26c] ss:$16 sps:$4 sm:$0xff]  }
 0x45f   :  { %4494 = vmatprep.subr.bf16.mxu1 %v14152_v62  ;;  %v14317_v62 = vld [vmem:[#allocation11 + $0xf4] ss:$12 sps:$4 sm:$0xff]  }
 0x462   :  { %4495 = vmatpush1.bf16.msra.mxu1 %v14150_v18  ;;  %v14198_v18 = vld [vmem:[#allocation8 + $0x268] ss:$16 sps:$4 sm:$0xff]  }
 0x463   :  { %4496 = vmatprep.subr.bf16.mxu1 %v14155_v0  ;;  %v14315_v0 = vld [vmem:[#allocation11 + $0xf0] ss:$12 sps:$4 sm:$0xff]  }
 0x466   :  { %4497 = vmatpush1.bf16.msra.mxu1 %v14153_v19  ;;  %v14320_v19 = vld [vmem:[#allocation11 + $0x10c] ss:$12 sps:$4 sm:$0xff]  }
 0x467   :  { %4498 = vmatprep.subr.bf16.mxu1 %v14158_v21  ;;  %v14201_v21 = vld [vmem:[#allocation8 + $0x288] ss:$16 sps:$4 sm:$0xff]  }
 0x46a   :  { %4499 = vmatpush1.bf16.msra.mxu1 %v14156_v59  ;;  %v14206_v59 = vld [vmem:[#allocation8 + $0x2ac] ss:$16 sps:$4 sm:$0xff]  }
 0x46b   :  { %4500 = vmatprep.subr.bf16.mxu1 %v14161_v23  ;;  %v14318_v23 = vld [vmem:[#allocation11 + $0x108] ss:$12 sps:$4 sm:$0xff]  }
 0x46e   :  { %4501 = vmatpush1.bf16.msra.mxu1 %v14159_v24  ;;  %v14204_v24 = vld [vmem:[#allocation8 + $0x2a8] ss:$16 sps:$4 sm:$0xff]  }
 0x46f   :  { %4502 = vmatprep.subr.bf16.mxu1 %v14164_v27  ;;  %v14209_v27 = vld [vmem:[#allocation8 + $0x2cc] ss:$16 sps:$4 sm:$0xff]  }
 0x472   :  { %4503 = vmatpush1.bf16.msra.mxu1 %v14162_v29  ;;  %v14323_v29 = vld [vmem:[#allocation11 + $0x124] ss:$12 sps:$4 sm:$0xff]  }
 0x473   :  { %4504 = vmatprep.subr.bf16.mxu1 %v14167_v30  ;;  %v14207_v30 = vld [vmem:[#allocation8 + $0x2c8] ss:$16 sps:$4 sm:$0xff]  }
 0x476   :  { %4505 = vmatpush1.bf16.msra.mxu1 %v14165_v31  ;;  %v14321_v31 = vld [vmem:[#allocation11 + $0x120] ss:$12 sps:$4 sm:$0xff]  }
 0x477   :  { %4506 = vmatprep.subr.bf16.mxu1 %v14170_v32  ;;  %v14212_v32 = vld [vmem:[#allocation8 + $0x2ec] ss:$16 sps:$4 sm:$0xff]  }
 0x47a   :  { %4507 = vmatpush1.bf16.msra.mxu1 %v14168_v33  ;;  %v14326_v33 = vld [vmem:[#allocation11 + $0x13c] ss:$12 sps:$4 sm:$0xff]  }
 0x47b   :  { %4508 = vmatprep.subr.bf16.mxu1 %v14173_v34  ;;  %v14210_v34 = vld [vmem:[#allocation8 + $0x2e8] ss:$16 sps:$4 sm:$0xff]  }
 0x47e   :  { %4509 = vmatpush1.bf16.msra.mxu1 %v14171_v37  ;;  %v14215_v37 = vld [vmem:[#allocation8 + $0x30c] ss:$16 sps:$4 sm:$0xff]  }
 0x47f   :  { %4510 = vmatprep.subr.bf16.mxu1 %v14176_v39  ;;  %v14213_v39 = vld [vmem:[#allocation8 + $0x308] ss:$16 sps:$4 sm:$0xff]  }
 0x482   :  { %4511 = vmatpush1.bf16.msra.mxu1 %v14174_v41  ;;  %v14218_v41 = vld [vmem:[#allocation8 + $0x32c] ss:$16 sps:$4 sm:$0xff]  }
 0x483   :  { %4512 = vmatprep.subr.bf16.mxu1 %v14179_v43  ;;  %v14216_v43 = vld [vmem:[#allocation8 + $0x328] ss:$16 sps:$4 sm:$0xff]  }
 0x486   :  { %4513 = vmatpush1.bf16.msra.mxu1 %v14177_v45  ;;  %v14221_v45 = vld [vmem:[#allocation8 + $0x34c] ss:$16 sps:$4 sm:$0xff]  }
 0x487   :  { %4514 = vmatprep.subr.bf16.mxu1 %v14182_v48  ;;  %v14335_v48 = vld [vmem:[#allocation11 + $0x184] ss:$12 sps:$4 sm:$0xff]  }
 0x48a   :  { %4515 = vmatpush1.bf16.msra.mxu1 %v14180_v10  ;;  %v14222_v10 = vld [vmem:[#allocation8 + $0x368] ss:$16 sps:$4 sm:$0xff]  }
 0x48b   :  { %4516 = vmatprep.subr.bf16.mxu1 %v14185_v50  ;;  %v14225_v50 = vld [vmem:[#allocation8 + $0x388] ss:$16 sps:$4 sm:$0xff]  }
 0x48e   :  { %4517 = vmatpush1.bf16.msra.mxu1 %v14183_v53  ;;  %v14228_v53 = vld [vmem:[#allocation8 + $0x3a8] ss:$16 sps:$4 sm:$0xff]  }
 0x48f   :  { %4518 = vmatprep.subr.bf16.mxu1 %v14188_v51  ;;  %v14231_v51 = vld [vmem:[#allocation8 + $0x3c8] ss:$16 sps:$4 sm:$0xff]  }
 0x492   :  { %4519 = vmatpush1.bf16.msra.mxu1 %v14186_v56  ;;  %v14234_v56 = vld [vmem:[#allocation8 + $0x3e8] ss:$16 sps:$4 sm:$0xff]  }
 0x493   :  { %4529 = vmatprep.subr.bf16.mxu1 %v14191_v61  ;;  %v14237_v61 = vld [vmem:[#allocation8 + $0x408] ss:$16 sps:$4 sm:$0xff]  }
 0x495   :  { %4521 = vmatmul.mubr.bf16.vlgmr.msra.gmra.mrb[12].mxu1 %v16104_v26  ;;  %v14312_v26 = vld [vmem:[#allocation11 + $0xd8] ss:$12 sps:$4 sm:$0xff]  }
 0x496   :  { %4530 = vmatpush1.bf16.msra.mxu1 %v14189_v63  ;;  %4561 = vmatprep.mubr.bf16.mxu1 %v16121_v20  ;;  %v14203_v20 = vld [vmem:[#allocation8 + $0x28c] ss:$16 sps:$4 sm:$0xff]   ;;  %v14240_v63 = vld [vmem:[#allocation8 + $0x428] ss:$16 sps:$4 sm:$0xff]  }
 0x497   :  { %4531 = vmatprep.subr.bf16.mxu1 %v14194_v1  ;;  %5295 = vmatpush1.bf16.msra.mxu0 %v14312_v26  ;;  %v14243_v1 = vld [vmem:[#allocation8 + $0x448] ss:$16 sps:$4 sm:$0xff]  }
 0x498   :  { %5296 = vmatprep.subr.bf16.mxu0 %v14317_v62  ;;  %v14261_v26 = vld [vmem:[#allocation8 + $0x508] ss:$16 sps:$4 sm:$0xff]   ;;  %v14266_v62 = vld [vmem:[#allocation8 + $0x52c] ss:$16 sps:$4 sm:$0xff]  }
 0x49a   :  { %4532 = vmatpush1.bf16.msra.mxu1 %v14192_v4  ;;  %v14251_v4 = vld [vmem:[#allocation8 + $0x48c] ss:$16 sps:$4 sm:$0xff]  }
 0x49b   :  { %4533 = vmatprep.subr.bf16.mxu1 %v14197_v12  ;;  %5297 = vmatpush1.bf16.msra.mxu0 %v14315_v0  ;;  %v14254_v12 = vld [vmem:[#allocation8 + $0x4ac] ss:$16 sps:$4 sm:$0xff]   ;;  %v14270_v0 = vld [vmem:[#allocation8 + $0x548] ss:$16 sps:$4 sm:$0xff]  }
 0x49c   :  { %5298 = vmatprep.subr.bf16.mxu0 %v14320_v19  ;;  %v14278_v19 = vld [vmem:[#allocation8 + $0x56c] ss:$16 sps:$4 sm:$0xff]  }
 0x49e   :  { %4534 = vmatpush1.bf16.msra.mxu1 %v14195_v15  ;;  %v14258_v15 = vld [vmem:[#allocation8 + $0x4e8] ss:$16 sps:$4 sm:$0xff]  }
 0x49f   :  { %4535 = vmatprep.subr.bf16.mxu1 %v14200_v16  ;;  %5299 = vmatpush1.bf16.msra.mxu0 %v14318_v23  ;;  %v14263_v16 = vld [vmem:[#allocation8 + $0x50c] ss:$16 sps:$4 sm:$0xff]   ;;  %v14282_v23 = vld [vmem:[#allocation8 + $0x588] ss:$16 sps:$4 sm:$0xff]  }
 0x4a0   :  { %5300 = vmatprep.subr.bf16.mxu0 %v14323_v29  ;;  %v14296_v29 = vld [vmem:[#allocation8 + $0x5cc] ss:$16 sps:$4 sm:$0xff]  }
 0x4a2   :  { %4536 = vmatpush1.bf16.msra.mxu1 %v14198_v18  ;;  %v14264_v18 = vld [vmem:[#allocation8 + $0x528] ss:$16 sps:$4 sm:$0xff]  }
 0x4a3   :  { %4537 = vmatprep.subr.bf16.mxu1 %v14203_v20  ;;  %5301 = vmatpush1.bf16.msra.mxu0 %v14321_v31  ;;  %v14272_v20 = vld [vmem:[#allocation8 + $0x54c] ss:$16 sps:$4 sm:$0xff]  }
 0x4a4   :  { %5302 = vmatprep.subr.bf16.mxu0 %v14326_v33  ;;  %v14302_v31 = vld [vmem:[#allocation8 + $0x5ec] ss:$16 sps:$4 sm:$0xff]  }
 0x4a5   :  { %v14360_v33 = vld [vmem:[#allocation11 + $0x248] ss:$12 sps:$4 sm:$0xff]  }
 0x4a6   :  { %4538 = vmatpush1.bf16.msra.mxu1 %v14201_v21  ;;  %v14276_v21 = vld [vmem:[#allocation8 + $0x568] ss:$16 sps:$4 sm:$0xff]  }
 0x4a7   :  { %4539 = vmatprep.subr.bf16.mxu1 %v14206_v59  ;;  %5303 = vmatpush1.bf16.msra.mxu0 %v14324_v35  ;;  %v14284_v59 = vld [vmem:[#allocation8 + $0x58c] ss:$16 sps:$4 sm:$0xff]   ;;  %v14365_v35 = vld [vmem:[#allocation11 + $0x260] ss:$12 sps:$4 sm:$0xff]  }
 0x4a8   :  { %5304 = vmatprep.subr.bf16.mxu0 %v14329_v38  ;;  %v14370_v38 = vld [vmem:[#allocation11 + $0x278] ss:$12 sps:$4 sm:$0xff]  }
 0x4aa   :  { %4540 = vmatpush1.bf16.msra.mxu1 %v14204_v24  ;;  %v14290_v24 = vld [vmem:[#allocation8 + $0x5ac] ss:$16 sps:$4 sm:$0xff]  }
 0x4ab   :  { %4541 = vmatprep.subr.bf16.mxu1 %v14209_v27  ;;  %5305 = vmatpush1.bf16.msra.mxu0 %v14327_v40  ;;  %v14288_v27 = vld [vmem:[#allocation8 + $0x5a8] ss:$16 sps:$4 sm:$0xff]   ;;  %v14375_v40 = vld [vmem:[#allocation11 + $0x290] ss:$12 sps:$4 sm:$0xff]  }
 0x4ac   :  { %5306 = vmatprep.subr.bf16.mxu0 %v14332_v42  ;;  %v16149_v42 = vld [vmem:[#allocation10] sm:$0xf] }
 0x4ae   :  { %4542 = vmatpush1.bf16.msra.mxu1 %v14207_v30  ;;  %v14294_v30 = vld [vmem:[#allocation8 + $0x5c8] ss:$16 sps:$4 sm:$0xff]  }
 0x4af   :  { %4543 = vmatprep.subr.bf16.mxu1 %v14212_v32  ;;  %5307 = vmatpush1.bf16.msra.mxu0 %v14330_v44  ;;  %v14300_v32 = vld [vmem:[#allocation8 + $0x5e8] ss:$16 sps:$4 sm:$0xff]  }
 0x4b0   :  { %5317 = vmatprep.subr.bf16.mxu0 %v14335_v48 }
 0x4b2   :  { %4544 = vmatpush1.bf16.msra.mxu1 %v14210_v34  ;;  %v14361_v34 = vld [vmem:[#allocation11 + $0x188] ss:$12 sps:$4 sm:$0xff]  }
 0x4b3   :  { %4545 = vmatprep.subr.bf16.mxu1 %v14215_v37  ;;  %v14366_v37 = vld [vmem:[#allocation11 + $0x1a0] ss:$12 sps:$4 sm:$0xff]  }
 0x4b6   :  { %4546 = vmatpush1.bf16.msra.mxu1 %v14213_v39  ;;  %v14371_v39 = vld [vmem:[#allocation11 + $0x1b8] ss:$12 sps:$4 sm:$0xff]  }
 0x4b7   :  { %4547 = vmatprep.subr.bf16.mxu1 %v14218_v41  ;;  %v14376_v41 = vld [vmem:[#allocation11 + $0x1d0] ss:$12 sps:$4 sm:$0xff]  }
 0x4ba   :  { %4548 = vmatpush1.bf16.msra.mxu1 %v14216_v43  ;;  %v3388_v43 = vrot.slane %v16149_v42, %v16091_v60 }
 0x4bb   :  { %4549 = vmatprep.subr.bf16.mxu1 %v14221_v45 }
 0x4be   :  { %4550 = vmatpush1.bf16.msra.mxu1 %v14219_v46 }
 0x4bf   :  { %4551 = vmatprep.subr.bf16.mxu1 %v14224_v47 }
 0x4c2   :  { %4552 = vmatpush1.bf16.msra.mxu1 %v14222_v10 }
 0x4c3   :  { %4553 = vmatprep.subr.bf16.mxu1 %v14227_v49 }
 0x4c6   :  { %4554 = vmatpush1.bf16.msra.mxu1 %v14225_v50 }
 0x4c7   :  { %4555 = vmatprep.subr.bf16.mxu1 %v14230_v52 }
 0x4ca   :  { %4556 = vmatpush1.bf16.msra.mxu1 %v14228_v53  ;;  %v14333_v53 = vld [vmem:[#allocation11 + $0x180] ss:$12 sps:$4 sm:$0xff]  }
 0x4cb   :  { %4557 = vmatprep.subr.bf16.mxu1 %v14233_v54 }
 0x4ce   :  { %4558 = vmatpush1.bf16.msra.mxu1 %v14231_v51  ;;  %v14338_v51 = vld [vmem:[#allocation11 + $0x19c] ss:$12 sps:$4 sm:$0xff]  }
 0x4cf   :  { %4559 = vmatprep.subr.bf16.mxu1 %v14236_v55  ;;  %v14336_v55 = vld [vmem:[#allocation11 + $0x198] ss:$12 sps:$4 sm:$0xff]  }
 0x4d2   :  { %4560 = vmatpush1.bf16.msra.mxu1 %v14234_v56  ;;  %v14341_v56 = vld [vmem:[#allocation11 + $0x1b4] ss:$12 sps:$4 sm:$0xff]  }
 0x4d3   :  { %4570 = vmatprep.subr.bf16.mxu1 %v14239_v25  ;;  %v14339_v25 = vld [vmem:[#allocation11 + $0x1b0] ss:$12 sps:$4 sm:$0xff]  }
 0x4d5   :  { %4562 = vmatmul.mubr.bf16.vlgmr.msra.gmra.mrb[12].mxu1 %v16123_v22  ;;  %v14252_v22 = vld [vmem:[#allocation8 + $0x4a8] ss:$16 sps:$4 sm:$0xff]  }
 0x4d6   :  { %4571 = vmatpush1.bf16.msra.mxu1 %v14237_v61  ;;  %4602 = vmatprep.mubr.bf16.mxu1 %v16137_v8  ;;  %v14255_v8 = vld [vmem:[#allocation8 + $0x4c8] ss:$16 sps:$4 sm:$0xff]   ;;  %v14344_v61 = vld [vmem:[#allocation11 + $0x1cc] ss:$12 sps:$4 sm:$0xff]  }
 0x4d7   :  { %4572 = vmatprep.subr.bf16.mxu1 %v14242_v36  ;;  %v14342_v36 = vld [vmem:[#allocation11 + $0x1c8] ss:$12 sps:$4 sm:$0xff]  }
 0x4da   :  { %4573 = vmatpush1.bf16.msra.mxu1 %v14240_v63  ;;  %v14347_v63 = vld [vmem:[#allocation11 + $0x1e4] ss:$12 sps:$4 sm:$0xff]  }
 0x4db   :  { %4574 = vmatprep.subr.bf16.mxu1 %v14245_v28  ;;  %v14345_v28 = vld [vmem:[#allocation11 + $0x1e0] ss:$12 sps:$4 sm:$0xff]  }
 0x4de   :  { %4575 = vmatpush1.bf16.msra.mxu1 %v14243_v1  ;;  %v14350_v1 = vld [vmem:[#allocation11 + $0x1fc] ss:$12 sps:$4 sm:$0xff]  }
 0x4df   :  { %4576 = vmatprep.subr.bf16.mxu1 %v14248_v2  ;;  %v14348_v2 = vld [vmem:[#allocation11 + $0x1f8] ss:$12 sps:$4 sm:$0xff]  }
 0x4e2   :  { %4577 = vmatpush1.bf16.msra.mxu1 %v14246_v3  ;;  %v14353_v3 = vld [vmem:[#allocation11 + $0x214] ss:$12 sps:$4 sm:$0xff]  }
 0x4e3   :  { %4578 = vmatprep.subr.bf16.mxu1 %v14251_v4  ;;  %v14351_v4 = vld [vmem:[#allocation11 + $0x210] ss:$12 sps:$4 sm:$0xff]  }
 0x4e6   :  { %4579 = vmatpush1.bf16.msra.mxu1 %v14249_v5  ;;  %v14356_v5 = vld [vmem:[#allocation11 + $0x22c] ss:$12 sps:$4 sm:$0xff]  }
 0x4e7   :  { %4580 = vmatprep.subr.bf16.mxu1 %v14254_v12  ;;  %v14354_v12 = vld [vmem:[#allocation11 + $0x228] ss:$12 sps:$4 sm:$0xff]  }
 0x4ea   :  { %4581 = vmatpush1.bf16.msra.mxu1 %v14252_v22  ;;  %v14359_v22 = vld [vmem:[#allocation11 + $0x244] ss:$12 sps:$4 sm:$0xff]  }
 0x4eb   :  { %4582 = vmatprep.subr.bf16.mxu1 %v14257_v14  ;;  %v14357_v14 = vld [vmem:[#allocation11 + $0x240] ss:$12 sps:$4 sm:$0xff]  }
 0x4ee   :  { %4583 = vmatpush1.bf16.msra.mxu1 %v14255_v8  ;;  %v14364_v8 = vld [vmem:[#allocation11 + $0x25c] ss:$12 sps:$4 sm:$0xff]  }
 0x4ef   :  { %4584 = vmatprep.subr.bf16.mxu1 %v14260_v9  ;;  %v14362_v9 = vld [vmem:[#allocation11 + $0x258] ss:$12 sps:$4 sm:$0xff]  }
 0x4f2   :  { %4585 = vmatpush1.bf16.msra.mxu1 %v14258_v15  ;;  %v14369_v15 = vld [vmem:[#allocation11 + $0x274] ss:$12 sps:$4 sm:$0xff]  }
 0x4f3   :  { %4586 = vmatprep.subr.bf16.mxu1 %v14263_v16  ;;  %v14367_v16 = vld [vmem:[#allocation11 + $0x270] ss:$12 sps:$4 sm:$0xff]  }
 0x4f6   :  { %4587 = vmatpush1.bf16.msra.mxu1 %v14261_v26  ;;  %v14374_v26 = vld [vmem:[#allocation11 + $0x28c] ss:$12 sps:$4 sm:$0xff]  }
 0x4f7   :  { %4588 = vmatprep.subr.bf16.mxu1 %v14266_v62  ;;  %v14372_v62 = vld [vmem:[#allocation11 + $0x288] ss:$12 sps:$4 sm:$0xff]  }
 0x4fa   :  { %4589 = vmatpush1.bf16.msra.mxu1 %v14264_v18  ;;  %v14379_v18 = vld [vmem:[#allocation11 + $0x2a4] ss:$12 sps:$4 sm:$0xff]  }
 0x4fb   :  { %4590 = vmatprep.subr.bf16.mxu1 %v14272_v20  ;;  %v14377_v20 = vld [vmem:[#allocation11 + $0x2a0] ss:$12 sps:$4 sm:$0xff]  }
 0x4fe   :  { %4591 = vmatpush1.bf16.msra.mxu1 %v14270_v0  ;;  %v14380_v0 = vld [vmem:[#allocation11 + $0x2a8] ss:$12 sps:$4 sm:$0xff]  }
 0x4ff   :  { %4592 = vmatprep.subr.bf16.mxu1 %v14278_v19  ;;  %v14381_v19 = vld [vmem:[#allocation11 + $0x1e8] ss:$12 sps:$4 sm:$0xff]  }
 0x502   :  { %4593 = vmatpush1.bf16.msra.mxu1 %v14276_v21  ;;  %v14384_v21 = vld [vmem:[#allocation11 + $0x2bc] ss:$12 sps:$4 sm:$0xff]  }
 0x503   :  { %4594 = vmatprep.subr.bf16.mxu1 %v14284_v59  ;;  %v14382_v59 = vld [vmem:[#allocation11 + $0x2b8] ss:$12 sps:$4 sm:$0xff]  }
 0x506   :  { %4595 = vmatpush1.bf16.msra.mxu1 %v14282_v23  ;;  %v14385_v23 = vld [vmem:[#allocation11 + $0x2c0] ss:$12 sps:$4 sm:$0xff]  }
 0x507   :  { %4596 = vmatprep.subr.bf16.mxu1 %v14290_v24  ;;  %v14386_v24 = vld [vmem:[#allocation11 + $0x200] ss:$12 sps:$4 sm:$0xff]  }
 0x50a   :  { %4597 = vmatpush1.bf16.msra.mxu1 %v14288_v27  ;;  %v14389_v27 = vld [vmem:[#allocation11 + $0x2d4] ss:$12 sps:$4 sm:$0xff]  }
 0x50b   :  { %4598 = vmatprep.subr.bf16.mxu1 %v14296_v29  ;;  %v14387_v29 = vld [vmem:[#allocation11 + $0x2d0] ss:$12 sps:$4 sm:$0xff]  }
 0x50e   :  { %4599 = vmatpush1.bf16.msra.mxu1 %v14294_v30  ;;  %v14390_v30 = vld [vmem:[#allocation11 + $0x2d8] ss:$12 sps:$4 sm:$0xff]  }
 0x50f   :  { %4600 = vmatprep.subr.bf16.mxu1 %v14302_v31  ;;  %v14391_v31 = vld [vmem:[#allocation11 + $0x218] ss:$12 sps:$4 sm:$0xff]  }
 0x512   :  { %4601 = vmatpush1.bf16.msra.mxu1 %v14300_v32  ;;  %v14394_v32 = vld [vmem:[#allocation11 + $0x2ec] ss:$12 sps:$4 sm:$0xff]  }
 0x513   :  { %13177 = vmatprep.subr.bf16.mxu1 %v14360_v33  ;;  %v14392_v33 = vld [vmem:[#allocation11 + $0x2e8] ss:$12 sps:$4 sm:$0xff]  }
 0x515   :  { %4603 = vmatmul.mubr.bf16.vlgmr.msra.gmra.mrb[12].mxu1 %v16139_v13  ;;  %v3392_v13 = vrot.slane %v16149_v42, %v16094_v17 }
 0x516   :  { %13178 = vmatpush3.bf16.msra.mxu1 %v14361_v34  ;;  %v14395_v34 = vld [vmem:[#allocation11 + $0x2f0] ss:$12 sps:$4 sm:$0xff]  }
 0x517   :  { %13179 = vmatprep.subr.bf16.mxu1 %v14365_v35  ;;  %v14396_v35 = vld [vmem:[#allocation11 + $0x230] ss:$12 sps:$4 sm:$0xff]  }
 0x51a   :  { %13180 = vmatpush3.bf16.msra.mxu1 %v14366_v37  ;;  %v14397_v37 = vld [vmem:[#allocation11 + $0xc8] ss:$12 sps:$4 sm:$0xff]  }
 0x51b   :  { %13181 = vmatprep.subr.bf16.mxu1 %v14370_v38  ;;  %v3396_v38 = vrot.slane %v16149_v42, %v16110_v6 }
 0x51e   :  { %13182 = vmatpush3.bf16.msra.mxu1 %v14371_v39  ;;  %v3400_v39 = vrot.slane %v16149_v42, %v16113_v7  ;;  %v14400_v42 = vld [vmem:[#allocation11 + $0x20] ss:$12 sps:$4 sm:$0xff]  }
 0x51f   :  { %13183 = vmatprep.subr.bf16.mxu1 %v14375_v40 }
 0x522   :  { %13184 = vmatpush3.bf16.msra.mxu1 %v14376_v41 }
 0x523   :  { %13185 = vmatprep.subr.bf16.mxu1 %v14380_v0  ;;  %v14434_v0 = vld [vmem:[#allocation14 + $0x70] ss:$8 sps:$4 sm:$0xff]  }
 0x526   :  { %13186 = vmatpush3.bf16.msra.mxu1 %v14381_v19  ;;  %v14439_v19 = vld [vmem:[#allocation14 + $0x84] ss:$8 sps:$4 sm:$0xff]  }
 0x527   :  { %13187 = vmatprep.subr.bf16.mxu1 %v14385_v23  ;;  %v14440_v23 = vld [vmem:[#allocation14 + $0x90] ss:$8 sps:$4 sm:$0xff]  }
 0x528   :  { %v4481_v44 = vpop.f32.mrb[8].mxu1 }
 0x529   :  { %v13251_v45 = vadd.f32 %v4481_v44, %v3388_v43  ;;  %v4483_v46 = vpop.f32.mrb[9].mxu1 }
 0x52a   :  { %v13252_v48 = vadd.f32 %v4483_v46, %v3392_v13  ;;  %v4485_v47 = vpop.f32.mrb[10].mxu1  ;;  %13188 = vmatpush3.bf16.msra.mxu1 %v14386_v24  ;;  %v14445_v24 = vld [vmem:[#allocation14 + $0xa4] ss:$8 sps:$4 sm:$0xff]  }
 0x52b   :  { %15033 = vtanh.f32 %v13251_v45  ;;  %v4486_v10 = vpop.f32.mrb[11].mxu1  ;;  %13189 = vmatprep.subr.bf16.mxu1 %v14390_v30  ;;  %v14446_v30 = vld [vmem:[#allocation14 + $0xb0] ss:$8 sps:$4 sm:$0xff]  }
 0x52c   :  { %15035 = vtanh.f32 %v13252_v48  ;;  %v14398_v10 = vld [vmem:[#allocation11 + $0x8] ss:$12 sps:$4 sm:$0xff]  }
 0x52e   :  { %13190 = vmatpush3.bf16.msra.mxu1 %v14391_v31  ;;  %v14451_v31 = vld [vmem:[#allocation14 + $0xc4] ss:$8 sps:$4 sm:$0xff]  }
 0x52f   :  { %13191 = vmatprep.subr.bf16.mxu1 %v14395_v34  ;;  %v14452_v34 = vld [vmem:[#allocation14 + $0xd0] ss:$8 sps:$4 sm:$0xff]  }
 0x532   :  { %13192 = vmatpush3.bf16.msra.mxu1 %v14396_v35  ;;  %v14457_v35 = vld [vmem:[#allocation14 + $0xe4] ss:$8 sps:$4 sm:$0xff]  }
 0x535   :  { %v15034_v49 = vpop.eup %15033 }
 0x536   :  { %v15036_v50 = vpop.eup %15035  ;;  %v16157_v54 = vpack.c.bf16 %v15034_v49, %v15034_v49 }
 0x537   :  { %v16155_v52 = vpack.c.bf16 %v15036_v50, %v15036_v50  ;;  %v14399_v50 = vld [vmem:[#allocation11 + $0xe0] ss:$12 sps:$4 sm:$0xff]  }
 0x539   :  { %5308 = vmatprep.mubr.bf16.mxu0 %v16155_v52 }
 0x53a   :  { %5309 = vmatmul.mubr.bf16.vlgmr.msra.gmra.mrb[8].mxu0 %v16157_v54 }
 0x53b   :  { %5318 = vmatpush1.bf16.msra.mxu0 %v14333_v53  ;;  %v14401_v53 = vld [vmem:[#allocation11 + $0xf8] ss:$12 sps:$4 sm:$0xff]  }
 0x53c   :  { %5319 = vmatprep.subr.bf16.mxu0 %v14338_v51  ;;  %v14402_v51 = vld [vmem:[#allocation11 + $0x38] ss:$12 sps:$4 sm:$0xff]  }
 0x53f   :  { %5320 = vmatpush1.bf16.msra.mxu0 %v14336_v55  ;;  %v14403_v55 = vld [vmem:[#allocation11 + $0x110] ss:$12 sps:$4 sm:$0xff]  }
 0x540   :  { %5321 = vmatprep.subr.bf16.mxu0 %v14341_v56  ;;  %v14404_v56 = vld [vmem:[#allocation11 + $0x50] ss:$12 sps:$4 sm:$0xff]  }
 0x543   :  { %5322 = vmatpush1.bf16.msra.mxu0 %v14339_v25  ;;  %v14405_v25 = vld [vmem:[#allocation11 + $0x128] ss:$12 sps:$4 sm:$0xff]  }
 0x544   :  { %5323 = vmatprep.subr.bf16.mxu0 %v14344_v61  ;;  %v14406_v61 = vld [vmem:[#allocation11 + $0x68] ss:$12 sps:$4 sm:$0xff]  }
 0x547   :  { %5324 = vmatpush1.bf16.msra.mxu0 %v14342_v36  ;;  %v14407_v36 = vld [vmem:[#allocation11 + $0x140] ss:$12 sps:$4 sm:$0xff]  }
 0x548   :  { %5325 = vmatprep.subr.bf16.mxu0 %v14347_v63  ;;  %v14408_v63 = vld [vmem:[#allocation11 + $0x80] ss:$12 sps:$4 sm:$0xff]  }
 0x54b   :  { %5326 = vmatpush1.bf16.msra.mxu0 %v14345_v28  ;;  %v14409_v28 = vld [vmem:[#allocation11 + $0x158] ss:$12 sps:$4 sm:$0xff]  }
 0x54c   :  { %5327 = vmatprep.subr.bf16.mxu0 %v14350_v1  ;;  %v14411_v1 = vld [vmem:[#allocation11 + $0x170] ss:$12 sps:$4 sm:$0xff]  }
 0x54f   :  { %5328 = vmatpush1.bf16.msra.mxu0 %v14348_v2  ;;  %v14412_v2 = vld [vmem:[#allocation11 + $0xb0] ss:$12 sps:$4 sm:$0xff]  }
 0x550   :  { %5329 = vmatprep.subr.bf16.mxu0 %v14353_v3  ;;  %v14415_v3 = vld [vmem:[#allocation14 + $0x4] ss:$8 sps:$4 sm:$0xff]  }
 0x553   :  { %5330 = vmatpush1.bf16.msra.mxu0 %v14351_v4  ;;  %v14413_v4 = vld [vmem:[#allocation14] ss:$8 sps:$4 sm:$0xff]  }
 0x554   :  { %5331 = vmatprep.subr.bf16.mxu0 %v14356_v5  ;;  %v14418_v5 = vld [vmem:[#allocation14 + $0x14] ss:$8 sps:$4 sm:$0xff]  }
 0x557   :  { %5332 = vmatpush1.bf16.msra.mxu0 %v14354_v12  ;;  %v14416_v12 = vld [vmem:[#allocation14 + $0x10] ss:$8 sps:$4 sm:$0xff]  }
 0x558   :  { %5333 = vmatprep.subr.bf16.mxu0 %v14359_v22  ;;  %v14421_v22 = vld [vmem:[#allocation14 + $0x24] ss:$8 sps:$4 sm:$0xff]  }
 0x55b   :  { %5334 = vmatpush1.bf16.msra.mxu0 %v14357_v14  ;;  %v14419_v14 = vld [vmem:[#allocation14 + $0x20] ss:$8 sps:$4 sm:$0xff]  }
 0x55c   :  { %5335 = vmatprep.subr.bf16.mxu0 %v14364_v8  ;;  %v14424_v8 = vld [vmem:[#allocation14 + $0x34] ss:$8 sps:$4 sm:$0xff]  }
 0x55f   :  { %5336 = vmatpush1.bf16.msra.mxu0 %v14362_v9  ;;  %v14422_v9 = vld [vmem:[#allocation14 + $0x30] ss:$8 sps:$4 sm:$0xff]  }
 0x560   :  { %5337 = vmatprep.subr.bf16.mxu0 %v14369_v15  ;;  %v14427_v15 = vld [vmem:[#allocation14 + $0x44] ss:$8 sps:$4 sm:$0xff]  }
 0x563   :  { %5338 = vmatpush1.bf16.msra.mxu0 %v14367_v16  ;;  %v14425_v16 = vld [vmem:[#allocation14 + $0x40] ss:$8 sps:$4 sm:$0xff]  }
 0x564   :  { %5339 = vmatprep.subr.bf16.mxu0 %v14374_v26  ;;  %v14430_v26 = vld [vmem:[#allocation14 + $0x54] ss:$8 sps:$4 sm:$0xff]  }
 0x567   :  { %5340 = vmatpush1.bf16.msra.mxu0 %v14372_v62  ;;  %v14428_v62 = vld [vmem:[#allocation14 + $0x50] ss:$8 sps:$4 sm:$0xff]  }
 0x568   :  { %5341 = vmatprep.subr.bf16.mxu0 %v14379_v18  ;;  %v14431_v18 = vld [vmem:[#allocation14 + $0x60] ss:$8 sps:$4 sm:$0xff]  }
 0x56b   :  { %5342 = vmatpush1.bf16.msra.mxu0 %v14377_v20  ;;  %v14436_v20 = vld [vmem:[#allocation14 + $0x74] ss:$8 sps:$4 sm:$0xff]  }
 0x56c   :  { %5343 = vmatprep.subr.bf16.mxu0 %v14384_v21  ;;  %v14437_v21 = vld [vmem:[#allocation14 + $0x80] ss:$8 sps:$4 sm:$0xff]  }
 0x56f   :  { %5344 = vmatpush1.bf16.msra.mxu0 %v14382_v59  ;;  %v14442_v59 = vld [vmem:[#allocation14 + $0x94] ss:$8 sps:$4 sm:$0xff]  }
 0x570   :  { %5345 = vmatprep.subr.bf16.mxu0 %v14389_v27  ;;  %v14443_v27 = vld [vmem:[#allocation14 + $0xa0] ss:$8 sps:$4 sm:$0xff]  }
 0x573   :  { %5346 = vmatpush1.bf16.msra.mxu0 %v14387_v29  ;;  %v14448_v29 = vld [vmem:[#allocation14 + $0xb4] ss:$8 sps:$4 sm:$0xff]  }
 0x574   :  { %5347 = vmatprep.subr.bf16.mxu0 %v14394_v32  ;;  %v14449_v32 = vld [vmem:[#allocation14 + $0xc0] ss:$8 sps:$4 sm:$0xff]  }
 0x577   :  { %5348 = vmatpush1.bf16.msra.mxu0 %v14392_v33  ;;  %v14454_v33 = vld [vmem:[#allocation14 + $0xd4] ss:$8 sps:$4 sm:$0xff]  }
 0x578   :  { %13155 = vmatprep.subr.bf16.mxu0 %v14397_v37  ;;  %v14455_v37 = vld [vmem:[#allocation14 + $0xe0] ss:$8 sps:$4 sm:$0xff]  }
 0x5e8   :  { %v4604_v40 = vpop.f32.mrb[12].mxu1 }
 0x5e9   :  { %v13253_v41 = vadd.f32 %v4604_v40, %v3396_v38  ;;  %v4606_v43 = vpop.f32.mrb[13].mxu1  ;;  %v14460_v38 = vld [vmem:[#allocation14 + $0xf4] ss:$8 sps:$4 sm:$0xff]   ;;  %v14463_v40 = vld [vmem:[#allocation14 + $0x104] ss:$8 sps:$4 sm:$0xff]  }
 0x5ea   :  { %v13254_v13 = vadd.f32 %v4606_v43, %v3400_v39  ;;  %v4608_v44 = vpop.f32.mrb[14].mxu1  ;;  %v14458_v39 = vld [vmem:[#allocation14 + $0xf0] ss:$8 sps:$4 sm:$0xff]   ;;  %v14486_v43 = vld [vmem:[#allocation17] sm:$0xff]  }
 0x5eb   :  { %15037 = vtanh.f32 %v13253_v41  ;;  %v4609_v45 = vpop.f32.mrb[15].mxu1  ;;  %v14485_v41 = vld [vmem:[#allocation17 + $0x40] sm:$0xff]   ;;  %v14488_v44 = vld [vmem:[#allocation17 + $0x8] sm:$0xff]  }
 0x5ec   :  { %15039 = vtanh.f32 %v13254_v13  ;;  %v14487_v13 = vld [vmem:[#allocation17 + $0x48] sm:$0xff]   ;;  %13199 = vmatprep.subr.bf16.mxu1 %v14485_v41  ;;  %v14489_v45 = vld [vmem:[#allocation17 + $0x50] sm:$0xff]  }
 0x5ed   :  { %v14498_v41 = vld [vmem:[#allocation17 + $0x30] sm:$0xff]  }
 0x5f5   :  { %v15038_v46 = vpop.eup %15037 }
 0x5f6   :  { %v15040_v48 = vpop.eup %15039  ;;  %v4746_v49 = vpack.c.bf16 %v15038_v46, %v15038_v46  ;;  %v14490_v46 = vld [vmem:[#allocation17 + $0x10] sm:$0xff]  }
 0x5f7   :  { %v4747_v47 = vpack.c.bf16 %v15040_v48, %v15040_v48  ;;  %v14491_v48 = vld [vmem:[#allocation17 + $0x58] sm:$0xff]  }
 0x5f9   :  { %5349 = vmatprep.mubr.bf16.mxu0 %v4747_v47  ;;  %5430 = vmatprep.mubr.bf16.mxu1 %v4747_v47  ;;  %v14492_v47 = vld [vmem:[#allocation17 + $0x18] sm:$0xff]  }
 0x5fa   :  { %5350 = vmatmul.mubr.bf16.vlgmr.msra.gmra.mrb[8].mxu0 %v4746_v49  ;;  %5431 = vmatmul.mubr.bf16.vlgmr.msra.gmra.mrb[16].mxu1 %v4746_v49 }
 0x5fb   :  { %13156 = vmatpush3.bf16.msra.mxu0 %v14398_v10  ;;  %5390 = vmatprep.mubr.bf16.mxu0 %v16155_v52  ;;  %v14410_v52 = vld [vmem:[#allocation11 + $0x98] ss:$12 sps:$4 sm:$0xff]   ;;  %v4743_v10 = vld [vmem:[#allocation13] sm:$0x7] }
 0x5fc   :  { %13157 = vmatprep.subr.bf16.mxu0 %v14399_v50  ;;  %13200 = vmatpush3.bf16.msra.mxu1 %v14486_v43  ;;  %v4752_v49 = vrot.slane %v4743_v10, %v16091_v60  ;;  %v4756_v50 = vrot.slane %v4743_v10, %v16094_v17  ;;  %v14499_v43 = vld [vmem:[#allocation17 + $0x78] sm:$0xff]  }
 0x5fd   :  { %13201 = vmatprep.subr.bf16.mxu1 %v14487_v13  ;;  %v14500_v13 = vld [vmem:[#allocation17 + $0x38] sm:$0xff]  }
 0x5ff   :  { %13158 = vmatpush3.bf16.msra.mxu0 %v14400_v42 }
 0x600   :  { %13159 = vmatprep.subr.bf16.mxu0 %v14401_v53  ;;  %13202 = vmatpush3.bf16.msra.mxu1 %v14488_v44  ;;  %v14503_v44 = vld [vmem:[#allocation20 + $0x4] ss:$8 sps:$4 sm:$0xff]  }
 0x601   :  { %13203 = vmatprep.subr.bf16.mxu1 %v14489_v45  ;;  %v5489_v45 = vld [vmem:[#allocation16] sm:$0x3] }
 0x603   :  { %13160 = vmatpush3.bf16.msra.mxu0 %v14402_v51 }
 0x604   :  { %13161 = vmatprep.subr.bf16.mxu0 %v14403_v55  ;;  %13204 = vmatpush3.bf16.msra.mxu1 %v14490_v46  ;;  %v5497_v46 = vrot.slane %v5489_v45, %v16091_v60 }
 0x605   :  { %13205 = vmatprep.subr.bf16.mxu1 %v14491_v48  ;;  %v5501_v48 = vrot.slane %v5489_v45, %v16094_v17  ;;  %v14540_v45 = vld [vmem:[#allocation23 + $0x78] ss:$12 sps:$4 sm:$0xff]  }
 0x607   :  { %13162 = vmatpush3.bf16.msra.mxu0 %v14404_v56 }
 0x608   :  { %13163 = vmatprep.subr.bf16.mxu0 %v14405_v25  ;;  %13206 = vmatpush3.bf16.msra.mxu1 %v14492_v47 }
 0x60b   :  { %13164 = vmatpush3.bf16.msra.mxu0 %v14406_v61 }
 0x60c   :  { %13165 = vmatprep.subr.bf16.mxu0 %v14407_v36 }
 0x60f   :  { %13166 = vmatpush3.bf16.msra.mxu0 %v14408_v63 }
 0x610   :  { %13167 = vmatprep.subr.bf16.mxu0 %v14409_v28 }
 0x613   :  { %13168 = vmatpush3.bf16.msra.mxu0 %v14410_v52 }
 0x614   :  { %13169 = vmatprep.subr.bf16.mxu0 %v14411_v1 }
 0x617   :  { %13170 = vmatpush3.bf16.msra.mxu0 %v14412_v2 }
 0x618   :  { %5744 = vmatprep.subr.bf16.mxu0 %v14415_v3 }
 0x61a   :  { %5391 = vmatmul.mubr.bf16.vlgmr.msra.gmra.mrb[12].mxu0 %v16157_v54  ;;  %v14433_v54 = vld [vmem:[#allocation14 + $0x64] ss:$8 sps:$4 sm:$0xff]  }
 0x61b   :  { %5745 = vmatpush1.bf16.msra.mxu0 %v14413_v4  ;;  %v14461_v4 = vld [vmem:[#allocation14 + $0x100] ss:$8 sps:$4 sm:$0xff]  }
 0x61c   :  { %5746 = vmatprep.subr.bf16.mxu0 %v14418_v5 }
 0x61f   :  { %5747 = vmatpush1.bf16.msra.mxu0 %v14416_v12  ;;  %v14466_v12 = vld [vmem:[#allocation14 + $0x114] ss:$8 sps:$4 sm:$0xff]  }
 0x620   :  { %5748 = vmatprep.subr.bf16.mxu0 %v14421_v22  ;;  %v14464_v22 = vld [vmem:[#allocation14 + $0x110] ss:$8 sps:$4 sm:$0xff]  }
 0x623   :  { %5749 = vmatpush1.bf16.msra.mxu0 %v14419_v14  ;;  %v15649_v14 = vmov 0  }
 0x624   :  { %5750 = vmatprep.subr.bf16.mxu0 %v14424_v8  ;;  %v14469_v8 = vld [vmem:[#allocation14 + $0x124] ss:$8 sps:$4 sm:$0xff]  }
 0x627   :  { %5751 = vmatpush1.bf16.msra.mxu0 %v14422_v9  ;;  %v14467_v9 = vld [vmem:[#allocation14 + $0x120] ss:$8 sps:$4 sm:$0xff]  }
 0x628   :  { %5752 = vmatprep.subr.bf16.mxu0 %v14427_v15  ;;  %v14472_v15 = vld [vmem:[#allocation14 + $0x134] ss:$8 sps:$4 sm:$0xff]  }
 0x62b   :  { %5753 = vmatpush1.bf16.msra.mxu0 %v14425_v16  ;;  %v14470_v16 = vld [vmem:[#allocation14 + $0x130] ss:$8 sps:$4 sm:$0xff]  }
 0x62c   :  { %5754 = vmatprep.subr.bf16.mxu0 %v14430_v26  ;;  %v14475_v26 = vld [vmem:[#allocation14 + $0x144] ss:$8 sps:$4 sm:$0xff]  }
 0x62f   :  { %5755 = vmatpush1.bf16.msra.mxu0 %v14428_v62  ;;  %v14473_v62 = vld [vmem:[#allocation14 + $0x140] ss:$8 sps:$4 sm:$0xff]  }
 0x630   :  { %5756 = vmatprep.subr.bf16.mxu0 %v14433_v54 }
 0x633   :  { %5757 = vmatpush1.bf16.msra.mxu0 %v14431_v18  ;;  %v4760_v18 = vrot.slane %v4743_v10, %v16110_v6 }
 0x634   :  { %5758 = vmatprep.subr.bf16.mxu0 %v14436_v20  ;;  %v14478_v20 = vld [vmem:[#allocation14 + $0x154] ss:$8 sps:$4 sm:$0xff]  }
 0x637   :  { %5759 = vmatpush1.bf16.msra.mxu0 %v14434_v0 }
 0x638   :  { %5760 = vmatprep.subr.bf16.mxu0 %v14439_v19 }
 0x63b   :  { %5761 = vmatpush1.bf16.msra.mxu0 %v14437_v21 }
 0x63c   :  { %5762 = vmatprep.subr.bf16.mxu0 %v14442_v59 }
 0x63f   :  { %5763 = vmatpush1.bf16.msra.mxu0 %v14440_v23  ;;  %v14476_v23 = vld [vmem:[#allocation14 + $0x150] ss:$8 sps:$4 sm:$0xff]  }
 0x640   :  { %5764 = vmatprep.subr.bf16.mxu0 %v14445_v24 }
 0x643   :  { %5765 = vmatpush1.bf16.msra.mxu0 %v14443_v27  ;;  %v14481_v27 = vld [vmem:[#allocation14 + $0x164] ss:$8 sps:$4 sm:$0xff]  }
 0x644   :  { %5766 = vmatprep.subr.bf16.mxu0 %v14448_v29 }
 0x647   :  { %5767 = vmatpush1.bf16.msra.mxu0 %v14446_v30  ;;  %v14479_v30 = vld [vmem:[#allocation14 + $0x160] ss:$8 sps:$4 sm:$0xff]  }
 0x648   :  { %5768 = vmatprep.subr.bf16.mxu0 %v14451_v31  ;;  %v14484_v31 = vld [vmem:[#allocation14 + $0x174] ss:$8 sps:$4 sm:$0xff]  }
 0x64b   :  { %5769 = vmatpush1.bf16.msra.mxu0 %v14449_v32  ;;  %v14482_v32 = vld [vmem:[#allocation14 + $0x170] ss:$8 sps:$4 sm:$0xff]  }
 0x64c   :  { %5770 = vmatprep.subr.bf16.mxu0 %v14454_v33 }
 0x64f   :  { %5771 = vmatpush1.bf16.msra.mxu0 %v14452_v34 }
 0x650   :  { %5772 = vmatprep.subr.bf16.mxu0 %v14457_v35  ;;  %v14493_v35 = vld [vmem:[#allocation17 + $0x60] sm:$0xff]  }
 0x651   :  { %13207 = vmatprep.subr.bf16.mxu1 %v14493_v35  ;;  %v14530_v35 = vld [vmem:[#allocation23 + $0x1c] ss:$12 sps:$4 sm:$0xff]  }
 0x653   :  { %5773 = vmatpush1.bf16.msra.mxu0 %v14455_v37  ;;  %v14494_v37 = vld [vmem:[#allocation17 + $0x20] sm:$0xff]  }
 0x654   :  { %5774 = vmatprep.subr.bf16.mxu0 %v14460_v38  ;;  %13208 = vmatpush3.bf16.msra.mxu1 %v14494_v37  ;;  %v14495_v38 = vld [vmem:[#allocation17 + $0x68] sm:$0xff]  }
 0x655   :  { %13209 = vmatprep.subr.bf16.mxu1 %v14495_v38  ;;  %v14528_v37 = vld [vmem:[#allocation23 + $0x18] ss:$12 sps:$4 sm:$0xff]   ;;  %v14533_v38 = vld [vmem:[#allocation23 + $0x34] ss:$12 sps:$4 sm:$0xff]  }
 0x657   :  { %5775 = vmatpush1.bf16.msra.mxu0 %v14458_v39  ;;  %v14496_v39 = vld [vmem:[#allocation17 + $0x28] sm:$0xff]  }
 0x658   :  { %5785 = vmatprep.subr.bf16.mxu0 %v14463_v40  ;;  %13210 = vmatpush3.bf16.msra.mxu1 %v14496_v39  ;;  %v14497_v40 = vld [vmem:[#allocation17 + $0x70] sm:$0xff]  }
 0x659   :  { %13211 = vmatprep.subr.bf16.mxu1 %v14497_v40  ;;  %v14531_v39 = vld [vmem:[#allocation23 + $0x30] ss:$12 sps:$4 sm:$0xff]   ;;  %v14536_v40 = vld [vmem:[#allocation23 + $0x4c] ss:$12 sps:$4 sm:$0xff]  }
 0x65c   :  { %13212 = vmatpush3.bf16.msra.mxu1 %v14498_v41  ;;  %v14534_v41 = vld [vmem:[#allocation23 + $0x48] ss:$12 sps:$4 sm:$0xff]  }
 0x65d   :  { %13213 = vmatprep.subr.bf16.mxu1 %v14499_v43  ;;  %v14539_v43 = vld [vmem:[#allocation23 + $0x64] ss:$12 sps:$4 sm:$0xff]  }
 0x660   :  { %13214 = vmatpush3.bf16.msra.mxu1 %v14500_v13  ;;  %v14537_v13 = vld [vmem:[#allocation23 + $0x60] ss:$12 sps:$4 sm:$0xff]  }
 0x661   :  { %6116 = vmatprep.subr.bf16.mxu1 %v14503_v44  ;;  %v14542_v44 = vld [vmem:[#allocation23 + $0x7c] ss:$12 sps:$4 sm:$0xff]  }
 0x6cd   :  { %v5351_v42 = vpop.f32.mrb[8].mxu0  ;;  %v13193_v53 = vpop.f32.mrb[16].mxu1 }
 0x6ce   :  { %v13255_v51 = vadd.f32 %v5351_v42, %v4752_v49  ;;  %v5353_v55 = vpop.f32.mrb[9].mxu0  ;;  %v13194_v56 = vpop.f32.mrb[17].mxu1 }
 0x6cf   :  { %v13256_v25 = vadd.f32 %v5353_v55, %v4756_v50  ;;  %v13195_v61 = vadd.f32 %v13194_v56, %v13193_v53  ;;  %v5355_v36 = vpop.f32.mrb[10].mxu0  ;;  %v13196_v63 = vpop.f32.mrb[18].mxu1 }
 0x6d0   :  { %15041 = vtanh.f32 %v13255_v51  ;;  %v5356_v28 = vpop.f32.mrb[11].mxu0  ;;  %v13197_v52 = vpop.f32.mrb[19].mxu1  ;;  %v14506_v36 = vld [vmem:[#allocation20 + $0x14] ss:$8 sps:$4 sm:$0xff]   ;;  %v14504_v63 = vld [vmem:[#allocation20 + $0x10] ss:$8 sps:$4 sm:$0xff]  }
 0x6d1   :  { %15043 = vtanh.f32 %v13256_v25  ;;  %v14501_v25 = vld [vmem:[#allocation20] ss:$8 sps:$4 sm:$0xff]   ;;  %v14509_v28 = vld [vmem:[#allocation20 + $0x24] ss:$8 sps:$4 sm:$0xff]  }
 0x6d2   :  { %v14507_v52 = vld [vmem:[#allocation20 + $0x20] ss:$8 sps:$4 sm:$0xff]  }
 0x6da   :  { %v15042_v1 = vpop.eup %15041 }
 0x6db   :  { %v15044_v2 = vpop.eup %15043  ;;  %v5490_v5 = vpack.c.bf16 %v15042_v1, %v15042_v1  ;;  %v14512_v1 = vld [vmem:[#allocation20 + $0x34] ss:$8 sps:$4 sm:$0xff]  }
 0x6dc   :  { %v5491_v3 = vpack.c.bf16 %v15044_v2, %v15044_v2  ;;  %v14510_v2 = vld [vmem:[#allocation20 + $0x30] ss:$8 sps:$4 sm:$0xff]  }
 0x6de   :  { %5776 = vmatprep.mubr.bf16.mxu0 %v5491_v3  ;;  %v14515_v3 = vld [vmem:[#allocation20 + $0x44] ss:$8 sps:$4 sm:$0xff]  }
 0x6df   :  { %5777 = vmatmul.mubr.bf16.vlgmr.msra.gmra.mrb[16].mxu0 %v5490_v5  ;;  %v14518_v5 = vld [vmem:[#allocation20 + $0x54] ss:$8 sps:$4 sm:$0xff]  }
 0x6e0   :  { %5786 = vmatpush1.bf16.msra.mxu0 %v14461_v4  ;;  %5817 = vmatprep.mubr.bf16.mxu0 %v15649_v14  ;;  %v14513_v4 = vld [vmem:[#allocation20 + $0x40] ss:$8 sps:$4 sm:$0xff]  }
 0x6e1   :  { %5787 = vmatprep.subr.bf16.mxu0 %v14466_v12  ;;  %v14516_v12 = vld [vmem:[#allocation20 + $0x50] ss:$8 sps:$4 sm:$0xff]  }
 0x6e4   :  { %5788 = vmatpush1.bf16.msra.mxu0 %v14464_v22  ;;  %v14521_v22 = vld [vmem:[#allocation20 + $0x64] ss:$8 sps:$4 sm:$0xff]  }
 0x6e5   :  { %5789 = vmatprep.subr.bf16.mxu0 %v14469_v8  ;;  %v14519_v8 = vld [vmem:[#allocation20 + $0x60] ss:$8 sps:$4 sm:$0xff]  }
 0x6e8   :  { %5790 = vmatpush1.bf16.msra.mxu0 %v14467_v9  ;;  %v14524_v9 = vld [vmem:[#allocation20 + $0x74] ss:$8 sps:$4 sm:$0xff]  }
 0x6e9   :  { %5791 = vmatprep.subr.bf16.mxu0 %v14472_v15  ;;  %v14522_v15 = vld [vmem:[#allocation20 + $0x70] ss:$8 sps:$4 sm:$0xff]  }
 0x6ec   :  { %5792 = vmatpush1.bf16.msra.mxu0 %v14470_v16  ;;  %v14527_v16 = vld [vmem:[#allocation23 + $0x4] ss:$12 sps:$4 sm:$0xff]  }
 0x6ed   :  { %v13171_v54 = vpop.f32.mrb[12].mxu0  ;;  %5793 = vmatprep.subr.bf16.mxu0 %v14475_v26  ;;  %v14552_v26 = vld [vmem:[#allocation23 + $0xc8] ss:$12 sps:$4 sm:$0xff]  }
 0x6ee   :  { %v13172_v0 = vpop.f32.mrb[13].mxu0 }
 0x6ef   :  { %v13173_v19 = vadd.f32 %v13172_v0, %v13171_v54  ;;  %v13174_v21 = vpop.f32.mrb[14].mxu0  ;;  %v14557_v54 = vld [vmem:[#allocation23 + $0xe0] ss:$12 sps:$4 sm:$0xff]   ;;  %v14563_v0 = vld [vmem:[#allocation23 + $0x38] ss:$12 sps:$4 sm:$0xff]  }
 0x6f0   :  { %v13175_v59 = vpop.f32.mrb[15].mxu0  ;;  %5794 = vmatpush1.bf16.msra.mxu0 %v14473_v62  ;;  %v14553_v62 = vld [vmem:[#allocation23 + $0x8] ss:$12 sps:$4 sm:$0xff]   ;;  %v14568_v21 = vld [vmem:[#allocation23 + $0x50] ss:$12 sps:$4 sm:$0xff]  }
 0x6f1   :  { %v5393_v24 = vadd.f32 %v13173_v19, %v4760_v18  ;;  %5795 = vmatprep.subr.bf16.mxu0 %v14478_v20  ;;  %v14558_v18 = vld [vmem:[#allocation23 + $0x20] ss:$12 sps:$4 sm:$0xff]   ;;  %v14562_v20 = vld [vmem:[#allocation23 + $0xf8] ss:$12 sps:$4 sm:$0xff]   ;;  %v14567_v19 = vld [vmem:[#allocation23 + $0x110] ss:$12 sps:$4 sm:$0xff]  }
 0x6f3   :  { %v5433_v29 = vadd.f32 %v13195_v61, %v5393_v24 }
 0x6f4   :  { %5796 = vmatpush1.bf16.msra.mxu0 %v14476_v23  ;;  %v12402_v23 = vld [vmem:[#allocation19] ss:$0 sm:$0xff] }
 0x6f5   :  { %15045 = vtanh.f32 %v5433_v29  ;;  %5797 = vmatprep.subr.bf16.mxu0 %v14481_v27 }
 0x6f8   :  { %5798 = vmatpush1.bf16.msra.mxu0 %v14479_v30 }
 0x6f9   :  { %5799 = vmatprep.subr.bf16.mxu0 %v14484_v31 }
 0x6fc   :  { %5800 = vmatpush1.bf16.msra.mxu0 %v14482_v32 }
 0x6fd   :  { %13221 = vmatprep.subr.bf16.mxu0 %v14552_v26  ;;  %v14591_v26 = vld [vmem:[#allocation26 + $0x4] ss:$16 sps:$4 sm:$0xff]  }
 0x6ff   :  { %v15046_v33 = vpop.eup %15045 }
 0x700   :  { %v5492_v34 = vpack.c.bf16 %v15046_v33, %v15046_v33  ;;  %v14525_v33 = vld [vmem:[#allocation23] ss:$12 sps:$4 sm:$0xff]  }
 0x702   :  { %5818 = vmatmul.mubr.bf16.vlgmr.msra.gmra.mrb[16].mxu0 %v5492_v34 }
 0x703   :  { %13222 = vmatpush3.bf16.msra.mxu0 %v14553_v62  ;;  %v14594_v62 = vld [vmem:[#allocation26 + $0xc] ss:$16 sps:$4 sm:$0xff]  }
 0x704   :  { %13223 = vmatprep.subr.bf16.mxu0 %v14557_v54  ;;  %v6023_v54 = vld [vmem:[#allocation22] sm:$0x3] }
 0x707   :  { %13224 = vmatpush3.bf16.msra.mxu0 %v14558_v18  ;;  %v6029_v18 = vrot.slane %v6023_v54, %v16091_v60 }
 0x708   :  { %13225 = vmatprep.subr.bf16.mxu0 %v14562_v20  ;;  %v6033_v20 = vrot.slane %v6023_v54, %v16094_v17  ;;  %v14660_v54 = vld [vmem:[#allocation26 + $0x16c] ss:$16 sps:$4 sm:$0xff]  }
 0x70b   :  { %13226 = vmatpush3.bf16.msra.mxu0 %v14563_v0 }
 0x70c   :  { %13227 = vmatprep.subr.bf16.mxu0 %v14567_v19 }
 0x70f   :  { %13228 = vmatpush3.bf16.msra.mxu0 %v14568_v21 }
 0x7d5   :  { %v5819_v47 = vpop.f32.mrb[16].mxu0 }
 0x7d6   :  { %v13257_v10 = vadd.f32 %v5819_v47, %v5497_v46  ;;  %v5821_v49 = vpop.f32.mrb[17].mxu0  ;;  %v14545_v46 = vld [vmem:[#allocation23 + $0x94] ss:$12 sps:$4 sm:$0xff]   ;;  %v14548_v47 = vld [vmem:[#allocation23 + $0xac] ss:$12 sps:$4 sm:$0xff]  }
 0x7d7   :  { %v13258_v50 = vadd.f32 %v5821_v49, %v5501_v48  ;;  %v5823_v42 = vpop.f32.mrb[18].mxu0  ;;  %v14543_v48 = vld [vmem:[#allocation23 + $0x90] ss:$12 sps:$4 sm:$0xff]  }
 0x7d8   :  { %15047 = vtanh.f32 %v13257_v10  ;;  %v5824_v53 = vpop.f32.mrb[19].mxu0  ;;  %v14546_v10 = vld [vmem:[#allocation23 + $0xa8] ss:$12 sps:$4 sm:$0xff]   ;;  %v14551_v49 = vld [vmem:[#allocation23 + $0xc4] ss:$12 sps:$4 sm:$0xff]  }
 0x7d9   :  { %15049 = vtanh.f32 %v13258_v50  ;;  %v14549_v50 = vld [vmem:[#allocation23 + $0xc0] ss:$12 sps:$4 sm:$0xff]   ;;  %v14556_v42 = vld [vmem:[#allocation23 + $0xdc] ss:$12 sps:$4 sm:$0xff]   ;;  %v14554_v53 = vld [vmem:[#allocation23 + $0xd8] ss:$12 sps:$4 sm:$0xff]  }
 0x7e2   :  { %v15048_v51 = vpop.eup %15047 }
 0x7e3   :  { %v15050_v55 = vpop.eup %15049  ;;  %v5861_v61 = vpack.c.bf16 %v15048_v51, %v15048_v51  ;;  %v14561_v51 = vld [vmem:[#allocation23 + $0xf4] ss:$12 sps:$4 sm:$0xff]  }
 0x7e4   :  { %v5862_v56 = vpack.c.bf16 %v15050_v55, %v15050_v55  ;;  %v14559_v55 = vld [vmem:[#allocation23 + $0xf0] ss:$12 sps:$4 sm:$0xff]  }
 0x7e6   :  { %5997 = vmatprep.mubr.bf16.mxu1 %v5862_v56  ;;  %v14566_v56 = vld [vmem:[#allocation23 + $0x10c] ss:$12 sps:$4 sm:$0xff]  }
 0x7e7   :  { %5998 = vmatmul.mubr.bf16.vlgmr.msra.gmra.mrb[20].mxu1 %v5861_v61  ;;  %v14571_v61 = vld [vmem:[#allocation23 + $0x124] ss:$12 sps:$4 sm:$0xff]  }
 0x7e8   :  { %6117 = vmatpush1.bf16.msra.mxu1 %v14501_v25  ;;  %6148 = vmatprep.mubr.bf16.mxu1 %v15649_v14  ;;  %v14564_v25 = vld [vmem:[#allocation23 + $0x108] ss:$12 sps:$4 sm:$0xff]  }
 0x7e9   :  { %6118 = vmatprep.subr.bf16.mxu1 %v14506_v36  ;;  %v14572_v36 = vld [vmem:[#allocation23 + $0x128] ss:$12 sps:$4 sm:$0xff]  }
 0x7ea   :  { %13229 = vmatprep.subr.bf16.mxu0 %v14572_v36  ;;  %v14633_v36 = vld [vmem:[#allocation26 + $0xe4] ss:$16 sps:$4 sm:$0xff]  }
 0x7ec   :  { %6119 = vmatpush1.bf16.msra.mxu1 %v14504_v63  ;;  %v14569_v63 = vld [vmem:[#allocation23 + $0x120] ss:$12 sps:$4 sm:$0xff]  }
 0x7ed   :  { %6120 = vmatprep.subr.bf16.mxu1 %v14509_v28  ;;  %v14573_v28 = vld [vmem:[#allocation23 + $0x68] ss:$12 sps:$4 sm:$0xff]  }
 0x7ee   :  { %13230 = vmatpush3.bf16.msra.mxu0 %v14573_v28  ;;  %v14631_v28 = vld [vmem:[#allocation26 + $0xe0] ss:$16 sps:$4 sm:$0xff]  }
 0x7f0   :  { %6121 = vmatpush1.bf16.msra.mxu1 %v14507_v52  ;;  %v14576_v52 = vld [vmem:[#allocation23 + $0x13c] ss:$12 sps:$4 sm:$0xff]  }
 0x7f1   :  { %6122 = vmatprep.subr.bf16.mxu1 %v14512_v1  ;;  %v14577_v1 = vld [vmem:[#allocation23 + $0x140] ss:$12 sps:$4 sm:$0xff]  }
 0x7f2   :  { %13231 = vmatprep.subr.bf16.mxu0 %v14577_v1  ;;  %v14639_v1 = vld [vmem:[#allocation26 + $0x104] ss:$16 sps:$4 sm:$0xff]  }
 0x7f4   :  { %6123 = vmatpush1.bf16.msra.mxu1 %v14510_v2  ;;  %v14574_v2 = vld [vmem:[#allocation23 + $0x138] ss:$12 sps:$4 sm:$0xff]  }
 0x7f5   :  { %6124 = vmatprep.subr.bf16.mxu1 %v14515_v3  ;;  %v14578_v3 = vld [vmem:[#allocation23 + $0x80] ss:$12 sps:$4 sm:$0xff]  }
 0x7f6   :  { %13232 = vmatpush3.bf16.msra.mxu0 %v14578_v3  ;;  %v14637_v3 = vld [vmem:[#allocation26 + $0x100] ss:$16 sps:$4 sm:$0xff]  }
 0x7f8   :  { %6125 = vmatpush1.bf16.msra.mxu1 %v14513_v4  ;;  %v14581_v4 = vld [vmem:[#allocation23 + $0x154] ss:$12 sps:$4 sm:$0xff]  }
 0x7f9   :  { %6126 = vmatprep.subr.bf16.mxu1 %v14518_v5  ;;  %v14582_v5 = vld [vmem:[#allocation23 + $0x158] ss:$12 sps:$4 sm:$0xff]  }
 0x7fa   :  { %13233 = vmatprep.subr.bf16.mxu0 %v14582_v5  ;;  %v14645_v5 = vld [vmem:[#allocation26 + $0x124] ss:$16 sps:$4 sm:$0xff]  }
 0x7fc   :  { %6127 = vmatpush1.bf16.msra.mxu1 %v14516_v12  ;;  %v14579_v12 = vld [vmem:[#allocation23 + $0x150] ss:$12 sps:$4 sm:$0xff]  }
 0x7fd   :  { %6128 = vmatprep.subr.bf16.mxu1 %v14521_v22  ;;  %v14583_v22 = vld [vmem:[#allocation23 + $0x98] ss:$12 sps:$4 sm:$0xff]  }
 0x7fe   :  { %13234 = vmatpush3.bf16.msra.mxu0 %v14583_v22  ;;  %v14643_v22 = vld [vmem:[#allocation26 + $0x120] ss:$16 sps:$4 sm:$0xff]  }
 0x800   :  { %6129 = vmatpush1.bf16.msra.mxu1 %v14519_v8  ;;  %v14586_v8 = vld [vmem:[#allocation23 + $0x16c] ss:$12 sps:$4 sm:$0xff]  }
 0x801   :  { %6130 = vmatprep.subr.bf16.mxu1 %v14524_v9  ;;  %v14587_v9 = vld [vmem:[#allocation23 + $0x170] ss:$12 sps:$4 sm:$0xff]  }
 0x802   :  { %13235 = vmatprep.subr.bf16.mxu0 %v14587_v9  ;;  %v14651_v9 = vld [vmem:[#allocation26 + $0x144] ss:$16 sps:$4 sm:$0xff]  }
 0x804   :  { %6131 = vmatpush1.bf16.msra.mxu1 %v14522_v15  ;;  %v14584_v15 = vld [vmem:[#allocation23 + $0x168] ss:$12 sps:$4 sm:$0xff]  }
 0x805   :  { %6498 = vmatprep.subr.bf16.mxu1 %v14527_v16  ;;  %v14588_v16 = vld [vmem:[#allocation23 + $0xb0] ss:$12 sps:$4 sm:$0xff]  }
 0x806   :  { %13236 = vmatpush3.bf16.msra.mxu0 %v14588_v16  ;;  %v14649_v16 = vld [vmem:[#allocation26 + $0x140] ss:$16 sps:$4 sm:$0xff]  }
 0x807   :  { %7183 = vmatprep.subr.bf16.mxu0 %v14591_v26  ;;  %v14652_v26 = vld [vmem:[#allocation26 + $0x148] ss:$16 sps:$4 sm:$0xff]  }
 0x8ba   :  { %v13215_v59 = vpop.f32.mrb[20].mxu1 }
 0x8bb   :  { %v13216_v24 = vpop.f32.mrb[21].mxu1 }
 0x8bc   :  { %v13217_v27 = vadd.f32 %v13216_v24, %v13215_v59  ;;  %v13218_v29 = vpop.f32.mrb[22].mxu1 }
 0x8bd   :  { %v13219_v30 = vpop.f32.mrb[23].mxu1 }
 0x8be   :  { %v6000_v31 = vadd.f32 %v13217_v27, %v12402_v23 }
 0x8c0   :  { %15051 = vtanh.f32 %v6000_v31  ;;  %v14589_v31 = vld [vmem:[#allocation26] ss:$16 sps:$4 sm:$0xff]  }
 0x8ca   :  { %v15052_v32 = vpop.eup %15051 }
 0x8cb   :  { %6006 = vst [vmem:[#allocation36] sm:$0xff] %v15052_v32  ;;  %v6024_v34 = vpack.c.bf16 %v15052_v32, %v15052_v32  ;;  %v14592_v32 = vld [vmem:[#allocation26 + $0x8] ss:$16 sps:$4 sm:$0xff]  }
 0x8cd   :  { %6149 = vmatmul.mubr.bf16.vlgmr.msra.gmra.mrb[24].mxu1 %v6024_v34  ;;  %v14597_v34 = vld [vmem:[#allocation26 + $0x24] ss:$16 sps:$4 sm:$0xff]  }
 0x8ce   :  { %6499 = vmatpush1.bf16.msra.mxu1 %v14525_v33 }
 0x8cf   :  { %6500 = vmatprep.subr.bf16.mxu1 %v14530_v35  ;;  %v14600_v35 = vld [vmem:[#allocation26 + $0x2c] ss:$16 sps:$4 sm:$0xff]  }
 0x8d2   :  { %6501 = vmatpush1.bf16.msra.mxu1 %v14528_v37  ;;  %v14595_v37 = vld [vmem:[#allocation26 + $0x20] ss:$16 sps:$4 sm:$0xff]  }
 0x8d3   :  { %6502 = vmatprep.subr.bf16.mxu1 %v14533_v38  ;;  %v14598_v38 = vld [vmem:[#allocation26 + $0x28] ss:$16 sps:$4 sm:$0xff]  }
 0x8d6   :  { %6503 = vmatpush1.bf16.msra.mxu1 %v14531_v39  ;;  %v14603_v39 = vld [vmem:[#allocation26 + $0x44] ss:$16 sps:$4 sm:$0xff]  }
 0x8d7   :  { %6504 = vmatprep.subr.bf16.mxu1 %v14536_v40  ;;  %v14606_v40 = vld [vmem:[#allocation26 + $0x4c] ss:$16 sps:$4 sm:$0xff]  }
 0x8da   :  { %6505 = vmatpush1.bf16.msra.mxu1 %v14534_v41  ;;  %v14601_v41 = vld [vmem:[#allocation26 + $0x40] ss:$16 sps:$4 sm:$0xff]  }
 0x8db   :  { %6506 = vmatprep.subr.bf16.mxu1 %v14539_v43  ;;  %v14604_v43 = vld [vmem:[#allocation26 + $0x48] ss:$16 sps:$4 sm:$0xff]  }
 0x8de   :  { %6507 = vmatpush1.bf16.msra.mxu1 %v14537_v13  ;;  %v14609_v13 = vld [vmem:[#allocation26 + $0x64] ss:$16 sps:$4 sm:$0xff]  }
 0x8df   :  { %6508 = vmatprep.subr.bf16.mxu1 %v14542_v44  ;;  %v14612_v44 = vld [vmem:[#allocation26 + $0x6c] ss:$16 sps:$4 sm:$0xff]  }
 0x8e2   :  { %6509 = vmatpush1.bf16.msra.mxu1 %v14540_v45  ;;  %v14607_v45 = vld [vmem:[#allocation26 + $0x60] ss:$16 sps:$4 sm:$0xff]  }
 0x8e3   :  { %6510 = vmatprep.subr.bf16.mxu1 %v14545_v46  ;;  %v14610_v46 = vld [vmem:[#allocation26 + $0x68] ss:$16 sps:$4 sm:$0xff]  }
 0x8e6   :  { %6511 = vmatpush1.bf16.msra.mxu1 %v14543_v48  ;;  %v14615_v48 = vld [vmem:[#allocation26 + $0x84] ss:$16 sps:$4 sm:$0xff]  }
 0x8e7   :  { %6512 = vmatprep.subr.bf16.mxu1 %v14548_v47  ;;  %v14618_v47 = vld [vmem:[#allocation26 + $0x8c] ss:$16 sps:$4 sm:$0xff]  }
 0x8ea   :  { %6513 = vmatpush1.bf16.msra.mxu1 %v14546_v10  ;;  %v14613_v10 = vld [vmem:[#allocation26 + $0x80] ss:$16 sps:$4 sm:$0xff]  }
 0x8eb   :  { %6514 = vmatprep.subr.bf16.mxu1 %v14551_v49  ;;  %v14616_v49 = vld [vmem:[#allocation26 + $0x88] ss:$16 sps:$4 sm:$0xff]  }
 0x8ee   :  { %6515 = vmatpush1.bf16.msra.mxu1 %v14549_v50  ;;  %v14621_v50 = vld [vmem:[#allocation26 + $0xa4] ss:$16 sps:$4 sm:$0xff]  }
 0x8ef   :  { %6516 = vmatprep.subr.bf16.mxu1 %v14556_v42  ;;  %v14624_v42 = vld [vmem:[#allocation26 + $0xac] ss:$16 sps:$4 sm:$0xff]  }
 0x8f2   :  { %6517 = vmatpush1.bf16.msra.mxu1 %v14554_v53  ;;  %v14619_v53 = vld [vmem:[#allocation26 + $0xa0] ss:$16 sps:$4 sm:$0xff]  }
 0x8f3   :  { %6518 = vmatprep.subr.bf16.mxu1 %v14561_v51  ;;  %v14622_v51 = vld [vmem:[#allocation26 + $0xa8] ss:$16 sps:$4 sm:$0xff]  }
 0x8f6   :  { %6519 = vmatpush1.bf16.msra.mxu1 %v14559_v55  ;;  %v14627_v55 = vld [vmem:[#allocation26 + $0xc4] ss:$16 sps:$4 sm:$0xff]  }
 0x8f7   :  { %6520 = vmatprep.subr.bf16.mxu1 %v14566_v56  ;;  %v14630_v56 = vld [vmem:[#allocation26 + $0xcc] ss:$16 sps:$4 sm:$0xff]  }
 0x8fa   :  { %6521 = vmatpush1.bf16.msra.mxu1 %v14564_v25  ;;  %v14625_v25 = vld [vmem:[#allocation26 + $0xc0] ss:$16 sps:$4 sm:$0xff]  }
 0x8fb   :  { %6522 = vmatprep.subr.bf16.mxu1 %v14571_v61  ;;  %v14628_v61 = vld [vmem:[#allocation26 + $0xc8] ss:$16 sps:$4 sm:$0xff]  }
 0x8fe   :  { %6523 = vmatpush1.bf16.msra.mxu1 %v14569_v63  ;;  %v14636_v63 = vld [vmem:[#allocation26 + $0xec] ss:$16 sps:$4 sm:$0xff]  }
 0x8ff   :  { %6524 = vmatprep.subr.bf16.mxu1 %v14576_v52  ;;  %v14634_v52 = vld [vmem:[#allocation26 + $0xe8] ss:$16 sps:$4 sm:$0xff]  }
 0x902   :  { %6525 = vmatpush1.bf16.msra.mxu1 %v14574_v2  ;;  %v14642_v2 = vld [vmem:[#allocation26 + $0x10c] ss:$16 sps:$4 sm:$0xff]  }
 0x903   :  { %6526 = vmatprep.subr.bf16.mxu1 %v14581_v4  ;;  %v14640_v4 = vld [vmem:[#allocation26 + $0x108] ss:$16 sps:$4 sm:$0xff]  }
 0x906   :  { %6527 = vmatpush1.bf16.msra.mxu1 %v14579_v12  ;;  %v14648_v12 = vld [vmem:[#allocation26 + $0x12c] ss:$16 sps:$4 sm:$0xff]  }
 0x907   :  { %6528 = vmatprep.subr.bf16.mxu1 %v14586_v8  ;;  %v14646_v8 = vld [vmem:[#allocation26 + $0x128] ss:$16 sps:$4 sm:$0xff]  }
 0x90a   :  { %6529 = vmatpush1.bf16.msra.mxu1 %v14584_v15  ;;  %v14654_v15 = vld [vmem:[#allocation26 + $0x14c] ss:$16 sps:$4 sm:$0xff]  }
 0x90b   :  { %7265 = vmatprep.subr.bf16.mxu1 %v14594_v62  ;;  %v14657_v62 = vld [vmem:[#allocation26 + $0x164] ss:$16 sps:$4 sm:$0xff]  }
 0x9a0   :  { %v6150_v0 = vpop.f32.mrb[24].mxu1 }
 0x9a1   :  { %v6151_v19 = vadd.f32 %v6150_v0, %v6029_v18  ;;  %v6152_v21 = vpop.f32.mrb[25].mxu1  ;;  %v14655_v18 = vld [vmem:[#allocation26 + $0x160] ss:$16 sps:$4 sm:$0xff]   ;;  %v14663_v0 = vld [vmem:[#allocation26 + $0x184] ss:$16 sps:$4 sm:$0xff]  }
 0x9a2   :  { %v6153_v59 = vadd.f32 %v6152_v21, %v6033_v20  ;;  %v6154_v23 = vpop.f32.mrb[26].mxu1  ;;  %v14658_v20 = vld [vmem:[#allocation26 + $0x168] ss:$16 sps:$4 sm:$0xff]   ;;  %v14661_v21 = vld [vmem:[#allocation26 + $0x180] ss:$16 sps:$4 sm:$0xff]  }
 0x9a3   :  { %15053 = vtanh.f32 %v6151_v19  ;;  %v6155_v24 = vpop.f32.mrb[27].mxu1  ;;  %v14666_v19 = vld [vmem:[#allocation26 + $0x18c] ss:$16 sps:$4 sm:$0xff]   ;;  %v14669_v23 = vld [vmem:[#allocation26 + $0x1a4] ss:$16 sps:$4 sm:$0xff]  }
 0x9a4   :  { %15055 = vtanh.f32 %v6153_v59  ;;  %v14664_v59 = vld [vmem:[#allocation26 + $0x188] ss:$16 sps:$4 sm:$0xff]   ;;  %v14672_v24 = vld [vmem:[#allocation26 + $0x1ac] ss:$16 sps:$4 sm:$0xff]  }
 0x9ad   :  { %v15054_v27 = vpop.eup %15053 }
 0x9ae   :  { %v15056_v29 = vpop.eup %15055  ;;  %v6224_v33 = vpack.c.bf16 %v15054_v27, %v15054_v27  ;;  %v14667_v27 = vld [vmem:[#allocation26 + $0x1a0] ss:$16 sps:$4 sm:$0xff]  }
 0x9af   :  { %v6225_v30 = vpack.c.bf16 %v15056_v29, %v15056_v29  ;;  %v14670_v29 = vld [vmem:[#allocation26 + $0x1a8] ss:$16 sps:$4 sm:$0xff]  }
 0x9b1   :  { %6530 = vmatprep.mubr.bf16.mxu1 %v6225_v30  ;;  %6571 = vmatprep.mubr.bf16.mxu0 %v6225_v30  ;;  %v14675_v30 = vld [vmem:[#allocation26 + $0x1c4] ss:$16 sps:$4 sm:$0xff]  }
 0x9b2   :  { %6531 = vmatmul.mubr.bf16.vlgmr.msra.gmra.mrb[28].mxu1 %v6224_v33  ;;  %6572 = vmatmul.mubr.bf16.vlgmr.msra.gmra.mrb[20].mxu0 %v6224_v33  ;;  %v14676_v33 = vld [vmem:[#allocation26 + $0x1c8] ss:$16 sps:$4 sm:$0xff]  }
 0x9b3   :  { %7184 = vmatpush1.bf16.msra.mxu0 %v14589_v31  ;;  %7266 = vmatpush1.bf16.msra.mxu1 %v14592_v32  ;;  %v14678_v31 = vld [vmem:[#allocation26 + $0x1cc] ss:$16 sps:$4 sm:$0xff]   ;;  %v14673_v32 = vld [vmem:[#allocation26 + $0x1c0] ss:$16 sps:$4 sm:$0xff]  }
 0x9b4   :  { %7185 = vmatprep.subr.bf16.mxu0 %v14597_v34  ;;  %7267 = vmatprep.subr.bf16.mxu1 %v14600_v35  ;;  %v14681_v34 = vld [vmem:[#allocation26 + $0x1e4] ss:$16 sps:$4 sm:$0xff]   ;;  %v14684_v35 = vld [vmem:[#allocation26 + $0x1ec] ss:$16 sps:$4 sm:$0xff]  }
 0x9b7   :  { %7186 = vmatpush1.bf16.msra.mxu0 %v14595_v37  ;;  %7268 = vmatpush1.bf16.msra.mxu1 %v14598_v38  ;;  %v14679_v37 = vld [vmem:[#allocation26 + $0x1e0] ss:$16 sps:$4 sm:$0xff]   ;;  %v14682_v38 = vld [vmem:[#allocation26 + $0x1e8] ss:$16 sps:$4 sm:$0xff]  }
 0x9b8   :  { %7187 = vmatprep.subr.bf16.mxu0 %v14603_v39  ;;  %7269 = vmatprep.subr.bf16.mxu1 %v14606_v40  ;;  %v14687_v39 = vld [vmem:[#allocation26 + $0x204] ss:$16 sps:$4 sm:$0xff]   ;;  %v14690_v40 = vld [vmem:[#allocation26 + $0x20c] ss:$16 sps:$4 sm:$0xff]  }
 0x9bb   :  { %7188 = vmatpush1.bf16.msra.mxu0 %v14601_v41  ;;  %7270 = vmatpush1.bf16.msra.mxu1 %v14604_v43  ;;  %v6223_v41 = vld [vmem:[#allocation25] sm:$0x7] }
 0x9bc   :  { %7189 = vmatprep.subr.bf16.mxu0 %v14609_v13  ;;  %7271 = vmatprep.subr.bf16.mxu1 %v14612_v44  ;;  %v6230_v43 = vrot.slane %v6223_v41, %v16091_v60  ;;  %v6234_v13 = vrot.slane %v6223_v41, %v16094_v17 }
 0x9bf   :  { %7190 = vmatpush1.bf16.msra.mxu0 %v14607_v45  ;;  %7272 = vmatpush1.bf16.msra.mxu1 %v14610_v46 }
 0x9c0   :  { %7191 = vmatprep.subr.bf16.mxu0 %v14615_v48  ;;  %7273 = vmatprep.subr.bf16.mxu1 %v14618_v47 }
 0x9c3   :  { %7192 = vmatpush1.bf16.msra.mxu0 %v14613_v10  ;;  %7274 = vmatpush1.bf16.msra.mxu1 %v14616_v49 }
 0x9c4   :  { %7193 = vmatprep.subr.bf16.mxu0 %v14621_v50  ;;  %7275 = vmatprep.subr.bf16.mxu1 %v14624_v42 }
 0x9c7   :  { %7194 = vmatpush1.bf16.msra.mxu0 %v14619_v53  ;;  %7276 = vmatpush1.bf16.msra.mxu1 %v14622_v51 }
 0x9c8   :  { %7195 = vmatprep.subr.bf16.mxu0 %v14627_v55  ;;  %7277 = vmatprep.subr.bf16.mxu1 %v14630_v56 }
 0x9cb   :  { %7196 = vmatpush1.bf16.msra.mxu0 %v14625_v25  ;;  %7278 = vmatpush1.bf16.msra.mxu1 %v14628_v61  ;;  %v14685_v61 = vld [vmem:[#allocation26 + $0x200] ss:$16 sps:$4 sm:$0xff]  }
 0x9cc   :  { %7197 = vmatprep.subr.bf16.mxu0 %v14633_v36  ;;  %7279 = vmatprep.subr.bf16.mxu1 %v14636_v63  ;;  %v14688_v36 = vld [vmem:[#allocation26 + $0x208] ss:$16 sps:$4 sm:$0xff]  }
 0x9cf   :  { %7198 = vmatpush1.bf16.msra.mxu0 %v14631_v28  ;;  %7280 = vmatpush1.bf16.msra.mxu1 %v14634_v52  ;;  %v14693_v28 = vld [vmem:[#allocation26 + $0x224] ss:$16 sps:$4 sm:$0xff]   ;;  %v14696_v52 = vld [vmem:[#allocation26 + $0x22c] ss:$16 sps:$4 sm:$0xff]  }
 0x9d0   :  { %7199 = vmatprep.subr.bf16.mxu0 %v14639_v1  ;;  %7281 = vmatprep.subr.bf16.mxu1 %v14642_v2  ;;  %v14691_v1 = vld [vmem:[#allocation26 + $0x220] ss:$16 sps:$4 sm:$0xff]   ;;  %v14694_v2 = vld [vmem:[#allocation26 + $0x228] ss:$16 sps:$4 sm:$0xff]  }
 0x9d3   :  { %7200 = vmatpush1.bf16.msra.mxu0 %v14637_v3  ;;  %7282 = vmatpush1.bf16.msra.mxu1 %v14640_v4  ;;  %v14699_v3 = vld [vmem:[#allocation26 + $0x244] ss:$16 sps:$4 sm:$0xff]   ;;  %v14702_v4 = vld [vmem:[#allocation26 + $0x24c] ss:$16 sps:$4 sm:$0xff]  }
 0x9d4   :  { %7201 = vmatprep.subr.bf16.mxu0 %v14645_v5  ;;  %7283 = vmatprep.subr.bf16.mxu1 %v14648_v12  ;;  %v14697_v5 = vld [vmem:[#allocation26 + $0x240] ss:$16 sps:$4 sm:$0xff]   ;;  %v14700_v12 = vld [vmem:[#allocation26 + $0x248] ss:$16 sps:$4 sm:$0xff]  }
 0x9d7   :  { %7202 = vmatpush1.bf16.msra.mxu0 %v14643_v22  ;;  %7284 = vmatpush1.bf16.msra.mxu1 %v14646_v8  ;;  %v14705_v22 = vld [vmem:[#allocation26 + $0x264] ss:$16 sps:$4 sm:$0xff]   ;;  %v14708_v8 = vld [vmem:[#allocation26 + $0x26c] ss:$16 sps:$4 sm:$0xff]  }
 0x9d8   :  { %7203 = vmatprep.subr.bf16.mxu0 %v14651_v9  ;;  %7285 = vmatprep.subr.bf16.mxu1 %v14654_v15  ;;  %v6238_v9 = vrot.slane %v6223_v41, %v16110_v6  ;;  %v14703_v15 = vld [vmem:[#allocation26 + $0x260] ss:$16 sps:$4 sm:$0xff]  }
 0x9d9   :  { %v14744_v41 = vld [vmem:[#allocation29 + $0x3c] ss:$24 sps:$4 sm:$0xff]  }
 0x9db   :  { %7204 = vmatpush1.bf16.msra.mxu0 %v14649_v16  ;;  %7286 = vmatpush1.bf16.msra.mxu1 %v14652_v26  ;;  %v14706_v16 = vld [vmem:[#allocation26 + $0x268] ss:$16 sps:$4 sm:$0xff]   ;;  %v14711_v26 = vld [vmem:[#allocation26 + $0x284] ss:$16 sps:$4 sm:$0xff]  }
 0x9dc   :  { %7205 = vmatprep.subr.bf16.mxu0 %v14657_v62  ;;  %7287 = vmatprep.subr.bf16.mxu1 %v14660_v54  ;;  %v14714_v62 = vld [vmem:[#allocation26 + $0x28c] ss:$16 sps:$4 sm:$0xff]  }
 0x9df   :  { %7206 = vmatpush1.bf16.msra.mxu0 %v14655_v18  ;;  %7288 = vmatpush1.bf16.msra.mxu1 %v14658_v20  ;;  %v14712_v18 = vld [vmem:[#allocation26 + $0x288] ss:$16 sps:$4 sm:$0xff]   ;;  %v14717_v20 = vld [vmem:[#allocation26 + $0x2a4] ss:$16 sps:$4 sm:$0xff]  }
 0x9e0   :  { %7207 = vmatprep.subr.bf16.mxu0 %v14663_v0  ;;  %7289 = vmatprep.subr.bf16.mxu1 %v14666_v19  ;;  %v14720_v0 = vld [vmem:[#allocation26 + $0x2ac] ss:$16 sps:$4 sm:$0xff]   ;;  %v14715_v19 = vld [vmem:[#allocation26 + $0x2a0] ss:$16 sps:$4 sm:$0xff]  }
 0x9e3   :  { %7208 = vmatpush1.bf16.msra.mxu0 %v14661_v21  ;;  %7290 = vmatpush1.bf16.msra.mxu1 %v14664_v59  ;;  %v14718_v21 = vld [vmem:[#allocation26 + $0x2a8] ss:$16 sps:$4 sm:$0xff]   ;;  %v14723_v59 = vld [vmem:[#allocation26 + $0x2c4] ss:$16 sps:$4 sm:$0xff]  }
 0x9e4   :  { %7209 = vmatprep.subr.bf16.mxu0 %v14669_v23  ;;  %7291 = vmatprep.subr.bf16.mxu1 %v14672_v24  ;;  %v14726_v23 = vld [vmem:[#allocation26 + $0x2cc] ss:$16 sps:$4 sm:$0xff]   ;;  %v14721_v24 = vld [vmem:[#allocation26 + $0x2c0] ss:$16 sps:$4 sm:$0xff]  }
 0x9e7   :  { %7210 = vmatpush1.bf16.msra.mxu0 %v14667_v27  ;;  %7292 = vmatpush1.bf16.msra.mxu1 %v14670_v29  ;;  %v14724_v27 = vld [vmem:[#allocation26 + $0x2c8] ss:$16 sps:$4 sm:$0xff]   ;;  %v14729_v29 = vld [vmem:[#allocation26 + $0x2e4] ss:$16 sps:$4 sm:$0xff]  }
 0x9e8   :  { %7211 = vmatprep.subr.bf16.mxu0 %v14675_v30  ;;  %7293 = vmatprep.subr.bf16.mxu1 %v14678_v31  ;;  %v14732_v30 = vld [vmem:[#allocation26 + $0x2ec] ss:$16 sps:$4 sm:$0xff]   ;;  %v14727_v31 = vld [vmem:[#allocation26 + $0x2e0] ss:$16 sps:$4 sm:$0xff]  }
 0x9eb   :  { %7212 = vmatpush1.bf16.msra.mxu0 %v14673_v32  ;;  %7294 = vmatpush1.bf16.msra.mxu1 %v14676_v33  ;;  %v14730_v32 = vld [vmem:[#allocation26 + $0x2e8] ss:$16 sps:$4 sm:$0xff]  }
 0x9ec   :  { %7213 = vmatprep.subr.bf16.mxu0 %v14681_v34  ;;  %7295 = vmatprep.subr.bf16.mxu1 %v14684_v35  ;;  %v14735_v33 = vld [vmem:[#allocation29 + $0x4] ss:$24 sps:$4 sm:$0xff]  }
 0x9ed   :  { %v14738_v34 = vld [vmem:[#allocation29 + $0xc] ss:$24 sps:$4 sm:$0xff]  }
 0x9ef   :  { %7214 = vmatpush1.bf16.msra.mxu0 %v14679_v37  ;;  %7296 = vmatpush1.bf16.msra.mxu1 %v14682_v38  ;;  %v14733_v37 = vld [vmem:[#allocation29] ss:$24 sps:$4 sm:$0xff]  }
 0x9f0   :  { %7224 = vmatprep.subr.bf16.mxu0 %v14687_v39  ;;  %7306 = vmatprep.subr.bf16.mxu1 %v14690_v40  ;;  %v14736_v38 = vld [vmem:[#allocation29 + $0x8] ss:$24 sps:$4 sm:$0xff]   ;;  %v14741_v40 = vld [vmem:[#allocation29 + $0x34] ss:$24 sps:$4 sm:$0xff]  }
 0xa85   :  { %v6532_v44 = vpop.f32.mrb[28].mxu1  ;;  %v13237_v45 = vpop.f32.mrb[20].mxu0 }
 0xa86   :  { %v6533_v46 = vadd.f32 %v6532_v44, %v6230_v43  ;;  %v6534_v48 = vpop.f32.mrb[29].mxu1  ;;  %v13238_v47 = vpop.f32.mrb[21].mxu0  ;;  %v14739_v43 = vld [vmem:[#allocation29 + $0x30] ss:$24 sps:$4 sm:$0xff]   ;;  %v14747_v44 = vld [vmem:[#allocation29 + $0x64] ss:$24 sps:$4 sm:$0xff]  }
 0xa87   :  { %v6535_v10 = vadd.f32 %v6534_v48, %v6234_v13  ;;  %v13239_v49 = vadd.f32 %v13238_v47, %v13237_v45  ;;  %v6536_v50 = vpop.f32.mrb[30].mxu1  ;;  %v13240_v42 = vpop.f32.mrb[22].mxu0  ;;  %v14742_v13 = vld [vmem:[#allocation29 + $0x38] ss:$24 sps:$4 sm:$0xff]   ;;  %v14750_v45 = vld [vmem:[#allocation29 + $0x6c] ss:$24 sps:$4 sm:$0xff]  }
 0xa88   :  { %15057 = vtanh.f32 %v6533_v46  ;;  %v6537_v53 = vpop.f32.mrb[31].mxu1  ;;  %v13241_v51 = vpop.f32.mrb[23].mxu0  ;;  %v14745_v46 = vld [vmem:[#allocation29 + $0x60] ss:$24 sps:$4 sm:$0xff]   ;;  %v14753_v47 = vld [vmem:[#allocation29 + $0x94] ss:$24 sps:$4 sm:$0xff]  }
 0xa89   :  { %15059 = vtanh.f32 %v6535_v10  ;;  %v6574_v54 = vadd.f32 %v13239_v49, %v6238_v9  ;;  %v14748_v48 = vld [vmem:[#allocation29 + $0x68] ss:$24 sps:$4 sm:$0xff]   ;;  %v14756_v10 = vld [vmem:[#allocation29 + $0x9c] ss:$24 sps:$4 sm:$0xff]   ;;  %v14754_v50 = vld [vmem:[#allocation29 + $0x98] ss:$24 sps:$4 sm:$0xff]  }
 0xa8a   :  { %v14751_v49 = vld [vmem:[#allocation29 + $0x90] ss:$24 sps:$4 sm:$0xff]   ;;  %v14759_v42 = vld [vmem:[#allocation29 + $0xc4] ss:$24 sps:$4 sm:$0xff]   ;;  %v14757_v51 = vld [vmem:[#allocation29 + $0xc0] ss:$24 sps:$4 sm:$0xff]  }
 0xa8b   :  { %15061 = vtanh.f32 %v6574_v54  ;;  %v14762_v53 = vld [vmem:[#allocation29 + $0xcc] ss:$24 sps:$4 sm:$0xff]   ;;  %v14784_v9 = vld [vmem:[#allocation29 + $0x188] ss:$24 sps:$4 sm:$0xff]  }
 0xa8c   :  { %v14795_v54 = vld [vmem:[#allocation29 + $0x1e4] ss:$24 sps:$4 sm:$0xff]  }
 0xa92   :  { %v15058_v55 = vpop.eup %15057 }
 0xa93   :  { %v15060_v56 = vpop.eup %15059  ;;  %v6679_v63 = vpack.c.bf16 %v15058_v55, %v15058_v55  ;;  %v14760_v55 = vld [vmem:[#allocation29 + $0xc8] ss:$24 sps:$4 sm:$0xff]  }
 0xa94   :  { %v6680_v25 = vpack.c.bf16 %v15060_v56, %v15060_v56  ;;  %v14765_v56 = vld [vmem:[#allocation29 + $0xf4] ss:$24 sps:$4 sm:$0xff]  }
 0xa95   :  { %v15062_v35 = vpop.eup %15061 }
 0xa96   :  { %7215 = vmatprep.mubr.bf16.mxu0 %v6680_v25  ;;  %7297 = vmatprep.mubr.bf16.mxu1 %v6680_v25  ;;  %v6681_v39 = vpack.c.bf16 %v15062_v35, %v15062_v35  ;;  %v14768_v25 = vld [vmem:[#allocation29 + $0xfc] ss:$24 sps:$4 sm:$0xff]   ;;  %v14822_v35 = vld [vmem:[#allocation29 + $0x2ac] ss:$24 sps:$4 sm:$0xff]  }
 0xa97   :  { %7216 = vmatmul.mubr.bf16.vlgmr.msra.gmra.mrb[24].mxu0 %v6679_v63  ;;  %7298 = vmatmul.mubr.bf16.vlgmr.msra.gmra.mrb[32].mxu1 %v6679_v63  ;;  %v14771_v63 = vld [vmem:[#allocation29 + $0x124] ss:$24 sps:$4 sm:$0xff]  }
 0xa98   :  { %7225 = vmatpush1.bf16.msra.mxu0 %v14685_v61  ;;  %7307 = vmatpush1.bf16.msra.mxu1 %v14688_v36  ;;  %v14763_v61 = vld [vmem:[#allocation29 + $0xf0] ss:$24 sps:$4 sm:$0xff]  }
 0xa99   :  { %7226 = vmatprep.subr.bf16.mxu0 %v14693_v28  ;;  %7308 = vmatprep.subr.bf16.mxu1 %v14696_v52  ;;  %v14766_v36 = vld [vmem:[#allocation29 + $0xf8] ss:$24 sps:$4 sm:$0xff]   ;;  %v14774_v28 = vld [vmem:[#allocation29 + $0x12c] ss:$24 sps:$4 sm:$0xff]  }
 0xa9a   :  { %7256 = vmatprep.mubr.bf16.mxu0 %v15649_v14  ;;  %7338 = vmatprep.mubr.bf16.mxu1 %v15649_v14  ;;  %v14709_v14 = vld [vmem:[#allocation26 + $0x280] ss:$16 sps:$4 sm:$0xff]   ;;  %v14769_v52 = vld [vmem:[#allocation29 + $0x120] ss:$24 sps:$4 sm:$0xff]  }
 0xa9c   :  { %7227 = vmatpush1.bf16.msra.mxu0 %v14691_v1  ;;  %7309 = vmatpush1.bf16.msra.mxu1 %v14694_v2  ;;  %v14772_v1 = vld [vmem:[#allocation29 + $0x128] ss:$24 sps:$4 sm:$0xff]   ;;  %v14777_v2 = vld [vmem:[#allocation29 + $0x154] ss:$24 sps:$4 sm:$0xff]  }
 0xa9d   :  { %7228 = vmatprep.subr.bf16.mxu0 %v14699_v3  ;;  %7310 = vmatprep.subr.bf16.mxu1 %v14702_v4  ;;  %v14780_v3 = vld [vmem:[#allocation29 + $0x15c] ss:$24 sps:$4 sm:$0xff]   ;;  %v14775_v4 = vld [vmem:[#allocation29 + $0x150] ss:$24 sps:$4 sm:$0xff]  }
 0xaa0   :  { %7229 = vmatpush1.bf16.msra.mxu0 %v14697_v5  ;;  %7311 = vmatpush1.bf16.msra.mxu1 %v14700_v12  ;;  %v14778_v5 = vld [vmem:[#allocation29 + $0x158] ss:$24 sps:$4 sm:$0xff]   ;;  %v14783_v12 = vld [vmem:[#allocation29 + $0x184] ss:$24 sps:$4 sm:$0xff]  }
 0xaa1   :  { %7230 = vmatprep.subr.bf16.mxu0 %v14705_v22  ;;  %7312 = vmatprep.subr.bf16.mxu1 %v14708_v8  ;;  %v14786_v22 = vld [vmem:[#allocation29 + $0x18c] ss:$24 sps:$4 sm:$0xff]   ;;  %v14781_v8 = vld [vmem:[#allocation29 + $0x180] ss:$24 sps:$4 sm:$0xff]  }
 0xaa4   :  { %7231 = vmatpush1.bf16.msra.mxu0 %v14703_v15  ;;  %7313 = vmatpush1.bf16.msra.mxu1 %v14706_v16  ;;  %v14789_v15 = vld [vmem:[#allocation29 + $0x1b4] ss:$24 sps:$4 sm:$0xff]  }
 0xaa5   :  { %7232 = vmatprep.subr.bf16.mxu0 %v14711_v26  ;;  %7314 = vmatprep.subr.bf16.mxu1 %v14714_v62  ;;  %v14792_v16 = vld [vmem:[#allocation29 + $0x1bc] ss:$24 sps:$4 sm:$0xff]   ;;  %v14787_v26 = vld [vmem:[#allocation29 + $0x1b0] ss:$24 sps:$4 sm:$0xff]  }
 0xaa6   :  { %v14790_v62 = vld [vmem:[#allocation29 + $0x1b8] ss:$24 sps:$4 sm:$0xff]  }
 0xaa8   :  { %7233 = vmatpush1.bf16.msra.mxu0 %v14709_v14  ;;  %7315 = vmatpush1.bf16.msra.mxu1 %v14712_v18  ;;  %v14798_v14 = vld [vmem:[#allocation29 + $0x1ec] ss:$24 sps:$4 sm:$0xff]   ;;  %v14793_v18 = vld [vmem:[#allocation29 + $0x1e0] ss:$24 sps:$4 sm:$0xff]  }
 0xaa9   :  { %7234 = vmatprep.subr.bf16.mxu0 %v14717_v20  ;;  %7316 = vmatprep.subr.bf16.mxu1 %v14720_v0  ;;  %v14796_v20 = vld [vmem:[#allocation29 + $0x1e8] ss:$24 sps:$4 sm:$0xff]   ;;  %v14801_v0 = vld [vmem:[#allocation29 + $0x214] ss:$24 sps:$4 sm:$0xff]  }
 0xaac   :  { %7235 = vmatpush1.bf16.msra.mxu0 %v14715_v19  ;;  %7317 = vmatpush1.bf16.msra.mxu1 %v14718_v21  ;;  %v14804_v19 = vld [vmem:[#allocation29 + $0x21c] ss:$24 sps:$4 sm:$0xff]   ;;  %v14799_v21 = vld [vmem:[#allocation29 + $0x210] ss:$24 sps:$4 sm:$0xff]  }
 0xaad   :  { %7236 = vmatprep.subr.bf16.mxu0 %v14723_v59  ;;  %7318 = vmatprep.subr.bf16.mxu1 %v14726_v23  ;;  %v14802_v59 = vld [vmem:[#allocation29 + $0x218] ss:$24 sps:$4 sm:$0xff]   ;;  %v14807_v23 = vld [vmem:[#allocation29 + $0x244] ss:$24 sps:$4 sm:$0xff]  }
 0xab0   :  { %7237 = vmatpush1.bf16.msra.mxu0 %v14721_v24  ;;  %7319 = vmatpush1.bf16.msra.mxu1 %v14724_v27  ;;  %v14810_v24 = vld [vmem:[#allocation29 + $0x24c] ss:$24 sps:$4 sm:$0xff]   ;;  %v14805_v27 = vld [vmem:[#allocation29 + $0x240] ss:$24 sps:$4 sm:$0xff]  }
 0xab1   :  { %7238 = vmatprep.subr.bf16.mxu0 %v14729_v29  ;;  %7320 = vmatprep.subr.bf16.mxu1 %v14732_v30  ;;  %v14808_v29 = vld [vmem:[#allocation29 + $0x248] ss:$24 sps:$4 sm:$0xff]   ;;  %v14813_v30 = vld [vmem:[#allocation29 + $0x274] ss:$24 sps:$4 sm:$0xff]  }
 0xab4   :  { %7239 = vmatpush1.bf16.msra.mxu0 %v14727_v31  ;;  %7321 = vmatpush1.bf16.msra.mxu1 %v14730_v32  ;;  %v14816_v31 = vld [vmem:[#allocation29 + $0x27c] ss:$24 sps:$4 sm:$0xff]   ;;  %v14811_v32 = vld [vmem:[#allocation29 + $0x270] ss:$24 sps:$4 sm:$0xff]  }
 0xab5   :  { %8539 = vmatprep.subr.bf16.mxu0 %v14735_v33  ;;  %8621 = vmatprep.subr.bf16.mxu1 %v14738_v34  ;;  %v14814_v33 = vld [vmem:[#allocation29 + $0x278] ss:$24 sps:$4 sm:$0xff]   ;;  %v14819_v34 = vld [vmem:[#allocation29 + $0x2a4] ss:$24 sps:$4 sm:$0xff]  }
 0xab7   :  { %7257 = vmatmul.mubr.bf16.vlgmr.msra.gmra.mrb[24].mxu0 %v6681_v39  ;;  %7339 = vmatmul.mubr.bf16.vlgmr.msra.gmra.mrb[32].mxu1 %v6681_v39  ;;  %v14825_v39 = vld [vmem:[#allocation29 + $0x2d4] ss:$24 sps:$4 sm:$0xff]  }
 0xab8   :  { %8540 = vmatpush1.bf16.msra.mxu0 %v14733_v37  ;;  %8622 = vmatpush1.bf16.msra.mxu1 %v14736_v38  ;;  %v14817_v37 = vld [vmem:[#allocation29 + $0x2a0] ss:$24 sps:$4 sm:$0xff]  }
 0xab9   :  { %8541 = vmatprep.subr.bf16.mxu0 %v14741_v40  ;;  %8623 = vmatprep.subr.bf16.mxu1 %v14744_v41  ;;  %v14820_v38 = vld [vmem:[#allocation29 + $0x2a8] ss:$24 sps:$4 sm:$0xff]   ;;  %v14828_v40 = vld [vmem:[#allocation29 + $0x2dc] ss:$24 sps:$4 sm:$0xff]  }
 0xaba   :  { %v14823_v41 = vld [vmem:[#allocation29 + $0x2d0] ss:$24 sps:$4 sm:$0xff]  }
 0xabc   :  { %8542 = vmatpush1.bf16.msra.mxu0 %v14739_v43  ;;  %8624 = vmatpush1.bf16.msra.mxu1 %v14742_v13  ;;  %v14826_v43 = vld [vmem:[#allocation29 + $0x2d8] ss:$24 sps:$4 sm:$0xff]   ;;  %v14831_v13 = vld [vmem:[#allocation29 + $0x304] ss:$24 sps:$4 sm:$0xff]  }
 0xabd   :  { %8543 = vmatprep.subr.bf16.mxu0 %v14747_v44  ;;  %8625 = vmatprep.subr.bf16.mxu1 %v14750_v45  ;;  %v14834_v44 = vld [vmem:[#allocation29 + $0x30c] ss:$24 sps:$4 sm:$0xff]   ;;  %v16181_v45 = vld [vmem:[#allocation28] sm:$0xf] }
 0xac0   :  { %8544 = vmatpush1.bf16.msra.mxu0 %v14745_v46  ;;  %8626 = vmatpush1.bf16.msra.mxu1 %v14748_v48  ;;  %v6686_v46 = vrot.slane %v16181_v45, %v16091_v60  ;;  %v6690_v48 = vrot.slane %v16181_v45, %v16094_v17 }
 0xac1   :  { %8545 = vmatprep.subr.bf16.mxu0 %v14753_v47  ;;  %8627 = vmatprep.subr.bf16.mxu1 %v14756_v10  ;;  %v6698_v47 = vrot.slane %v16181_v45, %v16113_v7 }
 0xac4   :  { %8546 = vmatpush1.bf16.msra.mxu0 %v14751_v49  ;;  %8628 = vmatpush1.bf16.msra.mxu1 %v14754_v50 }
 0xac5   :  { %8547 = vmatprep.subr.bf16.mxu0 %v14759_v42  ;;  %8629 = vmatprep.subr.bf16.mxu1 %v14762_v53 }
 0xac8   :  { %8548 = vmatpush1.bf16.msra.mxu0 %v14757_v51  ;;  %8630 = vmatpush1.bf16.msra.mxu1 %v14760_v55 }
 0xac9   :  { %8549 = vmatprep.subr.bf16.mxu0 %v14765_v56  ;;  %8631 = vmatprep.subr.bf16.mxu1 %v14768_v25 }
 0xacc   :  { %8550 = vmatpush1.bf16.msra.mxu0 %v14763_v61  ;;  %8632 = vmatpush1.bf16.msra.mxu1 %v14766_v36 }
 0xacd   :  { %8551 = vmatprep.subr.bf16.mxu0 %v14771_v63  ;;  %8633 = vmatprep.subr.bf16.mxu1 %v14774_v28 }
 0xad0   :  { %8552 = vmatpush1.bf16.msra.mxu0 %v14769_v52  ;;  %8634 = vmatpush1.bf16.msra.mxu1 %v14772_v1 }
 0xad1   :  { %8553 = vmatprep.subr.bf16.mxu0 %v14777_v2  ;;  %8635 = vmatprep.subr.bf16.mxu1 %v14780_v3  ;;  %v14829_v2 = vld [vmem:[#allocation29 + $0x300] ss:$24 sps:$4 sm:$0xff]  }
 0xad2   :  { %v14832_v3 = vld [vmem:[#allocation29 + $0x308] ss:$24 sps:$4 sm:$0xff]  }
 0xad4   :  { %8554 = vmatpush1.bf16.msra.mxu0 %v14775_v4  ;;  %8636 = vmatpush1.bf16.msra.mxu1 %v14778_v5  ;;  %v14837_v5 = vld [vmem:[#allocation29 + $0x334] ss:$24 sps:$4 sm:$0xff]  }
 0xad5   :  { %8555 = vmatprep.subr.bf16.mxu0 %v14783_v12  ;;  %8637 = vmatprep.subr.bf16.mxu1 %v14786_v22  ;;  %v14840_v12 = vld [vmem:[#allocation29 + $0x33c] ss:$24 sps:$4 sm:$0xff]  }
 0xad8   :  { %8556 = vmatpush1.bf16.msra.mxu0 %v14781_v8  ;;  %8638 = vmatpush1.bf16.msra.mxu1 %v14784_v9  ;;  %v14835_v8 = vld [vmem:[#allocation29 + $0x330] ss:$24 sps:$4 sm:$0xff]  }
 0xad9   :  { %8557 = vmatprep.subr.bf16.mxu0 %v14789_v15  ;;  %8639 = vmatprep.subr.bf16.mxu1 %v14792_v16  ;;  %v14838_v9 = vld [vmem:[#allocation29 + $0x338] ss:$24 sps:$4 sm:$0xff]   ;;  %v14843_v15 = vld [vmem:[#allocation29 + $0x364] ss:$24 sps:$4 sm:$0xff]  }
 0xada   :  { %v14846_v16 = vld [vmem:[#allocation29 + $0x36c] ss:$24 sps:$4 sm:$0xff]  }
 0xadc   :  { %8558 = vmatpush1.bf16.msra.mxu0 %v14787_v26  ;;  %8640 = vmatpush1.bf16.msra.mxu1 %v14790_v62  ;;  %v14841_v26 = vld [vmem:[#allocation29 + $0x360] ss:$24 sps:$4 sm:$0xff]  }
 0xadd   :  { %8559 = vmatprep.subr.bf16.mxu0 %v14795_v54  ;;  %8641 = vmatprep.subr.bf16.mxu1 %v14798_v14  ;;  %v14844_v62 = vld [vmem:[#allocation29 + $0x368] ss:$24 sps:$4 sm:$0xff]   ;;  %v14849_v54 = vld [vmem:[#allocation29 + $0x394] ss:$24 sps:$4 sm:$0xff]  }
 0xade   :  { %v14852_v14 = vld [vmem:[#allocation29 + $0x39c] ss:$24 sps:$4 sm:$0xff]  }
 0xae0   :  { %8560 = vmatpush1.bf16.msra.mxu0 %v14793_v18  ;;  %8642 = vmatpush1.bf16.msra.mxu1 %v14796_v20  ;;  %v14847_v18 = vld [vmem:[#allocation29 + $0x390] ss:$24 sps:$4 sm:$0xff]  }
 0xae1   :  { %8561 = vmatprep.subr.bf16.mxu0 %v14801_v0  ;;  %8643 = vmatprep.subr.bf16.mxu1 %v14804_v19  ;;  %v14850_v20 = vld [vmem:[#allocation29 + $0x398] ss:$24 sps:$4 sm:$0xff]   ;;  %v14855_v0 = vld [vmem:[#allocation29 + $0x3c4] ss:$24 sps:$4 sm:$0xff]  }
 0xae2   :  { %v14858_v19 = vld [vmem:[#allocation29 + $0x3cc] ss:$24 sps:$4 sm:$0xff]  }
 0xae4   :  { %8562 = vmatpush1.bf16.msra.mxu0 %v14799_v21  ;;  %8644 = vmatpush1.bf16.msra.mxu1 %v14802_v59  ;;  %v14853_v21 = vld [vmem:[#allocation29 + $0x3c0] ss:$24 sps:$4 sm:$0xff]  }
 0xae5   :  { %8563 = vmatprep.subr.bf16.mxu0 %v14807_v23  ;;  %8645 = vmatprep.subr.bf16.mxu1 %v14810_v24  ;;  %v14856_v59 = vld [vmem:[#allocation29 + $0x3c8] ss:$24 sps:$4 sm:$0xff]   ;;  %v14861_v23 = vld [vmem:[#allocation29 + $0x3f4] ss:$24 sps:$4 sm:$0xff]  }
 0xae6   :  { %v14864_v24 = vld [vmem:[#allocation29 + $0x3fc] ss:$24 sps:$4 sm:$0xff]  }
 0xae8   :  { %8564 = vmatpush1.bf16.msra.mxu0 %v14805_v27  ;;  %8646 = vmatpush1.bf16.msra.mxu1 %v14808_v29  ;;  %v14859_v27 = vld [vmem:[#allocation29 + $0x3f0] ss:$24 sps:$4 sm:$0xff]  }
 0xae9   :  { %8565 = vmatprep.subr.bf16.mxu0 %v14813_v30  ;;  %8647 = vmatprep.subr.bf16.mxu1 %v14816_v31  ;;  %v14862_v29 = vld [vmem:[#allocation29 + $0x3f8] ss:$24 sps:$4 sm:$0xff]   ;;  %v14867_v30 = vld [vmem:[#allocation29 + $0x424] ss:$24 sps:$4 sm:$0xff]  }
 0xaea   :  { %v14870_v31 = vld [vmem:[#allocation29 + $0x42c] ss:$24 sps:$4 sm:$0xff]  }
 0xaec   :  { %8566 = vmatpush1.bf16.msra.mxu0 %v14811_v32  ;;  %8648 = vmatpush1.bf16.msra.mxu1 %v14814_v33  ;;  %v14865_v32 = vld [vmem:[#allocation29 + $0x420] ss:$24 sps:$4 sm:$0xff]  }
 0xaed   :  { %8567 = vmatprep.subr.bf16.mxu0 %v14819_v34  ;;  %8649 = vmatprep.subr.bf16.mxu1 %v14822_v35  ;;  %v14868_v33 = vld [vmem:[#allocation29 + $0x428] ss:$24 sps:$4 sm:$0xff]   ;;  %v14873_v34 = vld [vmem:[#allocation29 + $0x454] ss:$24 sps:$4 sm:$0xff]  }
 0xaee   :  { %v14876_v35 = vld [vmem:[#allocation29 + $0x45c] ss:$24 sps:$4 sm:$0xff]  }
 0xaf0   :  { %8568 = vmatpush1.bf16.msra.mxu0 %v14817_v37  ;;  %8650 = vmatpush1.bf16.msra.mxu1 %v14820_v38  ;;  %v14871_v37 = vld [vmem:[#allocation29 + $0x450] ss:$24 sps:$4 sm:$0xff]  }
 0xaf1   :  { %8569 = vmatprep.subr.bf16.mxu0 %v14825_v39  ;;  %8651 = vmatprep.subr.bf16.mxu1 %v14828_v40  ;;  %v14874_v38 = vld [vmem:[#allocation29 + $0x458] ss:$24 sps:$4 sm:$0xff]   ;;  %v14879_v39 = vld [vmem:[#allocation29 + $0x484] ss:$24 sps:$4 sm:$0xff]  }
 0xaf2   :  { %v14882_v40 = vld [vmem:[#allocation29 + $0x48c] ss:$24 sps:$4 sm:$0xff]  }
 0xaf4   :  { %8570 = vmatpush1.bf16.msra.mxu0 %v14823_v41  ;;  %8652 = vmatpush1.bf16.msra.mxu1 %v14826_v43  ;;  %v14877_v41 = vld [vmem:[#allocation29 + $0x480] ss:$24 sps:$4 sm:$0xff]  }
 0xaf5   :  { %8580 = vmatprep.subr.bf16.mxu0 %v14831_v13  ;;  %8662 = vmatprep.subr.bf16.mxu1 %v14834_v44  ;;  %v14880_v43 = vld [vmem:[#allocation29 + $0x488] ss:$24 sps:$4 sm:$0xff]   ;;  %v14885_v13 = vld [vmem:[#allocation29 + $0x4b4] ss:$24 sps:$4 sm:$0xff]  }
 0xaf6   :  { %v14888_v44 = vld [vmem:[#allocation29 + $0x4bc] ss:$24 sps:$4 sm:$0xff]  }
 0xb8a   :  { %v7258_v10 = vpop.f32.mrb[24].mxu0  ;;  %v16189_v49 = vpop.f32.mrb[32].mxu1 }
 0xb8b   :  { %v13259_v50 = vadd.f32 %v7258_v10, %v6686_v46  ;;  %v7260_v42 = vpop.f32.mrb[25].mxu0  ;;  %v7342_v53 = vpop.f32.mrb[33].mxu1  ;;  %v14883_v46 = vld [vmem:[#allocation29 + $0x4b0] ss:$24 sps:$4 sm:$0xff]   ;;  %v14894_v10 = vld [vmem:[#allocation29 + $0x4ec] ss:$24 sps:$4 sm:$0xff]  }
 0xb8c   :  { %v13260_v51 = vadd.f32 %v7260_v42, %v6690_v48  ;;  %v13262_v55 = vadd.f32 %v7342_v53, %v6698_v47  ;;  %v7262_v56 = vpop.f32.mrb[26].mxu0  ;;  %v7344_v25 = vpop.f32.mrb[34].mxu1  ;;  %v14886_v48 = vld [vmem:[#allocation29 + $0x4b8] ss:$24 sps:$4 sm:$0xff]   ;;  %v14891_v47 = vld [vmem:[#allocation29 + $0x4e4] ss:$24 sps:$4 sm:$0xff]  }
 0xb8d   :  { %v7263_v61 = vpop.f32.mrb[27].mxu0  ;;  %v7345_v36 = vpop.f32.mrb[35].mxu1  ;;  %15063 = vtanh.f32 %v13259_v50  ;;  %v14889_v50 = vld [vmem:[#allocation29 + $0x4e0] ss:$24 sps:$4 sm:$0xff]   ;;  %v14897_v53 = vld [vmem:[#allocation29 + $0x514] ss:$24 sps:$4 sm:$0xff]  }
 0xb8e   :  { %15065 = vtanh.f32 %v13260_v51  ;;  %v14892_v42 = vld [vmem:[#allocation29 + $0x4e8] ss:$24 sps:$4 sm:$0xff]   ;;  %v14900_v51 = vld [vmem:[#allocation29 + $0x51c] ss:$24 sps:$4 sm:$0xff]   ;;  %v14898_v25 = vld [vmem:[#allocation29 + $0x518] ss:$24 sps:$4 sm:$0xff]  }
 0xb8f   :  { %15067 = vtanh.f32 %v13262_v55  ;;  %v6694_v55 = vrot.slane %v16181_v45, %v16110_v6  ;;  %v14895_v56 = vld [vmem:[#allocation29 + $0x510] ss:$24 sps:$4 sm:$0xff]   ;;  %v14903_v61 = vld [vmem:[#allocation29 + $0x544] ss:$24 sps:$4 sm:$0xff]  }
 0xb90   :  { %v14906_v36 = vld [vmem:[#allocation29 + $0x54c] ss:$24 sps:$4 sm:$0xff]   ;;  %v14907_v45 = vld [vmem:[#allocation29 + $0x570] ss:$24 sps:$4 sm:$0xff]  }
 0xb97   :  { %v15064_v63 = vpop.eup %15063 }
 0xb98   :  { %v15066_v28 = vpop.eup %15065  ;;  %v16193_v4 = vpack.c.bf16 %v15064_v63, %v15064_v63  ;;  %v13261_v63 = vadd.f32 %v16189_v49, %v6694_v55  ;;  %v14913_v49 = vld [vmem:[#allocation29 + $0x5a0] ss:$24 sps:$4 sm:$0xff]   ;;  %v8835_v55 = vld [vmem:[#allocation32 + $0x160] sm:$0xff] }
 0xb99   :  { %v15068_v52 = vpop.eup %15067  ;;  %v16191_v1 = vpack.c.bf16 %v15066_v28, %v15066_v28  ;;  %v14901_v28 = vld [vmem:[#allocation29 + $0x540] ss:$24 sps:$4 sm:$0xff]  }
 0xb9a   :  { %v16197_v22 = vpack.c.bf16 %v15068_v52, %v15068_v52  ;;  %v14904_v52 = vld [vmem:[#allocation29 + $0x548] ss:$24 sps:$4 sm:$0xff]   ;;  %15069 = vtanh.f32 %v13261_v63 }
 0xb9b   :  { %8571 = vmatprep.mubr.bf16.mxu0 %v16191_v1  ;;  %8653 = vmatprep.mubr.bf16.mxu1 %v16191_v1  ;;  %v8839_v63 = vld [vmem:[#allocation32 + $0x180] sm:$0xff] }
 0xb9c   :  { %8572 = vmatmul.mubr.bf16.vlgmr.msra.gmra.mrb[28].mxu0 %v16193_v4  ;;  %8654 = vmatmul.mubr.bf16.vlgmr.msra.gmra.mrb[36].mxu1 %v16193_v4 }
 0xb9d   :  { %8581 = vmatpush1.bf16.msra.mxu0 %v14829_v2  ;;  %8663 = vmatpush1.bf16.msra.mxu1 %v14832_v3  ;;  %v14909_v2 = vld [vmem:[#allocation29 + $0x574] ss:$24 sps:$4 sm:$0xff]  }
 0xb9e   :  { %8612 = vmatprep.mubr.bf16.mxu0 %v16197_v22  ;;  %8694 = vmatprep.mubr.bf16.mxu1 %v16197_v22  ;;  %v14912_v3 = vld [vmem:[#allocation29 + $0x57c] ss:$24 sps:$4 sm:$0xff]  }
 0xb9f   :  { %8582 = vmatprep.subr.bf16.mxu0 %v14837_v5  ;;  %8664 = vmatprep.subr.bf16.mxu1 %v14840_v12  ;;  %v14910_v5 = vld [vmem:[#allocation29 + $0x578] ss:$24 sps:$4 sm:$0xff]   ;;  %v14915_v12 = vld [vmem:[#allocation29 + $0x5a4] ss:$24 sps:$4 sm:$0xff]  }
 0xba1   :  { %8583 = vmatpush1.bf16.msra.mxu0 %v14835_v8  ;;  %8665 = vmatpush1.bf16.msra.mxu1 %v14838_v9  ;;  %v14918_v8 = vld [vmem:[#allocation29 + $0x5ac] ss:$24 sps:$4 sm:$0xff]   ;;  %v14916_v9 = vld [vmem:[#allocation29 + $0x5a8] ss:$24 sps:$4 sm:$0xff]  }
 0xba2   :  { %8584 = vmatprep.subr.bf16.mxu0 %v14843_v15  ;;  %8666 = vmatprep.subr.bf16.mxu1 %v14846_v16  ;;  %v14921_v15 = vld [vmem:[#allocation29 + $0x5d4] ss:$24 sps:$4 sm:$0xff]  }
 0xba3   :  { %v14924_v16 = vld [vmem:[#allocation29 + $0x5dc] ss:$24 sps:$4 sm:$0xff]  }
 0xba5   :  { %8585 = vmatpush1.bf16.msra.mxu0 %v14841_v26  ;;  %8667 = vmatpush1.bf16.msra.mxu1 %v14844_v62  ;;  %v14919_v26 = vld [vmem:[#allocation29 + $0x5d0] ss:$24 sps:$4 sm:$0xff]  }
 0xba6   :  { %8586 = vmatprep.subr.bf16.mxu0 %v14849_v54  ;;  %8668 = vmatprep.subr.bf16.mxu1 %v14852_v14  ;;  %v14922_v62 = vld [vmem:[#allocation29 + $0x5d8] ss:$24 sps:$4 sm:$0xff]   ;;  %v14927_v54 = vld [vmem:[#allocation29 + $0x14] ss:$24 sps:$4 sm:$0xff]   ;;  %v15070_v14 = vpop.eup %15069 }
 0xba9   :  { %8587 = vmatpush1.bf16.msra.mxu0 %v14847_v18  ;;  %8669 = vmatpush1.bf16.msra.mxu1 %v14850_v20  ;;  %v14925_v18 = vld [vmem:[#allocation29 + $0x10] ss:$24 sps:$4 sm:$0xff]   ;;  %v16206_v20 = vpack.c.bf16 %v15070_v14, %v15070_v14 }
 0xbaa   :  { %8588 = vmatprep.subr.bf16.mxu0 %v14855_v0  ;;  %8670 = vmatprep.subr.bf16.mxu1 %v14858_v19  ;;  %v14930_v0 = vld [vmem:[#allocation29 + $0x44] ss:$24 sps:$4 sm:$0xff]  }
 0xbab   :  { %v8791_v19 = vld [vmem:[#allocation32] sm:$0xff] }
 0xbad   :  { %8589 = vmatpush1.bf16.msra.mxu0 %v14853_v21  ;;  %8671 = vmatpush1.bf16.msra.mxu1 %v14856_v59  ;;  %v8795_v21 = vld [vmem:[#allocation32 + $0x20] sm:$0xff]  ;;  %v14928_v59 = vld [vmem:[#allocation29 + $0x40] ss:$24 sps:$4 sm:$0xff]  }
 0xbae   :  { %8590 = vmatprep.subr.bf16.mxu0 %v14861_v23  ;;  %8672 = vmatprep.subr.bf16.mxu1 %v14864_v24  ;;  %v12771_v23 = vcombine.low %v8791_v19, %v8795_v21  ;;  %v12772_v24 = vcombine.high %v8791_v19, %v8795_v21  ;;  %v8867_v19 = vld [vmem:[#allocation32 + $0x260] sm:$0xff] }
 0xbaf   :  { %v14957_v21 = vld [vmem:[#allocation29 + $0x1f4] ss:$24 sps:$4 sm:$0xff]  }
 0xbb1   :  { %8591 = vmatpush1.bf16.msra.mxu0 %v14859_v27  ;;  %8673 = vmatpush1.bf16.msra.mxu1 %v14862_v29  ;;  %v8799_v27 = vld [vmem:[#allocation32 + $0x40] sm:$0xff] }
 0xbb2   :  { %8592 = vmatprep.subr.bf16.mxu0 %v14867_v30  ;;  %8674 = vmatprep.subr.bf16.mxu1 %v14870_v31  ;;  %v8803_v29 = vld [vmem:[#allocation32 + $0x60] sm:$0xff] }
 0xbb3   :  { %v14933_v30 = vld [vmem:[#allocation29 + $0x74] ss:$24 sps:$4 sm:$0xff]   ;;  %v12780_v31 = vcombine.high %v8799_v27, %v8803_v29 }
 0xbb5   :  { %8593 = vmatpush1.bf16.msra.mxu0 %v14865_v32  ;;  %8675 = vmatpush1.bf16.msra.mxu1 %v14868_v33  ;;  %v12779_v32 = vcombine.low %v8799_v27, %v8803_v29  ;;  %v14931_v33 = vld [vmem:[#allocation29 + $0x70] ss:$24 sps:$4 sm:$0xff]  }
 0xbb6   :  { %8594 = vmatprep.subr.bf16.mxu0 %v14873_v34  ;;  %8676 = vmatprep.subr.bf16.mxu1 %v14876_v35  ;;  %v8807_v34 = vld [vmem:[#allocation32 + $0x80] sm:$0xff] }
 0xbb7   :  { %v8811_v35 = vld [vmem:[#allocation32 + $0xa0] sm:$0xff] }
 0xbb8   :  { %v8871_v27 = vld [vmem:[#allocation32 + $0x280] sm:$0xff] }
 0xbb9   :  { %8595 = vmatpush1.bf16.msra.mxu0 %v14871_v37  ;;  %8677 = vmatpush1.bf16.msra.mxu1 %v14874_v38  ;;  %v14936_v37 = vld [vmem:[#allocation29 + $0xa4] ss:$24 sps:$4 sm:$0xff]   ;;  %v12788_v38 = vcombine.high %v8807_v34, %v8811_v35 }
 0xbba   :  { %8596 = vmatprep.subr.bf16.mxu0 %v14879_v39  ;;  %8678 = vmatprep.subr.bf16.mxu1 %v14882_v40  ;;  %v14934_v39 = vld [vmem:[#allocation29 + $0xa0] ss:$24 sps:$4 sm:$0xff]   ;;  %v8815_v40 = vld [vmem:[#allocation32 + $0xc0] sm:$0xff] }
 0xbbb   :  { %v8875_v29 = vld [vmem:[#allocation32 + $0x2a0] sm:$0xff] }
 0xbbd   :  { %8597 = vmatpush1.bf16.msra.mxu0 %v14877_v41  ;;  %8679 = vmatpush1.bf16.msra.mxu1 %v14880_v43  ;;  %v8819_v41 = vld [vmem:[#allocation32 + $0xe0] sm:$0xff] }
 0xbbe   :  { %8598 = vmatprep.subr.bf16.mxu0 %v14885_v13  ;;  %8680 = vmatprep.subr.bf16.mxu1 %v14888_v44  ;;  %v14939_v43 = vld [vmem:[#allocation29 + $0xd4] ss:$24 sps:$4 sm:$0xff]   ;;  %v12796_v13 = vcombine.high %v8815_v40, %v8819_v41  ;;  %v12795_v44 = vcombine.low %v8815_v40, %v8819_v41  ;;  %v14966_v40 = vld [vmem:[#allocation29 + $0x284] ss:$24 sps:$4 sm:$0xff]   ;;  %v14964_v41 = vld [vmem:[#allocation29 + $0x280] ss:$24 sps:$4 sm:$0xff]  }
 0xbc1   :  { %8599 = vmatpush1.bf16.msra.mxu0 %v14883_v46  ;;  %8681 = vmatpush1.bf16.msra.mxu1 %v14886_v48  ;;  %v14937_v46 = vld [vmem:[#allocation29 + $0xd0] ss:$24 sps:$4 sm:$0xff]  }
 0xbc2   :  { %8600 = vmatprep.subr.bf16.mxu0 %v14891_v47  ;;  %8682 = vmatprep.subr.bf16.mxu1 %v14894_v10  ;;  %v8823_v48 = vld [vmem:[#allocation32 + $0x100] sm:$0xff] }
 0xbc3   :  { %v8827_v47 = vld [vmem:[#allocation32 + $0x120] sm:$0xff] }
 0xbc4   :  { %v14942_v10 = vld [vmem:[#allocation29 + $0x104] ss:$24 sps:$4 sm:$0xff]  }
 0xbc5   :  { %8601 = vmatpush1.bf16.msra.mxu0 %v14889_v50  ;;  %8683 = vmatpush1.bf16.msra.mxu1 %v14892_v42  ;;  %v12804_v50 = vcombine.high %v8823_v48, %v8827_v47  ;;  %v12803_v42 = vcombine.low %v8823_v48, %v8827_v47  ;;  %v14975_v48 = vld [vmem:[#allocation29 + $0x314] ss:$24 sps:$4 sm:$0xff]   ;;  %v14973_v47 = vld [vmem:[#allocation29 + $0x310] ss:$24 sps:$4 sm:$0xff]  }
 0xbc6   :  { %8602 = vmatprep.subr.bf16.mxu0 %v14897_v53  ;;  %8684 = vmatprep.subr.bf16.mxu1 %v14900_v51  ;;  %v14940_v53 = vld [vmem:[#allocation29 + $0x100] ss:$24 sps:$4 sm:$0xff]   ;;  %v8831_v51 = vld [vmem:[#allocation32 + $0x140] sm:$0xff] }
 0xbc9   :  { %8603 = vmatpush1.bf16.msra.mxu0 %v14895_v56  ;;  %8685 = vmatpush1.bf16.msra.mxu1 %v14898_v25  ;;  %v14945_v56 = vld [vmem:[#allocation29 + $0x134] ss:$24 sps:$4 sm:$0xff]   ;;  %v12812_v25 = vcombine.high %v8831_v51, %v8835_v55 }
 0xbca   :  { %8604 = vmatprep.subr.bf16.mxu0 %v14903_v61  ;;  %8686 = vmatprep.subr.bf16.mxu1 %v14906_v36  ;;  %v12811_v61 = vcombine.low %v8831_v51, %v8835_v55  ;;  %v14943_v36 = vld [vmem:[#allocation29 + $0x130] ss:$24 sps:$4 sm:$0xff]   ;;  %v14984_v51 = vld [vmem:[#allocation29 + $0x3a4] ss:$24 sps:$4 sm:$0xff]   ;;  %v14982_v55 = vld [vmem:[#allocation29 + $0x3a0] ss:$24 sps:$4 sm:$0xff]  }
 0xbcd   :  { %8605 = vmatpush1.bf16.msra.mxu0 %v14901_v28  ;;  %8687 = vmatpush1.bf16.msra.mxu1 %v14904_v52  ;;  %v8843_v28 = vld [vmem:[#allocation32 + $0x1a0] sm:$0xff] }
 0xbce   :  { %8606 = vmatprep.subr.bf16.mxu0 %v14909_v2  ;;  %8688 = vmatprep.subr.bf16.mxu1 %v14912_v3  ;;  %v14948_v52 = vld [vmem:[#allocation29 + $0x164] ss:$24 sps:$4 sm:$0xff]   ;;  %v12820_v2 = vcombine.high %v8839_v63, %v8843_v28  ;;  %v12819_v3 = vcombine.low %v8839_v63, %v8843_v28 }
 0xbcf   :  { %v8891_v63 = vld [vmem:[#allocation32 + $0x320] sm:$0xff] }
 0xbd1   :  { %8607 = vmatpush1.bf16.msra.mxu0 %v14907_v45  ;;  %8689 = vmatpush1.bf16.msra.mxu1 %v14910_v5  ;;  %v14946_v45 = vld [vmem:[#allocation29 + $0x160] ss:$24 sps:$4 sm:$0xff]   ;;  %v8847_v5 = vld [vmem:[#allocation32 + $0x1c0] sm:$0xff] }
 0xbd2   :  { %8608 = vmatprep.subr.bf16.mxu0 %v14915_v12  ;;  %8690 = vmatprep.subr.bf16.mxu1 %v14918_v8  ;;  %v8851_v12 = vld [vmem:[#allocation32 + $0x1e0] sm:$0xff] }
 0xbd3   :  { %v14951_v8 = vld [vmem:[#allocation29 + $0x194] ss:$24 sps:$4 sm:$0xff]  }
 0xbd5   :  { %8609 = vmatpush1.bf16.msra.mxu0 %v14913_v49  ;;  %8691 = vmatpush1.bf16.msra.mxu1 %v14916_v9  ;;  %v12828_v49 = vcombine.high %v8847_v5, %v8851_v12  ;;  %v12827_v9 = vcombine.low %v8847_v5, %v8851_v12  ;;  %v8899_v5 = vld [vmem:[#allocation32 + $0x360] sm:$0xff] }
 0xbd6   :  { %8610 = vmatprep.subr.bf16.mxu0 %v14921_v15  ;;  %8692 = vmatprep.subr.bf16.mxu1 %v14924_v16  ;;  %v14949_v15 = vld [vmem:[#allocation29 + $0x190] ss:$24 sps:$4 sm:$0xff]  }
 0xbd7   :  { %v8855_v16 = vld [vmem:[#allocation32 + $0x200] sm:$0xff] }
 0xbd9   :  { %8611 = vmatpush1.bf16.msra.mxu0 %v14919_v26  ;;  %8693 = vmatpush1.bf16.msra.mxu1 %v14922_v62  ;;  %v8859_v26 = vld [vmem:[#allocation32 + $0x220] sm:$0xff] }
 0xbda   :  { %8703 = vmatprep.subr.bf16.mxu0 %v14927_v54  ;;  %11143 = vmatprep.subr.bf16.mxu1 %v12772_v24  ;;  %v14954_v62 = vld [vmem:[#allocation29 + $0x1c4] ss:$24 sps:$4 sm:$0xff]   ;;  %v12836_v54 = vcombine.high %v8855_v16, %v8859_v26  ;;  %v12835_v14 = vcombine.low %v8855_v16, %v8859_v26  ;;  %v14955_v24 = vld [vmem:[#allocation29 + $0x1f0] ss:$24 sps:$4 sm:$0xff]  }
 0xbdb   :  { %v8907_v16 = vld [vmem:[#allocation32 + $0x3a0] sm:$0xff] }
 0xbdc   :  { %8613 = vmatmul.mubr.bf16.vlgmr.msra.gmra.mrb[28].mxu0 %v16206_v20  ;;  %8695 = vmatmul.mubr.bf16.vlgmr.msra.gmra.mrb[36].mxu1 %v16206_v20 }
 0xbdd   :  { %8704 = vmatpush1.bf16.msra.mxu0 %v14925_v18  ;;  %8735 = vmatprep.mubr.bf16.mxu0 %v16191_v1  ;;  %v12787_v1 = vcombine.low %v8807_v34, %v8811_v35  ;;  %v14952_v18 = vld [vmem:[#allocation29 + $0x1c0] ss:$24 sps:$4 sm:$0xff]   ;;  %v8879_v34 = vld [vmem:[#allocation32 + $0x2c0] sm:$0xff] }
 0xbde   :  { %8705 = vmatprep.subr.bf16.mxu0 %v14930_v0  ;;  %11144 = vmatpush1.bf16.msra.mxu1 %v12771_v23  ;;  %v8863_v0 = vld [vmem:[#allocation32 + $0x240] sm:$0xff] }
 0xbdf   :  { %11145 = vmatprep.subr.bf16.mxu1 %v12780_v31  ;;  %v12843_v23 = vcombine.low %v8863_v0, %v8867_v19  ;;  %v12852_v31 = vcombine.high %v8871_v27, %v8875_v29  ;;  %v8883_v35 = vld [vmem:[#allocation32 + $0x2e0] sm:$0xff] }
 0xbe1   :  { %8706 = vmatpush1.bf16.msra.mxu0 %v14928_v59  ;;  %v12844_v59 = vcombine.high %v8863_v0, %v8867_v19  ;;  %v8915_v0 = vld [vmem:[#allocation32 + $0x3e0] sm:$0xff] }
 0xbe2   :  { %8707 = vmatprep.subr.bf16.mxu0 %v14933_v30  ;;  %11146 = vmatpush1.bf16.msra.mxu1 %v12779_v32  ;;  %v14960_v30 = vld [vmem:[#allocation29 + $0x224] ss:$24 sps:$4 sm:$0xff]   ;;  %v12851_v32 = vcombine.low %v8871_v27, %v8875_v29 }
 0xbe3   :  { %11147 = vmatprep.subr.bf16.mxu1 %v12788_v38  ;;  %v12860_v38 = vcombine.high %v8879_v34, %v8883_v35  ;;  %v16215_v27 = vld [vmem:[#allocation32 + $0x420] sm:$0xff] }
 0xbe5   :  { %8708 = vmatpush1.bf16.msra.mxu0 %v14931_v33  ;;  %v14958_v33 = vld [vmem:[#allocation29 + $0x220] ss:$24 sps:$4 sm:$0xff]  }
 0xbe6   :  { %8709 = vmatprep.subr.bf16.mxu0 %v14936_v37  ;;  %11148 = vmatpush1.bf16.msra.mxu1 %v12787_v1  ;;  %v14963_v37 = vld [vmem:[#allocation29 + $0x254] ss:$24 sps:$4 sm:$0xff]   ;;  %v12859_v1 = vcombine.low %v8879_v34, %v8883_v35  ;;  %v15009_v35 = vld [vmem:[#allocation29 + $0x550] ss:$24 sps:$4 sm:$0xff]  }
 0xbe7   :  { %11149 = vmatprep.subr.bf16.mxu1 %v12796_v13  ;;  %v14967_v13 = vld [vmem:[#allocation29 + $0x2b0] ss:$24 sps:$4 sm:$0xff]   ;;  %v15011_v34 = vld [vmem:[#allocation29 + $0x554] ss:$24 sps:$4 sm:$0xff]  }
 0xbe9   :  { %8710 = vmatpush1.bf16.msra.mxu0 %v14934_v39  ;;  %v14961_v39 = vld [vmem:[#allocation29 + $0x250] ss:$24 sps:$4 sm:$0xff]  }
 0xbea   :  { %8711 = vmatprep.subr.bf16.mxu0 %v14939_v43  ;;  %11150 = vmatpush1.bf16.msra.mxu1 %v12795_v44  ;;  %v14969_v43 = vld [vmem:[#allocation29 + $0x2b4] ss:$24 sps:$4 sm:$0xff]   ;;  %v14972_v44 = vld [vmem:[#allocation29 + $0x2e4] ss:$24 sps:$4 sm:$0xff]  }
 0xbeb   :  { %11151 = vmatprep.subr.bf16.mxu1 %v12804_v50  ;;  %v14976_v50 = vld [vmem:[#allocation29 + $0x340] ss:$24 sps:$4 sm:$0xff]  }
 0xbed   :  { %8712 = vmatpush1.bf16.msra.mxu0 %v14937_v46  ;;  %v14970_v46 = vld [vmem:[#allocation29 + $0x2e0] ss:$24 sps:$4 sm:$0xff]  }
 0xbee   :  { %8713 = vmatprep.subr.bf16.mxu0 %v14942_v10  ;;  %11152 = vmatpush1.bf16.msra.mxu1 %v12803_v42  ;;  %v14978_v10 = vld [vmem:[#allocation29 + $0x344] ss:$24 sps:$4 sm:$0xff]   ;;  %v14981_v42 = vld [vmem:[#allocation29 + $0x374] ss:$24 sps:$4 sm:$0xff]  }
 0xbef   :  { %11153 = vmatprep.subr.bf16.mxu1 %v12812_v25  ;;  %v14985_v25 = vld [vmem:[#allocation29 + $0x3d0] ss:$24 sps:$4 sm:$0xff]  }
 0xbf1   :  { %8714 = vmatpush1.bf16.msra.mxu0 %v14940_v53  ;;  %v14979_v53 = vld [vmem:[#allocation29 + $0x370] ss:$24 sps:$4 sm:$0xff]  }
 0xbf2   :  { %8715 = vmatprep.subr.bf16.mxu0 %v14945_v56  ;;  %11154 = vmatpush1.bf16.msra.mxu1 %v12811_v61  ;;  %v14987_v56 = vld [vmem:[#allocation29 + $0x3d4] ss:$24 sps:$4 sm:$0xff]   ;;  %v14990_v61 = vld [vmem:[#allocation29 + $0x404] ss:$24 sps:$4 sm:$0xff]  }
 0xbf3   :  { %11155 = vmatprep.subr.bf16.mxu1 %v12820_v2 }
 0xbf5   :  { %8716 = vmatpush1.bf16.msra.mxu0 %v14943_v36  ;;  %v14993_v36 = vld [vmem:[#allocation29 + $0x434] ss:$24 sps:$4 sm:$0xff]  }
 0xbf6   :  { %8717 = vmatprep.subr.bf16.mxu0 %v14948_v52  ;;  %11156 = vmatpush1.bf16.msra.mxu1 %v12819_v3  ;;  %v14991_v52 = vld [vmem:[#allocation29 + $0x430] ss:$24 sps:$4 sm:$0xff]   ;;  %v14996_v3 = vld [vmem:[#allocation29 + $0x464] ss:$24 sps:$4 sm:$0xff]  }
 0xbf7   :  { %11157 = vmatprep.subr.bf16.mxu1 %v12828_v49 }
 0xbf9   :  { %8718 = vmatpush1.bf16.msra.mxu0 %v14946_v45  ;;  %v8895_v45 = vld [vmem:[#allocation32 + $0x340] sm:$0xff] }
 0xbfa   :  { %8719 = vmatprep.subr.bf16.mxu0 %v14951_v8  ;;  %11158 = vmatpush1.bf16.msra.mxu1 %v12827_v9  ;;  %v12876_v12 = vcombine.high %v8895_v45, %v8899_v5  ;;  %v14994_v8 = vld [vmem:[#allocation29 + $0x460] ss:$24 sps:$4 sm:$0xff]   ;;  %v12875_v49 = vcombine.low %v8895_v45, %v8899_v5  ;;  %v14999_v9 = vld [vmem:[#allocation29 + $0x494] ss:$24 sps:$4 sm:$0xff]  }
 0xbfb   :  { %11159 = vmatprep.subr.bf16.mxu1 %v12836_v54  ;;  %v8844_v45 = vld [vmem:[#allocation32 + $0x1a8] sm:$0xff] }
 0xbfd   :  { %8720 = vmatpush1.bf16.msra.mxu0 %v14949_v15  ;;  %v8903_v15 = vld [vmem:[#allocation32 + $0x380] sm:$0xff] }
 0xbfe   :  { %8721 = vmatprep.subr.bf16.mxu0 %v14954_v62  ;;  %11160 = vmatpush1.bf16.msra.mxu1 %v12835_v14  ;;  %v12884_v26 = vcombine.high %v8903_v15, %v8907_v16  ;;  %v14997_v62 = vld [vmem:[#allocation29 + $0x490] ss:$24 sps:$4 sm:$0xff]   ;;  %v12883_v54 = vcombine.low %v8903_v15, %v8907_v16  ;;  %v15002_v14 = vld [vmem:[#allocation29 + $0x4c4] ss:$24 sps:$4 sm:$0xff]  }
 0xbff   :  { %11161 = vmatprep.subr.bf16.mxu1 %v12844_v59  ;;  %v8856_v16 = vld [vmem:[#allocation32 + $0x208] sm:$0xff] }
 0xc01   :  { %8722 = vmatpush1.bf16.msra.mxu0 %v14952_v18  ;;  %v8911_v18 = vld [vmem:[#allocation32 + $0x3c0] sm:$0xff] }
 0xc02   :  { %8723 = vmatprep.subr.bf16.mxu0 %v14957_v21  ;;  %11162 = vmatpush1.bf16.msra.mxu1 %v12843_v23  ;;  %v12892_v19 = vcombine.high %v8911_v18, %v8915_v0  ;;  %v15000_v21 = vld [vmem:[#allocation29 + $0x4c0] ss:$24 sps:$4 sm:$0xff]   ;;  %v12891_v59 = vcombine.low %v8911_v18, %v8915_v0  ;;  %v15005_v23 = vld [vmem:[#allocation29 + $0x4f4] ss:$24 sps:$4 sm:$0xff]  }
 0xc03   :  { %11163 = vmatprep.subr.bf16.mxu1 %v12852_v31  ;;  %v8868_v18 = vld [vmem:[#allocation32 + $0x268] sm:$0xff] }
 0xc05   :  { %8724 = vmatpush1.bf16.msra.mxu0 %v14955_v24  ;;  %v16213_v24 = vld [vmem:[#allocation32 + $0x400] sm:$0xff] }
 0xc06   :  { %8725 = vmatprep.subr.bf16.mxu0 %v14960_v30  ;;  %11164 = vmatpush1.bf16.msra.mxu1 %v12851_v32  ;;  %v12900_v29 = vcombine.high %v16213_v24, %v16215_v27  ;;  %v15003_v30 = vld [vmem:[#allocation29 + $0x4f0] ss:$24 sps:$4 sm:$0xff]   ;;  %v12899_v31 = vcombine.low %v16213_v24, %v16215_v27  ;;  %v15008_v32 = vld [vmem:[#allocation29 + $0x524] ss:$24 sps:$4 sm:$0xff]  }
 0xc07   :  { %11165 = vmatprep.subr.bf16.mxu1 %v12860_v38  ;;  %v15012_v38 = vld [vmem:[#allocation29 + $0x580] ss:$24 sps:$4 sm:$0xff]  }
 0xc09   :  { %8726 = vmatpush1.bf16.msra.mxu0 %v14958_v33  ;;  %v15006_v33 = vld [vmem:[#allocation29 + $0x520] ss:$24 sps:$4 sm:$0xff]  }
 0xc0a   :  { %8727 = vmatprep.subr.bf16.mxu0 %v14963_v37  ;;  %11166 = vmatpush1.bf16.msra.mxu1 %v12859_v1  ;;  %v15014_v37 = vld [vmem:[#allocation29 + $0x584] ss:$24 sps:$4 sm:$0xff]   ;;  %v15017_v1 = vld [vmem:[#allocation29 + $0x5b4] ss:$24 sps:$4 sm:$0xff]  }
 0xc0d   :  { %8728 = vmatpush1.bf16.msra.mxu0 %v14961_v39  ;;  %v15015_v39 = vld [vmem:[#allocation29 + $0x5b0] ss:$24 sps:$4 sm:$0xff]  }
 0xc0e   :  { %8729 = vmatprep.subr.bf16.mxu0 %v14966_v40  ;;  %v15020_v40 = vld [vmem:[#allocation29 + $0x5e4] ss:$24 sps:$4 sm:$0xff]  }
 0xc11   :  { %8730 = vmatpush1.bf16.msra.mxu0 %v14964_v41  ;;  %v8792_v41 = vld [vmem:[#allocation32 + $0x8] sm:$0xff] }
 0xc12   :  { %8731 = vmatprep.subr.bf16.mxu0 %v14969_v43  ;;  %v8796_v43 = vld [vmem:[#allocation32 + $0x28] sm:$0xff] }
 0xc15   :  { %8732 = vmatpush1.bf16.msra.mxu0 %v14967_v13  ;;  %v15018_v13 = vld [vmem:[#allocation29 + $0x5e0] ss:$24 sps:$4 sm:$0xff]  }
 0xc16   :  { %8733 = vmatprep.subr.bf16.mxu0 %v14972_v44  ;;  %v12774_v44 = vcombine.high %v8792_v41, %v8796_v43 }
 0xc19   :  { %8734 = vmatpush1.bf16.msra.mxu0 %v14970_v46  ;;  %v8800_v46 = vld [vmem:[#allocation32 + $0x48] sm:$0xff] }
 0xc1a   :  { %8744 = vmatprep.subr.bf16.mxu0 %v14975_v48  ;;  %v8804_v48 = vld [vmem:[#allocation32 + $0x68] sm:$0xff] }
 0xc1c   :  { %8736 = vmatmul.mubr.bf16.vlgmr.msra.gmra.mrb[32].mxu0 %v16193_v4  ;;  %v14988_v4 = vld [vmem:[#allocation29 + $0x400] ss:$24 sps:$4 sm:$0xff]  }
 0xc1d   :  { %8745 = vmatpush1.bf16.msra.mxu0 %v14973_v47  ;;  %8776 = vmatprep.mubr.bf16.mxu0 %v16197_v22  ;;  %v8887_v22 = vld [vmem:[#allocation32 + $0x300] sm:$0xff]  ;;  %v12773_v47 = vcombine.low %v8792_v41, %v8796_v43 }
 0xc1e   :  { %8746 = vmatprep.subr.bf16.mxu0 %v14978_v10  ;;  %v12868_v28 = vcombine.high %v8887_v22, %v8891_v63  ;;  %v12867_v2 = vcombine.low %v8887_v22, %v8891_v63  ;;  %v12782_v10 = vcombine.high %v8800_v46, %v8804_v48 }
 0xc20   :  { %11167 = vmatprep.subr.bf16.mxu1 %v12868_v28  ;;  %v8832_v28 = vld [vmem:[#allocation32 + $0x148] sm:$0xff] }
 0xc21   :  { %8747 = vmatpush1.bf16.msra.mxu0 %v14976_v50  ;;  %11168 = vmatpush1.bf16.msra.mxu1 %v12867_v2  ;;  %v8808_v50 = vld [vmem:[#allocation32 + $0x88] sm:$0xff] }
 0xc22   :  { %8748 = vmatprep.subr.bf16.mxu0 %v14981_v42  ;;  %11169 = vmatprep.subr.bf16.mxu1 %v12876_v12  ;;  %v8812_v42 = vld [vmem:[#allocation32 + $0xa8] sm:$0xff] }
 0xc25   :  { %8749 = vmatpush1.bf16.msra.mxu0 %v14979_v53  ;;  %11170 = vmatpush1.bf16.msra.mxu1 %v12875_v49  ;;  %v12781_v53 = vcombine.low %v8800_v46, %v8804_v48  ;;  %v8852_v49 = vld [vmem:[#allocation32 + $0x1e8] sm:$0xff] }
 0xc26   :  { %8750 = vmatprep.subr.bf16.mxu0 %v14984_v51  ;;  %11171 = vmatprep.subr.bf16.mxu1 %v12884_v26  ;;  %v12790_v51 = vcombine.high %v8808_v50, %v8812_v42  ;;  %v8860_v26 = vld [vmem:[#allocation32 + $0x228] sm:$0xff] }
 0xc27   :  { %v12837_v0 = vcombine.low %v8856_v16, %v8860_v26 }
 0xc29   :  { %8751 = vmatpush1.bf16.msra.mxu0 %v14982_v55  ;;  %11172 = vmatpush1.bf16.msra.mxu1 %v12883_v54  ;;  %v8816_v55 = vld [vmem:[#allocation32 + $0xc8] sm:$0xff]  ;;  %v12838_v54 = vcombine.high %v8856_v16, %v8860_v26  ;;  %v8931_v16 = vld [vmem:[#allocation32 + $0x460] sm:$0xff] }
 0xc2a   :  { %8752 = vmatprep.subr.bf16.mxu0 %v14987_v56  ;;  %11173 = vmatprep.subr.bf16.mxu1 %v12892_v19  ;;  %v8820_v56 = vld [vmem:[#allocation32 + $0xe8] sm:$0xff] }
 0xc2b   :  { %v12797_v22 = vcombine.low %v8816_v55, %v8820_v56  ;;  %v8928_v26 = vld [vmem:[#allocation32 + $0x448] sm:$0xff] }
 0xc2d   :  { %8753 = vmatpush1.bf16.msra.mxu0 %v14985_v25  ;;  %11174 = vmatpush1.bf16.msra.mxu1 %v12891_v59  ;;  %v12789_v25 = vcombine.low %v8808_v50, %v8812_v42  ;;  %v8876_v59 = vld [vmem:[#allocation32 + $0x2a8] sm:$0xff] }
 0xc2e   :  { %8754 = vmatprep.subr.bf16.mxu0 %v14990_v61  ;;  %11184 = vmatprep.subr.bf16.mxu1 %v12900_v29  ;;  %v12798_v61 = vcombine.high %v8816_v55, %v8820_v56 }
 0xc31   :  { %8755 = vmatpush1.bf16.msra.mxu0 %v14988_v4  ;;  %v8824_v4 = vld [vmem:[#allocation32 + $0x108] sm:$0xff] }
 0xc32   :  { %8756 = vmatprep.subr.bf16.mxu0 %v14993_v36  ;;  %v8828_v36 = vld [vmem:[#allocation32 + $0x128] sm:$0xff] }
 0xc33   :  { %v12806_v63 = vcombine.high %v8824_v4, %v8828_v36 }
 0xc35   :  { %8757 = vmatpush1.bf16.msra.mxu0 %v14991_v52  ;;  %v8836_v52 = vld [vmem:[#allocation32 + $0x168] sm:$0xff] }
 0xc36   :  { %8758 = vmatprep.subr.bf16.mxu0 %v14996_v3  ;;  %v12814_v2 = vcombine.high %v8832_v28, %v8836_v52  ;;  %v8840_v3 = vld [vmem:[#allocation32 + $0x188] sm:$0xff]  ;;  %v12813_v5 = vcombine.low %v8832_v28, %v8836_v52 }
 0xc37   :  { %v12822_v12 = vcombine.high %v8840_v3, %v8844_v45 }
 0xc39   :  { %8759 = vmatpush1.bf16.msra.mxu0 %v14994_v8  ;;  %v8848_v8 = vld [vmem:[#allocation32 + $0x1c8] sm:$0xff] }
 0xc3a   :  { %8760 = vmatprep.subr.bf16.mxu0 %v14999_v9  ;;  %v12821_v9 = vcombine.low %v8840_v3, %v8844_v45  ;;  %v12830_v15 = vcombine.high %v8848_v8, %v8852_v49 }
 0xc3d   :  { %8761 = vmatpush1.bf16.msra.mxu0 %v14997_v62  ;;  %v12829_v62 = vcombine.low %v8848_v8, %v8852_v49 }
 0xc3e   :  { %8762 = vmatprep.subr.bf16.mxu0 %v15002_v14  ;;  %v8864_v14 = vld [vmem:[#allocation32 + $0x248] sm:$0xff] }
 0xc3f   :  { %v12846_v19 = vcombine.high %v8864_v14, %v8868_v18 }
 0xc41   :  { %8763 = vmatpush1.bf16.msra.mxu0 %v15000_v21  ;;  %v8872_v21 = vld [vmem:[#allocation32 + $0x288] sm:$0xff] }
 0xc42   :  { %8764 = vmatprep.subr.bf16.mxu0 %v15005_v23  ;;  %v12845_v23 = vcombine.low %v8864_v14, %v8868_v18  ;;  %v12854_v29 = vcombine.high %v8872_v21, %v8876_v59 }
 0xc45   :  { %8765 = vmatpush1.bf16.msra.mxu0 %v15003_v30  ;;  %v8880_v30 = vld [vmem:[#allocation32 + $0x2c8] sm:$0xff] }
 0xc46   :  { %8766 = vmatprep.subr.bf16.mxu0 %v15008_v32  ;;  %v8884_v32 = vld [vmem:[#allocation32 + $0x2e8] sm:$0xff] }
 0xc49   :  { %8767 = vmatpush1.bf16.msra.mxu0 %v15006_v33  ;;  %v12853_v33 = vcombine.low %v8872_v21, %v8876_v59 }
 0xc4a   :  { %8768 = vmatprep.subr.bf16.mxu0 %v15011_v34  ;;  %v12862_v34 = vcombine.high %v8880_v30, %v8884_v32 }
 0xc4d   :  { %8769 = vmatpush1.bf16.msra.mxu0 %v15009_v35  ;;  %v8888_v35 = vld [vmem:[#allocation32 + $0x308] sm:$0xff] }
 0xc4e   :  { %8770 = vmatprep.subr.bf16.mxu0 %v15014_v37  ;;  %v8892_v37 = vld [vmem:[#allocation32 + $0x328] sm:$0xff] }
 0xc4f   :  { %v12869_v41 = vcombine.low %v8888_v35, %v8892_v37 }
 0xc51   :  { %8771 = vmatpush1.bf16.msra.mxu0 %v15012_v38  ;;  %v12861_v38 = vcombine.low %v8880_v30, %v8884_v32  ;;  %v8940_v30 = vld [vmem:[#allocation32 + $0x4a8] sm:$0xff] }
 0xc52   :  { %8772 = vmatprep.subr.bf16.mxu0 %v15017_v1  ;;  %v12870_v1 = vcombine.high %v8888_v35, %v8892_v37 }
 0xc55   :  { %8773 = vmatpush1.bf16.msra.mxu0 %v15015_v39  ;;  %v8896_v39 = vld [vmem:[#allocation32 + $0x348] sm:$0xff] }
 0xc56   :  { %8774 = vmatprep.subr.bf16.mxu0 %v15020_v40  ;;  %v8900_v40 = vld [vmem:[#allocation32 + $0x368] sm:$0xff] }
 0xc57   :  { %v12878_v43 = vcombine.high %v8896_v39, %v8900_v40  ;;  %v12877_v46 = vcombine.low %v8896_v39, %v8900_v40  ;;  %v8944_v39 = vld [vmem:[#allocation32 + $0x4c8] sm:$0xff] }
 0xc58   :  { %v8948_v40 = vld [vmem:[#allocation32 + $0x4e8] sm:$0xff] }
 0xc59   :  { %8775 = vmatpush1.bf16.msra.mxu0 %v15018_v13  ;;  %v8904_v13 = vld [vmem:[#allocation32 + $0x388] sm:$0xff] }
 0xc5a   :  { %11266 = vmatprep.subr.bf16.mxu0 %v12774_v44  ;;  %v8908_v44 = vld [vmem:[#allocation32 + $0x3a8] sm:$0xff] }
 0xc5b   :  { %v12886_v48 = vcombine.high %v8904_v13, %v8908_v44  ;;  %v12885_v50 = vcombine.low %v8904_v13, %v8908_v44  ;;  %v8955_v13 = vld [vmem:[#allocation32 + $0x520] sm:$0xff]  ;;  %v8952_v44 = vld [vmem:[#allocation32 + $0x508] sm:$0xff] }
 0xc5c   :  { %8777 = vmatmul.mubr.bf16.vlgmr.msra.gmra.mrb[32].mxu0 %v16206_v20  ;;  %v12805_v20 = vcombine.low %v8824_v4, %v8828_v36 }
 0xc5d   :  { %11267 = vmatpush1.bf16.msra.mxu0 %v12773_v47  ;;  %v8912_v47 = vld [vmem:[#allocation32 + $0x3c8] sm:$0xff] }
 0xc5e   :  { %11268 = vmatprep.subr.bf16.mxu0 %v12782_v10  ;;  %v8916_v10 = vld [vmem:[#allocation32 + $0x3e8] sm:$0xff] }
 0xc5f   :  { %v12894_v42 = vcombine.high %v8912_v47, %v8916_v10  ;;  %v12893_v55 = vcombine.low %v8912_v47, %v8916_v10  ;;  %v12925_v47 = vcombine.low %v8944_v39, %v8948_v40 }
 0xc61   :  { %11269 = vmatpush1.bf16.msra.mxu0 %v12781_v53  ;;  %v8920_v53 = vld [vmem:[#allocation32 + $0x408] sm:$0xff] }
 0xc62   :  { %11270 = vmatprep.subr.bf16.mxu0 %v12790_v51  ;;  %v8924_v51 = vld [vmem:[#allocation32 + $0x428] sm:$0xff] }
 0xc63   :  { %v12902_v56 = vcombine.high %v8920_v53, %v8924_v51  ;;  %v12901_v18 = vcombine.low %v8920_v53, %v8924_v51  ;;  %v8963_v53 = vld [vmem:[#allocation32 + $0x560] sm:$0xff]  ;;  %v8960_v51 = vld [vmem:[#allocation32 + $0x548] sm:$0xff] }
 0xc65   :  { %11271 = vmatpush1.bf16.msra.mxu0 %v12789_v25  ;;  %v16222_v25 = vld [vmem:[#allocation31] sm:$0x3f] }
 0xc66   :  { %11272 = vmatprep.subr.bf16.mxu0 %v12798_v61  ;;  %v7552_v61 = vrot.slane %v16222_v25, %v16091_v60  ;;  %v7556_v4 = vrot.slane %v16222_v25, %v16094_v17  ;;  %v7564_v36 = vrot.slane %v16222_v25, %v16113_v7 }
 0xc69   :  { %11273 = vmatpush1.bf16.msra.mxu0 %v12797_v22 }
 0xc6a   :  { %11274 = vmatprep.subr.bf16.mxu0 %v12806_v63 }
 0xc6d   :  { %11275 = vmatpush1.bf16.msra.mxu0 %v12805_v20 }
 0xc6e   :  { %11276 = vmatprep.subr.bf16.mxu0 %v12814_v2 }
 0xc71   :  { %11277 = vmatpush1.bf16.msra.mxu0 %v12813_v5 }
 0xc72   :  { %11278 = vmatprep.subr.bf16.mxu0 %v12822_v12 }
 0xc75   :  { %11279 = vmatpush1.bf16.msra.mxu0 %v12821_v9  ;;  %v8927_v9 = vld [vmem:[#allocation32 + $0x440] sm:$0xff] }
 0xc76   :  { %11280 = vmatprep.subr.bf16.mxu0 %v12830_v15  ;;  %v12908_v21 = vcombine.high %v8927_v9, %v8931_v16 }
 0xc79   :  { %11281 = vmatpush1.bf16.msra.mxu0 %v12829_v62  ;;  %v8932_v62 = vld [vmem:[#allocation32 + $0x468] sm:$0xff] }
 0xc7a   :  { %11282 = vmatprep.subr.bf16.mxu0 %v12838_v54  ;;  %v12910_v59 = vcombine.high %v8928_v26, %v8932_v62 }
 0xc7d   :  { %11283 = vmatpush1.bf16.msra.mxu0 %v12837_v0 }
 0xc7e   :  { %11284 = vmatprep.subr.bf16.mxu0 %v12846_v19  ;;  %v8935_v19 = vld [vmem:[#allocation32 + $0x480] sm:$0xff] }
 0xc81   :  { %11285 = vmatpush1.bf16.msra.mxu0 %v12845_v23  ;;  %v8939_v23 = vld [vmem:[#allocation32 + $0x4a0] sm:$0xff] }
 0xc82   :  { %11286 = vmatprep.subr.bf16.mxu0 %v12854_v29  ;;  %v8936_v29 = vld [vmem:[#allocation32 + $0x488] sm:$0xff]  ;;  %v12916_v35 = vcombine.high %v8935_v19, %v8939_v23 }
 0xc83   :  { %v12918_v37 = vcombine.high %v8936_v29, %v8940_v30  ;;  %v12917_v24 = vcombine.low %v8936_v29, %v8940_v30 }
 0xc85   :  { %11287 = vmatpush1.bf16.msra.mxu0 %v12853_v33  ;;  %v12907_v33 = vcombine.low %v8927_v9, %v8931_v16  ;;  %v8980_v9 = vld [vmem:[#allocation32 + $0x5e8] sm:$0xff] }
 0xc86   :  { %11288 = vmatprep.subr.bf16.mxu0 %v12862_v34  ;;  %v12909_v34 = vcombine.low %v8928_v26, %v8932_v62 }
 0xc89   :  { %11289 = vmatpush1.bf16.msra.mxu0 %v12861_v38  ;;  %v8943_v38 = vld [vmem:[#allocation32 + $0x4c0] sm:$0xff] }
 0xc8a   :  { %11290 = vmatprep.subr.bf16.mxu0 %v12870_v1  ;;  %v8947_v1 = vld [vmem:[#allocation32 + $0x4e0] sm:$0xff] }
 0xc8b   :  { %v12924_v27 = vcombine.high %v8943_v38, %v8947_v1 }
 0xc8d   :  { %11291 = vmatpush1.bf16.msra.mxu0 %v12869_v41  ;;  %v12915_v41 = vcombine.low %v8935_v19, %v8939_v23  ;;  %v8984_v19 = vld [vmem:[#allocation32 + $0x608] sm:$0xff] }
 0xc8e   :  { %11292 = vmatprep.subr.bf16.mxu0 %v12878_v43  ;;  %v8951_v43 = vld [vmem:[#allocation32 + $0x500] sm:$0xff] }
 0xc8f   :  { %v12932_v10 = vcombine.high %v8951_v43, %v8955_v13 }
 0xc91   :  { %11293 = vmatpush1.bf16.msra.mxu0 %v12877_v46  ;;  %v8956_v46 = vld [vmem:[#allocation32 + $0x528] sm:$0xff] }
 0xc92   :  { %11294 = vmatprep.subr.bf16.mxu0 %v12886_v48  ;;  %v12923_v48 = vcombine.low %v8943_v38, %v8947_v1 }
 0xc95   :  { %11295 = vmatpush1.bf16.msra.mxu0 %v12885_v50  ;;  %v12934_v50 = vcombine.high %v8952_v44, %v8956_v46 }
 0xc96   :  { %11296 = vmatprep.subr.bf16.mxu0 %v12894_v42  ;;  %v8959_v42 = vld [vmem:[#allocation32 + $0x540] sm:$0xff] }
 0xc99   :  { %11297 = vmatpush1.bf16.msra.mxu0 %v12893_v55  ;;  %v8964_v55 = vld [vmem:[#allocation32 + $0x568] sm:$0xff] }
 0xc9a   :  { %11307 = vmatprep.subr.bf16.mxu0 %v12902_v56  ;;  %v12931_v56 = vcombine.low %v8951_v43, %v8955_v13 }
 0xcaf   :  { %v8614_v22 = vpop.f32.mrb[28].mxu0  ;;  %v16230_v63 = vpop.f32.mrb[36].mxu1 }
 0xcb0   :  { %v13263_v28 = vadd.f32 %v8614_v22, %v7552_v61  ;;  %v8616_v52 = vpop.f32.mrb[29].mxu0  ;;  %v8698_v20 = vpop.f32.mrb[37].mxu1  ;;  %v12933_v61 = vcombine.low %v8952_v44, %v8956_v46  ;;  %v8967_v22 = vld [vmem:[#allocation32 + $0x580] sm:$0xff] }
 0xcb1   :  { %v13264_v2 = vadd.f32 %v8616_v52, %v7556_v4  ;;  %v13266_v3 = vadd.f32 %v8698_v20, %v7564_v36  ;;  %v8618_v45 = vpop.f32.mrb[30].mxu0  ;;  %v8700_v5 = vpop.f32.mrb[38].mxu1  ;;  %v12940_v4 = vcombine.high %v8959_v42, %v8963_v53  ;;  %v12942_v36 = vcombine.high %v8960_v51, %v8964_v55  ;;  %v8968_v52 = vld [vmem:[#allocation32 + $0x588] sm:$0xff] }
 0xcb2   :  { %v8619_v12 = vpop.f32.mrb[31].mxu0  ;;  %v8701_v8 = vpop.f32.mrb[39].mxu1  ;;  %15071 = vtanh.f32 %v13263_v28  ;;  %v8971_v28 = vld [vmem:[#allocation32 + $0x5a0] sm:$0xff]  ;;  %v8972_v20 = vld [vmem:[#allocation32 + $0x5a8] sm:$0xff] }
 0xcb3   :  { %15073 = vtanh.f32 %v13264_v2  ;;  %v12939_v2 = vcombine.low %v8959_v42, %v8963_v53  ;;  %v12948_v45 = vcombine.high %v8967_v22, %v8971_v28  ;;  %v12950_v5 = vcombine.high %v8968_v52, %v8972_v20  ;;  %v8975_v12 = vld [vmem:[#allocation32 + $0x5c0] sm:$0xff] }
 0xcb4   :  { %15075 = vtanh.f32 %v13266_v3  ;;  %v12941_v3 = vcombine.low %v8960_v51, %v8964_v55  ;;  %v8979_v8 = vld [vmem:[#allocation32 + $0x5e0] sm:$0xff]  ;;  %v12949_v16 = vcombine.low %v8968_v52, %v8972_v20 }
 0xcb5   :  { %v12956_v26 = vcombine.high %v8975_v12, %v8979_v8 }
 0xcbc   :  { %v15072_v49 = vpop.eup %15071 }
 0xcbd   :  { %v15074_v15 = vpop.eup %15073  ;;  %v16234_v0 = vpack.c.bf16 %v15072_v49, %v15072_v49  ;;  %v8976_v49 = vld [vmem:[#allocation32 + $0x5c8] sm:$0xff] }
 0xcbe   :  { %v15076_v54 = vpop.eup %15075  ;;  %v16232_v14 = vpack.c.bf16 %v15074_v15, %v15074_v15  ;;  %v12947_v15 = vcombine.low %v8967_v22, %v8971_v28  ;;  %v12958_v62 = vcombine.high %v8976_v49, %v8980_v9  ;;  %v12957_v23 = vcombine.low %v8976_v49, %v8980_v9 }
 0xcbf   :  { %v16238_v32 = vpack.c.bf16 %v15076_v54, %v15076_v54  ;;  %v8983_v54 = vld [vmem:[#allocation32 + $0x600] sm:$0xff]  ;;  %v7560_v22 = vrot.slane %v16222_v25, %v16110_v6 }
 0xcc0   :  { %11175 = vmatprep.mubr.bf16.mxu1 %v16232_v14  ;;  %11298 = vmatprep.mubr.bf16.mxu0 %v16232_v14 }
 0xcc1   :  { %11176 = vmatmul.mubr.bf16.vlgmr.msra.gmra.mrb[40].mxu1 %v16234_v0  ;;  %11299 = vmatmul.mubr.bf16.vlgmr.msra.gmra.mrb[36].mxu0 %v16234_v0 }
 0xcc2   :  { %11185 = vmatpush1.bf16.msra.mxu1 %v12899_v31  ;;  %11308 = vmatpush1.bf16.msra.mxu0 %v12901_v18  ;;  %v12926_v31 = vcombine.high %v8944_v39, %v8948_v40  ;;  %v8987_v18 = vld [vmem:[#allocation32 + $0x620] sm:$0xff] }
 0xcc3   :  { %11216 = vmatprep.mubr.bf16.mxu1 %v16238_v32  ;;  %11339 = vmatprep.mubr.bf16.mxu0 %v16238_v32  ;;  %v12964_v29 = vcombine.high %v8983_v54, %v8987_v18  ;;  %v12963_v38 = vcombine.low %v8983_v54, %v8987_v18  ;;  %v9032_v54 = vld [vmem:[#allocation32 + $0x788] sm:$0xff] }
 0xcc4   :  { %11186 = vmatprep.subr.bf16.mxu1 %v12908_v21  ;;  %11309 = vmatprep.subr.bf16.mxu0 %v12910_v59  ;;  %v8988_v21 = vld [vmem:[#allocation32 + $0x628] sm:$0xff]  ;;  %v12955_v59 = vcombine.low %v8975_v12, %v8979_v8  ;;  %v13265_v8 = vadd.f32 %v16230_v63, %v7560_v22 }
 0xcc5   :  { %v12966_v30 = vcombine.high %v8984_v19, %v8988_v21  ;;  %v12965_v1 = vcombine.low %v8984_v19, %v8988_v21  ;;  %v9028_v12 = vld [vmem:[#allocation32 + $0x768] sm:$0xff] }
 0xcc6   :  { %11187 = vmatpush1.bf16.msra.mxu1 %v12907_v33  ;;  %11310 = vmatpush1.bf16.msra.mxu0 %v12909_v34  ;;  %v8991_v33 = vld [vmem:[#allocation32 + $0x640] sm:$0xff]  ;;  %v9036_v18 = vld [vmem:[#allocation32 + $0x7a8] sm:$0xff]  ;;  %15077 = vtanh.f32 %v13265_v8 }
 0xcc7   :  { %11188 = vmatprep.subr.bf16.mxu1 %v12916_v35  ;;  %11311 = vmatprep.subr.bf16.mxu0 %v12918_v37  ;;  %v8995_v34 = vld [vmem:[#allocation32 + $0x660] sm:$0xff]  ;;  %v8992_v35 = vld [vmem:[#allocation32 + $0x648] sm:$0xff] }
 0xcc8   :  { %v8996_v37 = vld [vmem:[#allocation32 + $0x668] sm:$0xff]  ;;  %v12972_v39 = vcombine.high %v8991_v33, %v8995_v34  ;;  %v12971_v43 = vcombine.low %v8991_v33, %v8995_v34 }
 0xcc9   :  { %v12974_v40 = vcombine.high %v8992_v35, %v8996_v37  ;;  %v12973_v13 = vcombine.low %v8992_v35, %v8996_v37  ;;  %v9044_v33 = vld [vmem:[#allocation32 + $0x7e8] sm:$0xff]  ;;  %v13013_v35 = vcombine.low %v9032_v54, %v9036_v18 }
 0xcca   :  { %11189 = vmatpush1.bf16.msra.mxu1 %v12915_v41  ;;  %11312 = vmatpush1.bf16.msra.mxu0 %v12917_v24  ;;  %v8999_v41 = vld [vmem:[#allocation32 + $0x680] sm:$0xff] }
 0xccb   :  { %11190 = vmatprep.subr.bf16.mxu1 %v12924_v27  ;;  %11313 = vmatprep.subr.bf16.mxu0 %v12926_v31  ;;  %v9003_v24 = vld [vmem:[#allocation32 + $0x6a0] sm:$0xff]  ;;  %v9000_v27 = vld [vmem:[#allocation32 + $0x688] sm:$0xff] }
 0xccc   :  { %v9004_v31 = vld [vmem:[#allocation32 + $0x6a8] sm:$0xff]  ;;  %v12980_v44 = vcombine.high %v8999_v41, %v9003_v24  ;;  %v12979_v42 = vcombine.low %v8999_v41, %v9003_v24 }
 0xccd   :  { %v12982_v46 = vcombine.high %v9000_v27, %v9004_v31  ;;  %v12981_v53 = vcombine.low %v9000_v27, %v9004_v31  ;;  %v9052_v41 = vld [vmem:[#allocation32 + $0x828] sm:$0xff] }
 0xcce   :  { %11191 = vmatpush1.bf16.msra.mxu1 %v12923_v48  ;;  %11314 = vmatpush1.bf16.msra.mxu0 %v12925_v47  ;;  %v9007_v48 = vld [vmem:[#allocation32 + $0x6c0] sm:$0xff] }
 0xccf   :  { %11192 = vmatprep.subr.bf16.mxu1 %v12932_v10  ;;  %11315 = vmatprep.subr.bf16.mxu0 %v12934_v50  ;;  %v9011_v47 = vld [vmem:[#allocation32 + $0x6e0] sm:$0xff]  ;;  %v9008_v10 = vld [vmem:[#allocation32 + $0x6c8] sm:$0xff] }
 0xcd0   :  { %v9012_v50 = vld [vmem:[#allocation32 + $0x6e8] sm:$0xff]  ;;  %v12988_v51 = vcombine.high %v9007_v48, %v9011_v47  ;;  %v12987_v28 = vcombine.low %v9007_v48, %v9011_v47 }
 0xcd1   :  { %v12990_v55 = vcombine.high %v9008_v10, %v9012_v50  ;;  %v12989_v52 = vcombine.low %v9008_v10, %v9012_v50  ;;  %v9056_v48 = vld [vmem:[#allocation32 + $0x848] sm:$0xff] }
 0xcd2   :  { %11193 = vmatpush1.bf16.msra.mxu1 %v12931_v56  ;;  %11316 = vmatpush1.bf16.msra.mxu0 %v12933_v61  ;;  %v9015_v56 = vld [vmem:[#allocation32 + $0x700] sm:$0xff]  ;;  %v9060_v47 = vld [vmem:[#allocation32 + $0x868] sm:$0xff] }
 0xcd3   :  { %11194 = vmatprep.subr.bf16.mxu1 %v12940_v4  ;;  %11317 = vmatprep.subr.bf16.mxu0 %v12942_v36  ;;  %v9019_v61 = vld [vmem:[#allocation32 + $0x720] sm:$0xff]  ;;  %v9016_v4 = vld [vmem:[#allocation32 + $0x708] sm:$0xff]  ;;  %v13037_v22 = vcombine.low %v9056_v48, %v9060_v47 }
 0xcd4   :  { %v9020_v36 = vld [vmem:[#allocation32 + $0x728] sm:$0xff]  ;;  %v12996_v20 = vcombine.high %v9015_v56, %v9019_v61  ;;  %v12995_v49 = vcombine.low %v9015_v56, %v9019_v61  ;;  %v9067_v56 = vld [vmem:[#allocation32 + $0x8a0] sm:$0xff] }
 0xcd5   :  { %v12997_v9 = vcombine.low %v9016_v4, %v9020_v36  ;;  %v9064_v61 = vld [vmem:[#allocation32 + $0x888] sm:$0xff] }
 0xcd6   :  { %11195 = vmatpush1.bf16.msra.mxu1 %v12939_v2  ;;  %11318 = vmatpush1.bf16.msra.mxu0 %v12941_v3  ;;  %v12998_v2 = vcombine.high %v9016_v4, %v9020_v36  ;;  %v9023_v3 = vld [vmem:[#allocation32 + $0x740] sm:$0xff]  ;;  %v9068_v4 = vld [vmem:[#allocation32 + $0x8a8] sm:$0xff] }
 0xcd7   :  { %11196 = vmatprep.subr.bf16.mxu1 %v12948_v45  ;;  %11319 = vmatprep.subr.bf16.mxu0 %v12950_v5  ;;  %v9027_v45 = vld [vmem:[#allocation32 + $0x760] sm:$0xff]  ;;  %v9024_v5 = vld [vmem:[#allocation32 + $0x748] sm:$0xff] }
 0xcd8   :  { %v13003_v19 = vcombine.low %v9023_v3, %v9027_v45  ;;  %v13005_v21 = vcombine.low %v9024_v5, %v9028_v12 }
 0xcda   :  { %11197 = vmatpush1.bf16.msra.mxu1 %v12947_v15  ;;  %11320 = vmatpush1.bf16.msra.mxu0 %v12949_v16  ;;  %v13004_v15 = vcombine.high %v9023_v3, %v9027_v45  ;;  %v13006_v16 = vcombine.high %v9024_v5, %v9028_v12  ;;  %v9072_v3 = vld [vmem:[#allocation32 + $0x8c8] sm:$0xff]  ;;  %v13045_v12 = vcombine.low %v9064_v61, %v9068_v4 }
 0xcdb   :  { %11198 = vmatprep.subr.bf16.mxu1 %v12956_v26  ;;  %11321 = vmatprep.subr.bf16.mxu0 %v12958_v62  ;;  %v9031_v26 = vld [vmem:[#allocation32 + $0x780] sm:$0xff]  ;;  %v9076_v45 = vld [vmem:[#allocation32 + $0x8e8] sm:$0xff] }
 0xcdc   :  { %v9035_v62 = vld [vmem:[#allocation32 + $0x7a0] sm:$0xff] }
 0xcdd   :  { %v13012_v63 = vcombine.high %v9031_v26, %v9035_v62  ;;  %v13011_v34 = vcombine.low %v9031_v26, %v9035_v62  ;;  %v9084_v26 = vld [vmem:[#allocation32 + $0x928] sm:$0xff] }
 0xcde   :  { %11199 = vmatpush1.bf16.msra.mxu1 %v12955_v59  ;;  %11322 = vmatpush1.bf16.msra.mxu0 %v12957_v23  ;;  %v13014_v59 = vcombine.high %v9032_v54, %v9036_v18  ;;  %v9039_v23 = vld [vmem:[#allocation32 + $0x7c0] sm:$0xff]  ;;  %v13053_v54 = vcombine.low %v9072_v3, %v9076_v45 }
 0xcdf   :  { %11200 = vmatprep.subr.bf16.mxu1 %v12964_v29  ;;  %11323 = vmatprep.subr.bf16.mxu0 %v12966_v30  ;;  %v9043_v29 = vld [vmem:[#allocation32 + $0x7e0] sm:$0xff]  ;;  %v9040_v30 = vld [vmem:[#allocation32 + $0x7c8] sm:$0xff] }
 0xce0   :  { %v13020_v37 = vcombine.high %v9039_v23, %v9043_v29  ;;  %v13019_v24 = vcombine.low %v9039_v23, %v9043_v29  ;;  %v13021_v27 = vcombine.low %v9040_v30, %v9044_v33  ;;  %v9092_v23 = vld [vmem:[#allocation32 + $0x968] sm:$0xff] }
 0xce2   :  { %11201 = vmatpush1.bf16.msra.mxu1 %v12963_v38  ;;  %11324 = vmatpush1.bf16.msra.mxu0 %v12965_v1  ;;  %v13022_v38 = vcombine.high %v9040_v30, %v9044_v33  ;;  %v9047_v1 = vld [vmem:[#allocation32 + $0x800] sm:$0xff] }
 0xce3   :  { %11202 = vmatprep.subr.bf16.mxu1 %v12972_v39  ;;  %11325 = vmatprep.subr.bf16.mxu0 %v12974_v40  ;;  %v9051_v39 = vld [vmem:[#allocation32 + $0x820] sm:$0xff]  ;;  %v9048_v40 = vld [vmem:[#allocation32 + $0x808] sm:$0xff] }
 0xce4   :  { %v13028_v31 = vcombine.high %v9047_v1, %v9051_v39  ;;  %v13027_v10 = vcombine.low %v9047_v1, %v9051_v39  ;;  %v13029_v50 = vcombine.low %v9048_v40, %v9052_v41  ;;  %v9100_v1 = vld [vmem:[#allocation32 + $0x9a8] sm:$0xff] }
 0xce6   :  { %11203 = vmatpush1.bf16.msra.mxu1 %v12971_v43  ;;  %11326 = vmatpush1.bf16.msra.mxu0 %v12973_v13  ;;  %v13030_v43 = vcombine.high %v9048_v40, %v9052_v41  ;;  %v9055_v13 = vld [vmem:[#allocation32 + $0x840] sm:$0xff] }
 0xce7   :  { %11204 = vmatprep.subr.bf16.mxu1 %v12980_v44  ;;  %11327 = vmatprep.subr.bf16.mxu0 %v12982_v46  ;;  %v15078_v44 = vpop.eup %15077  ;;  %v9059_v46 = vld [vmem:[#allocation32 + $0x860] sm:$0xff] }
 0xce8   :  { %v13035_v36 = vcombine.low %v9055_v13, %v9059_v46 }
 0xcea   :  { %11205 = vmatpush1.bf16.msra.mxu1 %v12979_v42  ;;  %11328 = vmatpush1.bf16.msra.mxu0 %v12981_v53  ;;  %v16250_v42 = vpack.c.bf16 %v15078_v44, %v15078_v44  ;;  %v13036_v53 = vcombine.high %v9055_v13, %v9059_v46  ;;  %v9108_v13 = vld [vmem:[#allocation32 + $0x9e8] sm:$0xff] }
 0xceb   :  { %11206 = vmatprep.subr.bf16.mxu1 %v12988_v51  ;;  %11329 = vmatprep.subr.bf16.mxu0 %v12990_v55  ;;  %v13038_v51 = vcombine.high %v9056_v48, %v9060_v47  ;;  %v9063_v55 = vld [vmem:[#allocation32 + $0x880] sm:$0xff] }
 0xcec   :  { %v13043_v5 = vcombine.low %v9063_v55, %v9067_v56 }
 0xcee   :  { %11207 = vmatpush1.bf16.msra.mxu1 %v12987_v28  ;;  %11330 = vmatpush1.bf16.msra.mxu0 %v12989_v52  ;;  %v13044_v28 = vcombine.high %v9063_v55, %v9067_v56  ;;  %v13046_v52 = vcombine.high %v9064_v61, %v9068_v4 }
 0xcef   :  { %11208 = vmatprep.subr.bf16.mxu1 %v12996_v20  ;;  %11331 = vmatprep.subr.bf16.mxu0 %v12998_v2  ;;  %v9071_v20 = vld [vmem:[#allocation32 + $0x8c0] sm:$0xff] }
 0xcf0   :  { %v9075_v2 = vld [vmem:[#allocation32 + $0x8e0] sm:$0xff] }
 0xcf1   :  { %v13052_v8 = vcombine.high %v9071_v20, %v9075_v2  ;;  %v13051_v62 = vcombine.low %v9071_v20, %v9075_v2 }
 0xcf2   :  { %11209 = vmatpush1.bf16.msra.mxu1 %v12995_v49  ;;  %11332 = vmatpush1.bf16.msra.mxu0 %v12997_v9  ;;  %v13054_v49 = vcombine.high %v9072_v3, %v9076_v45  ;;  %v9079_v9 = vld [vmem:[#allocation32 + $0x900] sm:$0xff] }
 0xcf3   :  { %11210 = vmatprep.subr.bf16.mxu1 %v13004_v15  ;;  %11333 = vmatprep.subr.bf16.mxu0 %v13006_v16  ;;  %v9083_v15 = vld [vmem:[#allocation32 + $0x920] sm:$0xff]  ;;  %v9080_v16 = vld [vmem:[#allocation32 + $0x908] sm:$0xff] }
 0xcf4   :  { %v13060_v18 = vcombine.high %v9079_v9, %v9083_v15  ;;  %v13059_v29 = vcombine.low %v9079_v9, %v9083_v15  ;;  %v13061_v30 = vcombine.low %v9080_v16, %v9084_v26 }
 0xcf6   :  { %11211 = vmatpush1.bf16.msra.mxu1 %v13003_v19  ;;  %11334 = vmatpush1.bf16.msra.mxu0 %v13005_v21  ;;  %v13062_v19 = vcombine.high %v9080_v16, %v9084_v26  ;;  %v9087_v21 = vld [vmem:[#allocation32 + $0x940] sm:$0xff] }
 0xcf7   :  { %11212 = vmatprep.subr.bf16.mxu1 %v13012_v63  ;;  %11335 = vmatprep.subr.bf16.mxu0 %v13014_v59  ;;  %v9091_v63 = vld [vmem:[#allocation32 + $0x960] sm:$0xff]  ;;  %v9088_v59 = vld [vmem:[#allocation32 + $0x948] sm:$0xff] }
 0xcf8   :  { %v13068_v33 = vcombine.high %v9087_v21, %v9091_v63  ;;  %v13067_v39 = vcombine.low %v9087_v21, %v9091_v63  ;;  %v13069_v40 = vcombine.low %v9088_v59, %v9092_v23 }
 0xcfa   :  { %11213 = vmatpush1.bf16.msra.mxu1 %v13011_v34  ;;  %11336 = vmatpush1.bf16.msra.mxu0 %v13013_v35  ;;  %v13070_v34 = vcombine.high %v9088_v59, %v9092_v23  ;;  %v9095_v35 = vld [vmem:[#allocation32 + $0x980] sm:$0xff] }
 0xcfb   :  { %11214 = vmatprep.subr.bf16.mxu1 %v13020_v37  ;;  %11337 = vmatprep.subr.bf16.mxu0 %v13022_v38  ;;  %v9099_v37 = vld [vmem:[#allocation32 + $0x9a0] sm:$0xff]  ;;  %v9096_v38 = vld [vmem:[#allocation32 + $0x988] sm:$0xff] }
 0xcfc   :  { %v13076_v41 = vcombine.high %v9095_v35, %v9099_v37  ;;  %v13075_v44 = vcombine.low %v9095_v35, %v9099_v37  ;;  %v13077_v46 = vcombine.low %v9096_v38, %v9100_v1 }
 0xcfe   :  { %11215 = vmatpush1.bf16.msra.mxu1 %v13019_v24  ;;  %11338 = vmatpush1.bf16.msra.mxu0 %v13021_v27  ;;  %v13078_v24 = vcombine.high %v9096_v38, %v9100_v1  ;;  %v9103_v27 = vld [vmem:[#allocation32 + $0x9c0] sm:$0xff]  ;;  %v7568_v38 = vrot.slane %v16222_v25, %v16128_v11 }
 0xcff   :  { %11225 = vmatprep.subr.bf16.mxu1 %v13028_v31  ;;  %11348 = vmatprep.subr.bf16.mxu0 %v13030_v43  ;;  %v9107_v31 = vld [vmem:[#allocation32 + $0x9e0] sm:$0xff]  ;;  %v9104_v43 = vld [vmem:[#allocation32 + $0x9c8] sm:$0xff] }
 0xd00   :  { %v13084_v48 = vcombine.high %v9103_v27, %v9107_v31  ;;  %v13086_v47 = vcombine.high %v9104_v43, %v9108_v13  ;;  %v13083_v55 = vcombine.low %v9103_v27, %v9107_v31  ;;  %v13085_v56 = vcombine.low %v9104_v43, %v9108_v13  ;;  %v9152_v27 = vld [vmem:[#allocation32 + $0xb48] sm:$0xff] }
 0xd01   :  { %11217 = vmatmul.mubr.bf16.vlgmr.msra.gmra.mrb[40].mxu1 %v16250_v42  ;;  %11340 = vmatmul.mubr.bf16.vlgmr.msra.gmra.mrb[36].mxu0 %v16250_v42  ;;  %v9156_v31 = vld [vmem:[#allocation32 + $0xb68] sm:$0xff] }
 0xd02   :  { %11226 = vmatpush1.bf16.msra.mxu1 %v13027_v10  ;;  %11349 = vmatpush1.bf16.msra.mxu0 %v13029_v50  ;;  %v9111_v10 = vld [vmem:[#allocation32 + $0xa00] sm:$0xff] }
 0xd03   :  { %11227 = vmatprep.subr.bf16.mxu1 %v13036_v53  ;;  %11350 = vmatprep.subr.bf16.mxu0 %v13038_v51  ;;  %v9115_v50 = vld [vmem:[#allocation32 + $0xa20] sm:$0xff]  ;;  %v9112_v53 = vld [vmem:[#allocation32 + $0xa08] sm:$0xff] }
 0xd04   :  { %v9116_v51 = vld [vmem:[#allocation32 + $0xa28] sm:$0xff]  ;;  %v13092_v61 = vcombine.high %v9111_v10, %v9115_v50  ;;  %v13091_v20 = vcombine.low %v9111_v10, %v9115_v50  ;;  %v13134_v10 = vcombine.high %v9152_v27, %v9156_v31  ;;  %v9159_v50 = vld [vmem:[#allocation32 + $0xb80] sm:$0xff] }
 0xd05   :  { %v13094_v4 = vcombine.high %v9112_v53, %v9116_v51  ;;  %v13093_v2 = vcombine.low %v9112_v53, %v9116_v51 }
 0xd06   :  { %11228 = vmatpush1.bf16.msra.mxu1 %v13035_v36  ;;  %11351 = vmatpush1.bf16.msra.mxu0 %v13037_v22  ;;  %v9119_v36 = vld [vmem:[#allocation32 + $0xa40] sm:$0xff] }
 0xd07   :  { %11229 = vmatprep.subr.bf16.mxu1 %v13044_v28  ;;  %11352 = vmatprep.subr.bf16.mxu0 %v13046_v52  ;;  %v9123_v22 = vld [vmem:[#allocation32 + $0xa60] sm:$0xff]  ;;  %v9120_v28 = vld [vmem:[#allocation32 + $0xa48] sm:$0xff] }
 0xd08   :  { %v9124_v52 = vld [vmem:[#allocation32 + $0xa68] sm:$0xff]  ;;  %v13100_v3 = vcombine.high %v9119_v36, %v9123_v22  ;;  %v13099_v9 = vcombine.low %v9119_v36, %v9123_v22  ;;  %v13133_v36 = vcombine.low %v9152_v27, %v9156_v31 }
 0xd09   :  { %v13102_v45 = vcombine.high %v9120_v28, %v9124_v52  ;;  %v13101_v15 = vcombine.low %v9120_v28, %v9124_v52  ;;  %v9167_v52 = vld [vmem:[#allocation32 + $0xbc0] sm:$0xff] }
 0xd0a   :  { %11230 = vmatpush1.bf16.msra.mxu1 %v13043_v5  ;;  %11353 = vmatpush1.bf16.msra.mxu0 %v13045_v12  ;;  %v9127_v5 = vld [vmem:[#allocation32 + $0xa80] sm:$0xff] }
 0xd0b   :  { %11231 = vmatprep.subr.bf16.mxu1 %v13052_v8  ;;  %11354 = vmatprep.subr.bf16.mxu0 %v13054_v49  ;;  %v9131_v12 = vld [vmem:[#allocation32 + $0xaa0] sm:$0xff]  ;;  %v9128_v8 = vld [vmem:[#allocation32 + $0xa88] sm:$0xff] }
 0xd0c   :  { %v9132_v49 = vld [vmem:[#allocation32 + $0xaa8] sm:$0xff]  ;;  %v13108_v16 = vcombine.high %v9127_v5, %v9131_v12  ;;  %v13107_v21 = vcombine.low %v9127_v5, %v9131_v12 }
 0xd0d   :  { %v13110_v26 = vcombine.high %v9128_v8, %v9132_v49  ;;  %v13109_v63 = vcombine.low %v9128_v8, %v9132_v49  ;;  %v8793_v49 = vld [vmem:[#allocation32 + $0x10] sm:$0xff] }
 0xd0e   :  { %11232 = vmatpush1.bf16.msra.mxu1 %v13051_v62  ;;  %11355 = vmatpush1.bf16.msra.mxu0 %v13053_v54  ;;  %v9135_v62 = vld [vmem:[#allocation32 + $0xac0] sm:$0xff] }
 0xd0f   :  { %11233 = vmatprep.subr.bf16.mxu1 %v13060_v18  ;;  %11356 = vmatprep.subr.bf16.mxu0 %v13062_v19  ;;  %v9139_v54 = vld [vmem:[#allocation32 + $0xae0] sm:$0xff]  ;;  %v9136_v18 = vld [vmem:[#allocation32 + $0xac8] sm:$0xff] }
 0xd10   :  { %v9140_v19 = vld [vmem:[#allocation32 + $0xae8] sm:$0xff]  ;;  %v13116_v59 = vcombine.high %v9135_v62, %v9139_v54  ;;  %v13115_v35 = vcombine.low %v9135_v62, %v9139_v54 }
 0xd11   :  { %v13118_v23 = vcombine.high %v9136_v18, %v9140_v19  ;;  %v13117_v37 = vcombine.low %v9136_v18, %v9140_v19 }
 0xd12   :  { %11234 = vmatpush1.bf16.msra.mxu1 %v13059_v29  ;;  %11357 = vmatpush1.bf16.msra.mxu0 %v13061_v30  ;;  %v9143_v29 = vld [vmem:[#allocation32 + $0xb00] sm:$0xff] }
 0xd13   :  { %11235 = vmatprep.subr.bf16.mxu1 %v13068_v33  ;;  %11358 = vmatprep.subr.bf16.mxu0 %v13070_v34  ;;  %v9147_v30 = vld [vmem:[#allocation32 + $0xb20] sm:$0xff]  ;;  %v9144_v33 = vld [vmem:[#allocation32 + $0xb08] sm:$0xff] }
 0xd14   :  { %v9148_v34 = vld [vmem:[#allocation32 + $0xb28] sm:$0xff]  ;;  %v13124_v1 = vcombine.high %v9143_v29, %v9147_v30  ;;  %v13123_v13 = vcombine.low %v9143_v29, %v9147_v30  ;;  %v8802_v29 = vld [vmem:[#allocation32 + $0x58] sm:$0xff] }
 0xd15   :  { %v8806_v30 = vld [vmem:[#allocation32 + $0x78] sm:$0xff] }
 0xd16   :  { %11236 = vmatpush1.bf16.msra.mxu1 %v13067_v39  ;;  %11359 = vmatpush1.bf16.msra.mxu0 %v13069_v40  ;;  %v13126_v39 = vcombine.high %v9144_v33, %v9148_v34  ;;  %v9151_v40 = vld [vmem:[#allocation32 + $0xb40] sm:$0xff]  ;;  %v12785_v27 = vcombine.low %v8802_v29, %v8806_v30 }
 0xd17   :  { %11237 = vmatprep.subr.bf16.mxu1 %v13076_v41  ;;  %11360 = vmatprep.subr.bf16.mxu0 %v13078_v24  ;;  %v7572_v41 = vrot.slane %v16222_v25, %v16131_v58  ;;  %v9155_v24 = vld [vmem:[#allocation32 + $0xb60] sm:$0xff]  ;;  %v9164_v25 = vld [vmem:[#allocation32 + $0xba8] sm:$0xff] }
 0xd1a   :  { %11238 = vmatpush1.bf16.msra.mxu1 %v13075_v44  ;;  %11361 = vmatpush1.bf16.msra.mxu0 %v13077_v46  ;;  %v13125_v44 = vcombine.low %v9144_v33, %v9148_v34 }
 0xd1b   :  { %11239 = vmatprep.subr.bf16.mxu1 %v13084_v48  ;;  %11362 = vmatprep.subr.bf16.mxu0 %v13086_v47  ;;  %v13132_v47 = vcombine.high %v9151_v40, %v9155_v24 }
 0xd1e   :  { %11240 = vmatpush1.bf16.msra.mxu1 %v13083_v55  ;;  %11363 = vmatpush1.bf16.msra.mxu0 %v13085_v56  ;;  %v9163_v55 = vld [vmem:[#allocation32 + $0xba0] sm:$0xff]  ;;  %v9160_v56 = vld [vmem:[#allocation32 + $0xb88] sm:$0xff] }
 0xd1f   :  { %11241 = vmatprep.subr.bf16.mxu1 %v13092_v61  ;;  %11364 = vmatprep.subr.bf16.mxu0 %v13094_v4  ;;  %v13131_v4 = vcombine.low %v9151_v40, %v9155_v24  ;;  %v13140_v22 = vcombine.high %v9159_v50, %v9163_v55  ;;  %v13142_v28 = vcombine.high %v9160_v56, %v9164_v25  ;;  %v8810_v40 = vld [vmem:[#allocation32 + $0x98] sm:$0xff] }
 0xd20   :  { %v13141_v5 = vcombine.low %v9160_v56, %v9164_v25  ;;  %v8826_v56 = vld [vmem:[#allocation32 + $0x118] sm:$0xff] }
 0xd22   :  { %11242 = vmatpush1.bf16.msra.mxu1 %v13091_v20  ;;  %11365 = vmatpush1.bf16.msra.mxu0 %v13093_v2  ;;  %v9171_v20 = vld [vmem:[#allocation32 + $0xbe0] sm:$0xff]  ;;  %v9168_v2 = vld [vmem:[#allocation32 + $0xbc8] sm:$0xff] }
 0xd23   :  { %11243 = vmatprep.subr.bf16.mxu1 %v13100_v3  ;;  %11366 = vmatprep.subr.bf16.mxu0 %v13102_v45  ;;  %v9172_v3 = vld [vmem:[#allocation32 + $0xbe8] sm:$0xff]  ;;  %v13139_v45 = vcombine.low %v9159_v50, %v9163_v55  ;;  %v13148_v12 = vcombine.high %v9167_v52, %v9171_v20  ;;  %v8829_v55 = vld [vmem:[#allocation32 + $0x130] sm:$0xff] }
 0xd24   :  { %v13150_v8 = vcombine.high %v9168_v2, %v9172_v3  ;;  %v13149_v62 = vcombine.low %v9168_v2, %v9172_v3 }
 0xd26   :  { %11244 = vmatpush1.bf16.msra.mxu1 %v13099_v9  ;;  %11367 = vmatpush1.bf16.msra.mxu0 %v13101_v15  ;;  %v8797_v9 = vld [vmem:[#allocation32 + $0x30] sm:$0xff]  ;;  %v8794_v15 = vld [vmem:[#allocation32 + $0x18] sm:$0xff] }
 0xd27   :  { %11245 = vmatprep.subr.bf16.mxu1 %v13108_v16  ;;  %11368 = vmatprep.subr.bf16.mxu0 %v13110_v26  ;;  %v8798_v16 = vld [vmem:[#allocation32 + $0x38] sm:$0xff]  ;;  %v13147_v26 = vcombine.low %v9167_v52, %v9171_v20  ;;  %v12776_v19 = vcombine.high %v8793_v49, %v8797_v9  ;;  %v12775_v33 = vcombine.low %v8793_v49, %v8797_v9 }
 0xd28   :  { %v12777_v34 = vcombine.low %v8794_v15, %v8798_v16  ;;  %v8834_v52 = vld [vmem:[#allocation32 + $0x158] sm:$0xff] }
 0xd29   :  { %v8838_v20 = vld [vmem:[#allocation32 + $0x178] sm:$0xff] }
 0xd2a   :  { %11246 = vmatpush1.bf16.msra.mxu1 %v13107_v21  ;;  %11369 = vmatpush1.bf16.msra.mxu0 %v13109_v63  ;;  %v12778_v21 = vcombine.high %v8794_v15, %v8798_v16  ;;  %v8801_v63 = vld [vmem:[#allocation32 + $0x50] sm:$0xff]  ;;  %v8842_v49 = vld [vmem:[#allocation32 + $0x198] sm:$0xff]  ;;  %v12817_v16 = vcombine.low %v8834_v52, %v8838_v20 }
 0xd2b   :  { %11247 = vmatprep.subr.bf16.mxu1 %v13116_v59  ;;  %11370 = vmatprep.subr.bf16.mxu0 %v13118_v23  ;;  %v8805_v23 = vld [vmem:[#allocation32 + $0x70] sm:$0xff]  ;;  %v8846_v9 = vld [vmem:[#allocation32 + $0x1b8] sm:$0xff] }
 0xd2c   :  { %v12783_v24 = vcombine.low %v8801_v63, %v8805_v23 }
 0xd2e   :  { %11248 = vmatpush1.bf16.msra.mxu1 %v13115_v35  ;;  %11371 = vmatpush1.bf16.msra.mxu0 %v13117_v37  ;;  %v8809_v37 = vld [vmem:[#allocation32 + $0x90] sm:$0xff] }
 0xd2f   :  { %v8778_v43 = vpop.f32.mrb[32].mxu0  ;;  %11249 = vmatprep.subr.bf16.mxu1 %v13124_v1  ;;  %11372 = vmatprep.subr.bf16.mxu0 %v13126_v39  ;;  %v12786_v1 = vcombine.high %v8802_v29, %v8806_v30  ;;  %v8813_v39 = vld [vmem:[#allocation32 + $0xb0] sm:$0xff] }
 0xd30   :  { %v13267_v46 = vadd.f32 %v8778_v43, %v7568_v38  ;;  %v8780_v48 = vpop.f32.mrb[33].mxu0  ;;  %v12784_v38 = vcombine.high %v8801_v63, %v8805_v23  ;;  %v12792_v31 = vcombine.high %v8809_v37, %v8813_v39  ;;  %v12825_v23 = vcombine.low %v8842_v49, %v8846_v9 }
 0xd31   :  { %v13268_v53 = vadd.f32 %v8780_v48, %v7572_v41  ;;  %v8782_v51 = vpop.f32.mrb[34].mxu0  ;;  %v8814_v41 = vld [vmem:[#allocation32 + $0xb8] sm:$0xff] }
 0xd32   :  { %15079 = vtanh.f32 %v13267_v46  ;;  %v8783_v61 = vpop.f32.mrb[35].mxu0  ;;  %11250 = vmatpush1.bf16.msra.mxu1 %v13123_v13  ;;  %11373 = vmatpush1.bf16.msra.mxu0 %v13125_v44  ;;  %v12794_v43 = vcombine.high %v8810_v40, %v8814_v41  ;;  %v8817_v13 = vld [vmem:[#allocation32 + $0xd0] sm:$0xff]  ;;  %v8818_v46 = vld [vmem:[#allocation32 + $0xd8] sm:$0xff] }
 0xd33   :  { %15081 = vtanh.f32 %v13268_v53  ;;  %11251 = vmatprep.subr.bf16.mxu1 %v13132_v47  ;;  %11374 = vmatprep.subr.bf16.mxu0 %v13134_v10  ;;  %v8821_v44 = vld [vmem:[#allocation32 + $0xf0] sm:$0xff]  ;;  %v8822_v48 = vld [vmem:[#allocation32 + $0xf8] sm:$0xff]  ;;  %v12791_v47 = vcombine.low %v8809_v37, %v8813_v39  ;;  %v12793_v10 = vcombine.low %v8810_v40, %v8814_v41 }
 0xd34   :  { %v12800_v50 = vcombine.high %v8817_v13, %v8821_v44  ;;  %v12802_v53 = vcombine.high %v8818_v46, %v8822_v48  ;;  %v8825_v51 = vld [vmem:[#allocation32 + $0x110] sm:$0xff]  ;;  %v12799_v25 = vcombine.low %v8817_v13, %v8821_v44  ;;  %v12801_v61 = vcombine.low %v8818_v46, %v8822_v48  ;;  %v8858_v37 = vld [vmem:[#allocation32 + $0x218] sm:$0xff] }
 0xd35   :  { %v12807_v2 = vcombine.low %v8825_v51, %v8829_v55 }
 0xd36   :  { %11252 = vmatpush1.bf16.msra.mxu1 %v13131_v4  ;;  %11375 = vmatpush1.bf16.msra.mxu0 %v13133_v36  ;;  %v12808_v4 = vcombine.high %v8825_v51, %v8829_v55 }
 0xd37   :  { %11253 = vmatprep.subr.bf16.mxu1 %v13140_v22  ;;  %11376 = vmatprep.subr.bf16.mxu0 %v13142_v28  ;;  %v8833_v22 = vld [vmem:[#allocation32 + $0x150] sm:$0xff] }
 0xd38   :  { %v8837_v28 = vld [vmem:[#allocation32 + $0x170] sm:$0xff] }
 0xd39   :  { %v12815_v15 = vcombine.low %v8833_v22, %v8837_v28 }
 0xd3a   :  { %11254 = vmatpush1.bf16.msra.mxu1 %v13139_v45  ;;  %11377 = vmatpush1.bf16.msra.mxu0 %v13141_v5  ;;  %v12816_v45 = vcombine.high %v8833_v22, %v8837_v28  ;;  %v12818_v5 = vcombine.high %v8834_v52, %v8838_v20 }
 0xd3b   :  { %11255 = vmatprep.subr.bf16.mxu1 %v13148_v12  ;;  %11378 = vmatprep.subr.bf16.mxu0 %v13150_v8  ;;  %v8841_v12 = vld [vmem:[#allocation32 + $0x190] sm:$0xff] }
 0xd3c   :  { %v15080_v54 = vpop.eup %15079  ;;  %v8845_v8 = vld [vmem:[#allocation32 + $0x1b0] sm:$0xff] }
 0xd3d   :  { %v15082_v18 = vpop.eup %15081  ;;  %v16260_v35 = vpack.c.bf16 %v15080_v54, %v15080_v54  ;;  %v8849_v54 = vld [vmem:[#allocation32 + $0x1d0] sm:$0xff]  ;;  %v12823_v63 = vcombine.low %v8841_v12, %v8845_v8 }
 0xd3e   :  { %v16258_v59 = vpack.c.bf16 %v15082_v18, %v15082_v18  ;;  %11256 = vmatpush1.bf16.msra.mxu1 %v13147_v26  ;;  %11379 = vmatpush1.bf16.msra.mxu0 %v13149_v62  ;;  %v12824_v26 = vcombine.high %v8841_v12, %v8845_v8  ;;  %v12826_v62 = vcombine.high %v8842_v49, %v8846_v9  ;;  %v8853_v18 = vld [vmem:[#allocation32 + $0x1f0] sm:$0xff] }
 0xd3f   :  { %11389 = vmatprep.subr.bf16.mxu1 %v12776_v19  ;;  %11512 = vmatprep.subr.bf16.mxu0 %v12778_v21  ;;  %v8850_v19 = vld [vmem:[#allocation32 + $0x1d8] sm:$0xff]  ;;  %v12832_v29 = vcombine.high %v8849_v54, %v8853_v18 }
 0xd40   :  { %11257 = vmatprep.mubr.bf16.mxu1 %v16258_v59  ;;  %11380 = vmatprep.mubr.bf16.mxu0 %v16258_v59  ;;  %v8854_v21 = vld [vmem:[#allocation32 + $0x1f8] sm:$0xff] }
 0xd41   :  { %11258 = vmatmul.mubr.bf16.vlgmr.msra.gmra.mrb[40].mxu1 %v16260_v35  ;;  %11381 = vmatmul.mubr.bf16.vlgmr.msra.gmra.mrb[36].mxu0 %v16260_v35  ;;  %v12834_v30 = vcombine.high %v8850_v19, %v8854_v21  ;;  %v12833_v39 = vcombine.low %v8850_v19, %v8854_v21 }
 0xd42   :  { %11390 = vmatpush1.bf16.msra.mxu1 %v12775_v33  ;;  %11513 = vmatpush1.bf16.msra.mxu0 %v12777_v34  ;;  %v8857_v33 = vld [vmem:[#allocation32 + $0x210] sm:$0xff] }
 0xd43   :  { %11421 = vmatprep.mubr.bf16.mxu1 %v16232_v14  ;;  %11544 = vmatprep.mubr.bf16.mxu0 %v16232_v14  ;;  %v8830_v14 = vld [vmem:[#allocation32 + $0x138] sm:$0xff]  ;;  %v8861_v34 = vld [vmem:[#allocation32 + $0x230] sm:$0xff] }
 0xd44   :  { %11391 = vmatprep.subr.bf16.mxu1 %v12784_v38  ;;  %11514 = vmatprep.subr.bf16.mxu0 %v12786_v1  ;;  %v12810_v36 = vcombine.high %v8826_v56, %v8830_v14  ;;  %v12809_v3 = vcombine.low %v8826_v56, %v8830_v14  ;;  %v8862_v38 = vld [vmem:[#allocation32 + $0x238] sm:$0xff]  ;;  %v12831_v1 = vcombine.low %v8849_v54, %v8853_v18 }
 0xd45   :  { %v12840_v40 = vcombine.high %v8857_v33, %v8861_v34  ;;  %v12842_v41 = vcombine.high %v8858_v37, %v8862_v38  ;;  %v12839_v13 = vcombine.low %v8857_v33, %v8861_v34  ;;  %v12841_v44 = vcombine.low %v8858_v37, %v8862_v38 }
 0xd46   :  { %11392 = vmatpush1.bf16.msra.mxu1 %v12783_v24  ;;  %11515 = vmatpush1.bf16.msra.mxu0 %v12785_v27  ;;  %v8865_v24 = vld [vmem:[#allocation32 + $0x250] sm:$0xff] }
 0xd47   :  { %11393 = vmatprep.subr.bf16.mxu1 %v12792_v31  ;;  %11516 = vmatprep.subr.bf16.mxu0 %v12794_v43  ;;  %v8869_v27 = vld [vmem:[#allocation32 + $0x270] sm:$0xff]  ;;  %v8866_v31 = vld [vmem:[#allocation32 + $0x258] sm:$0xff] }
 0xd48   :  { %v8870_v43 = vld [vmem:[#allocation32 + $0x278] sm:$0xff]  ;;  %v12848_v46 = vcombine.high %v8865_v24, %v8869_v27  ;;  %v12847_v51 = vcombine.low %v8865_v24, %v8869_v27 }
 0xd49   :  { %v12850_v48 = vcombine.high %v8866_v31, %v8870_v43  ;;  %v12849_v55 = vcombine.low %v8866_v31, %v8870_v43 }
 0xd4a   :  { %11394 = vmatpush1.bf16.msra.mxu1 %v12791_v47  ;;  %11517 = vmatpush1.bf16.msra.mxu0 %v12793_v10  ;;  %v8873_v47 = vld [vmem:[#allocation32 + $0x290] sm:$0xff] }
 0xd4b   :  { %11395 = vmatprep.subr.bf16.mxu1 %v12800_v50  ;;  %11518 = vmatprep.subr.bf16.mxu0 %v12802_v53  ;;  %v8877_v10 = vld [vmem:[#allocation32 + $0x2b0] sm:$0xff]  ;;  %v8874_v50 = vld [vmem:[#allocation32 + $0x298] sm:$0xff] }
 0xd4c   :  { %v8878_v53 = vld [vmem:[#allocation32 + $0x2b8] sm:$0xff]  ;;  %v12856_v56 = vcombine.high %v8873_v47, %v8877_v10  ;;  %v12855_v22 = vcombine.low %v8873_v47, %v8877_v10 }
 0xd4d   :  { %v12858_v14 = vcombine.high %v8874_v50, %v8878_v53  ;;  %v12857_v28 = vcombine.low %v8874_v50, %v8878_v53 }
 0xd4e   :  { %11396 = vmatpush1.bf16.msra.mxu1 %v12799_v25  ;;  %11519 = vmatpush1.bf16.msra.mxu0 %v12801_v61  ;;  %v8881_v25 = vld [vmem:[#allocation32 + $0x2d0] sm:$0xff] }
 0xd4f   :  { %11397 = vmatprep.subr.bf16.mxu1 %v12808_v4  ;;  %11520 = vmatprep.subr.bf16.mxu0 %v12810_v36  ;;  %v8885_v61 = vld [vmem:[#allocation32 + $0x2f0] sm:$0xff]  ;;  %v8882_v4 = vld [vmem:[#allocation32 + $0x2d8] sm:$0xff] }
 0xd50   :  { %v8886_v36 = vld [vmem:[#allocation32 + $0x2f8] sm:$0xff]  ;;  %v12864_v52 = vcombine.high %v8881_v25, %v8885_v61  ;;  %v12863_v12 = vcombine.low %v8881_v25, %v8885_v61 }
 0xd51   :  { %v12866_v20 = vcombine.high %v8882_v4, %v8886_v36  ;;  %v12865_v8 = vcombine.low %v8882_v4, %v8886_v36 }
 0xd52   :  { %11398 = vmatpush1.bf16.msra.mxu1 %v12807_v2  ;;  %11521 = vmatpush1.bf16.msra.mxu0 %v12809_v3  ;;  %v8889_v2 = vld [vmem:[#allocation32 + $0x310] sm:$0xff] }
 0xd53   :  { %11399 = vmatprep.subr.bf16.mxu1 %v12816_v45  ;;  %11522 = vmatprep.subr.bf16.mxu0 %v12818_v5  ;;  %v8893_v3 = vld [vmem:[#allocation32 + $0x330] sm:$0xff]  ;;  %v8890_v45 = vld [vmem:[#allocation32 + $0x318] sm:$0xff] }
 0xd54   :  { %v8894_v5 = vld [vmem:[#allocation32 + $0x338] sm:$0xff]  ;;  %v12872_v49 = vcombine.high %v8889_v2, %v8893_v3  ;;  %v12871_v54 = vcombine.low %v8889_v2, %v8893_v3 }
 0xd55   :  { %v12874_v9 = vcombine.high %v8890_v45, %v8894_v5  ;;  %v12873_v18 = vcombine.low %v8890_v45, %v8894_v5 }
 0xd56   :  { %11400 = vmatpush1.bf16.msra.mxu1 %v12815_v15  ;;  %11523 = vmatpush1.bf16.msra.mxu0 %v12817_v16  ;;  %v8897_v15 = vld [vmem:[#allocation32 + $0x350] sm:$0xff] }
 0xd57   :  { %11401 = vmatprep.subr.bf16.mxu1 %v12824_v26  ;;  %11524 = vmatprep.subr.bf16.mxu0 %v12826_v62  ;;  %v8901_v16 = vld [vmem:[#allocation32 + $0x370] sm:$0xff]  ;;  %v8898_v26 = vld [vmem:[#allocation32 + $0x358] sm:$0xff] }
 0xd58   :  { %v8902_v62 = vld [vmem:[#allocation32 + $0x378] sm:$0xff]  ;;  %v12880_v19 = vcombine.high %v8897_v15, %v8901_v16  ;;  %v12879_v33 = vcombine.low %v8897_v15, %v8901_v16 }
 0xd59   :  { %v12882_v21 = vcombine.high %v8898_v26, %v8902_v62  ;;  %v12881_v34 = vcombine.low %v8898_v26, %v8902_v62  ;;  %v8953_v62 = vld [vmem:[#allocation32 + $0x510] sm:$0xff] }
 0xd5a   :  { %11402 = vmatpush1.bf16.msra.mxu1 %v12823_v63  ;;  %11525 = vmatpush1.bf16.msra.mxu0 %v12825_v23  ;;  %v8905_v63 = vld [vmem:[#allocation32 + $0x390] sm:$0xff] }
 0xd5b   :  { %11403 = vmatprep.subr.bf16.mxu1 %v12832_v29  ;;  %11526 = vmatprep.subr.bf16.mxu0 %v12834_v30  ;;  %v8909_v23 = vld [vmem:[#allocation32 + $0x3b0] sm:$0xff]  ;;  %v8906_v29 = vld [vmem:[#allocation32 + $0x398] sm:$0xff] }
 0xd5c   :  { %v8910_v30 = vld [vmem:[#allocation32 + $0x3b8] sm:$0xff]  ;;  %v12888_v37 = vcombine.high %v8905_v63, %v8909_v23  ;;  %v12887_v24 = vcombine.low %v8905_v63, %v8909_v23 }
 0xd5d   :  { %v12890_v38 = vcombine.high %v8906_v29, %v8910_v30  ;;  %v12889_v27 = vcombine.low %v8906_v29, %v8910_v30  ;;  %v8961_v29 = vld [vmem:[#allocation32 + $0x550] sm:$0xff] }
 0xd5e   :  { %11404 = vmatpush1.bf16.msra.mxu1 %v12831_v1  ;;  %11527 = vmatpush1.bf16.msra.mxu0 %v12833_v39  ;;  %v8913_v1 = vld [vmem:[#allocation32 + $0x3d0] sm:$0xff] }
 0xd5f   :  { %11405 = vmatprep.subr.bf16.mxu1 %v12840_v40  ;;  %11528 = vmatprep.subr.bf16.mxu0 %v12842_v41  ;;  %v8917_v39 = vld [vmem:[#allocation32 + $0x3f0] sm:$0xff]  ;;  %v8914_v40 = vld [vmem:[#allocation32 + $0x3d8] sm:$0xff] }
 0xd60   :  { %v8918_v41 = vld [vmem:[#allocation32 + $0x3f8] sm:$0xff]  ;;  %v12896_v31 = vcombine.high %v8913_v1, %v8917_v39  ;;  %v12895_v47 = vcombine.low %v8913_v1, %v8917_v39  ;;  %v8965_v30 = vld [vmem:[#allocation32 + $0x570] sm:$0xff] }
 0xd61   :  { %v12898_v43 = vcombine.high %v8914_v40, %v8918_v41  ;;  %v12897_v10 = vcombine.low %v8914_v40, %v8918_v41  ;;  %v12944_v1 = vcombine.high %v8961_v29, %v8965_v30  ;;  %v8969_v40 = vld [vmem:[#allocation32 + $0x590] sm:$0xff] }
 0xd62   :  { %11406 = vmatpush1.bf16.msra.mxu1 %v12839_v13  ;;  %11529 = vmatpush1.bf16.msra.mxu0 %v12841_v44  ;;  %v8921_v13 = vld [vmem:[#allocation32 + $0x410] sm:$0xff] }
 0xd63   :  { %11407 = vmatprep.subr.bf16.mxu1 %v12848_v46  ;;  %11530 = vmatprep.subr.bf16.mxu0 %v12850_v48  ;;  %v8925_v44 = vld [vmem:[#allocation32 + $0x430] sm:$0xff]  ;;  %v8922_v46 = vld [vmem:[#allocation32 + $0x418] sm:$0xff] }
 0xd64   :  { %v8926_v48 = vld [vmem:[#allocation32 + $0x438] sm:$0xff]  ;;  %v12904_v50 = vcombine.high %v8921_v13, %v8925_v44  ;;  %v12903_v25 = vcombine.low %v8921_v13, %v8925_v44  ;;  %v8973_v41 = vld [vmem:[#allocation32 + $0x5b0] sm:$0xff] }
 0xd65   :  { %v12906_v53 = vcombine.high %v8922_v46, %v8926_v48  ;;  %v12905_v61 = vcombine.low %v8922_v46, %v8926_v48  ;;  %v12952_v13 = vcombine.high %v8969_v40, %v8973_v41  ;;  %v8977_v46 = vld [vmem:[#allocation32 + $0x5d0] sm:$0xff] }
 0xd66   :  { %11408 = vmatpush1.bf16.msra.mxu1 %v12847_v51  ;;  %11531 = vmatpush1.bf16.msra.mxu0 %v12849_v55  ;;  %v8929_v51 = vld [vmem:[#allocation32 + $0x450] sm:$0xff] }
 0xd67   :  { %11409 = vmatprep.subr.bf16.mxu1 %v12856_v56  ;;  %11532 = vmatprep.subr.bf16.mxu0 %v12858_v14  ;;  %v8933_v55 = vld [vmem:[#allocation32 + $0x470] sm:$0xff]  ;;  %v8930_v56 = vld [vmem:[#allocation32 + $0x458] sm:$0xff] }
 0xd68   :  { %v8934_v14 = vld [vmem:[#allocation32 + $0x478] sm:$0xff]  ;;  %v12912_v4 = vcombine.high %v8929_v51, %v8933_v55  ;;  %v12911_v2 = vcombine.low %v8929_v51, %v8933_v55  ;;  %v8981_v48 = vld [vmem:[#allocation32 + $0x5f0] sm:$0xff] }
 0xd69   :  { %v12914_v36 = vcombine.high %v8930_v56, %v8934_v14  ;;  %v12913_v3 = vcombine.low %v8930_v56, %v8934_v14  ;;  %v12960_v51 = vcombine.high %v8977_v46, %v8981_v48  ;;  %v8985_v56 = vld [vmem:[#allocation32 + $0x610] sm:$0xff] }
 0xd6a   :  { %11410 = vmatpush1.bf16.msra.mxu1 %v12855_v22  ;;  %11533 = vmatpush1.bf16.msra.mxu0 %v12857_v28  ;;  %v8937_v22 = vld [vmem:[#allocation32 + $0x490] sm:$0xff] }
 0xd6b   :  { %11411 = vmatprep.subr.bf16.mxu1 %v12864_v52  ;;  %11534 = vmatprep.subr.bf16.mxu0 %v12866_v20  ;;  %v8941_v28 = vld [vmem:[#allocation32 + $0x4b0] sm:$0xff]  ;;  %v8938_v52 = vld [vmem:[#allocation32 + $0x498] sm:$0xff] }
 0xd6c   :  { %v8942_v20 = vld [vmem:[#allocation32 + $0x4b8] sm:$0xff]  ;;  %v12920_v45 = vcombine.high %v8937_v22, %v8941_v28  ;;  %v8989_v14 = vld [vmem:[#allocation32 + $0x630] sm:$0xff] }
 0xd6d   :  { %v12922_v5 = vcombine.high %v8938_v52, %v8942_v20  ;;  %v12921_v15 = vcombine.low %v8938_v52, %v8942_v20  ;;  %v8993_v52 = vld [vmem:[#allocation32 + $0x650] sm:$0xff] }
 0xd6e   :  { %11412 = vmatpush1.bf16.msra.mxu1 %v12863_v12  ;;  %11535 = vmatpush1.bf16.msra.mxu0 %v12865_v8  ;;  %v8945_v12 = vld [vmem:[#allocation32 + $0x4d0] sm:$0xff] }
 0xd6f   :  { %11413 = vmatprep.subr.bf16.mxu1 %v12872_v49  ;;  %11536 = vmatprep.subr.bf16.mxu0 %v12874_v9  ;;  %v8949_v8 = vld [vmem:[#allocation32 + $0x4f0] sm:$0xff]  ;;  %v8946_v49 = vld [vmem:[#allocation32 + $0x4d8] sm:$0xff] }
 0xd70   :  { %v8950_v9 = vld [vmem:[#allocation32 + $0x4f8] sm:$0xff]  ;;  %v12928_v16 = vcombine.high %v8945_v12, %v8949_v8  ;;  %v8997_v20 = vld [vmem:[#allocation32 + $0x670] sm:$0xff] }
 0xd71   :  { %v12930_v26 = vcombine.high %v8946_v49, %v8950_v9 }
 0xd72   :  { %11414 = vmatpush1.bf16.msra.mxu1 %v12871_v54  ;;  %11537 = vmatpush1.bf16.msra.mxu0 %v12873_v18  ;;  %v8957_v54 = vld [vmem:[#allocation32 + $0x530] sm:$0xff]  ;;  %v8958_v18 = vld [vmem:[#allocation32 + $0x538] sm:$0xff] }
 0xd73   :  { %11415 = vmatprep.subr.bf16.mxu1 %v12880_v19  ;;  %11538 = vmatprep.subr.bf16.mxu0 %v12882_v21  ;;  %v12927_v19 = vcombine.low %v8945_v12, %v8949_v8  ;;  %v12929_v21 = vcombine.low %v8946_v49, %v8950_v9  ;;  %v12936_v63 = vcombine.high %v8953_v62, %v8957_v54  ;;  %v9001_v49 = vld [vmem:[#allocation32 + $0x690] sm:$0xff] }
 0xd74   :  { %v12976_v12 = vcombine.high %v8993_v52, %v8997_v20  ;;  %v9005_v9 = vld [vmem:[#allocation32 + $0x6b0] sm:$0xff] }
 0xd76   :  { %11416 = vmatpush1.bf16.msra.mxu1 %v12879_v33  ;;  %11539 = vmatpush1.bf16.msra.mxu0 %v12881_v34  ;;  %v8962_v33 = vld [vmem:[#allocation32 + $0x558] sm:$0xff] }
 0xd77   :  { %11417 = vmatprep.subr.bf16.mxu1 %v12888_v37  ;;  %11540 = vmatprep.subr.bf16.mxu0 %v12890_v38  ;;  %v8966_v34 = vld [vmem:[#allocation32 + $0x578] sm:$0xff]  ;;  %v12935_v37 = vcombine.low %v8953_v62, %v8957_v54  ;;  %v12984_v62 = vcombine.high %v9001_v49, %v9005_v9 }
 0xd78   :  { %v12946_v39 = vcombine.high %v8962_v33, %v8966_v34 }
 0xd7a   :  { %11418 = vmatpush1.bf16.msra.mxu1 %v12887_v24  ;;  %11541 = vmatpush1.bf16.msra.mxu0 %v12889_v27  ;;  %v8970_v24 = vld [vmem:[#allocation32 + $0x598] sm:$0xff] }
 0xd7b   :  { %11419 = vmatprep.subr.bf16.mxu1 %v12896_v31  ;;  %11542 = vmatprep.subr.bf16.mxu0 %v12898_v43  ;;  %v8974_v27 = vld [vmem:[#allocation32 + $0x5b8] sm:$0xff]  ;;  %v12943_v31 = vcombine.low %v8961_v29, %v8965_v30  ;;  %v12945_v43 = vcombine.low %v8962_v33, %v8966_v34  ;;  %v9017_v33 = vld [vmem:[#allocation32 + $0x710] sm:$0xff] }
 0xd7c   :  { %v12954_v44 = vcombine.high %v8970_v24, %v8974_v27  ;;  %v9021_v34 = vld [vmem:[#allocation32 + $0x730] sm:$0xff] }
 0xd7e   :  { %11420 = vmatpush1.bf16.msra.mxu1 %v12895_v47  ;;  %11543 = vmatpush1.bf16.msra.mxu0 %v12897_v10  ;;  %v8978_v47 = vld [vmem:[#allocation32 + $0x5d8] sm:$0xff] }
 0xd7f   :  { %11430 = vmatprep.subr.bf16.mxu1 %v12904_v50  ;;  %11553 = vmatprep.subr.bf16.mxu0 %v12906_v53  ;;  %v8982_v10 = vld [vmem:[#allocation32 + $0x5f8] sm:$0xff]  ;;  %v12951_v50 = vcombine.low %v8969_v40, %v8973_v41  ;;  %v12953_v53 = vcombine.low %v8970_v24, %v8974_v27  ;;  %v13000_v40 = vcombine.high %v9017_v33, %v9021_v34  ;;  %v9025_v24 = vld [vmem:[#allocation32 + $0x750] sm:$0xff] }
 0xd80   :  { %v12962_v55 = vcombine.high %v8978_v47, %v8982_v10  ;;  %v9029_v27 = vld [vmem:[#allocation32 + $0x770] sm:$0xff] }
 0xd81   :  { %11422 = vmatmul.mubr.bf16.vlgmr.msra.gmra.mrb[44].mxu1 %v16234_v0  ;;  %11545 = vmatmul.mubr.bf16.vlgmr.msra.gmra.mrb[40].mxu0 %v16234_v0  ;;  %v12919_v0 = vcombine.low %v8937_v22, %v8941_v28  ;;  %v12968_v22 = vcombine.high %v8985_v56, %v8989_v14 }
 0xd82   :  { %11431 = vmatpush1.bf16.msra.mxu1 %v12903_v25  ;;  %11462 = vmatprep.mubr.bf16.mxu1 %v16238_v32  ;;  %v8986_v25 = vld [vmem:[#allocation32 + $0x618] sm:$0xff] }
 0xd83   :  { %11554 = vmatpush1.bf16.msra.mxu0 %v12905_v61  ;;  %11585 = vmatprep.mubr.bf16.mxu0 %v16238_v32  ;;  %v8954_v32 = vld [vmem:[#allocation32 + $0x518] sm:$0xff] }
 0xd84   :  { %11432 = vmatprep.subr.bf16.mxu1 %v12912_v4  ;;  %11555 = vmatprep.subr.bf16.mxu0 %v12914_v36  ;;  %v12938_v23 = vcombine.high %v8954_v32, %v8958_v18  ;;  %v12937_v38 = vcombine.low %v8954_v32, %v8958_v18  ;;  %v8990_v61 = vld [vmem:[#allocation32 + $0x638] sm:$0xff]  ;;  %v12959_v4 = vcombine.low %v8977_v46, %v8981_v48  ;;  %v9009_v32 = vld [vmem:[#allocation32 + $0x6d0] sm:$0xff] }
 0xd85   :  { %v12961_v36 = vcombine.low %v8978_v47, %v8982_v10  ;;  %v12970_v28 = vcombine.high %v8986_v25, %v8990_v61  ;;  %v9013_v18 = vld [vmem:[#allocation32 + $0x6f0] sm:$0xff]  ;;  %v13008_v46 = vcombine.high %v9025_v24, %v9029_v27 }
 0xd86   :  { %11433 = vmatpush1.bf16.msra.mxu1 %v12911_v2  ;;  %v8994_v2 = vld [vmem:[#allocation32 + $0x658] sm:$0xff]  ;;  %v12992_v29 = vcombine.high %v9009_v32, %v9013_v18  ;;  %v9033_v47 = vld [vmem:[#allocation32 + $0x790] sm:$0xff] }
 0xd87   :  { %11556 = vmatpush1.bf16.msra.mxu0 %v12913_v3  ;;  %11434 = vmatprep.subr.bf16.mxu1 %v12920_v45  ;;  %v8998_v3 = vld [vmem:[#allocation32 + $0x678] sm:$0xff]  ;;  %v12967_v45 = vcombine.low %v8985_v56, %v8989_v14  ;;  %v9037_v10 = vld [vmem:[#allocation32 + $0x7b0] sm:$0xff] }
 0xd88   :  { %11557 = vmatprep.subr.bf16.mxu0 %v12922_v5  ;;  %v12969_v5 = vcombine.low %v8986_v25, %v8990_v61  ;;  %v12978_v8 = vcombine.high %v8994_v2, %v8998_v3  ;;  %v13016_v56 = vcombine.high %v9033_v47, %v9037_v10  ;;  %v9041_v25 = vld [vmem:[#allocation32 + $0x7d0] sm:$0xff] }
 0xd89   :  { %v9045_v61 = vld [vmem:[#allocation32 + $0x7f0] sm:$0xff] }
 0xd8a   :  { %11435 = vmatpush1.bf16.msra.mxu1 %v12919_v0  ;;  %v9002_v0 = vld [vmem:[#allocation32 + $0x698] sm:$0xff] }
 0xd8b   :  { %11558 = vmatpush1.bf16.msra.mxu0 %v12921_v15  ;;  %11436 = vmatprep.subr.bf16.mxu1 %v12928_v16  ;;  %v9006_v15 = vld [vmem:[#allocation32 + $0x6b8] sm:$0xff]  ;;  %v12975_v16 = vcombine.low %v8993_v52, %v8997_v20  ;;  %v13024_v52 = vcombine.high %v9041_v25, %v9045_v61 }
 0xd8c   :  { %11559 = vmatprep.subr.bf16.mxu0 %v12930_v26  ;;  %v12977_v26 = vcombine.low %v8994_v2, %v8998_v3  ;;  %v12986_v54 = vcombine.high %v9002_v0, %v9006_v15  ;;  %v9049_v2 = vld [vmem:[#allocation32 + $0x810] sm:$0xff] }
 0xd8d   :  { %v9053_v3 = vld [vmem:[#allocation32 + $0x830] sm:$0xff] }
 0xd8e   :  { %11437 = vmatpush1.bf16.msra.mxu1 %v12927_v19  ;;  %v9010_v19 = vld [vmem:[#allocation32 + $0x6d8] sm:$0xff] }
 0xd8f   :  { %11560 = vmatpush1.bf16.msra.mxu0 %v12929_v21  ;;  %11438 = vmatprep.subr.bf16.mxu1 %v12936_v63  ;;  %v9014_v21 = vld [vmem:[#allocation32 + $0x6f8] sm:$0xff]  ;;  %v12983_v63 = vcombine.low %v9001_v49, %v9005_v9  ;;  %v13032_v49 = vcombine.high %v9049_v2, %v9053_v3 }
 0xd90   :  { %11561 = vmatprep.subr.bf16.mxu0 %v12938_v23  ;;  %v12985_v23 = vcombine.low %v9002_v0, %v9006_v15  ;;  %v12994_v30 = vcombine.high %v9010_v19, %v9014_v21  ;;  %v9057_v0 = vld [vmem:[#allocation32 + $0x850] sm:$0xff] }
 0xd91   :  { %v9061_v15 = vld [vmem:[#allocation32 + $0x870] sm:$0xff] }
 0xd92   :  { %11439 = vmatpush1.bf16.msra.mxu1 %v12935_v37  ;;  %v9018_v37 = vld [vmem:[#allocation32 + $0x718] sm:$0xff] }
 0xd93   :  { %11562 = vmatpush1.bf16.msra.mxu0 %v12937_v38  ;;  %11440 = vmatprep.subr.bf16.mxu1 %v12944_v1  ;;  %v9022_v38 = vld [vmem:[#allocation32 + $0x738] sm:$0xff]  ;;  %v12991_v1 = vcombine.low %v9009_v32, %v9013_v18  ;;  %v13040_v32 = vcombine.high %v9057_v0, %v9061_v15  ;;  %v9065_v18 = vld [vmem:[#allocation32 + $0x890] sm:$0xff] }
 0xd94   :  { %11563 = vmatprep.subr.bf16.mxu0 %v12946_v39  ;;  %v12993_v39 = vcombine.low %v9010_v19, %v9014_v21  ;;  %v13002_v41 = vcombine.high %v9018_v37, %v9022_v38  ;;  %v9069_v19 = vld [vmem:[#allocation32 + $0x8b0] sm:$0xff] }
 0xd96   :  { %11441 = vmatpush1.bf16.msra.mxu1 %v12943_v31  ;;  %v9026_v31 = vld [vmem:[#allocation32 + $0x758] sm:$0xff] }
 0xd97   :  { %11564 = vmatpush1.bf16.msra.mxu0 %v12945_v43  ;;  %11442 = vmatprep.subr.bf16.mxu1 %v12952_v13  ;;  %v9030_v43 = vld [vmem:[#allocation32 + $0x778] sm:$0xff]  ;;  %v12999_v13 = vcombine.low %v9017_v33, %v9021_v34  ;;  %v13048_v33 = vcombine.high %v9065_v18, %v9069_v19 }
 0xd98   :  { %11565 = vmatprep.subr.bf16.mxu0 %v12954_v44  ;;  %v13001_v44 = vcombine.low %v9018_v37, %v9022_v38  ;;  %v13010_v48 = vcombine.high %v9026_v31, %v9030_v43  ;;  %v9073_v37 = vld [vmem:[#allocation32 + $0x8d0] sm:$0xff] }
 0xd99   :  { %v9077_v38 = vld [vmem:[#allocation32 + $0x8f0] sm:$0xff] }
 0xd9a   :  { %11443 = vmatpush1.bf16.msra.mxu1 %v12951_v50  ;;  %v9034_v50 = vld [vmem:[#allocation32 + $0x798] sm:$0xff] }
 0xd9b   :  { %11566 = vmatpush1.bf16.msra.mxu0 %v12953_v53  ;;  %11444 = vmatprep.subr.bf16.mxu1 %v12960_v51  ;;  %v9038_v53 = vld [vmem:[#allocation32 + $0x7b8] sm:$0xff]  ;;  %v13007_v51 = vcombine.low %v9025_v24, %v9029_v27  ;;  %v9081_v27 = vld [vmem:[#allocation32 + $0x910] sm:$0xff] }
 0xd9c   :  { %11567 = vmatprep.subr.bf16.mxu0 %v12962_v55  ;;  %v13009_v55 = vcombine.low %v9026_v31, %v9030_v43  ;;  %v13018_v14 = vcombine.high %v9034_v50, %v9038_v53  ;;  %v9085_v31 = vld [vmem:[#allocation32 + $0x930] sm:$0xff]  ;;  %v9082_v43 = vld [vmem:[#allocation32 + $0x918] sm:$0xff] }
 0xd9e   :  { %11445 = vmatpush1.bf16.msra.mxu1 %v12959_v4  ;;  %v9042_v4 = vld [vmem:[#allocation32 + $0x7d8] sm:$0xff] }
 0xd9f   :  { %11568 = vmatpush1.bf16.msra.mxu0 %v12961_v36  ;;  %11446 = vmatprep.subr.bf16.mxu1 %v12968_v22  ;;  %v9046_v36 = vld [vmem:[#allocation32 + $0x7f8] sm:$0xff]  ;;  %v13015_v22 = vcombine.low %v9033_v47, %v9037_v10  ;;  %v9089_v47 = vld [vmem:[#allocation32 + $0x950] sm:$0xff] }
 0xda0   :  { %11569 = vmatprep.subr.bf16.mxu0 %v12970_v28  ;;  %v13017_v28 = vcombine.low %v9034_v50, %v9038_v53  ;;  %v13026_v20 = vcombine.high %v9042_v4, %v9046_v36  ;;  %v9093_v10 = vld [vmem:[#allocation32 + $0x970] sm:$0xff]  ;;  %v9090_v50 = vld [vmem:[#allocation32 + $0x958] sm:$0xff] }
 0xda1   :  { %v9094_v53 = vld [vmem:[#allocation32 + $0x978] sm:$0xff] }
 0xda2   :  { %11447 = vmatpush1.bf16.msra.mxu1 %v12967_v45  ;;  %v9050_v45 = vld [vmem:[#allocation32 + $0x818] sm:$0xff] }
 0xda3   :  { %11570 = vmatpush1.bf16.msra.mxu0 %v12969_v5  ;;  %11448 = vmatprep.subr.bf16.mxu1 %v12976_v12  ;;  %v9054_v5 = vld [vmem:[#allocation32 + $0x838] sm:$0xff]  ;;  %v13023_v12 = vcombine.low %v9041_v25, %v9045_v61  ;;  %v9097_v25 = vld [vmem:[#allocation32 + $0x990] sm:$0xff] }
 0xda4   :  { %11571 = vmatprep.subr.bf16.mxu0 %v12978_v8  ;;  %v13025_v8 = vcombine.low %v9042_v4, %v9046_v36  ;;  %v13034_v9 = vcombine.high %v9050_v45, %v9054_v5  ;;  %v9101_v61 = vld [vmem:[#allocation32 + $0x9b0] sm:$0xff]  ;;  %v9098_v4 = vld [vmem:[#allocation32 + $0x998] sm:$0xff] }
 0xda5   :  { %v9102_v36 = vld [vmem:[#allocation32 + $0x9b8] sm:$0xff] }
 0xda6   :  { %11449 = vmatpush1.bf16.msra.mxu1 %v12975_v16  ;;  %v13031_v16 = vcombine.low %v9049_v2, %v9053_v3  ;;  %v9105_v2 = vld [vmem:[#allocation32 + $0x9d0] sm:$0xff] }
 0xda7   :  { %11572 = vmatpush1.bf16.msra.mxu0 %v12977_v26  ;;  %11450 = vmatprep.subr.bf16.mxu1 %v12984_v62  ;;  %v9058_v26 = vld [vmem:[#allocation32 + $0x858] sm:$0xff]  ;;  %v9109_v3 = vld [vmem:[#allocation32 + $0x9f0] sm:$0xff] }
 0xda8   :  { %11573 = vmatprep.subr.bf16.mxu0 %v12986_v54  ;;  %v9062_v62 = vld [vmem:[#allocation32 + $0x878] sm:$0xff]  ;;  %v13033_v54 = vcombine.low %v9050_v45, %v9054_v5 }
 0xda9   :  { %v13042_v21 = vcombine.high %v9058_v26, %v9062_v62  ;;  %v9106_v45 = vld [vmem:[#allocation32 + $0x9d8] sm:$0xff] }
 0xdaa   :  { %11451 = vmatpush1.bf16.msra.mxu1 %v12983_v63  ;;  %v9066_v63 = vld [vmem:[#allocation32 + $0x898] sm:$0xff] }
 0xdab   :  { %11574 = vmatpush1.bf16.msra.mxu0 %v12985_v23  ;;  %11452 = vmatprep.subr.bf16.mxu1 %v12992_v29  ;;  %v9070_v23 = vld [vmem:[#allocation32 + $0x8b8] sm:$0xff]  ;;  %v13039_v29 = vcombine.low %v9057_v0, %v9061_v15  ;;  %v9113_v0 = vld [vmem:[#allocation32 + $0xa10] sm:$0xff] }
 0xdac   :  { %11575 = vmatprep.subr.bf16.mxu0 %v12994_v30  ;;  %v13041_v30 = vcombine.low %v9058_v26, %v9062_v62  ;;  %v13050_v34 = vcombine.high %v9066_v63, %v9070_v23  ;;  %v9110_v5 = vld [vmem:[#allocation32 + $0x9f8] sm:$0xff]  ;;  %v9117_v15 = vld [vmem:[#allocation32 + $0xa30] sm:$0xff]  ;;  %v13087_v62 = vcombine.low %v9105_v2, %v9109_v3 }
 0xdad   :  { %v9118_v26 = vld [vmem:[#allocation32 + $0xa38] sm:$0xff] }
 0xdae   :  { %11453 = vmatpush1.bf16.msra.mxu1 %v12991_v1  ;;  %v9074_v1 = vld [vmem:[#allocation32 + $0x8d8] sm:$0xff] }
 0xdaf   :  { %11576 = vmatpush1.bf16.msra.mxu0 %v12993_v39  ;;  %11454 = vmatprep.subr.bf16.mxu1 %v13000_v40  ;;  %v9078_v39 = vld [vmem:[#allocation32 + $0x8f8] sm:$0xff]  ;;  %v13047_v40 = vcombine.low %v9065_v18, %v9069_v19  ;;  %v9121_v19 = vld [vmem:[#allocation32 + $0xa50] sm:$0xff] }
 0xdb0   :  { %11577 = vmatprep.subr.bf16.mxu0 %v13002_v41  ;;  %v13056_v41 = vcombine.high %v9073_v37, %v9077_v38  ;;  %v13058_v24 = vcombine.high %v9074_v1, %v9078_v39 }
 0xdb2   :  { %11455 = vmatpush1.bf16.msra.mxu1 %v12999_v13  ;;  %v9086_v13 = vld [vmem:[#allocation32 + $0x938] sm:$0xff] }
 0xdb3   :  { %11578 = vmatpush1.bf16.msra.mxu0 %v13001_v44  ;;  %11456 = vmatprep.subr.bf16.mxu1 %v13008_v46  ;;  %v13057_v44 = vcombine.low %v9074_v1, %v9078_v39  ;;  %v13064_v46 = vcombine.high %v9081_v27, %v9085_v31  ;;  %v9130_v1 = vld [vmem:[#allocation32 + $0xa98] sm:$0xff] }
 0xdb4   :  { %11579 = vmatprep.subr.bf16.mxu0 %v13010_v48  ;;  %v13066_v48 = vcombine.high %v9082_v43, %v9086_v13  ;;  %v9134_v39 = vld [vmem:[#allocation32 + $0xab8] sm:$0xff] }
 0xdb6   :  { %11457 = vmatpush1.bf16.msra.mxu1 %v13007_v51  ;;  %v13063_v51 = vcombine.low %v9081_v27, %v9085_v31  ;;  %v9137_v27 = vld [vmem:[#allocation32 + $0xad0] sm:$0xff] }
 0xdb7   :  { %11580 = vmatpush1.bf16.msra.mxu0 %v13009_v55  ;;  %11458 = vmatprep.subr.bf16.mxu1 %v13016_v56  ;;  %v13065_v55 = vcombine.low %v9082_v43, %v9086_v13  ;;  %v13072_v56 = vcombine.high %v9089_v47, %v9093_v10  ;;  %v9141_v31 = vld [vmem:[#allocation32 + $0xaf0] sm:$0xff]  ;;  %v9138_v43 = vld [vmem:[#allocation32 + $0xad8] sm:$0xff] }
 0xdb8   :  { %11581 = vmatprep.subr.bf16.mxu0 %v13018_v14  ;;  %v13074_v14 = vcombine.high %v9090_v50, %v9094_v53  ;;  %v9142_v13 = vld [vmem:[#allocation32 + $0xaf8] sm:$0xff] }
 0xdba   :  { %11459 = vmatpush1.bf16.msra.mxu1 %v13015_v22  ;;  %v13071_v22 = vcombine.low %v9089_v47, %v9093_v10  ;;  %v9145_v47 = vld [vmem:[#allocation32 + $0xb10] sm:$0xff] }
 0xdbb   :  { %11582 = vmatpush1.bf16.msra.mxu0 %v13017_v28  ;;  %11460 = vmatprep.subr.bf16.mxu1 %v13024_v52  ;;  %v13073_v28 = vcombine.low %v9090_v50, %v9094_v53  ;;  %v13080_v52 = vcombine.high %v9097_v25, %v9101_v61  ;;  %v9149_v10 = vld [vmem:[#allocation32 + $0xb30] sm:$0xff]  ;;  %v9146_v50 = vld [vmem:[#allocation32 + $0xb18] sm:$0xff] }
 0xdbc   :  { %11583 = vmatprep.subr.bf16.mxu0 %v13026_v20  ;;  %v13082_v20 = vcombine.high %v9098_v4, %v9102_v36  ;;  %v9150_v53 = vld [vmem:[#allocation32 + $0xb38] sm:$0xff] }
 0xdbe   :  { %11461 = vmatpush1.bf16.msra.mxu1 %v13023_v12  ;;  %v13079_v12 = vcombine.low %v9097_v25, %v9101_v61  ;;  %v9153_v25 = vld [vmem:[#allocation32 + $0xb50] sm:$0xff] }
 0xdbf   :  { %11584 = vmatpush1.bf16.msra.mxu0 %v13025_v8  ;;  %11471 = vmatprep.subr.bf16.mxu1 %v13032_v49  ;;  %v13081_v8 = vcombine.low %v9098_v4, %v9102_v36  ;;  %v13088_v49 = vcombine.high %v9105_v2, %v9109_v3  ;;  %v9157_v61 = vld [vmem:[#allocation32 + $0xb70] sm:$0xff]  ;;  %v9154_v4 = vld [vmem:[#allocation32 + $0xb58] sm:$0xff] }
 0xdc0   :  { %11594 = vmatprep.subr.bf16.mxu0 %v13034_v9  ;;  %v13090_v9 = vcombine.high %v9106_v45, %v9110_v5  ;;  %v9158_v36 = vld [vmem:[#allocation32 + $0xb78] sm:$0xff]  ;;  %v9161_v2 = vld [vmem:[#allocation32 + $0xb90] sm:$0xff] }
 0xdc1   :  { %11463 = vmatmul.mubr.bf16.vlgmr.msra.gmra.mrb[44].mxu1 %v16250_v42  ;;  %v9165_v3 = vld [vmem:[#allocation32 + $0xbb0] sm:$0xff] }
 0xdc2   :  { %11586 = vmatmul.mubr.bf16.vlgmr.msra.gmra.mrb[40].mxu0 %v16250_v42  ;;  %11472 = vmatpush1.bf16.msra.mxu1 %v13031_v16  ;;  %v13049_v42 = vcombine.low %v9066_v63, %v9070_v23  ;;  %v9114_v16 = vld [vmem:[#allocation32 + $0xa18] sm:$0xff] }
 0xdc3   :  { %11503 = vmatprep.mubr.bf16.mxu1 %v16258_v59  ;;  %11595 = vmatpush1.bf16.msra.mxu0 %v13033_v54  ;;  %v13089_v54 = vcombine.low %v9106_v45, %v9110_v5  ;;  %v13098_v18 = vcombine.high %v9114_v16, %v9118_v26  ;;  %v9122_v63 = vld [vmem:[#allocation32 + $0xa58] sm:$0xff] }
 0xdc4   :  { %11626 = vmatprep.mubr.bf16.mxu0 %v16258_v59  ;;  %11473 = vmatprep.subr.bf16.mxu1 %v13040_v32  ;;  %v13055_v59 = vcombine.low %v9073_v37, %v9077_v38  ;;  %v13096_v32 = vcombine.high %v9113_v0, %v9117_v15  ;;  %v9126_v23 = vld [vmem:[#allocation32 + $0xa78] sm:$0xff]  ;;  %v9129_v37 = vld [vmem:[#allocation32 + $0xa90] sm:$0xff] }
 0xdc5   :  { %11596 = vmatprep.subr.bf16.mxu0 %v13042_v21  ;;  %v9125_v21 = vld [vmem:[#allocation32 + $0xa70] sm:$0xff]  ;;  %v9162_v45 = vld [vmem:[#allocation32 + $0xb98] sm:$0xff] }
 0xdc6   :  { %11474 = vmatpush1.bf16.msra.mxu1 %v13039_v29  ;;  %v13095_v29 = vcombine.low %v9113_v0, %v9117_v15  ;;  %v9133_v38 = vld [vmem:[#allocation32 + $0xab0] sm:$0xff]  ;;  %v9166_v5 = vld [vmem:[#allocation32 + $0xbb8] sm:$0xff] }
 0xdc7   :  { %11597 = vmatpush1.bf16.msra.mxu0 %v13041_v30  ;;  %11475 = vmatprep.subr.bf16.mxu1 %v13048_v33  ;;  %v13097_v30 = vcombine.low %v9114_v16, %v9118_v26  ;;  %v13104_v33 = vcombine.high %v9121_v19, %v9125_v21  ;;  %v9169_v0 = vld [vmem:[#allocation32 + $0xbd0] sm:$0xff]  ;;  %v9170_v16 = vld [vmem:[#allocation32 + $0xbd8] sm:$0xff] }
 0xdc8   :  { %11598 = vmatprep.subr.bf16.mxu0 %v13050_v34  ;;  %v13106_v34 = vcombine.high %v9122_v63, %v9126_v23  ;;  %v9173_v15 = vld [vmem:[#allocation32 + $0xbf0] sm:$0xff]  ;;  %v9174_v26 = vld [vmem:[#allocation32 + $0xbf8] sm:$0xff] }
 0xdca   :  { %11476 = vmatpush1.bf16.msra.mxu1 %v13047_v40  ;;  %v13103_v40 = vcombine.low %v9121_v19, %v9125_v21  ;;  %v13151_v19 = vcombine.low %v9169_v0, %v9173_v15  ;;  %v13153_v21 = vcombine.low %v9170_v16, %v9174_v26 }
 0xdcb   :  { %11599 = vmatpush1.bf16.msra.mxu0 %v13049_v42  ;;  %11477 = vmatprep.subr.bf16.mxu1 %v13056_v41  ;;  %v13105_v42 = vcombine.low %v9122_v63, %v9126_v23  ;;  %v13112_v41 = vcombine.high %v9129_v37, %v9133_v38  ;;  %v9175_v63 = vld [vmem:[#allocation34] sm:$0xff] }
 0xdcc   :  { %11600 = vmatprep.subr.bf16.mxu0 %v13058_v24  ;;  %v13114_v24 = vcombine.high %v9130_v1, %v9134_v39  ;;  %v9186_v23 = vrot.slane %v9175_v63, %v16091_v60 }
 0xdce   :  { %11478 = vmatpush1.bf16.msra.mxu1 %v13055_v59  ;;  %v13111_v59 = vcombine.low %v9129_v37, %v9133_v38 }
 0xdcf   :  { %11601 = vmatpush1.bf16.msra.mxu0 %v13057_v44  ;;  %11479 = vmatprep.subr.bf16.mxu1 %v13064_v46  ;;  %v13113_v44 = vcombine.low %v9130_v1, %v9134_v39  ;;  %v13120_v46 = vcombine.high %v9137_v27, %v9141_v31 }
 0xdd0   :  { %11602 = vmatprep.subr.bf16.mxu0 %v13066_v48  ;;  %v13122_v48 = vcombine.high %v9138_v43, %v9142_v13 }
 0xdd2   :  { %11480 = vmatpush1.bf16.msra.mxu1 %v13063_v51  ;;  %v13119_v51 = vcombine.low %v9137_v27, %v9141_v31 }
 0xdd3   :  { %11603 = vmatpush1.bf16.msra.mxu0 %v13065_v55  ;;  %11481 = vmatprep.subr.bf16.mxu1 %v13072_v56  ;;  %v13121_v55 = vcombine.low %v9138_v43, %v9142_v13  ;;  %v13128_v56 = vcombine.high %v9145_v47, %v9149_v10 }
 0xdd4   :  { %11604 = vmatprep.subr.bf16.mxu0 %v13074_v14  ;;  %v13130_v14 = vcombine.high %v9146_v50, %v9150_v53 }
 0xdd6   :  { %11482 = vmatpush1.bf16.msra.mxu1 %v13071_v22  ;;  %v13127_v22 = vcombine.low %v9145_v47, %v9149_v10 }
 0xdd7   :  { %11605 = vmatpush1.bf16.msra.mxu0 %v13073_v28  ;;  %11483 = vmatprep.subr.bf16.mxu1 %v13080_v52  ;;  %v13129_v28 = vcombine.low %v9146_v50, %v9150_v53  ;;  %v13136_v52 = vcombine.high %v9153_v25, %v9157_v61 }
 0xdd8   :  { %11606 = vmatprep.subr.bf16.mxu0 %v13082_v20  ;;  %v13138_v20 = vcombine.high %v9154_v4, %v9158_v36 }
 0xdda   :  { %11484 = vmatpush1.bf16.msra.mxu1 %v13079_v12  ;;  %v13135_v12 = vcombine.low %v9153_v25, %v9157_v61 }
 0xddb   :  { %11607 = vmatpush1.bf16.msra.mxu0 %v13081_v8  ;;  %11485 = vmatprep.subr.bf16.mxu1 %v13088_v49  ;;  %v13137_v8 = vcombine.low %v9154_v4, %v9158_v36  ;;  %v13144_v49 = vcombine.high %v9161_v2, %v9165_v3 }
 0xddc   :  { %11608 = vmatprep.subr.bf16.mxu0 %v13090_v9  ;;  %v13146_v9 = vcombine.high %v9162_v45, %v9166_v5 }
 0xdde   :  { %11486 = vmatpush1.bf16.msra.mxu1 %v13087_v62  ;;  %v13143_v62 = vcombine.low %v9161_v2, %v9165_v3 }
 0xddf   :  { %11609 = vmatpush1.bf16.msra.mxu0 %v13089_v54  ;;  %11487 = vmatprep.subr.bf16.mxu1 %v13096_v32  ;;  %v13145_v54 = vcombine.low %v9162_v45, %v9166_v5  ;;  %v13152_v32 = vcombine.high %v9169_v0, %v9173_v15 }
 0xde0   :  { %11610 = vmatprep.subr.bf16.mxu0 %v13098_v18  ;;  %v13154_v18 = vcombine.high %v9170_v16, %v9174_v26 }
 0xde2   :  { %11488 = vmatpush1.bf16.msra.mxu1 %v13095_v29  ;;  %v9194_v29 = vrot.slane %v9175_v63, %v16110_v6 }
 0xde3   :  { %11611 = vmatpush1.bf16.msra.mxu0 %v13097_v30  ;;  %11489 = vmatprep.subr.bf16.mxu1 %v13104_v33  ;;  %v9190_v30 = vrot.slane %v9175_v63, %v16094_v17  ;;  %v9198_v33 = vrot.slane %v9175_v63, %v16113_v7 }
 0xde4   :  { %11612 = vmatprep.subr.bf16.mxu0 %v13106_v34 }
 0xde6   :  { %11490 = vmatpush1.bf16.msra.mxu1 %v13103_v40 }
 0xde7   :  { %11613 = vmatpush1.bf16.msra.mxu0 %v13105_v42  ;;  %11491 = vmatprep.subr.bf16.mxu1 %v13112_v41 }
 0xde8   :  { %11614 = vmatprep.subr.bf16.mxu0 %v13114_v24 }
 0xdea   :  { %11492 = vmatpush1.bf16.msra.mxu1 %v13111_v59 }
 0xdeb   :  { %11615 = vmatpush1.bf16.msra.mxu0 %v13113_v44  ;;  %11493 = vmatprep.subr.bf16.mxu1 %v13120_v46 }
 0xdec   :  { %11616 = vmatprep.subr.bf16.mxu0 %v13122_v48 }
 0xdee   :  { %11494 = vmatpush1.bf16.msra.mxu1 %v13119_v51 }
 0xdef   :  { %11617 = vmatpush1.bf16.msra.mxu0 %v13121_v55  ;;  %11495 = vmatprep.subr.bf16.mxu1 %v13128_v56 }
 0xdf0   :  { %11618 = vmatprep.subr.bf16.mxu0 %v13130_v14 }
 0xdf2   :  { %11496 = vmatpush1.bf16.msra.mxu1 %v13127_v22 }
 0xdf3   :  { %11619 = vmatpush1.bf16.msra.mxu0 %v13129_v28  ;;  %11497 = vmatprep.subr.bf16.mxu1 %v13136_v52 }
 0xdf4   :  { %11620 = vmatprep.subr.bf16.mxu0 %v13138_v20 }
 0xdf6   :  { %11498 = vmatpush1.bf16.msra.mxu1 %v13135_v12 }
 0xdf7   :  { %11621 = vmatpush1.bf16.msra.mxu0 %v13137_v8  ;;  %11499 = vmatprep.subr.bf16.mxu1 %v13144_v49 }
 0xdf8   :  { %11622 = vmatprep.subr.bf16.mxu0 %v13146_v9 }
 0xdfa   :  { %11500 = vmatpush1.bf16.msra.mxu1 %v13143_v62 }
 0xdfb   :  { %11623 = vmatpush1.bf16.msra.mxu0 %v13145_v54  ;;  %11501 = vmatprep.subr.bf16.mxu1 %v13152_v32 }
 0xdfc   :  { %11624 = vmatprep.subr.bf16.mxu0 %v13154_v18 }
 0xdfe   :  { %11502 = vmatpush1.bf16.msra.mxu1 %v13151_v19 }
 0xdff   :  { %11625 = vmatpush1.bf16.msra.mxu0 %v13153_v21 }
 0xe01   :  { %11504 = vmatmul.mubr.bf16.vlgmr.msra.gmra.mrb[44].mxu1 %v16260_v35 }
 0xe02   :  { %11627 = vmatmul.mubr.bf16.vlgmr.msra.gmra.mrb[40].mxu0 %v16260_v35 }
 0xe14   :  { %v11259_v34 = vpop.f32.mrb[40].mxu1  ;;  %v11382_v37 = vpop.f32.mrb[36].mxu0 }
 0xe15   :  { %v13269_v38 = vadd.f32 %v11259_v34, %v9186_v23  ;;  %v13271_v1 = vadd.f32 %v11382_v37, %v9194_v29  ;;  %v11261_v39 = vpop.f32.mrb[41].mxu1  ;;  %v11384_v40 = vpop.f32.mrb[37].mxu0 }
 0xe16   :  { %v13270_v42 = vadd.f32 %v11261_v39, %v9190_v30  ;;  %v13272_v41 = vadd.f32 %v11384_v40, %v9198_v33  ;;  %v11263_v24 = vpop.f32.mrb[42].mxu1  ;;  %v11386_v27 = vpop.f32.mrb[38].mxu0 }
 0xe17   :  { %11635 = vst [vmem:[#allocation35] sm:$0xff] %v13269_v38  ;;  %11637 = vst [vmem:[#allocation35 + $0x10] sm:$0xff] %v13271_v1  ;;  %v11264_v35 = vpop.f32.mrb[43].mxu1  ;;  %v11387_v60 = vpop.f32.mrb[39].mxu0 }
 0xe18   :  { %11636 = vst [vmem:[#allocation35 + $0x8] sm:$0xff] %v13270_v42  ;;  %11638 = vst [vmem:[#allocation35 + $0x18] sm:$0xff] %v13272_v41 }
 0xe19   :  { %15557 = shalt.err (!%p15554_p4)
}
 0xe1a   :  { %s16370_s27 = sld [smem:[#allocation59_spill]] }
 0xe20   :  { %s15558_s14 = scalar_lea.hbm %s16370_s27, 128 }
 0xe21   :  { %p15559_p5 = scmp.ne.s32.totalorder %s16370_s27, %s15558_s14  ;;  %p15562_p6 = scmp.lt.u32.totalorder %s15558_s14, %s16370_s27 }
 0xe23   :  { %p15564_p7 = pnand %p15562_p6, %p15559_p5 }
 0xe25   :  { %15567 = shalt.err (!%p15564_p7)
}
 0xe26   :  { %11662 = dma.vmem_to_hbm [thread:$0]  %s11660_s29, 128, %s16370_s27, [#allocation37]   ;;  %v9209_v17 = vsub.s32 6, %v16086_v57  ;;  %v9213_v6 = vsub.s32 7, %v16086_v57  ;;  %v9202_v7 = vrot.slane %v9175_v63, %v16128_v11  ;;  %v9206_v43 = vrot.slane %v9175_v63, %v16131_v58 }
 0xe27   :  { %s15651_s28 = smov [#allocation35]  }
 0xe28   :  { %v9210_v31 = vrot.slane %v9175_v63, %v9209_v17  ;;  %v9214_v13 = vrot.slane %v9175_v63, %v9213_v6  ;;  %s11649_s17 = sshll.u32 %s15651_s28, 4  ;;  %s11650_s17 = int_to_ptr.vmem [resolvable:$true] %s11649_s17 }
 0xe29   :  { %s15568_s4 = scalar_lea.vmem %s11650_s17, 1024  ;;  %p15573_p9 = scmp.lt.s32.totalorder %s11650_s17, %s11650_s17 }
 0xe2a   :  { %p15569_p8 = scmp.ne.s32.totalorder %s11650_s17, %s15568_s4  ;;  %p15574_p10 = scmp.lt.s32.totalorder %s15568_s4, %s15568_s4 }
 0xe2c   :  { %p15575_p11 = por %p15574_p10, %p15573_p9 }
 0xe2e   :  { %p15576_p12 = pnand %p15575_p11, %p15569_p8 }
 0xed4   :  { %v11505_v59 = vpop.f32.mrb[44].mxu1 }
 0xed5   :  { %v13273_v44 = vadd.f32 %v11505_v59, %v9202_v7  ;;  %v11628_v46 = vpop.f32.mrb[40].mxu0  ;;  %v11507_v48 = vpop.f32.mrb[45].mxu1 }
 0xed6   :  { %v13275_v47 = vadd.f32 %v11628_v46, %v9210_v31  ;;  %v13274_v10 = vadd.f32 %v11507_v48, %v9206_v43  ;;  %v11630_v50 = vpop.f32.mrb[41].mxu0  ;;  %v11509_v53 = vpop.f32.mrb[46].mxu1 }
 0xed7   :  { %11639 = vst [vmem:[#allocation35 + $0x20] sm:$0xff] %v13273_v44  ;;  %v13276_v51 = vadd.f32 %v11630_v50, %v9214_v13  ;;  %v11632_v55 = vpop.f32.mrb[42].mxu0  ;;  %v11510_v57 = vpop.f32.mrb[47].mxu1 }
 0xed8   :  { %11641 = vst [vmem:[#allocation35 + $0x30] sm:$0xff] %v13275_v47  ;;  %11640 = vst [vmem:[#allocation35 + $0x28] sm:$0xff] %v13274_v10  ;;  %v11633_v11 = vpop.f32.mrb[43].mxu0 }
 0xed9   :  { %11642 = vst [vmem:[#allocation35 + $0x38] sm:$0xff] %v13276_v51 }
 0xeda   :  { %15579 = shalt.err (!%p15576_p12)
}
 0xedb   :  { %s16371_s3 = sld [smem:[#allocation58_spill]] }
 0xee1   :  { %s15580_s1 = scalar_lea.hbm %s16371_s3, 1024 }
 0xee2   :  { %p15581_p13 = scmp.ne.s32.totalorder %s16371_s3, %s15580_s1  ;;  %p15584_p0 = scmp.lt.u32.totalorder %s15580_s1, %s16371_s3 }
 0xee4   :  { %p15586_p1 = pnand %p15584_p0, %p15581_p13 }
 0xee6   :  { %15589 = shalt.err (!%p15586_p1)
}
 0xee7   :  { %11652 = dma.vmem_to_hbm [thread:$0]  %s11650_s17, 1024, %s16371_s3, [#allocation4]  }
 0xee8   :  { %15612 = dma.done.wait [#allocation4], 1024  }
 0xee9   :  { %15613 = vsyncadd [#allocation4], 4294966272 }
 0xeea   :  { %15614 = dma.done.wait [#allocation37], 128  }
 0xeeb   :  { %15615 = vsyncadd [#allocation37], 4294967168 }
 0xeec   :  { %11669 = vsyncpa [#allocation3], 1 }
 0xeed   :  { %11670 = vsyncpa [#allocation6], 1 }
 0xeee   :  { %11671 = vsyncpa [#allocation9], 1 }
 0xeef   :  { %11672 = vsyncpa [#allocation12], 1 }
 0xef0   :  { %11673 = vsyncpa [#allocation15], 1 }
 0xef1   :  { %11674 = vsyncpa [#allocation18], 1 }
 0xef2   :  { %11675 = vsyncpa [#allocation21], 1 }
 0xef3   :  { %11676 = vsyncpa [#allocation24], 1 }
 0xef4   :  { %11677 = vsyncpa [#allocation27], 1 }
 0xef5   :  { %11678 = vsyncpa [#allocation30], 1 }
 0xef6   :  { %11679 = vsyncpa [#allocation33], 1 }
 0xef7   :  { %11680 = vsyncpa [#allocation4], 1 }
 0xef8   :  { %11681 = vsyncpa [#allocation37], 1 }

</bundles_post_ra>
